<compile_context>
chip_gen: v7x
topology: tpu7x:2x2x1
jax: 0.10.0
libtpu: 0.0.40
codegen_flags: <defaults>
</compile_context>

<pallas_src>
import jax
import jax.numpy as jnp
from jax.experimental import pallas as pl
from jax.experimental.pallas import tpu as pltpu


# ----------------------------------------------------------------------------
# Fused kernel body
# ----------------------------------------------------------------------------
def _fused_bgsub_kernel(H, W, C2):
    """Builds the fused kernel body for one (H, W) image; C2 = 2 * num_preproc_channels."""
    HW = H * W
    Hd, Wd = H - 2, W - 2                          # dense (stride-1, valid) compress size
    Hc, Wc = (H - 3) // 2 + 1, (W - 3) // 2 + 1    # stride-2 compress output size
    TAPS = [(dy, dx) for dy in range(3) for dx in range(3)]

    def kernel(x_ref, wpre_ref, bpre_ref, wmix_ref, bmix_ref, wcmp_ref,
               bcmp_ref, wout_ref, bout_ref,                       # inputs
               o_ref,                                              # output (1,2,2,Hc+1,Wc+1)
               xpad_ref, slab_pre_ref, actpad_ref, slab_mix_ref, cpad_ref):  # VMEM scratch
        f32 = jnp.float32
        bf16 = jnp.bfloat16

        # ---- Stage 1+2+3: chan/bg preprocs fused into ONE Cin=2 -> C2 conv (pad=1) + ReLU.
        #      im2col -> single (HW, 18) x (18, C2) bf16 matmul, f32 accumulation.
        xpad_ref[...] = jnp.zeros_like(xpad_ref)          # in-kernel halo padding
        xpad_ref[1:H + 1, 1:W + 1, :] = x_ref[0]
        for t, (dy, dx) in enumerate(TAPS):
            patch = xpad_ref[dy:dy + H, dx:dx + W, :]     # (H, W, 2) f32
            slab_pre_ref[:, 2 * t:2 * t + 2] = patch.reshape(HW, 2).astype(bf16)
        pre = jnp.dot(slab_pre_ref[...], wpre_ref[...], preferred_element_type=f32)
        combined = jnp.maximum(pre + bpre_ref[...], 0.0)  # (HW, C2) == cat([chan_pp, bg_pp])

        # ---- Stage 4: mix conv (C2 -> C2, pad=1) + ReLU. im2col -> one K=9*C2 bf16 matmul.
        actpad_ref[...] = jnp.zeros_like(actpad_ref)
        actpad_ref[1:H + 1, 1:W + 1, :] = combined.reshape(H, W, C2)
        for t, (dy, dx) in enumerate(TAPS):
            slab_mix_ref[:, C2 * t:C2 * (t + 1)] = (
                actpad_ref[dy:dy + H, dx:dx + W, :].reshape(HW, C2).astype(bf16))
        mixed = jnp.dot(slab_mix_ref[...], wmix_ref[...], preferred_element_type=f32)
        mixed = jnp.maximum(mixed + bmix_ref[...], 0.0)   # (HW, C2)
        mixed3 = mixed.reshape(H, W, C2)

        # ---- Stage 5: compress conv (C2 -> 1, k=3, stride=2, pad=0) + ReLU.
        #      Cout=1 => VPU multiply + lane-reduce; stride-2 subsample via exact 0/1
        #      selection matmuls so everything stays on well-supported ops in VMEM.
        dense = jnp.zeros((Hd, Wd), f32)
        for t, (dy, dx) in enumerate(TAPS):
            patch = mixed3[dy:dy + Hd, dx:dx + Wd, :]     # (Hd, Wd, C2)
            dense = dense + jnp.sum(patch * wcmp_ref[t], axis=-1)
        ri = jax.lax.broadcasted_iota(jnp.int32, (Hc, Hd), 0)
        rj = jax.lax.broadcasted_iota(jnp.int32, (Hc, Hd), 1)
        sel_r = (rj == 2 * ri).astype(f32)                # picks rows 2a
        ci = jax.lax.broadcasted_iota(jnp.int32, (Wd, Wc), 0)
        cj = jax.lax.broadcasted_iota(jnp.int32, (Wd, Wc), 1)
        sel_c = (ci == 2 * cj).astype(f32)                # picks cols 2b
        comp = jnp.dot(jnp.dot(sel_r, dense, preferred_element_type=f32), sel_c,
                       preferred_element_type=f32)        # (Hc, Wc)
        comp = jnp.maximum(comp + bcmp_ref[0], 0.0)

        # ---- Stage 6: ConvTranspose2d(1,1,3,stride=2,pad=0,output_padding=1) + ReLU as 4
        #      output phases: out[2a+p, 2b+q] = sum_{m,n: 2m+p'=2a+p} comp[m,n] * w[p',q'].
        cpad_ref[...] = jnp.zeros_like(cpad_ref)
        cpad_ref[1:Hc + 1, 1:Wc + 1] = comp
        x00 = cpad_ref[1:Hc + 2, 1:Wc + 2]   # comp[a,   b  ]  (0 outside range)
        xm0 = cpad_ref[0:Hc + 1, 1:Wc + 2]   # comp[a-1, b  ]
        x0m = cpad_ref[1:Hc + 2, 0:Wc + 1]   # comp[a,   b-1]
        xmm = cpad_ref[0:Hc + 1, 0:Wc + 1]   # comp[a-1, b-1]
        wo = wout_ref                        # (3, 3) scalar taps in SMEM
        bo = bout_ref[0]
        o_ref[0, 0, 0] = jnp.maximum(
            x00 * wo[0, 0] + xm0 * wo[2, 0] + x0m * wo[0, 2] + xmm * wo[2, 2] + bo, 0.0)
        o_ref[0, 0, 1] = jnp.maximum(x00 * wo[0, 1] + xm0 * wo[2, 1] + bo, 0.0)
        o_ref[0, 1, 0] = jnp.maximum(x00 * wo[1, 0] + x0m * wo[1, 2] + bo, 0.0)
        o_ref[0, 1, 1] = jnp.maximum(x00 * wo[1, 1] + bo, 0.0)

    return kernel, Hc, Wc


def fused_forward(x, w_pre_2d, b_pre, w_mix_2d, b_mix, w_cmp, b_cmp, w_out, b_out):
    """x: (N, H, W, 2) f32 with channel 0 = chan_img, channel 1 = bg_img.
    Returns phases (N, 2, 2, Hc+1, Wc+1): phases[n, p, q, a, b] = out[n, 2a+p, 2b+q]."""
    N, H, W, _ = x.shape
    C2 = w_mix_2d.shape[1]
    HW = H * W
    kernel, Hc, Wc = _fused_bgsub_kernel(H, W, C2)
    return pl.pallas_call(
        kernel,
        out_shape=jax.ShapeDtypeStruct((N, 2, 2, Hc + 1, Wc + 1), jnp.float32),
        grid=(N,),                                                  # one image per grid step
        in_specs=[
            pl.BlockSpec((1, H, W, 2), lambda n: (n, 0, 0, 0)),     # stacked chan/bg image
            pl.BlockSpec((9 * 2, C2), lambda n: (0, 0)),            # fused preproc W (bf16)
            pl.BlockSpec((1, C2), lambda n: (0, 0)),                # fused preproc bias
            pl.BlockSpec((9 * C2, C2), lambda n: (0, 0)),           # mix W (bf16, im2col)
            pl.BlockSpec((1, C2), lambda n: (0, 0)),                # mix bias
            pl.BlockSpec((9, 1, 1, C2), lambda n: (0, 0, 0, 0)),    # compress W (f32, VPU)
            pl.BlockSpec(memory_space=pltpu.MemorySpace.SMEM),      # compress bias (1,)
            pl.BlockSpec(memory_space=pltpu.MemorySpace.SMEM),      # conv-transpose W (3,3)
            pl.BlockSpec(memory_space=pltpu.MemorySpace.SMEM),      # conv-transpose bias (1,)
        ],
        out_specs=pl.BlockSpec((1, 2, 2, Hc + 1, Wc + 1), lambda n: (n, 0, 0, 0, 0)),
        scratch_shapes=[
            pltpu.VMEM((H + 2, W + 2, 2), jnp.float32),     # padded 2-channel input
            pltpu.VMEM((HW, 9 * 2), jnp.bfloat16),          # preproc im2col slab (K=18)
            pltpu.VMEM((H + 2, W + 2, C2), jnp.float32),    # padded combined activations
            pltpu.VMEM((HW, 9 * C2), jnp.bfloat16),         # mix im2col slab (K=9*C2)
            pltpu.VMEM((Hc + 2, Wc + 2), jnp.float32),      # padded compressed map
        ],
        compiler_params=pltpu.CompilerParams(
            dimension_semantics=("parallel",),              # batch shards across TensorCores
            vmem_limit_bytes=64 * 1024 * 1024),
    )(x, w_pre_2d, b_pre, w_mix_2d, b_mix, w_cmp, b_cmp, w_out, b_out)


# ----------------------------------------------------------------------------
# The module
# ----------------------------------------------------------------------------
class BGSubAndDenoiserPallas:
    def __init__(self, num_preproc_channels=32, key=jax.random.PRNGKey(0)):
        C = num_preproc_channels
        C2 = 2 * C
        k_chan, k_bg, k_mix, k_cmp, k_out = jax.random.split(key, 5)

        def kaiming(k, cin, cout):
            # kaiming_normal_(fan_in, relu): std = sqrt(2 / (cin * 3 * 3))
            std = (2.0 / (cin * 9)) ** 0.5
            return std * jax.random.normal(k, (3, 3, cin, cout), jnp.float32)

        w_chan = kaiming(k_chan, 1, C)
        w_bg = kaiming(k_bg, 1, C)
        b_chan = jnp.full((C,), 0.1, jnp.float32)
        b_bg = jnp.full((C,), 0.1, jnp.float32)
        # Fuse the two Cin=1 preproc convs into one block-diagonal Cin=2 -> C2 conv whose
        # output equals torch.cat([chan_pp, bg_pp], dim=1).
        w_pre = jnp.zeros((3, 3, 2, C2), jnp.float32)
        w_pre = w_pre.at[:, :, 0, :C].set(w_chan[:, :, 0, :])
        w_pre = w_pre.at[:, :, 1, C:].set(w_bg[:, :, 0, :])
        b_pre = jnp.concatenate([b_chan, b_bg])

        w_mix = kaiming(k_mix, C2, C2)
        b_mix = jnp.full((C2,), 0.1, jnp.float32)
        w_cmp = kaiming(k_cmp, C2, 1)                     # (3, 3, C2, 1)
        b_cmp = jnp.full((1,), 0.1, jnp.float32)
        # ConvTranspose2d(1,1,3): synthetic deterministic init (the original module's
        # init_weights does not touch ConvTranspose2d). Used UNFLIPPED, per the transposed-
        # conv definition out[2m+p, 2n+q] += x[m, n] * w[p, q].
        w_out = 0.3 * jax.random.normal(k_out, (3, 3), jnp.float32)
        b_out = jnp.full((1,), 0.1, jnp.float32)

        # Kernel-side layouts: im2col 2-D weights stored bf16 (MXU operands, f32 accumulate).
        self.w_pre_2d = w_pre.reshape(9 * 2, C2).astype(jnp.bfloat16)
        self.b_pre = b_pre.reshape(1, C2)
        self.w_mix_2d = w_mix.reshape(9 * C2, C2).astype(jnp.bfloat16)
        self.b_mix = b_mix.reshape(1, C2)
        self.w_cmp = w_cmp.reshape(9, 1, 1, C2)           # per-tap channel vectors (f32)
        self.b_cmp = b_cmp
        self.w_out = w_out
        self.b_out = b_out

        # f32 HWIO copies for the pure-JAX reference (correctness check only).
        self._w_pre_f32, self._b_pre_vec = w_pre, b_pre
        self._w_mix_f32, self._b_mix_vec = w_mix, b_mix
        self._w_cmp_f32, self._b_cmp_vec = w_cmp, b_cmp

    def __call__(self, chan_img, bg_img):
        chan = chan_img[:, 0].astype(jnp.float32)         # NCHW (N,1,H,W) -> (N,H,W)
        bg = bg_img[:, 0].astype(jnp.float32)
        x = jnp.stack([chan, bg], axis=-1)                # (N, H, W, 2)
        phases = fused_forward(x, self.w_pre_2d, self.b_pre, self.w_mix_2d, self.b_mix,
                               self.w_cmp, self.b_cmp, self.w_out, self.b_out)
        n, _, _, ha, wa = phases.shape
        # Tiny 2x2 phase interleave (layout glue): out[n, 2a+p, 2b+q] = phases[n, p, q, a, b].
        out = jnp.transpose(phases, (0, 3, 1, 4, 2)).reshape(n, 2 * ha, 2 * wa)
        return out[:, None, :, :]                         # NCHW (N, 1, H_out, W_out)

    def reference_forward(self, chan_img, bg_img):
        """Pure-JAX (lax.conv) reference with identical weights; used for validation."""
        dn = ("NHWC", "HWIO", "NHWC")

        def conv_relu(v, w, b, stride, pad):
            y = jax.lax.conv_general_dilated(
                v, w, (stride, stride), [(pad, pad), (pad, pad)], dimension_numbers=dn)
            return jnp.maximum(y + b, 0.0)

        chan = chan_img[:, 0].astype(jnp.float32)
        bg = bg_img[:, 0].astype(jnp.float32)
        x = jnp.stack([chan, bg], axis=-1)
        combined = conv_relu(x, self._w_pre_f32, self._b_pre_vec, 1, 1)
        mixed = conv_relu(combined, self._w_mix_f32, self._b_mix_vec, 1, 1)
        comp = conv_relu(mixed, self._w_cmp_f32, self._b_cmp_vec, 2, 0)
        # ConvTranspose(k=3, s=2, p=0, out_pad=1) == zero-dilate + pad(2,3) + flipped kernel.
        wt = self.w_out[::-1, ::-1].reshape(3, 3, 1, 1)
        y = jax.lax.conv_general_dilated(
            comp, wt, (1, 1), [(2, 3), (2, 3)], lhs_dilation=(2, 2), dimension_numbers=dn)
        out = jnp.maximum(y + self.b_out[0], 0.0)
        return jnp.transpose(out, (0, 3, 1, 2))           # (N, 1, H_out, W_out)


if __name__ == "__main__":
    key = jax.random.PRNGKey(0)
    k_chan, k_bg, k_net = jax.random.split(key, 3)
    N, H, W = 2, 16, 16
    chan_img = jax.random.uniform(k_chan, (N, 1, H, W), jnp.float32)
    bg_img = jax.random.uniform(k_bg, (N, 1, H, W), jnp.float32)

    net = BGSubAndDenoiserPallas(num_preproc_channels=32, key=k_net)
    out = net(chan_img, bg_img)
    jax.block_until_ready(out)

    assert out.shape == (N, 1, H, W), out.shape
    assert bool(jnp.all(jnp.isfinite(out)))
    assert bool(jnp.all(out >= 0.0))

    ref = net.reference_forward(chan_img, bg_img)
    max_err = float(jnp.max(jnp.abs(out - ref)))
    assert bool(jnp.allclose(out, ref, rtol=5e-2, atol=5e-2)), f"max abs err {max_err}"
    print("KERNEL_OK")
</pallas_src>

<mosaic_0001>
module attributes {stable_mosaic.version = 11 : i64} {
  func.func @kernel(%arg0: i32, %arg1: memref<1x16x16x2xf32, #tpu.memory_space<vmem>>, %arg2: memref<18x64xbf16, #tpu.memory_space<vmem>>, %arg3: memref<1x64xf32, #tpu.memory_space<vmem>>, %arg4: memref<576x64xbf16, #tpu.memory_space<vmem>>, %arg5: memref<1x64xf32, #tpu.memory_space<vmem>>, %arg6: memref<9x1x1x64xf32, #tpu.memory_space<vmem>>, %arg7: memref<1xf32, #tpu.memory_space<smem>>, %arg8: memref<3x3xf32, #tpu.memory_space<smem>>, %arg9: memref<1xf32, #tpu.memory_space<smem>>, %arg10: memref<1x2x2x8x8xf32, #tpu.memory_space<vmem>>, %arg11: memref<18x18x2xf32, #tpu.memory_space<vmem>>, %arg12: memref<256x18xbf16, #tpu.memory_space<vmem>>, %arg13: memref<18x18x64xf32, #tpu.memory_space<vmem>>, %arg14: memref<256x576xbf16, #tpu.memory_space<vmem>>, %arg15: memref<9x9xf32, #tpu.memory_space<vmem>>) attributes {dimension_semantics = [#tpu.dimension_semantics<parallel>], iteration_bounds = array<i64: 2>, scalar_prefetch = 0 : i64, scratch_operands = 5 : i64, tpu.core_type = #tpu.core_type<tc>, window_params = [{transform_indices = @transform_0, window_bounds = array<i64: 1, 16, 16, 2>}, {pipeline_mode = #tpu.pipeline_mode<synchronous>, transform_indices = @transform_1, window_bounds = array<i64: 18, 64>}, {pipeline_mode = #tpu.pipeline_mode<synchronous>, transform_indices = @transform_2, window_bounds = array<i64: 1, 64>}, {pipeline_mode = #tpu.pipeline_mode<synchronous>, transform_indices = @transform_3, window_bounds = array<i64: 576, 64>}, {pipeline_mode = #tpu.pipeline_mode<synchronous>, transform_indices = @transform_4, window_bounds = array<i64: 1, 64>}, {pipeline_mode = #tpu.pipeline_mode<synchronous>, transform_indices = @transform_5, window_bounds = array<i64: 9, 1, 1, 64>}, {transform_indices = @transform_6, window_bounds = array<i64: 1>}, {transform_indices = @transform_7, window_bounds = array<i64: 3, 3>}, {transform_indices = @transform_8, window_bounds = array<i64: 1>}, {transform_indices = @transform_9, window_bounds = array<i64: 1, 2, 2, 8, 8>}]} {
    %cst = arith.constant 0.000000e+00 : f32
    %0 = vector.broadcast %cst : f32 to vector<18x18x2xf32>
    %c0 = arith.constant 0 : index
    %c0_0 = arith.constant 0 : index
    %c0_1 = arith.constant 0 : index
    %1 = vector.load %arg11[%c0, %c0_0, %c0_1] : memref<18x18x2xf32, #tpu.memory_space<vmem>>, vector<18x18x2xf32>
    tpu.vector_store %arg11[%c0, %c0_0, %c0_1], %0 {strides = array<i32>} : memref<18x18x2xf32, #tpu.memory_space<vmem>>, vector<18x18x2xf32>,
    %c0_2 = arith.constant 0 : index
    %c0_3 = arith.constant 0 : index
    %c0_4 = arith.constant 0 : index
    %c0_5 = arith.constant 0 : index
    %2 = vector.load %arg1[%c0_2, %c0_3, %c0_4, %c0_5] : memref<1x16x16x2xf32, #tpu.memory_space<vmem>>, vector<1x16x16x2xf32>
    %3 = vector.shape_cast %2 : vector<1x16x16x2xf32> to vector<16x16x2xf32>
    %c1 = arith.constant 1 : index
    %c1_6 = arith.constant 1 : index
    %c0_7 = arith.constant 0 : index
    %4 = vector.load %arg11[%c1, %c1_6, %c0_7] : memref<18x18x2xf32, #tpu.memory_space<vmem>>, vector<16x16x2xf32>
    tpu.vector_store %arg11[%c1, %c1_6, %c0_7], %3 {strides = array<i32>} : memref<18x18x2xf32, #tpu.memory_space<vmem>>, vector<16x16x2xf32>,
    %c0_8 = arith.constant 0 : index
    %c0_9 = arith.constant 0 : index
    %c0_10 = arith.constant 0 : index
    %5 = vector.load %arg11[%c0_8, %c0_9, %c0_10] : memref<18x18x2xf32, #tpu.memory_space<vmem>>, vector<16x16x2xf32>
    %6 = vector.shape_cast %5 : vector<16x16x2xf32> to vector<256x2xf32>
    %7 = arith.truncf %6 : vector<256x2xf32> to vector<256x2xbf16>
    %c0_11 = arith.constant 0 : index
    %c0_12 = arith.constant 0 : index
    %8 = vector.load %arg12[%c0_11, %c0_12] : memref<256x18xbf16, #tpu.memory_space<vmem>>, vector<256x2xbf16>
    tpu.vector_store %arg12[%c0_11, %c0_12], %7 {strides = array<i32>} : memref<256x18xbf16, #tpu.memory_space<vmem>>, vector<256x2xbf16>,
    %c0_13 = arith.constant 0 : index
    %c1_14 = arith.constant 1 : index
    %c0_15 = arith.constant 0 : index
    %9 = vector.load %arg11[%c0_13, %c1_14, %c0_15] : memref<18x18x2xf32, #tpu.memory_space<vmem>>, vector<16x16x2xf32>
    %10 = vector.shape_cast %9 : vector<16x16x2xf32> to vector<256x2xf32>
    %11 = arith.truncf %10 : vector<256x2xf32> to vector<256x2xbf16>
    %c0_16 = arith.constant 0 : index
    %c2 = arith.constant 2 : index
    %12 = vector.load %arg12[%c0_16, %c2] : memref<256x18xbf16, #tpu.memory_space<vmem>>, vector<256x2xbf16>
    tpu.vector_store %arg12[%c0_16, %c2], %11 {strides = array<i32>} : memref<256x18xbf16, #tpu.memory_space<vmem>>, vector<256x2xbf16>,
    %c0_17 = arith.constant 0 : index
    %c2_18 = arith.constant 2 : index
    %c0_19 = arith.constant 0 : index
    %13 = vector.load %arg11[%c0_17, %c2_18, %c0_19] : memref<18x18x2xf32, #tpu.memory_space<vmem>>, vector<16x16x2xf32>
    %14 = vector.shape_cast %13 : vector<16x16x2xf32> to vector<256x2xf32>
    %15 = arith.truncf %14 : vector<256x2xf32> to vector<256x2xbf16>
    %c0_20 = arith.constant 0 : index
    %c4 = arith.constant 4 : index
    %16 = vector.load %arg12[%c0_20, %c4] : memref<256x18xbf16, #tpu.memory_space<vmem>>, vector<256x2xbf16>
    tpu.vector_store %arg12[%c0_20, %c4], %15 {strides = array<i32>} : memref<256x18xbf16, #tpu.memory_space<vmem>>, vector<256x2xbf16>,
    %c1_21 = arith.constant 1 : index
    %c0_22 = arith.constant 0 : index
    %c0_23 = arith.constant 0 : index
    %17 = vector.load %arg11[%c1_21, %c0_22, %c0_23] : memref<18x18x2xf32, #tpu.memory_space<vmem>>, vector<16x16x2xf32>
    %18 = vector.shape_cast %17 : vector<16x16x2xf32> to vector<256x2xf32>
    %19 = arith.truncf %18 : vector<256x2xf32> to vector<256x2xbf16>
    %c0_24 = arith.constant 0 : index
    %c6 = arith.constant 6 : index
    %20 = vector.load %arg12[%c0_24, %c6] : memref<256x18xbf16, #tpu.memory_space<vmem>>, vector<256x2xbf16>
    tpu.vector_store %arg12[%c0_24, %c6], %19 {strides = array<i32>} : memref<256x18xbf16, #tpu.memory_space<vmem>>, vector<256x2xbf16>,
    %c1_25 = arith.constant 1 : index
    %c1_26 = arith.constant 1 : index
    %c0_27 = arith.constant 0 : index
    %21 = vector.load %arg11[%c1_25, %c1_26, %c0_27] : memref<18x18x2xf32, #tpu.memory_space<vmem>>, vector<16x16x2xf32>
    %22 = vector.shape_cast %21 : vector<16x16x2xf32> to vector<256x2xf32>
    %23 = arith.truncf %22 : vector<256x2xf32> to vector<256x2xbf16>
    %c0_28 = arith.constant 0 : index
    %c8 = arith.constant 8 : index
    %24 = vector.load %arg12[%c0_28, %c8] : memref<256x18xbf16, #tpu.memory_space<vmem>>, vector<256x2xbf16>
    tpu.vector_store %arg12[%c0_28, %c8], %23 {strides = array<i32>} : memref<256x18xbf16, #tpu.memory_space<vmem>>, vector<256x2xbf16>,
    %c1_29 = arith.constant 1 : index
    %c2_30 = arith.constant 2 : index
    %c0_31 = arith.constant 0 : index
    %25 = vector.load %arg11[%c1_29, %c2_30, %c0_31] : memref<18x18x2xf32, #tpu.memory_space<vmem>>, vector<16x16x2xf32>
    %26 = vector.shape_cast %25 : vector<16x16x2xf32> to vector<256x2xf32>
    %27 = arith.truncf %26 : vector<256x2xf32> to vector<256x2xbf16>
    %c0_32 = arith.constant 0 : index
    %c10 = arith.constant 10 : index
    %28 = vector.load %arg12[%c0_32, %c10] : memref<256x18xbf16, #tpu.memory_space<vmem>>, vector<256x2xbf16>
    tpu.vector_store %arg12[%c0_32, %c10], %27 {strides = array<i32>} : memref<256x18xbf16, #tpu.memory_space<vmem>>, vector<256x2xbf16>,
    %c2_33 = arith.constant 2 : index
    %c0_34 = arith.constant 0 : index
    %c0_35 = arith.constant 0 : index
    %29 = vector.load %arg11[%c2_33, %c0_34, %c0_35] : memref<18x18x2xf32, #tpu.memory_space<vmem>>, vector<16x16x2xf32>
    %30 = vector.shape_cast %29 : vector<16x16x2xf32> to vector<256x2xf32>
    %31 = arith.truncf %30 : vector<256x2xf32> to vector<256x2xbf16>
    %c0_36 = arith.constant 0 : index
    %c12 = arith.constant 12 : index
    %32 = vector.load %arg12[%c0_36, %c12] : memref<256x18xbf16, #tpu.memory_space<vmem>>, vector<256x2xbf16>
    tpu.vector_store %arg12[%c0_36, %c12], %31 {strides = array<i32>} : memref<256x18xbf16, #tpu.memory_space<vmem>>, vector<256x2xbf16>,
    %c2_37 = arith.constant 2 : index
    %c1_38 = arith.constant 1 : index
    %c0_39 = arith.constant 0 : index
    %33 = vector.load %arg11[%c2_37, %c1_38, %c0_39] : memref<18x18x2xf32, #tpu.memory_space<vmem>>, vector<16x16x2xf32>
    %34 = vector.shape_cast %33 : vector<16x16x2xf32> to vector<256x2xf32>
    %35 = arith.truncf %34 : vector<256x2xf32> to vector<256x2xbf16>
    %c0_40 = arith.constant 0 : index
    %c14 = arith.constant 14 : index
    %36 = vector.load %arg12[%c0_40, %c14] : memref<256x18xbf16, #tpu.memory_space<vmem>>, vector<256x2xbf16>
    tpu.vector_store %arg12[%c0_40, %c14], %35 {strides = array<i32>} : memref<256x18xbf16, #tpu.memory_space<vmem>>, vector<256x2xbf16>,
    %c2_41 = arith.constant 2 : index
    %c2_42 = arith.constant 2 : index
    %c0_43 = arith.constant 0 : index
    %37 = vector.load %arg11[%c2_41, %c2_42, %c0_43] : memref<18x18x2xf32, #tpu.memory_space<vmem>>, vector<16x16x2xf32>
    %38 = vector.shape_cast %37 : vector<16x16x2xf32> to vector<256x2xf32>
    %39 = arith.truncf %38 : vector<256x2xf32> to vector<256x2xbf16>
    %c0_44 = arith.constant 0 : index
    %c16 = arith.constant 16 : index
    %40 = vector.load %arg12[%c0_44, %c16] : memref<256x18xbf16, #tpu.memory_space<vmem>>, vector<256x2xbf16>
    tpu.vector_store %arg12[%c0_44, %c16], %39 {strides = array<i32>} : memref<256x18xbf16, #tpu.memory_space<vmem>>, vector<256x2xbf16>,
    %c0_45 = arith.constant 0 : index
    %c0_46 = arith.constant 0 : index
    %41 = vector.load %arg12[%c0_45, %c0_46] : memref<256x18xbf16, #tpu.memory_space<vmem>>, vector<256x18xbf16>
    %c0_47 = arith.constant 0 : index
    %c0_48 = arith.constant 0 : index
    %42 = vector.load %arg2[%c0_47, %c0_48] : memref<18x64xbf16, #tpu.memory_space<vmem>>, vector<18x64xbf16>
    %cst_49 = arith.constant dense<0.000000e+00> : vector<256x64xf32>
    %43 = tpu.matmul %41, %42, %cst_49 {dimension_numbers = #tpu.dot_dimension_numbers<[1], [0], [0], [1], [0, 0, 1, 1], [], []>} : vector<256x18xbf16>, vector<18x64xbf16>, vector<256x64xf32> -> vector<256x64xf32>
    %c0_50 = arith.constant 0 : index
    %c0_51 = arith.constant 0 : index
    %44 = vector.load %arg3[%c0_50, %c0_51] : memref<1x64xf32, #tpu.memory_space<vmem>>, vector<1x64xf32>
    %45 = vector.broadcast %44 : vector<1x64xf32> to vector<256x64xf32>
    %46 = arith.addf %43, %45 : vector<256x64xf32>
    %cst_52 = arith.constant 0.000000e+00 : f32
    %47 = vector.broadcast %cst_52 : f32 to vector<256x64xf32>
    %48 = arith.maximumf %46, %47 : vector<256x64xf32>
    %cst_53 = arith.constant 0.000000e+00 : f32
    %49 = vector.broadcast %cst_53 : f32 to vector<18x18x64xf32>
    %c0_54 = arith.constant 0 : index
    %c0_55 = arith.constant 0 : index
    %c0_56 = arith.constant 0 : index
    %50 = vector.load %arg13[%c0_54, %c0_55, %c0_56] : memref<18x18x64xf32, #tpu.memory_space<vmem>>, vector<18x18x64xf32>
    tpu.vector_store %arg13[%c0_54, %c0_55, %c0_56], %49 {strides = array<i32>} : memref<18x18x64xf32, #tpu.memory_space<vmem>>, vector<18x18x64xf32>,
    %51 = vector.shape_cast %48 : vector<256x64xf32> to vector<16x16x64xf32>
    %c1_57 = arith.constant 1 : index
    %c1_58 = arith.constant 1 : index
    %c0_59 = arith.constant 0 : index
    %52 = vector.load %arg13[%c1_57, %c1_58, %c0_59] : memref<18x18x64xf32, #tpu.memory_space<vmem>>, vector<16x16x64xf32>
    tpu.vector_store %arg13[%c1_57, %c1_58, %c0_59], %51 {strides = array<i32>} : memref<18x18x64xf32, #tpu.memory_space<vmem>>, vector<16x16x64xf32>,
    %c0_60 = arith.constant 0 : index
    %c0_61 = arith.constant 0 : index
    %c0_62 = arith.constant 0 : index
    %53 = vector.load %arg13[%c0_60, %c0_61, %c0_62] : memref<18x18x64xf32, #tpu.memory_space<vmem>>, vector<16x16x64xf32>
    %54 = vector.shape_cast %53 : vector<16x16x64xf32> to vector<256x64xf32>
    %55 = arith.truncf %54 : vector<256x64xf32> to vector<256x64xbf16>
    %c0_63 = arith.constant 0 : index
    %c0_64 = arith.constant 0 : index
    %56 = vector.load %arg14[%c0_63, %c0_64] : memref<256x576xbf16, #tpu.memory_space<vmem>>, vector<256x64xbf16>
    tpu.vector_store %arg14[%c0_63, %c0_64], %55 {strides = array<i32>} : memref<256x576xbf16, #tpu.memory_space<vmem>>, vector<256x64xbf16>,
    %c0_65 = arith.constant 0 : index
    %c1_66 = arith.constant 1 : index
    %c0_67 = arith.constant 0 : index
    %57 = vector.load %arg13[%c0_65, %c1_66, %c0_67] : memref<18x18x64xf32, #tpu.memory_space<vmem>>, vector<16x16x64xf32>
    %58 = vector.shape_cast %57 : vector<16x16x64xf32> to vector<256x64xf32>
    %59 = arith.truncf %58 : vector<256x64xf32> to vector<256x64xbf16>
    %c0_68 = arith.constant 0 : index
    %c64 = arith.constant 64 : index
    %60 = vector.load %arg14[%c0_68, %c64] : memref<256x576xbf16, #tpu.memory_space<vmem>>, vector<256x64xbf16>
    tpu.vector_store %arg14[%c0_68, %c64], %59 {strides = array<i32>} : memref<256x576xbf16, #tpu.memory_space<vmem>>, vector<256x64xbf16>,
    %c0_69 = arith.constant 0 : index
    %c2_70 = arith.constant 2 : index
    %c0_71 = arith.constant 0 : index
    %61 = vector.load %arg13[%c0_69, %c2_70, %c0_71] : memref<18x18x64xf32, #tpu.memory_space<vmem>>, vector<16x16x64xf32>
    %62 = vector.shape_cast %61 : vector<16x16x64xf32> to vector<256x64xf32>
    %63 = arith.truncf %62 : vector<256x64xf32> to vector<256x64xbf16>
    %c0_72 = arith.constant 0 : index
    %c128 = arith.constant 128 : index
    %64 = vector.load %arg14[%c0_72, %c128] : memref<256x576xbf16, #tpu.memory_space<vmem>>, vector<256x64xbf16>
    tpu.vector_store %arg14[%c0_72, %c128], %63 {strides = array<i32>} : memref<256x576xbf16, #tpu.memory_space<vmem>>, vector<256x64xbf16>,
    %c1_73 = arith.constant 1 : index
    %c0_74 = arith.constant 0 : index
    %c0_75 = arith.constant 0 : index
    %65 = vector.load %arg13[%c1_73, %c0_74, %c0_75] : memref<18x18x64xf32, #tpu.memory_space<vmem>>, vector<16x16x64xf32>
    %66 = vector.shape_cast %65 : vector<16x16x64xf32> to vector<256x64xf32>
    %67 = arith.truncf %66 : vector<256x64xf32> to vector<256x64xbf16>
    %c0_76 = arith.constant 0 : index
    %c192 = arith.constant 192 : index
    %68 = vector.load %arg14[%c0_76, %c192] : memref<256x576xbf16, #tpu.memory_space<vmem>>, vector<256x64xbf16>
    tpu.vector_store %arg14[%c0_76, %c192], %67 {strides = array<i32>} : memref<256x576xbf16, #tpu.memory_space<vmem>>, vector<256x64xbf16>,
    %c1_77 = arith.constant 1 : index
    %c1_78 = arith.constant 1 : index
    %c0_79 = arith.constant 0 : index
    %69 = vector.load %arg13[%c1_77, %c1_78, %c0_79] : memref<18x18x64xf32, #tpu.memory_space<vmem>>, vector<16x16x64xf32>
    %70 = vector.shape_cast %69 : vector<16x16x64xf32> to vector<256x64xf32>
    %71 = arith.truncf %70 : vector<256x64xf32> to vector<256x64xbf16>
    %c0_80 = arith.constant 0 : index
    %c256 = arith.constant 256 : index
    %72 = vector.load %arg14[%c0_80, %c256] : memref<256x576xbf16, #tpu.memory_space<vmem>>, vector<256x64xbf16>
    tpu.vector_store %arg14[%c0_80, %c256], %71 {strides = array<i32>} : memref<256x576xbf16, #tpu.memory_space<vmem>>, vector<256x64xbf16>,
    %c1_81 = arith.constant 1 : index
    %c2_82 = arith.constant 2 : index
    %c0_83 = arith.constant 0 : index
    %73 = vector.load %arg13[%c1_81, %c2_82, %c0_83] : memref<18x18x64xf32, #tpu.memory_space<vmem>>, vector<16x16x64xf32>
    %74 = vector.shape_cast %73 : vector<16x16x64xf32> to vector<256x64xf32>
    %75 = arith.truncf %74 : vector<256x64xf32> to vector<256x64xbf16>
    %c0_84 = arith.constant 0 : index
    %c320 = arith.constant 320 : index
    %76 = vector.load %arg14[%c0_84, %c320] : memref<256x576xbf16, #tpu.memory_space<vmem>>, vector<256x64xbf16>
    tpu.vector_store %arg14[%c0_84, %c320], %75 {strides = array<i32>} : memref<256x576xbf16, #tpu.memory_space<vmem>>, vector<256x64xbf16>,
    %c2_85 = arith.constant 2 : index
    %c0_86 = arith.constant 0 : index
    %c0_87 = arith.constant 0 : index
    %77 = vector.load %arg13[%c2_85, %c0_86, %c0_87] : memref<18x18x64xf32, #tpu.memory_space<vmem>>, vector<16x16x64xf32>
    %78 = vector.shape_cast %77 : vector<16x16x64xf32> to vector<256x64xf32>
    %79 = arith.truncf %78 : vector<256x64xf32> to vector<256x64xbf16>
    %c0_88 = arith.constant 0 : index
    %c384 = arith.constant 384 : index
    %80 = vector.load %arg14[%c0_88, %c384] : memref<256x576xbf16, #tpu.memory_space<vmem>>, vector<256x64xbf16>
    tpu.vector_store %arg14[%c0_88, %c384], %79 {strides = array<i32>} : memref<256x576xbf16, #tpu.memory_space<vmem>>, vector<256x64xbf16>,
    %c2_89 = arith.constant 2 : index
    %c1_90 = arith.constant 1 : index
    %c0_91 = arith.constant 0 : index
    %81 = vector.load %arg13[%c2_89, %c1_90, %c0_91] : memref<18x18x64xf32, #tpu.memory_space<vmem>>, vector<16x16x64xf32>
    %82 = vector.shape_cast %81 : vector<16x16x64xf32> to vector<256x64xf32>
    %83 = arith.truncf %82 : vector<256x64xf32> to vector<256x64xbf16>
    %c0_92 = arith.constant 0 : index
    %c448 = arith.constant 448 : index
    %84 = vector.load %arg14[%c0_92, %c448] : memref<256x576xbf16, #tpu.memory_space<vmem>>, vector<256x64xbf16>
    tpu.vector_store %arg14[%c0_92, %c448], %83 {strides = array<i32>} : memref<256x576xbf16, #tpu.memory_space<vmem>>, vector<256x64xbf16>,
    %c2_93 = arith.constant 2 : index
    %c2_94 = arith.constant 2 : index
    %c0_95 = arith.constant 0 : index
    %85 = vector.load %arg13[%c2_93, %c2_94, %c0_95] : memref<18x18x64xf32, #tpu.memory_space<vmem>>, vector<16x16x64xf32>
    %86 = vector.shape_cast %85 : vector<16x16x64xf32> to vector<256x64xf32>
    %87 = arith.truncf %86 : vector<256x64xf32> to vector<256x64xbf16>
    %c0_96 = arith.constant 0 : index
    %c512 = arith.constant 512 : index
    %88 = vector.load %arg14[%c0_96, %c512] : memref<256x576xbf16, #tpu.memory_space<vmem>>, vector<256x64xbf16>
    tpu.vector_store %arg14[%c0_96, %c512], %87 {strides = array<i32>} : memref<256x576xbf16, #tpu.memory_space<vmem>>, vector<256x64xbf16>,
    %c0_97 = arith.constant 0 : index
    %c0_98 = arith.constant 0 : index
    %89 = vector.load %arg14[%c0_97, %c0_98] : memref<256x576xbf16, #tpu.memory_space<vmem>>, vector<256x576xbf16>
    %c0_99 = arith.constant 0 : index
    %c0_100 = arith.constant 0 : index
    %90 = vector.load %arg4[%c0_99, %c0_100] : memref<576x64xbf16, #tpu.memory_space<vmem>>, vector<576x64xbf16>
    %cst_101 = arith.constant dense<0.000000e+00> : vector<256x64xf32>
    %91 = tpu.matmul %89, %90, %cst_101 {dimension_numbers = #tpu.dot_dimension_numbers<[1], [0], [0], [1], [0, 0, 1, 1], [], []>} : vector<256x576xbf16>, vector<576x64xbf16>, vector<256x64xf32> -> vector<256x64xf32>
    %c0_102 = arith.constant 0 : index
    %c0_103 = arith.constant 0 : index
    %92 = vector.load %arg5[%c0_102, %c0_103] : memref<1x64xf32, #tpu.memory_space<vmem>>, vector<1x64xf32>
    %93 = vector.broadcast %92 : vector<1x64xf32> to vector<256x64xf32>
    %94 = arith.addf %91, %93 : vector<256x64xf32>
    %cst_104 = arith.constant 0.000000e+00 : f32
    %95 = vector.broadcast %cst_104 : f32 to vector<256x64xf32>
    %96 = arith.maximumf %94, %95 : vector<256x64xf32>
    %97 = vector.shape_cast %96 : vector<256x64xf32> to vector<16x16x64xf32>
    %cst_105 = arith.constant 0.000000e+00 : f32
    %98 = vector.broadcast %cst_105 : f32 to vector<14x14xf32>
    %99 = vector.extract_strided_slice %97 {offsets = [0, 0, 0], sizes = [14, 14, 64], strides = [1, 1, 1]} : vector<16x16x64xf32> to vector<14x14x64xf32>
    %c0_106 = arith.constant 0 : index
    %c0_107 = arith.constant 0 : index
    %c0_108 = arith.constant 0 : index
    %c0_109 = arith.constant 0 : index
    %100 = vector.load %arg6[%c0_106, %c0_107, %c0_108, %c0_109] : memref<9x1x1x64xf32, #tpu.memory_space<vmem>>, vector<1x1x1x64xf32>
    %101 = vector.shape_cast %100 : vector<1x1x1x64xf32> to vector<1x1x64xf32>
    %102 = vector.broadcast %101 : vector<1x1x64xf32> to vector<14x14x64xf32>
    %103 = arith.mulf %99, %102 : vector<14x14x64xf32>
    %cst_110 = arith.constant dense<0.000000e+00> : vector<14x14xf32>
    %104 = vector.multi_reduction <add>, %103, %cst_110 [2] : vector<14x14x64xf32> to vector<14x14xf32>
    %105 = arith.addf %98, %104 : vector<14x14xf32>
    %106 = vector.extract_strided_slice %97 {offsets = [0, 1, 0], sizes = [14, 14, 64], strides = [1, 1, 1]} : vector<16x16x64xf32> to vector<14x14x64xf32>
    %c1_111 = arith.constant 1 : index
    %c0_112 = arith.constant 0 : index
    %c0_113 = arith.constant 0 : index
    %c0_114 = arith.constant 0 : index
    %107 = vector.load %arg6[%c1_111, %c0_112, %c0_113, %c0_114] : memref<9x1x1x64xf32, #tpu.memory_space<vmem>>, vector<1x1x1x64xf32>
    %108 = vector.shape_cast %107 : vector<1x1x1x64xf32> to vector<1x1x64xf32>
    %109 = vector.broadcast %108 : vector<1x1x64xf32> to vector<14x14x64xf32>
    %110 = arith.mulf %106, %109 : vector<14x14x64xf32>
    %cst_115 = arith.constant dense<0.000000e+00> : vector<14x14xf32>
    %111 = vector.multi_reduction <add>, %110, %cst_115 [2] : vector<14x14x64xf32> to vector<14x14xf32>
    %112 = arith.addf %105, %111 : vector<14x14xf32>
    %113 = vector.extract_strided_slice %97 {offsets = [0, 2, 0], sizes = [14, 14, 64], strides = [1, 1, 1]} : vector<16x16x64xf32> to vector<14x14x64xf32>
    %c2_116 = arith.constant 2 : index
    %c0_117 = arith.constant 0 : index
    %c0_118 = arith.constant 0 : index
    %c0_119 = arith.constant 0 : index
    %114 = vector.load %arg6[%c2_116, %c0_117, %c0_118, %c0_119] : memref<9x1x1x64xf32, #tpu.memory_space<vmem>>, vector<1x1x1x64xf32>
    %115 = vector.shape_cast %114 : vector<1x1x1x64xf32> to vector<1x1x64xf32>
    %116 = vector.broadcast %115 : vector<1x1x64xf32> to vector<14x14x64xf32>
    %117 = arith.mulf %113, %116 : vector<14x14x64xf32>
    %cst_120 = arith.constant dense<0.000000e+00> : vector<14x14xf32>
    %118 = vector.multi_reduction <add>, %117, %cst_120 [2] : vector<14x14x64xf32> to vector<14x14xf32>
    %119 = arith.addf %112, %118 : vector<14x14xf32>
    %120 = vector.extract_strided_slice %97 {offsets = [1, 0, 0], sizes = [14, 14, 64], strides = [1, 1, 1]} : vector<16x16x64xf32> to vector<14x14x64xf32>
    %c3 = arith.constant 3 : index
    %c0_121 = arith.constant 0 : index
    %c0_122 = arith.constant 0 : index
    %c0_123 = arith.constant 0 : index
    %121 = vector.load %arg6[%c3, %c0_121, %c0_122, %c0_123] : memref<9x1x1x64xf32, #tpu.memory_space<vmem>>, vector<1x1x1x64xf32>
    %122 = vector.shape_cast %121 : vector<1x1x1x64xf32> to vector<1x1x64xf32>
    %123 = vector.broadcast %122 : vector<1x1x64xf32> to vector<14x14x64xf32>
    %124 = arith.mulf %120, %123 : vector<14x14x64xf32>
    %cst_124 = arith.constant dense<0.000000e+00> : vector<14x14xf32>
    %125 = vector.multi_reduction <add>, %124, %cst_124 [2] : vector<14x14x64xf32> to vector<14x14xf32>
    %126 = arith.addf %119, %125 : vector<14x14xf32>
    %127 = vector.extract_strided_slice %97 {offsets = [1, 1, 0], sizes = [14, 14, 64], strides = [1, 1, 1]} : vector<16x16x64xf32> to vector<14x14x64xf32>
    %c4_125 = arith.constant 4 : index
    %c0_126 = arith.constant 0 : index
    %c0_127 = arith.constant 0 : index
    %c0_128 = arith.constant 0 : index
    %128 = vector.load %arg6[%c4_125, %c0_126, %c0_127, %c0_128] : memref<9x1x1x64xf32, #tpu.memory_space<vmem>>, vector<1x1x1x64xf32>
    %129 = vector.shape_cast %128 : vector<1x1x1x64xf32> to vector<1x1x64xf32>
    %130 = vector.broadcast %129 : vector<1x1x64xf32> to vector<14x14x64xf32>
    %131 = arith.mulf %127, %130 : vector<14x14x64xf32>
    %cst_129 = arith.constant dense<0.000000e+00> : vector<14x14xf32>
    %132 = vector.multi_reduction <add>, %131, %cst_129 [2] : vector<14x14x64xf32> to vector<14x14xf32>
    %133 = arith.addf %126, %132 : vector<14x14xf32>
    %134 = vector.extract_strided_slice %97 {offsets = [1, 2, 0], sizes = [14, 14, 64], strides = [1, 1, 1]} : vector<16x16x64xf32> to vector<14x14x64xf32>
    %c5 = arith.constant 5 : index
    %c0_130 = arith.constant 0 : index
    %c0_131 = arith.constant 0 : index
    %c0_132 = arith.constant 0 : index
    %135 = vector.load %arg6[%c5, %c0_130, %c0_131, %c0_132] : memref<9x1x1x64xf32, #tpu.memory_space<vmem>>, vector<1x1x1x64xf32>
    %136 = vector.shape_cast %135 : vector<1x1x1x64xf32> to vector<1x1x64xf32>
    %137 = vector.broadcast %136 : vector<1x1x64xf32> to vector<14x14x64xf32>
    %138 = arith.mulf %134, %137 : vector<14x14x64xf32>
    %cst_133 = arith.constant dense<0.000000e+00> : vector<14x14xf32>
    %139 = vector.multi_reduction <add>, %138, %cst_133 [2] : vector<14x14x64xf32> to vector<14x14xf32>
    %140 = arith.addf %133, %139 : vector<14x14xf32>
    %141 = vector.extract_strided_slice %97 {offsets = [2, 0, 0], sizes = [14, 14, 64], strides = [1, 1, 1]} : vector<16x16x64xf32> to vector<14x14x64xf32>
    %c6_134 = arith.constant 6 : index
    %c0_135 = arith.constant 0 : index
    %c0_136 = arith.constant 0 : index
    %c0_137 = arith.constant 0 : index
    %142 = vector.load %arg6[%c6_134, %c0_135, %c0_136, %c0_137] : memref<9x1x1x64xf32, #tpu.memory_space<vmem>>, vector<1x1x1x64xf32>
    %143 = vector.shape_cast %142 : vector<1x1x1x64xf32> to vector<1x1x64xf32>
    %144 = vector.broadcast %143 : vector<1x1x64xf32> to vector<14x14x64xf32>
    %145 = arith.mulf %141, %144 : vector<14x14x64xf32>
    %cst_138 = arith.constant dense<0.000000e+00> : vector<14x14xf32>
    %146 = vector.multi_reduction <add>, %145, %cst_138 [2] : vector<14x14x64xf32> to vector<14x14xf32>
    %147 = arith.addf %140, %146 : vector<14x14xf32>
    %148 = vector.extract_strided_slice %97 {offsets = [2, 1, 0], sizes = [14, 14, 64], strides = [1, 1, 1]} : vector<16x16x64xf32> to vector<14x14x64xf32>
    %c7 = arith.constant 7 : index
    %c0_139 = arith.constant 0 : index
    %c0_140 = arith.constant 0 : index
    %c0_141 = arith.constant 0 : index
    %149 = vector.load %arg6[%c7, %c0_139, %c0_140, %c0_141] : memref<9x1x1x64xf32, #tpu.memory_space<vmem>>, vector<1x1x1x64xf32>
    %150 = vector.shape_cast %149 : vector<1x1x1x64xf32> to vector<1x1x64xf32>
    %151 = vector.broadcast %150 : vector<1x1x64xf32> to vector<14x14x64xf32>
    %152 = arith.mulf %148, %151 : vector<14x14x64xf32>
    %cst_142 = arith.constant dense<0.000000e+00> : vector<14x14xf32>
    %153 = vector.multi_reduction <add>, %152, %cst_142 [2] : vector<14x14x64xf32> to vector<14x14xf32>
    %154 = arith.addf %147, %153 : vector<14x14xf32>
    %155 = vector.extract_strided_slice %97 {offsets = [2, 2, 0], sizes = [14, 14, 64], strides = [1, 1, 1]} : vector<16x16x64xf32> to vector<14x14x64xf32>
    %c8_143 = arith.constant 8 : index
    %c0_144 = arith.constant 0 : index
    %c0_145 = arith.constant 0 : index
    %c0_146 = arith.constant 0 : index
    %156 = vector.load %arg6[%c8_143, %c0_144, %c0_145, %c0_146] : memref<9x1x1x64xf32, #tpu.memory_space<vmem>>, vector<1x1x1x64xf32>
    %157 = vector.shape_cast %156 : vector<1x1x1x64xf32> to vector<1x1x64xf32>
    %158 = vector.broadcast %157 : vector<1x1x64xf32> to vector<14x14x64xf32>
    %159 = arith.mulf %155, %158 : vector<14x14x64xf32>
    %cst_147 = arith.constant dense<0.000000e+00> : vector<14x14xf32>
    %160 = vector.multi_reduction <add>, %159, %cst_147 [2] : vector<14x14x64xf32> to vector<14x14xf32>
    %161 = arith.addf %154, %160 : vector<14x14xf32>
    %162 = tpu.iota {dimensions = array<i32: 0>} : vector<7x14xi32>
    %163 = tpu.iota {dimensions = array<i32: 1>} : vector<7x14xi32>
    %c2_i32 = arith.constant 2 : i32
    %164 = vector.broadcast %c2_i32 : i32 to vector<7x14xi32>
    %165 = arith.muli %164, %162 : vector<7x14xi32>
    %166 = arith.cmpi eq, %163, %165 : vector<7x14xi32>
    %167 = arith.extui %166 : vector<7x14xi1> to vector<7x14xi32>
    %168 = arith.sitofp %167 : vector<7x14xi32> to vector<7x14xf32>
    %169 = tpu.iota {dimensions = array<i32: 0>} : vector<14x7xi32>
    %170 = tpu.iota {dimensions = array<i32: 1>} : vector<14x7xi32>
    %c2_i32_148 = arith.constant 2 : i32
    %171 = vector.broadcast %c2_i32_148 : i32 to vector<14x7xi32>
    %172 = arith.muli %171, %170 : vector<14x7xi32>
    %173 = arith.cmpi eq, %169, %172 : vector<14x7xi32>
    %174 = arith.extui %173 : vector<14x7xi1> to vector<14x7xi32>
    %175 = arith.sitofp %174 : vector<14x7xi32> to vector<14x7xf32>
    %cst_149 = arith.constant dense<0.000000e+00> : vector<7x14xf32>
    %176 = tpu.matmul %168, %161, %cst_149 {dimension_numbers = #tpu.dot_dimension_numbers<[1], [0], [0], [1], [0, 0, 1, 1], [], []>} : vector<7x14xf32>, vector<14x14xf32>, vector<7x14xf32> -> vector<7x14xf32>
    %cst_150 = arith.constant dense<0.000000e+00> : vector<7x7xf32>
    %177 = tpu.matmul %176, %175, %cst_150 {dimension_numbers = #tpu.dot_dimension_numbers<[1], [0], [0], [1], [0, 0, 1, 1], [], []>} : vector<7x14xf32>, vector<14x7xf32>, vector<7x7xf32> -> vector<7x7xf32>
    %c0_151 = arith.constant 0 : index
    %178 = memref.load %arg7[%c0_151] : memref<1xf32, #tpu.memory_space<smem>>
    %179 = vector.broadcast %178 : f32 to vector<7x7xf32>
    %180 = arith.addf %177, %179 : vector<7x7xf32>
    %cst_152 = arith.constant 0.000000e+00 : f32
    %181 = vector.broadcast %cst_152 : f32 to vector<7x7xf32>
    %182 = arith.maximumf %180, %181 : vector<7x7xf32>
    %cst_153 = arith.constant 0.000000e+00 : f32
    %183 = vector.broadcast %cst_153 : f32 to vector<9x9xf32>
    %c0_154 = arith.constant 0 : index
    %c0_155 = arith.constant 0 : index
    %184 = vector.load %arg15[%c0_154, %c0_155] : memref<9x9xf32, #tpu.memory_space<vmem>>, vector<9x9xf32>
    tpu.vector_store %arg15[%c0_154, %c0_155], %183 {strides = array<i32>} : memref<9x9xf32, #tpu.memory_space<vmem>>, vector<9x9xf32>,
    %c1_156 = arith.constant 1 : index
    %c1_157 = arith.constant 1 : index
    %185 = vector.load %arg15[%c1_156, %c1_157] : memref<9x9xf32, #tpu.memory_space<vmem>>, vector<7x7xf32>
    tpu.vector_store %arg15[%c1_156, %c1_157], %182 {strides = array<i32>} : memref<9x9xf32, #tpu.memory_space<vmem>>, vector<7x7xf32>,
    %c1_158 = arith.constant 1 : index
    %c1_159 = arith.constant 1 : index
    %186 = vector.load %arg15[%c1_158, %c1_159] : memref<9x9xf32, #tpu.memory_space<vmem>>, vector<8x8xf32>
    %c0_160 = arith.constant 0 : index
    %c1_161 = arith.constant 1 : index
    %187 = vector.load %arg15[%c0_160, %c1_161] : memref<9x9xf32, #tpu.memory_space<vmem>>, vector<8x8xf32>
    %c1_162 = arith.constant 1 : index
    %c0_163 = arith.constant 0 : index
    %188 = vector.load %arg15[%c1_162, %c0_163] : memref<9x9xf32, #tpu.memory_space<vmem>>, vector<8x8xf32>
    %c0_164 = arith.constant 0 : index
    %c0_165 = arith.constant 0 : index
    %189 = vector.load %arg15[%c0_164, %c0_165] : memref<9x9xf32, #tpu.memory_space<vmem>>, vector<8x8xf32>
    %c0_166 = arith.constant 0 : index
    %190 = memref.load %arg9[%c0_166] : memref<1xf32, #tpu.memory_space<smem>>
    %c0_167 = arith.constant 0 : index
    %c0_168 = arith.constant 0 : index
    %191 = memref.load %arg8[%c0_167, %c0_168] : memref<3x3xf32, #tpu.memory_space<smem>>
    %192 = vector.broadcast %191 : f32 to vector<8x8xf32>
    %193 = arith.mulf %186, %192 : vector<8x8xf32>
    %c2_169 = arith.constant 2 : index
    %c0_170 = arith.constant 0 : index
    %194 = memref.load %arg8[%c2_169, %c0_170] : memref<3x3xf32, #tpu.memory_space<smem>>
    %195 = vector.broadcast %194 : f32 to vector<8x8xf32>
    %196 = arith.mulf %187, %195 : vector<8x8xf32>
    %197 = arith.addf %193, %196 : vector<8x8xf32>
    %c0_171 = arith.constant 0 : index
    %c2_172 = arith.constant 2 : index
    %198 = memref.load %arg8[%c0_171, %c2_172] : memref<3x3xf32, #tpu.memory_space<smem>>
    %199 = vector.broadcast %198 : f32 to vector<8x8xf32>
    %200 = arith.mulf %188, %199 : vector<8x8xf32>
    %201 = arith.addf %197, %200 : vector<8x8xf32>
    %c2_173 = arith.constant 2 : index
    %c2_174 = arith.constant 2 : index
    %202 = memref.load %arg8[%c2_173, %c2_174] : memref<3x3xf32, #tpu.memory_space<smem>>
    %203 = vector.broadcast %202 : f32 to vector<8x8xf32>
    %204 = arith.mulf %189, %203 : vector<8x8xf32>
    %205 = arith.addf %201, %204 : vector<8x8xf32>
    %206 = vector.broadcast %190 : f32 to vector<8x8xf32>
    %207 = arith.addf %205, %206 : vector<8x8xf32>
    %cst_175 = arith.constant 0.000000e+00 : f32
    %208 = vector.broadcast %cst_175 : f32 to vector<8x8xf32>
    %209 = arith.maximumf %207, %208 : vector<8x8xf32>
    %c0_176 = arith.constant 0 : index
    %c0_177 = arith.constant 0 : index
    %c0_178 = arith.constant 0 : index
    %c0_179 = arith.constant 0 : index
    %c0_180 = arith.constant 0 : index
    %210 = vector.load %arg10[%c0_176, %c0_177, %c0_178, %c0_179, %c0_180] : memref<1x2x2x8x8xf32, #tpu.memory_space<vmem>>, vector<1x1x1x8x8xf32>
    %211 = vector.shape_cast %210 : vector<1x1x1x8x8xf32> to vector<8x8xf32>
    %212 = vector.shape_cast %209 : vector<8x8xf32> to vector<1x1x1x8x8xf32>
    tpu.vector_store %arg10[%c0_176, %c0_177, %c0_178, %c0_179, %c0_180], %212 {strides = array<i32>} : memref<1x2x2x8x8xf32, #tpu.memory_space<vmem>>, vector<1x1x1x8x8xf32>,
    %c0_181 = arith.constant 0 : index
    %c1_182 = arith.constant 1 : index
    %213 = memref.load %arg8[%c0_181, %c1_182] : memref<3x3xf32, #tpu.memory_space<smem>>
    %214 = vector.broadcast %213 : f32 to vector<8x8xf32>
    %215 = arith.mulf %186, %214 : vector<8x8xf32>
    %c2_183 = arith.constant 2 : index
    %c1_184 = arith.constant 1 : index
    %216 = memref.load %arg8[%c2_183, %c1_184] : memref<3x3xf32, #tpu.memory_space<smem>>
    %217 = vector.broadcast %216 : f32 to vector<8x8xf32>
    %218 = arith.mulf %187, %217 : vector<8x8xf32>
    %219 = arith.addf %215, %218 : vector<8x8xf32>
    %220 = vector.broadcast %190 : f32 to vector<8x8xf32>
    %221 = arith.addf %219, %220 : vector<8x8xf32>
    %cst_185 = arith.constant 0.000000e+00 : f32
    %222 = vector.broadcast %cst_185 : f32 to vector<8x8xf32>
    %223 = arith.maximumf %221, %222 : vector<8x8xf32>
    %c0_186 = arith.constant 0 : index
    %c0_187 = arith.constant 0 : index
    %c1_188 = arith.constant 1 : index
    %c0_189 = arith.constant 0 : index
    %c0_190 = arith.constant 0 : index
    %224 = vector.load %arg10[%c0_186, %c0_187, %c1_188, %c0_189, %c0_190] : memref<1x2x2x8x8xf32, #tpu.memory_space<vmem>>, vector<1x1x1x8x8xf32>
    %225 = vector.shape_cast %224 : vector<1x1x1x8x8xf32> to vector<8x8xf32>
    %226 = vector.shape_cast %223 : vector<8x8xf32> to vector<1x1x1x8x8xf32>
    tpu.vector_store %arg10[%c0_186, %c0_187, %c1_188, %c0_189, %c0_190], %226 {strides = array<i32>} : memref<1x2x2x8x8xf32, #tpu.memory_space<vmem>>, vector<1x1x1x8x8xf32>,
    %c1_191 = arith.constant 1 : index
    %c0_192 = arith.constant 0 : index
    %227 = memref.load %arg8[%c1_191, %c0_192] : memref<3x3xf32, #tpu.memory_space<smem>>
    %228 = vector.broadcast %227 : f32 to vector<8x8xf32>
    %229 = arith.mulf %186, %228 : vector<8x8xf32>
    %c1_193 = arith.constant 1 : index
    %c2_194 = arith.constant 2 : index
    %230 = memref.load %arg8[%c1_193, %c2_194] : memref<3x3xf32, #tpu.memory_space<smem>>
    %231 = vector.broadcast %230 : f32 to vector<8x8xf32>
    %232 = arith.mulf %188, %231 : vector<8x8xf32>
    %233 = arith.addf %229, %232 : vector<8x8xf32>
    %234 = vector.broadcast %190 : f32 to vector<8x8xf32>
    %235 = arith.addf %233, %234 : vector<8x8xf32>
    %cst_195 = arith.constant 0.000000e+00 : f32
    %236 = vector.broadcast %cst_195 : f32 to vector<8x8xf32>
    %237 = arith.maximumf %235, %236 : vector<8x8xf32>
    %c0_196 = arith.constant 0 : index
    %c1_197 = arith.constant 1 : index
    %c0_198 = arith.constant 0 : index
    %c0_199 = arith.constant 0 : index
    %c0_200 = arith.constant 0 : index
    %238 = vector.load %arg10[%c0_196, %c1_197, %c0_198, %c0_199, %c0_200] : memref<1x2x2x8x8xf32, #tpu.memory_space<vmem>>, vector<1x1x1x8x8xf32>
    %239 = vector.shape_cast %238 : vector<1x1x1x8x8xf32> to vector<8x8xf32>
    %240 = vector.shape_cast %237 : vector<8x8xf32> to vector<1x1x1x8x8xf32>
    tpu.vector_store %arg10[%c0_196, %c1_197, %c0_198, %c0_199, %c0_200], %240 {strides = array<i32>} : memref<1x2x2x8x8xf32, #tpu.memory_space<vmem>>, vector<1x1x1x8x8xf32>,
    %c1_201 = arith.constant 1 : index
    %c1_202 = arith.constant 1 : index
    %241 = memref.load %arg8[%c1_201, %c1_202] : memref<3x3xf32, #tpu.memory_space<smem>>
    %242 = vector.broadcast %241 : f32 to vector<8x8xf32>
    %243 = arith.mulf %186, %242 : vector<8x8xf32>
    %244 = vector.broadcast %190 : f32 to vector<8x8xf32>
    %245 = arith.addf %243, %244 : vector<8x8xf32>
    %cst_203 = arith.constant 0.000000e+00 : f32
    %246 = vector.broadcast %cst_203 : f32 to vector<8x8xf32>
    %247 = arith.maximumf %245, %246 : vector<8x8xf32>
    %c0_204 = arith.constant 0 : index
    %c1_205 = arith.constant 1 : index
    %c1_206 = arith.constant 1 : index
    %c0_207 = arith.constant 0 : index
    %c0_208 = arith.constant 0 : index
    %248 = vector.load %arg10[%c0_204, %c1_205, %c1_206, %c0_207, %c0_208] : memref<1x2x2x8x8xf32, #tpu.memory_space<vmem>>, vector<1x1x1x8x8xf32>
    %249 = vector.shape_cast %248 : vector<1x1x1x8x8xf32> to vector<8x8xf32>
    %250 = vector.shape_cast %247 : vector<8x8xf32> to vector<1x1x1x8x8xf32>
    tpu.vector_store %arg10[%c0_204, %c1_205, %c1_206, %c0_207, %c0_208], %250 {strides = array<i32>} : memref<1x2x2x8x8xf32, #tpu.memory_space<vmem>>, vector<1x1x1x8x8xf32>,
    return
  }
  func.func @transform_0(%arg0: i32) -> (i32, i32, i32, i32) {
    %c0_i32 = arith.constant 0 : i32
    %c0_i32_0 = arith.constant 0 : i32
    %c0_i32_1 = arith.constant 0 : i32
    %c0_i32_2 = arith.constant 0 : i32
    return %arg0, %c0_i32, %c0_i32_0, %c0_i32_1 : i32, i32, i32, i32
  }
  func.func @transform_1(%arg0: i32) -> (i32, i32) {
    %c0_i32 = arith.constant 0 : i32
    %c0_i32_0 = arith.constant 0 : i32
    %c0_i32_1 = arith.constant 0 : i32
    return %c0_i32, %c0_i32_0 : i32, i32
  }
  func.func @transform_2(%arg0: i32) -> (i32, i32) {
    %c0_i32 = arith.constant 0 : i32
    %c0_i32_0 = arith.constant 0 : i32
    %c0_i32_1 = arith.constant 0 : i32
    return %c0_i32, %c0_i32_0 : i32, i32
  }
  func.func @transform_3(%arg0: i32) -> (i32, i32) {
    %c0_i32 = arith.constant 0 : i32
    %c0_i32_0 = arith.constant 0 : i32
    %c0_i32_1 = arith.constant 0 : i32
    return %c0_i32, %c0_i32_0 : i32, i32
  }
  func.func @transform_4(%arg0: i32) -> (i32, i32) {
    %c0_i32 = arith.constant 0 : i32
    %c0_i32_0 = arith.constant 0 : i32
    %c0_i32_1 = arith.constant 0 : i32
    return %c0_i32, %c0_i32_0 : i32, i32
  }
  func.func @transform_5(%arg0: i32) -> (i32, i32, i32, i32) {
    %c0_i32 = arith.constant 0 : i32
    %c0_i32_0 = arith.constant 0 : i32
    %c0_i32_1 = arith.constant 0 : i32
    %c0_i32_2 = arith.constant 0 : i32
    %c0_i32_3 = arith.constant 0 : i32
    return %c0_i32, %c0_i32_0, %c0_i32_1, %c0_i32_2 : i32, i32, i32, i32
  }
  func.func @transform_6(%arg0: i32) -> i32 {
    %c0_i32 = arith.constant 0 : i32
    %c0_i32_0 = arith.constant 0 : i32
    return %c0_i32 : i32
  }
  func.func @transform_7(%arg0: i32) -> (i32, i32) {
    %c0_i32 = arith.constant 0 : i32
    %c0_i32_0 = arith.constant 0 : i32
    %c0_i32_1 = arith.constant 0 : i32
    return %c0_i32, %c0_i32_0 : i32, i32
  }
  func.func @transform_8(%arg0: i32) -> i32 {
    %c0_i32 = arith.constant 0 : i32
    %c0_i32_0 = arith.constant 0 : i32
    return %c0_i32 : i32
  }
  func.func @transform_9(%arg0: i32) -> (i32, i32, i32, i32, i32) {
    %c0_i32 = arith.constant 0 : i32
    %c0_i32_0 = arith.constant 0 : i32
    %c0_i32_1 = arith.constant 0 : i32
    %c0_i32_2 = arith.constant 0 : i32
    %c0_i32_3 = arith.constant 0 : i32
    return %arg0, %c0_i32, %c0_i32_0, %c0_i32_1, %c0_i32_2 : i32, i32, i32, i32, i32
  }
}

</mosaic_0001>

<bundles_post_ra>
// kernel: tpu_custom_call.1
= control target key start
LH: loop header
LB: loop body
LE: loop exit
PB: predicated region body
PF: predicated region fallthrough
CT: control target
= control target key end

     0   :  { %s10473_s0 = inlined_call_operand.hbm [shape: f32[2,16,16,2], index: 0, kind: input, shape index: {}]   ;;  %s10474_s1 = inlined_call_operand.hbm [shape: bf16[18,64], index: 1, kind: input, shape index: {}]   ;;  %s10475_s2 = inlined_call_operand.hbm [shape: f32[1,64], index: 2, kind: input, shape index: {}]   ;;  %s10476_s3 = inlined_call_operand.hbm [shape: bf16[576,64], index: 3, kind: input, shape index: {}]   ;;  %s10477_s4 = inlined_call_operand.hbm [shape: f32[1,64], index: 4, kind: input, shape index: {}]   ;;  %s10478_s5 = inlined_call_operand.hbm [shape: f32[9,1,1,64], index: 5, kind: input, shape index: {}]   ;;  %s10479_s6 = inlined_call_operand.<no memory space> [shape: f32[1], index: 6, kind: input, shape index: {}]   ;;  %s10480_s7 = inlined_call_operand.hbm [shape: f32[3,3], index: 7, kind: input, shape index: {}]   ;;  %s10481_s8 = inlined_call_operand.<no memory space> [shape: f32[1], index: 8, kind: input, shape index: {}]   ;;  %s10482_s9 = inlined_call_operand.hbm [shape: f32[2,2,2,8,8], index: 9, kind: output, shape index: {}]  }
   0x1   :  { %14 = sst [smem:[#allocation7]] %s10479_s6 }
   0x2   :  { %15 = sst [smem:[#allocation8]] %s10481_s8 }
   0x3   :  { %16 = vsyncpa [#allocation10], 0 }
   0x4   :  { %18 = vsyncpa [#allocation10 + $0x1], 0 }
   0x5   :  { %19 = vsyncpa [#allocation14], 0 }
   0x6   :  { %20 = vsyncpa [#allocation17], 0 }
   0x7   :  { %21 = vsyncpa [#allocation20], 0 }
   0x8   :  { %22 = vsyncpa [#allocation12], 0 }
   0x9   :  { %23 = vsyncpa [#allocation11], 0 }
   0xa   :  { %25 = vsyncpa [#allocation11 + $0x1], 0  ;;  %s7505_s13 = smov 0   ;;  %s7507_s14 = smov 0  }
   0xb   :  { %s7509_s15 = smov 0   ;;  %s7511_s16 = smov 0  }
   0xc LB: > { %s7417_s6 = smov [#allocation13]   ;;  %s7526_s17 = sadd.s32 4294967295, %s7415_s16   ;;  %s7415_s16 = sphi %s7511_s16, %s10553_s16   ;;  %s7411_s15 = sphi %s7509_s15, %s10552_s15   ;;  %s7407_s14 = sphi %s7507_s14, %s10551_s14   ;;  %s7403_s13 = sphi %s7505_s13, %s10550_s13  }
   0xd   : > { %s268_s8 = sshll.u32 %s7417_s6, 4  ;;  %p6389_p0 = scmp.ge.s32.totalorder %s7415_s16, 1  ;;  %s7531_s8 = int_to_ptr.vmem [resolvable:$true] %s268_s8 }
   0xe   : > { %p10483_p1 = scmp.eq.s32.totalorder %s7526_s17, 0  ;;  %p256_p2 = scmp.lt.s32.totalorder %s7415_s16, 3 }
   0xf   : > { %s7418_s19 = smov [#allocation16]   ;;  %s7419_s22 = smov [#allocation15]  }
  0x10   : > { %p7533_p3 = pnand %p6389_p0, %p256_p2  ;;  %s292_s20 = sshll.u32 %s7418_s19, 4  ;;  %s7546_s20 = int_to_ptr.vmem [resolvable:$true] %s292_s20 }
  0x11   : > { %s282_s23 = sshll.u32 %s7419_s22, 4  ;;  %s7150_s26 = scalar_lea.hbm %s10474_s1, 192  ;;  %s7548_s23 = int_to_ptr.vmem [resolvable:$true] %s282_s23 }
  0x12   : > { %s10497_s18 = scalar_select %p7533_p3, 1, 0 }
  0x13   : > { %p6919_p5 = pneg %p7533_p3  ;;  %p7151_p7 = scmp.ne.s32.totalorder %s10474_s1, %s7150_s26 }
  0x14   : > { %p7157_p11 = scmp.lt.u32.totalorder %s7150_s26, %s10474_s1 }
  0x15   : > { %p7542_p6 = pnand %p6919_p5, %p10483_p1 }
  0x17   : > { %p7558_p8 = pneg %p7542_p6 }
  0x19   : > { %p7153_p9 = pnand %p7558_p8, %p7151_p7 }
  0x1b   : > { %p7154_p10 = pneg %p7153_p9 }
  0x1d   : > { %p7159_p12 = pnand %p7157_p11, %p7154_p10 }
  0x1f   : > { %7162 = shalt.err (!%p7159_p12)
}
  0x20   : > { %s7163_s11 = scalar_lea.vmem %s7531_s8, 192  ;;  %p7171_p5 = scmp.lt.s32.totalorder %s7531_s8, %s7531_s8 }
  0x21   : > { %p7164_p13 = scmp.ne.s32.totalorder %s7531_s8, %s7163_s11  ;;  %p7172_p4 = scmp.lt.s32.totalorder %s7163_s11, %s7163_s11 }
  0x23   : > { %p7166_p0 = pnand %p7164_p13, %p7558_p8  ;;  %p7173_p7 = por %p7172_p4, %p7171_p5 }
  0x25   : > { %p7167_p2 = pneg %p7166_p0 }
  0x27   : > { %p7174_p9 = pnand %p7173_p7, %p7167_p2 }
  0x29   : > { %7177 = shalt.err (!%p7174_p9)
}
  0x2a   : > { %s7420_s12 = smov 64   ;;  %s7421_s6 = smov 4  }
  0x2b   : > { %6922 = dma.hbm_to_vmem [thread:$0]  (!%p7542_p6), %s10474_s1, 192, %s7531_s8, [#allocation14], %s7420_s12, %s7420_s12, %s7421_s6  }
  0x2c   : > { %s7178_s26 = scalar_lea.hbm %s10476_s3, 4608 }
  0x2d   : > { %p7179_p4 = scmp.ne.s32.totalorder %s10476_s3, %s7178_s26  ;;  %p7185_p12 = scmp.lt.u32.totalorder %s7178_s26, %s10476_s3 }
  0x2f   : > { %p7181_p10 = pnand %p7179_p4, %p7558_p8 }
  0x31   : > { %p7182_p11 = pneg %p7181_p10 }
  0x33   : > { %p7187_p13 = pnand %p7185_p12, %p7182_p11 }
  0x35   : > { %7190 = shalt.err (!%p7187_p13)
}
  0x36   : > { %s7191_s8 = scalar_lea.vmem %s7546_s20, 4608  ;;  %p7199_p7 = scmp.lt.s32.totalorder %s7546_s20, %s7546_s20 }
  0x37   : > { %p7192_p0 = scmp.ne.s32.totalorder %s7546_s20, %s7191_s8  ;;  %p7200_p9 = scmp.lt.s32.totalorder %s7191_s8, %s7191_s8 }
  0x39   : > { %p7194_p2 = pnand %p7192_p0, %p7558_p8  ;;  %p7201_p4 = por %p7200_p9, %p7199_p7 }
  0x3b   : > { %p7195_p5 = pneg %p7194_p2 }
  0x3d   : > { %p7202_p10 = pnand %p7201_p4, %p7195_p5 }
  0x3f   : > { %7205 = shalt.err (!%p7202_p10)
}
  0x40   : > { %6928 = dma.hbm_to_vmem [thread:$0]  (!%p7542_p6), %s10476_s3, 4608, %s7546_s20, [#allocation17], %s7420_s12, %s7420_s12, %s7421_s6  }
  0x41   : > { %s7206_s25 = scalar_lea.hbm %s10475_s2, 16 }
  0x42   : > { %p7207_p11 = scmp.ne.s32.totalorder %s10475_s2, %s7206_s25  ;;  %p7213_p0 = scmp.lt.u32.totalorder %s7206_s25, %s10475_s2 }
  0x44   : > { %p7209_p12 = pnand %p7207_p11, %p7558_p8 }
  0x46   : > { %p7210_p13 = pneg %p7209_p12 }
  0x48   : > { %p7215_p2 = pnand %p7213_p0, %p7210_p13 }
  0x4a   : > { %7218 = shalt.err (!%p7215_p2)
}
  0x4b   : > { %s7219_s20 = scalar_lea.vmem %s7548_s23, 16  ;;  %s7226_s12 = scalar_lea.vmem %s7548_s23, 32 }
  0x4c   : > { %p7220_p5 = scmp.ne.s32.totalorder %s7548_s23, %s7219_s20  ;;  %p7227_p4 = scmp.lt.s32.totalorder %s7548_s23, %s7548_s23 }
  0x4d   : > { %p7228_p10 = scmp.lt.s32.totalorder %s7226_s12, %s7219_s20 }
  0x4e   : > { %p7222_p7 = pnand %p7220_p5, %p7558_p8 }
  0x4f   : > { %p7229_p11 = por %p7228_p10, %p7227_p4 }
  0x50   : > { %p7223_p9 = pneg %p7222_p7 }
  0x52   : > { %p7230_p12 = pnand %p7229_p11, %p7223_p9 }
  0x54   : > { %7233 = shalt.err (!%p7230_p12)
}
  0x55   : > { %6925 = dma.hbm_to_vmem [thread:$0]  (!%p7542_p6), %s10475_s2, 16, %s7548_s23, [#allocation14]  }
  0x56   : > { %s7422_s8 = smov [#allocation18]   ;;  %s7423_s19 = smov [#allocation19]  }
  0x57   : > { %s306_s11 = sshll.u32 %s7422_s8, 4  ;;  %s316_s22 = sshll.u32 %s7423_s19, 4  ;;  %s307_s11 = int_to_ptr.vmem [resolvable:$true] %s306_s11  ;;  %s317_s22 = int_to_ptr.vmem [resolvable:$true] %s316_s22 }
  0x58   : > { %s7234_s26 = scalar_lea.hbm %s10477_s4, 16 }
  0x59   : > { %p7235_p13 = scmp.ne.s32.totalorder %s10477_s4, %s7234_s26  ;;  %p7241_p5 = scmp.lt.u32.totalorder %s7234_s26, %s10477_s4 }
  0x5b   : > { %p7237_p0 = pnand %p7235_p13, %p7558_p8 }
  0x5d   : > { %p7238_p2 = pneg %p7237_p0 }
  0x5f   : > { %p7243_p7 = pnand %p7241_p5, %p7238_p2 }
  0x61   : > { %7246 = shalt.err (!%p7243_p7)
}
  0x62   : > { %s7247_s23 = scalar_lea.vmem %s307_s11, 16  ;;  %s7254_s12 = scalar_lea.vmem %s307_s11, 32 }
  0x63   : > { %p7248_p9 = scmp.ne.s32.totalorder %s307_s11, %s7247_s23  ;;  %p7255_p11 = scmp.lt.s32.totalorder %s307_s11, %s307_s11 }
  0x64   : > { %p7256_p12 = scmp.lt.s32.totalorder %s7254_s12, %s7247_s23 }
  0x65   : > { %p7250_p4 = pnand %p7248_p9, %p7558_p8 }
  0x66   : > { %p7257_p1 = por %p7256_p12, %p7255_p11 }
  0x67   : > { %p7251_p10 = pneg %p7250_p4 }
  0x69   : > { %p7258_p3 = pnand %p7257_p1, %p7251_p10 }
  0x6b   : > { %7261 = shalt.err (!%p7258_p3)
}
  0x6c   : > { %6931 = dma.hbm_to_vmem [thread:$0]  (!%p7542_p6), %s10477_s4, 16, %s307_s11, [#allocation17]  }
  0x6d   : > { %s7262_s24 = scalar_lea.hbm %s10478_s5, 144 }
  0x6e   : > { %p7263_p13 = scmp.ne.s32.totalorder %s10478_s5, %s7262_s24  ;;  %p7269_p3 = scmp.lt.u32.totalorder %s7262_s24, %s10478_s5 }
  0x70   : > { %p7265_p0 = pnand %p7263_p13, %p7558_p8 }
  0x72   : > { %p7266_p1 = pneg %p7265_p0 }
  0x74   : > { %p7271_p2 = pnand %p7269_p3, %p7266_p1 }
  0x76   : > { %7274 = shalt.err (!%p7271_p2)
}
  0x77   : > { %s7275_s30 = scalar_lea.vmem %s317_s22, 144  ;;  %s7282_s11 = scalar_lea.vmem %s317_s22, 160 }
  0x78   : > { %p7276_p5 = scmp.ne.s32.totalorder %s317_s22, %s7275_s30  ;;  %p7283_p4 = scmp.lt.s32.totalorder %s317_s22, %s317_s22 }
  0x79   : > { %p7284_p10 = scmp.lt.s32.totalorder %s7282_s11, %s7275_s30 }
  0x7a   : > { %p7278_p7 = pnand %p7276_p5, %p7558_p8 }
  0x7b   : > { %p7285_p11 = por %p7284_p10, %p7283_p4 }
  0x7c   : > { %p7279_p9 = pneg %p7278_p7 }
  0x7e   : > { %p7286_p12 = pnand %p7285_p11, %p7279_p9 }
  0x80   : > { %7289 = shalt.err (!%p7286_p12)
}
  0x81   : > { %s7424_s20 = smov 16   ;;  %s7425_s23 = smov 1  }
  0x82   : > { %6934 = dma.hbm_to_vmem [thread:$0]  (!%p7542_p6), %s10478_s5, 144, %s317_s22, [#allocation20], %s7424_s20, %s7424_s20, %s7425_s23  }
  0x83   : > { %s7290_s19 = scalar_lea.hbm %s10480_s7, 64 }
  0x84   : > { %p7291_p13 = scmp.ne.s32.totalorder %s10480_s7, %s7290_s19  ;;  %p7297_p3 = scmp.lt.u32.totalorder %s7290_s19, %s10480_s7 }
  0x86   : > { %p7293_p0 = pnand %p7291_p13, %p7558_p8 }
  0x88   : > { %p7294_p1 = pneg %p7293_p0 }
  0x8a   : > { %p7299_p2 = pnand %p7297_p3, %p7294_p1 }
  0x8c   : > { %7302 = shalt.err (!%p7299_p2)
}
  0x8d   : > { %s7426_s28 = smov [#allocation21]   ;;  %s6388_s29 = sadd.s32 4294967294, %s7415_s16  }
  0x8e   : > { %6937 = dma.hbm_to_smem (!%p7542_p6), %s10480_s7, 64, %s7426_s28, [#allocation12]  }
  0x8f   : > { %s7680_s21 = sadd.s32 1, %s7415_s16   ;;  %s38_s20 = sadd.s32 1, %s7411_s15 }
  0x90   : > { %s35_s11 = ssub.s32 %s7415_s16, %s7680_s21  ;;  %p45_p5 = scmp.ne.s32.totalorder %s7411_s15, %s7407_s14 }
  0x91   : > { %p36_p8 = scmp.eq.s32.totalorder %s35_s11, 0  ;;  %p46_p7 = scmp.eq.s32.totalorder %s7415_s16, 0 }
  0x92   : > { %p51_p9 = scmp.ne.s32.totalorder %s7407_s14, %s7403_s13  ;;  %p10501_p10 = scmp.eq.s32.totalorder %s7526_s17, 0 }
  0x93   : > { %s7691_s23 = scalar_select %p36_p8, %s7411_s15, %s38_s20  }
  0x94   : > { %p7693_p4 = por %p46_p7, %p45_p5  ;;  %p7699_p6 = por %p10501_p10, %p51_p9 }
  0x95   : > { %p243_p11 = scmp.eq.s32.totalorder %s7526_s17, 1  ;;  %p249_p12 = scmp.eq.s32.totalorder %s6388_s29, 1 }
  0x96   : > { %p6952_p13 = scmp.lt.s32.totalorder %s7415_s16, 2  ;;  %s345_s10 = sand.u32 1, %s7411_s15  }
  0x97   : > { %p7706_p0 = por %p243_p11, %p45_p5  ;;  %p7710_p1 = por %p249_p12, %p51_p9 }
  0x98   : > { %s6397_s24 = sshll.u32 %s345_s10, 8  ;;  %s6514_s25 = sshll.u32 %s7415_s16, 12 }
  0x99   : > { %s10503_s8 = scalar_select %p7706_p0, 1, 0 }
  0x9a   : > { %s10504_s19 = scalar_select %p7710_p1, 1, 0 }
  0x9b   : > { %s7718_s28 = scalar_lea.hbm %s10473_s0, %s6514_s25  ;;  %s349_s22 = scalar_lea.vmem [#allocation9], %s6397_s24 }
  0x9c   : > { %s356_s30 = sshll.u32 %s349_s22, 4  ;;  %p7724_p3 = pnand %p6952_p13, %p7693_p4  ;;  %s7720_s30 = int_to_ptr.vmem [resolvable:$true] %s356_s30 }
  0x9d   : > { %s7728_s11 = scalar_lea.sflag [#allocation10], %s345_s10  ;;  %s7303_s20 = scalar_lea.hbm %s7718_s28, 4096 }
  0x9e   : > { %p7304_p2 = scmp.ne.s32.totalorder %s7718_s28, %s7303_s20  ;;  %p7305_p8 = pneg %p7724_p3 }
  0x9f   : > { %s7308_s12 = scalar_lea.hbm %s10473_s0, 8192  ;;  %p7309_p9 = scmp.lt.u32.totalorder %s7718_s28, %s10473_s0 }
  0xa0   : > { %p7306_p5 = pnand %p7305_p8, %p7304_p2  ;;  %p7310_p4 = scmp.lt.u32.totalorder %s7308_s12, %s7303_s20 }
  0xa1   : > { %p7312_p11 = scmp.lt.u32.totalorder %s7303_s20, %s7718_s28 }
  0xa2   : > { %p7307_p7 = pneg %p7306_p5  ;;  %p7311_p10 = por %p7310_p4, %p7309_p9 }
  0xa4   : > { %p7313_p12 = por %p7312_p11, %p7311_p10 }
  0xa6   : > { %p7314_p13 = pnand %p7313_p12, %p7307_p7 }
  0xa8   : > { %7317 = shalt.err (!%p7314_p13)
}
  0xa9   : > { %s7318_s10 = scalar_lea.vmem %s7720_s30, 4096  ;;  %s7427_s22 = smov [#allocation9]  }
  0xaa   : > { %p7319_p2 = scmp.ne.s32.totalorder %s7720_s30, %s7318_s10  ;;  %s7323_s24 = sshll.u32 %s7427_s22, 4  ;;  %s7324_s24 = int_to_ptr.vmem [resolvable:$false] %s7323_s24 }
  0xab   : > { %s7325_s25 = scalar_lea.vmem %s7324_s24, 8192  ;;  %p7326_p0 = scmp.lt.s32.totalorder %s7720_s30, %s7324_s24 }
  0xac   : > { %p7321_p5 = pnand %p7319_p2, %p7305_p8  ;;  %p7327_p9 = scmp.lt.s32.totalorder %s7325_s25, %s7318_s10 }
  0xae   : > { %p7322_p1 = pneg %p7321_p5  ;;  %p7328_p4 = por %p7327_p9, %p7326_p0 }
  0xb0   : > { %p7329_p10 = pnand %p7328_p4, %p7322_p1 }
  0xb2   : > { %7332 = shalt.err (!%p7329_p10)
}
  0xb3   : > { %s7428_s20 = smov 128   ;;  %s7429_s12 = smov 8  }
  0xb4   : > { %6941 = dma.hbm_to_vmem [thread:$0]  (!%p7724_p3), %s7718_s28, 4096, %s7720_s30, %s7728_s11, %s7428_s20, %s7428_s20, %s7429_s12  }
  0xb5   : > { %p10506_p8 = scmp.ne.s32.totalorder %s10497_s18, 0 }
  0xb7   : > { %368 = sbr.rel (%p10506_p8) target bundleno = 2830 (0xb0e), region = 56 }
  0xbe   : > { %s7759_s26 = sand.u32 1, %s7407_s14  }
  0xbf   : > { %s6401_s27 = sshll.u32 %s7759_s26, 8  ;;  %s371_s10 = scalar_lea.sflag [#allocation10], %s7759_s26 }
  0xc0   : > { %s7763_s22 = scalar_lea.vmem [#allocation9], %s6401_s27 }
  0xc1   : > { %7378 = dma.done.wait (%p7699_p6), %s371_s10, 4096  }
  0xc2   : > { %7380 = vsyncadd (%p7699_p6), %s371_s10, 4294963200  ;;  %p10507_p0 = scmp.eq.s32.totalorder %s7526_s17, 0 }
  0xc4   : > { %7382 = dma.done.wait (%p10507_p0), [#allocation14], 208   ;;  %p10508_p1 = pmov %p10507_p0 }
  0xc5   : > { %p10509_p3 = pmov %p10507_p0 }
  0xc6   : > { %7384 = vsyncadd (%p10508_p1), [#allocation14], 4294967088 }
  0xc7   : > { %7386 = dma.done.wait (%p10509_p3), [#allocation17], 4624   ;;  %p10510_p7 = pmov %p10507_p0 }
  0xc8   : > { %p10511_p11 = pmov %p10507_p0 }
  0xc9   : > { %7388 = vsyncadd (%p10510_p7), [#allocation17], 4294962672 }
  0xca   : > { %7390 = dma.done.wait (%p10511_p11), [#allocation20], 144   ;;  %p10512_p12 = pmov %p10507_p0 }
  0xcb   : > { %p10513_p6 = pmov %p10507_p0 }
  0xcc   : > { %7392 = vsyncadd (%p10512_p12), [#allocation20], 4294967152 }
  0xcd   : > { %7394 = dma.done.wait (%p10513_p6), [#allocation12], 64   ;;  %p10514_p13 = pmov %p10507_p0 }
  0xcf   : > { %7396 = vsyncadd (%p10514_p13), [#allocation12], 4294967232 }
  0xd0   : > { %403 = sfence }
  0xd1   : > { %vm435_vm0 = vcmask 15360   ;;  %vm438_vm1 = vcmask 9216   ;;  %v491_v0 = vld [vmem:[%s7763_s22] sm:$0xff]  ;;  %v10486_v1 = vmov 0.0   ;;  %v492_v2 = vld [vmem:[%s7763_s22 + $0x8] sm:$0xff]  ;;  %v493_v3 = vld [vmem:[%s7763_s22 + $0x10] sm:$0xff] }
  0xd2   : > { %436 = vst.msk [vmem:[#allocation2] sm:$0xff] %vm435_vm0, %v10486_v1  ;;  %437 = vst.msk [vmem:[#allocation2 + $0x8] sm:$0xff] %vm435_vm0, %v10486_v1  ;;  %v494_v4 = vld [vmem:[%s7763_s22 + $0x18] sm:$0xff]  ;;  %v495_v5 = vld [vmem:[%s7763_s22 + $0x20] sm:$0xff]  ;;  %s7431_s18 = smov 2   ;;  %s7432_s6 = smov 4  }
  0xd3   : > { %439 = vst.msk [vmem:[#allocation2 + $0x10] sm:$0x3] %vm438_vm1, %v10486_v1  ;;  %442 = vst.msk [vmem:[#allocation2 + $0x28] sm:$0x3] %vm438_vm1, %v10486_v1  ;;  %v496_v6 = vld [vmem:[%s7763_s22 + $0x28] sm:$0xff]  ;;  %v497_v7 = vld [vmem:[%s7763_s22 + $0x30] sm:$0xff] }
  0xd4   : > { %440 = vst.msk [vmem:[#allocation2 + $0x18] sm:$0xff] %vm435_vm0, %v10486_v1  ;;  %441 = vst.msk [vmem:[#allocation2 + $0x20] sm:$0xff] %vm435_vm0, %v10486_v1  ;;  %v498_v8 = vld [vmem:[%s7763_s22 + $0x38] sm:$0xff]  ;;  %v499_v9 = vld [vmem:[%s7763_s22 + $0x40] sm:$0xff]  ;;  %s7433_s28 = smov 6   ;;  %s7434_s30 = smov 8  }
  0xd5   : > { %443 = vst.msk [vmem:[#allocation2 + $0x30] sm:$0xff] %vm435_vm0, %v10486_v1  ;;  %444 = vst.msk [vmem:[#allocation2 + $0x38] sm:$0xff] %vm435_vm0, %v10486_v1  ;;  %v500_v10 = vld [vmem:[%s7763_s22 + $0x48] sm:$0xff]  ;;  %v501_v11 = vld [vmem:[%s7763_s22 + $0x50] sm:$0xff]  ;;  %s7435_s29 = smov 10   ;;  %vm1737_vm2 = vcmask 1040384  }
  0xd6   : > { %445 = vst.msk [vmem:[#allocation2 + $0x40] sm:$0x3] %vm438_vm1, %v10486_v1  ;;  %448 = vst.msk [vmem:[#allocation2 + $0x58] sm:$0x3] %vm438_vm1, %v10486_v1  ;;  %v502_v12 = vld [vmem:[%s7763_s22 + $0x58] sm:$0xff]  ;;  %v503_v13 = vld [vmem:[%s7763_s22 + $0x60] sm:$0xff] }
  0xd7   : > { %446 = vst.msk [vmem:[#allocation2 + $0x48] sm:$0xff] %vm435_vm0, %v10486_v1  ;;  %447 = vst.msk [vmem:[#allocation2 + $0x50] sm:$0xff] %vm435_vm0, %v10486_v1  ;;  %v504_v14 = vld [vmem:[%s7763_s22 + $0x68] sm:$0xff]  ;;  %v505_v15 = vld [vmem:[%s7763_s22 + $0x70] sm:$0xff]  ;;  %s7436_s11 = smov 12   ;;  %s7437_s24 = smov 14  }
  0xd8   : > { %449 = vst.msk [vmem:[#allocation2 + $0x60] sm:$0xff] %vm435_vm0, %v10486_v1  ;;  %450 = vst.msk [vmem:[#allocation2 + $0x68] sm:$0xff] %vm435_vm0, %v10486_v1  ;;  %v506_v16 = vld [vmem:[%s7763_s22 + $0x78] sm:$0xff]  ;;  %v507_v17 = vld [vmem:[%s7763_s22 + $0x80] sm:$0xff]  ;;  %s7438_s25 = smov 16   ;;  %vm732_vm3 = vcmask 31760  }
  0xd9   : > { %451 = vst.msk [vmem:[#allocation2 + $0x70] sm:$0x3] %vm438_vm1, %v10486_v1  ;;  %454 = vst.msk [vmem:[#allocation2 + $0x88] sm:$0x3] %vm438_vm1, %v10486_v1  ;;  %v508_v18 = vld [vmem:[%s7763_s22 + $0x88] sm:$0xff]  ;;  %v620_v19 = vld [vmem:[#allocation2 + $0x1] sm:$0xff] }
  0xda   : > { %452 = vst.msk [vmem:[#allocation2 + $0x78] sm:$0xff] %vm435_vm0, %v10486_v1  ;;  %453 = vst.msk [vmem:[#allocation2 + $0x80] sm:$0xff] %vm435_vm0, %v10486_v1  ;;  %v621_v20 = vld [vmem:[#allocation2 + $0x9] sm:$0xff]  ;;  %v556_v62 = vld [vmem:[#allocation2] sm:$0xff]  ;;  %vm861_vm4 = vcmask 48160   ;;  %vm990_vm5 = vcmask 64560  }
  0xdb   : > { %455 = vst.msk [vmem:[#allocation2 + $0x90] sm:$0xff] %vm435_vm0, %v10486_v1  ;;  %456 = vst.msk [vmem:[#allocation2 + $0x98] sm:$0xff] %vm435_vm0, %v10486_v1  ;;  %v749_v21 = vld [vmem:[#allocation2 + $0x2] sm:$0xff]  ;;  %v652_v22 = vpack.c.bf16 %v621_v20, %v620_v19  ;;  %v750_v23 = vld [vmem:[#allocation2 + $0xa] sm:$0xff]  ;;  %vm1119_vm6 = vcmask 80960   ;;  %vm1248_vm7 = vcmask 97360  }
  0xdc   : > { %457 = vst.msk [vmem:[#allocation2 + $0xa0] sm:$0x3] %vm438_vm1, %v10486_v1  ;;  %460 = vst.msk [vmem:[#allocation2 + $0xb8] sm:$0x3] %vm438_vm1, %v10486_v1  ;;  %v781_v26 = vpack.c.bf16 %v750_v23, %v749_v21  ;;  %v557_v61 = vld [vmem:[#allocation2 + $0x8] sm:$0xff]  ;;  %v513_v23 = vld [vmem:[%s7763_s22 + $0xb0] sm:$0xff] }
  0xdd   : > { %458 = vst.msk [vmem:[#allocation2 + $0xa8] sm:$0xff] %vm435_vm0, %v10486_v1  ;;  %459 = vst.msk [vmem:[#allocation2 + $0xb0] sm:$0xff] %vm435_vm0, %v10486_v1  ;;  %684 = vrot.lane.b32.xlu0 %v652_v22, %s7431_s18  ;;  %v588_v63 = vpack.c.bf16 %v557_v61, %v556_v62  ;;  %vm1378_vm8 = vcmask 113760   ;;  %vm1507_vm9 = vcmask 130160   ;;  %vm1636_vm10 = vcmask 146560   ;;  %s7439_s20 = smov 64  }
  0xde   : > { %461 = vst.msk [vmem:[#allocation2 + $0xc0] sm:$0xff] %vm435_vm0, %v10486_v1  ;;  %462 = vst.msk [vmem:[#allocation2 + $0xc8] sm:$0xff] %vm435_vm0, %v10486_v1  ;;  %813 = vrot.lane.b32.xlu1 %v781_v26, %s7432_s6  ;;  %vm1688_vm11 = vcmask 146432   ;;  %vm1934_vm12 = vcmask 523264   ;;  %vm1937_vm13 = vcmask 517120   ;;  %vm2199_vm14 = vcmask 1048064  }
  0xdf   : > { %463 = vst.msk [vmem:[#allocation2 + $0xd0] sm:$0x3] %vm438_vm1, %v10486_v1  ;;  %466 = vst.msk [vmem:[#allocation2 + $0xe8] sm:$0x3] %vm438_vm1, %v10486_v1  ;;  %vm3979_vm15 = vcmask 523265   ;;  %s6072_s12 = sld [smem:[#allocation7]] }
  0xe0   : > { %464 = vst.msk [vmem:[#allocation2 + $0xd8] sm:$0xff] %vm435_vm0, %v10486_v1  ;;  %465 = vst.msk [vmem:[#allocation2 + $0xe0] sm:$0xff] %vm435_vm0, %v10486_v1  ;;  %s7445_s27 = smov 1   ;;  %s6499_s10 = sld [smem:[#allocation21 + $0x2]] }
  0xe1   : > { %467 = vst.msk [vmem:[#allocation2 + $0xf0] sm:$0xff] %vm435_vm0, %v10486_v1  ;;  %468 = vst.msk [vmem:[#allocation2 + $0xf8] sm:$0xff] %vm435_vm0, %v10486_v1  ;;  %p10547_p5 = scmp.ne.s32.totalorder %s10503_s8, 0 }
  0xe2   : > { %469 = vst.msk [vmem:[#allocation2 + $0x100] sm:$0x3] %vm438_vm1, %v10486_v1  ;;  %472 = vst.msk [vmem:[#allocation2 + $0x118] sm:$0x3] %vm438_vm1, %v10486_v1 }
  0xe3   : > { %470 = vst.msk [vmem:[#allocation2 + $0x108] sm:$0xff] %vm435_vm0, %v10486_v1  ;;  %471 = vst.msk [vmem:[#allocation2 + $0x110] sm:$0xff] %vm435_vm0, %v10486_v1 }
  0xe4   : > { %473 = vst.msk [vmem:[#allocation2 + $0x120] sm:$0xff] %vm435_vm0, %v10486_v1  ;;  %474 = vst.msk [vmem:[#allocation2 + $0x128] sm:$0xff] %vm435_vm0, %v10486_v1 }
  0xe5   : > { %475 = vst.msk [vmem:[#allocation2 + $0x130] sm:$0x3] %vm438_vm1, %v10486_v1  ;;  %478 = vst.msk [vmem:[#allocation2 + $0x148] sm:$0x3] %vm438_vm1, %v10486_v1 }
  0xe6   : > { %476 = vst.msk [vmem:[#allocation2 + $0x138] sm:$0xff] %vm435_vm0, %v10486_v1  ;;  %477 = vst.msk [vmem:[#allocation2 + $0x140] sm:$0xff] %vm435_vm0, %v10486_v1 }
  0xe7   : > { %479 = vst.msk [vmem:[#allocation2 + $0x150] sm:$0xff] %vm435_vm0, %v10486_v1  ;;  %480 = vst.msk [vmem:[#allocation2 + $0x158] sm:$0xff] %vm435_vm0, %v10486_v1 }
  0xe8   : > { %481 = vst.msk [vmem:[#allocation2 + $0x160] sm:$0x3] %vm438_vm1, %v10486_v1  ;;  %484 = vst.msk [vmem:[#allocation2 + $0x178] sm:$0x3] %vm438_vm1, %v10486_v1 }
  0xe9   : > { %482 = vst.msk [vmem:[#allocation2 + $0x168] sm:$0xff] %vm435_vm0, %v10486_v1  ;;  %483 = vst.msk [vmem:[#allocation2 + $0x170] sm:$0xff] %vm435_vm0, %v10486_v1 }
  0xea   : > { %485 = vst.msk [vmem:[#allocation2 + $0x180] sm:$0xff] %vm435_vm0, %v10486_v1  ;;  %486 = vst.msk [vmem:[#allocation2 + $0x188] sm:$0xff] %vm435_vm0, %v10486_v1 }
  0xeb   : > { %487 = vst.msk [vmem:[#allocation2 + $0x190] sm:$0x3] %vm438_vm1, %v10486_v1  ;;  %490 = vst.msk [vmem:[#allocation2 + $0x1a8] sm:$0x3] %vm438_vm1, %v10486_v1  ;;  %vm3983_vm1 = vcmask 522240  }
  0xec   : > { %488 = vst.msk [vmem:[#allocation2 + $0x198] sm:$0xff] %vm435_vm0, %v10486_v1  ;;  %489 = vst.msk [vmem:[#allocation2 + $0x1a0] sm:$0xff] %vm435_vm0, %v10486_v1 }
  0xed   : > { %524 = vst.msk [vmem:[#allocation2 + $0x19] sm:$0xff] %vm435_vm0, %v491_v0  ;;  %525 = vst.msk [vmem:[#allocation2 + $0x21] sm:$0xff] %vm435_vm0, %v492_v2 }
  0xee   : > { %526 = vst.msk [vmem:[#allocation2 + $0x31] sm:$0xff] %vm435_vm0, %v493_v3  ;;  %527 = vst.msk [vmem:[#allocation2 + $0x39] sm:$0xff] %vm435_vm0, %v494_v4 }
  0xef   : > { %528 = vst.msk [vmem:[#allocation2 + $0x49] sm:$0xff] %vm435_vm0, %v495_v5  ;;  %529 = vst.msk [vmem:[#allocation2 + $0x51] sm:$0xff] %vm435_vm0, %v496_v6  ;;  %v509_v6 = vld [vmem:[%s7763_s22 + $0x90] sm:$0xff] }
  0xf0   : > { %530 = vst.msk [vmem:[#allocation2 + $0x61] sm:$0xff] %vm435_vm0, %v497_v7  ;;  %531 = vst.msk [vmem:[#allocation2 + $0x69] sm:$0xff] %vm435_vm0, %v498_v8  ;;  %v510_v7 = vld [vmem:[%s7763_s22 + $0x98] sm:$0xff]  ;;  %v7094_v8 = vld [vmem:[#allocation13] sm:$0xff]  }
  0xf1   : > { %532 = vst.msk [vmem:[#allocation2 + $0x79] sm:$0xff] %vm435_vm0, %v499_v9  ;;  %533 = vst.msk [vmem:[#allocation2 + $0x81] sm:$0xff] %vm435_vm0, %v500_v10  ;;  %v7095_v9 = vld [vmem:[#allocation13 + $0x8] ss:$0 sps:$4 sm:$0x11]   ;;  %v511_v10 = vld [vmem:[%s7763_s22 + $0xa0] sm:$0xff]  ;;  %6784 = vmatprep.subr.bf16.mxu0 %v7094_v8 }
  0xf2   : > { %534 = vst.msk [vmem:[#allocation2 + $0x91] sm:$0xff] %vm435_vm0, %v501_v11  ;;  %535 = vst.msk [vmem:[#allocation2 + $0x99] sm:$0xff] %vm435_vm0, %v502_v12  ;;  %v512_v11 = vld [vmem:[%s7763_s22 + $0xa8] sm:$0xff]  ;;  %6785 = vmatpush3.bf16.msra.mxu0 %v7094_v8  ;;  %v522_v8 = vld [vmem:[%s7763_s22 + $0xf8] sm:$0xff] }
  0xf3   : > { %536 = vst.msk [vmem:[#allocation2 + $0xa9] sm:$0xff] %vm435_vm0, %v503_v13  ;;  %537 = vst.msk [vmem:[#allocation2 + $0xb1] sm:$0xff] %vm435_vm0, %v504_v14  ;;  %v1739_v13 = vsel %vm1737_vm2, %v7095_v9, 0  ;;  %6890 = vmatprep.subr.msk.bf16.mxu0 %vm1737_vm2, %v7095_v9  ;;  %vm3833_vm2 = vcmask 521216  }
  0xf4   : > { %538 = vst.msk [vmem:[#allocation2 + $0xc1] sm:$0xff] %vm435_vm0, %v505_v15  ;;  %539 = vst.msk [vmem:[#allocation2 + $0xc9] sm:$0xff] %vm435_vm0, %v506_v16  ;;  %v622_v24 = vld [vmem:[#allocation2 + $0x19] sm:$0xff]  ;;  %v623_v25 = vld [vmem:[#allocation2 + $0x21] sm:$0xff] }
  0xf5   : > { %540 = vst.msk [vmem:[#allocation2 + $0xd9] sm:$0xff] %vm435_vm0, %v507_v17  ;;  %541 = vst.msk [vmem:[#allocation2 + $0xe1] sm:$0xff] %vm435_vm0, %v508_v18  ;;  %v751_v27 = vld [vmem:[#allocation2 + $0x1a] sm:$0xff]  ;;  %v752_v28 = vld [vmem:[#allocation2 + $0x22] sm:$0xff]  ;;  %v653_v30 = vpack.c.bf16 %v623_v25, %v622_v24 }
  0xf6   : > { %v878_v29 = vld [vmem:[#allocation2 + $0x18] sm:$0xff]  ;;  %v879_v31 = vld [vmem:[#allocation2 + $0x20] sm:$0xff]  ;;  %v880_v32 = vld [vmem:[#allocation2 + $0x30] sm:$0xff]  ;;  %v782_v34 = vpack.c.bf16 %v752_v28, %v751_v27  ;;  %604 = vst.msk [vmem:[#allocation3] sm:$0xff] %vm435_vm0, %v588_v63  ;;  %6787 = vmatpush3.bf16.msra.mxu0 %v1739_v13 }
  0xf7   : > { %v881_v33 = vld [vmem:[#allocation2 + $0x38] sm:$0xff]  ;;  %v910_v35 = vpack.c.bf16 %v879_v31, %v878_v29  ;;  %v1268_v37 = vld [vmem:[#allocation2 + $0x48] sm:$0xff]  ;;  %v1269_v38 = vld [vmem:[#allocation2 + $0x50] sm:$0xff]  ;;  %686 = vrot.lane.b32.xlu0 %v653_v30, %s7431_s18  ;;  %542 = vst.msk [vmem:[#allocation2 + $0xf1] sm:$0xff] %vm435_vm0, %v509_v6 }
  0xf8   : > { %v7931_v36 = vpack.c.bf16 %v881_v33, %v880_v32  ;;  %v7933_v39 = vpack.c.bf16 %v1269_v38, %v1268_v37  ;;  %v884_v40 = vld [vmem:[#allocation2 + $0x60] sm:$0xff]  ;;  %v885_v41 = vld [vmem:[#allocation2 + $0x68] sm:$0xff]  ;;  %815 = vrot.lane.b32.xlu1 %v782_v34, %s7432_s6  ;;  %v1009_v42 = vld [vmem:[#allocation2 + $0x31] sm:$0xff]  ;;  %543 = vst.msk [vmem:[#allocation2 + $0xf9] sm:$0xff] %vm435_vm0, %v510_v7 }
  0xf9   : > { %605 = vst.msk [vmem:[#allocation3 + $0x8] sm:$0xff] %vm435_vm0, %v910_v35  ;;  %v7940_v43 = vpack.c.bf16 %v885_v41, %v884_v40  ;;  %v1010_v44 = vld [vmem:[#allocation2 + $0x39] sm:$0xff]  ;;  %v888_v48 = vld [vmem:[#allocation2 + $0x90] sm:$0xff]  ;;  %544 = vst.msk [vmem:[#allocation2 + $0x109] sm:$0xff] %vm435_vm0, %v511_v10 }
  0xfa   : > { %606 = vst.msk [vmem:[#allocation3 + $0x10] sm:$0xff] %vm435_vm0, %v7931_v36  ;;  %607 = vst.msk [vmem:[#allocation3 + $0x18] sm:$0xff] %vm435_vm0, %v7933_v39  ;;  %v1272_v45 = vld [vmem:[#allocation2 + $0x78] sm:$0xff]  ;;  %v1273_v46 = vld [vmem:[#allocation2 + $0x80] sm:$0xff]  ;;  %v7951_v50 = vpack.c.bf16 %v1010_v44, %v1009_v42 }
  0xfb   : > { %v7944_v47 = vpack.c.bf16 %v1273_v46, %v1272_v45  ;;  %608 = vst.msk [vmem:[#allocation3 + $0x20] sm:$0xff] %vm435_vm0, %v7940_v43  ;;  %942 = vrot.lane.b32.xlu0 %v910_v35, %s7433_s28  ;;  %v889_v49 = vld [vmem:[#allocation2 + $0x98] sm:$0xff]  ;;  %v1276_v54 = vld [vmem:[#allocation2 + $0xa8] sm:$0xff]  ;;  %v1277_v55 = vld [vmem:[#allocation2 + $0xb0] sm:$0xff] }
  0xfc   : > { %944 = vrot.lane.b32.xlu1 %v7931_v36, %s7433_s28  ;;  %v1138_v51 = vld [vmem:[#allocation2 + $0x32] sm:$0xff]  ;;  %v7953_v52 = vpack.c.bf16 %v889_v49, %v888_v48  ;;  %v1139_v53 = vld [vmem:[#allocation2 + $0x3a] sm:$0xff]  ;;  %v7957_v56 = vpack.c.bf16 %v1277_v55, %v1276_v54  ;;  %v893_v58 = vld [vmem:[#allocation2 + $0xc8] sm:$0xff]  ;;  %545 = vst.msk [vmem:[#allocation2 + $0x111] sm:$0xff] %vm435_vm0, %v512_v11 }
  0xfd   : > { %609 = vst.msk [vmem:[#allocation3 + $0x28] sm:$0xff] %vm435_vm0, %v7944_v47  ;;  %v892_v57 = vld [vmem:[#allocation2 + $0xc0] sm:$0xff]  ;;  %v1169_v59 = vpack.c.bf16 %v1139_v53, %v1138_v51  ;;  %v1280_v0 = vld [vmem:[#allocation2 + $0xd8] sm:$0xff]  ;;  %v1397_v3 = vld [vmem:[#allocation2 + $0x49] sm:$0xff] }
  0xfe   : > { %610 = vst.msk [vmem:[#allocation3 + $0x30] sm:$0xff] %vm435_vm0, %v7953_v52  ;;  %v7964_v60 = vpack.c.bf16 %v893_v58, %v892_v57  ;;  %611 = vst.msk [vmem:[#allocation3 + $0x38] sm:$0xff] %vm435_vm0, %v7957_v56  ;;  %v1281_v2 = vld [vmem:[#allocation2 + $0xe0] sm:$0xff]  ;;  %v1398_v4 = vld [vmem:[#allocation2 + $0x51] sm:$0xff] }
  0xff   : > { %1071 = vrot.lane.b32.xlu0 %v653_v30, %s7434_s30  ;;  %v7971_v5 = vpack.c.bf16 %v1281_v2, %v1280_v0  ;;  %v1526_v12 = vld [vmem:[#allocation2 + $0x4a] sm:$0xff]  ;;  %v1428_v14 = vpack.c.bf16 %v1398_v4, %v1397_v3  ;;  %v1527_v15 = vld [vmem:[#allocation2 + $0x52] sm:$0xff]  ;;  %546 = vst.msk [vmem:[#allocation2 + $0x121] sm:$0xff] %vm435_vm0, %v513_v23  ;;  %v1013_v25 = vld [vmem:[#allocation2 + $0x61] sm:$0xff] }
 0x100   : > { %1073 = vrot.lane.b32.xlu1 %v7951_v50, %s7434_s30  ;;  %612 = vst.msk [vmem:[#allocation3 + $0x40] sm:$0xff] %vm435_vm0, %v7964_v60  ;;  %v1557_v16 = vpack.c.bf16 %v1527_v15, %v1526_v12  ;;  %v896_v17 = vld [vmem:[#allocation2 + $0xf0] sm:$0xff]  ;;  %v897_v18 = vld [vmem:[#allocation2 + $0xf8] sm:$0xff]  ;;  %v1284_v20 = vld [vmem:[#allocation2 + $0x108] sm:$0xff] }
 0x101   : > { %613 = vst.msk [vmem:[#allocation3 + $0x48] sm:$0xff] %vm435_vm0, %v7971_v5  ;;  %v7992_v19 = vpack.c.bf16 %v897_v18, %v896_v17  ;;  %v514_v24 = vld [vmem:[%s7763_s22 + $0xb8] sm:$0xff]  ;;  %v515_v33 = vld [vmem:[%s7763_s22 + $0xc0] sm:$0xff]  ;;  %v1530_v42 = vld [vmem:[#allocation2 + $0x7a] sm:$0xff] }
 0x102   : > { %547 = vst.msk [vmem:[#allocation2 + $0x129] sm:$0xff] %vm435_vm0, %v514_v24  ;;  %v1014_v26 = vld [vmem:[#allocation2 + $0x69] sm:$0xff]  ;;  %548 = vst.msk [vmem:[#allocation2 + $0x139] sm:$0xff] %vm435_vm0, %v515_v33  ;;  %v1402_v37 = vld [vmem:[#allocation2 + $0x81] sm:$0xff] }
 0x103   : > { %1200 = vrot.lane.b32.xlu0 %v782_v34, %s7435_s29  ;;  %v1285_v21 = vld [vmem:[#allocation2 + $0x110] sm:$0xff]  ;;  %614 = vst.msk [vmem:[#allocation3 + $0x50] sm:$0xff] %vm435_vm0, %v7992_v19  ;;  %v1042_v30 = vpack.c.bf16 %v1014_v26, %v1013_v25  ;;  %v1142_v31 = vld [vmem:[#allocation2 + $0x62] sm:$0xff]  ;;  %v516_v34 = vld [vmem:[%s7763_s22 + $0xc8] sm:$0xff] }
 0x104   : > { %1202 = vrot.lane.b32.xlu1 %v1169_v59, %s7435_s29  ;;  %v7995_v22 = vpack.c.bf16 %v1285_v21, %v1284_v20  ;;  %v1143_v32 = vld [vmem:[#allocation2 + $0x6a] sm:$0xff]  ;;  %549 = vst.msk [vmem:[#allocation2 + $0x141] sm:$0xff] %vm435_vm0, %v516_v34  ;;  %v1531_v44 = vld [vmem:[#allocation2 + $0x82] sm:$0xff]  ;;  %v1018_v49 = vld [vmem:[#allocation2 + $0x99] sm:$0xff] }
 0x105   : > { %v1171_v35 = vpack.c.bf16 %v1143_v32, %v1142_v31  ;;  %v1559_v45 = vpack.c.bf16 %v1531_v44, %v1530_v42  ;;  %v518_v46 = vld [vmem:[%s7763_s22 + $0xd8] sm:$0xff]  ;;  %v1017_v48 = vld [vmem:[#allocation2 + $0x91] sm:$0xff]  ;;  %v1147_v57 = vld [vmem:[#allocation2 + $0x9a] sm:$0xff]  ;;  %555 = vst.msk [vmem:[#allocation2 + $0x189] sm:$0xff] %vm435_vm0, %v522_v8 }
 0x106   : > { %615 = vst.msk [vmem:[#allocation3 + $0x58] sm:$0xff] %vm435_vm0, %v7995_v22  ;;  %v900_v27 = vld [vmem:[#allocation2 + $0x120] sm:$0xff]  ;;  %551 = vst.msk [vmem:[#allocation2 + $0x159] sm:$0xff] %vm435_vm0, %v518_v46  ;;  %v1044_v54 = vpack.c.bf16 %v1018_v49, %v1017_v48  ;;  %v1146_v55 = vld [vmem:[#allocation2 + $0x92] sm:$0xff] }
 0x107   : > { %1330 = vrot.lane.b32.xlu0 %v7931_v36, %s7436_s11  ;;  %v1401_v36 = vld [vmem:[#allocation2 + $0x79] sm:$0xff]  ;;  %v519_v58 = vld [vmem:[%s7763_s22 + $0xe0] sm:$0xff]  ;;  %v1021_v9 = vld [vmem:[#allocation2 + $0xc1] sm:$0xff]  ;;  %1942 = vst.msk [vmem:[#allocation4 + $0x30] sm:$0xff] %vm1934_vm12, %v10486_v1 }
 0x108   : > { %1332 = vrot.lane.b32.xlu1 %v7933_v39, %s7436_s11  ;;  %v1430_v41 = vpack.c.bf16 %v1402_v37, %v1401_v36  ;;  %552 = vst.msk [vmem:[#allocation2 + $0x169] sm:$0xff] %vm435_vm0, %v519_v58  ;;  %v1405_v61 = vld [vmem:[#allocation2 + $0xa9] sm:$0xff]  ;;  %v1406_v62 = vld [vmem:[#allocation2 + $0xb1] sm:$0xff]  ;;  %v1538_v21 = vld [vmem:[#allocation2 + $0xda] sm:$0xff] }
 0x109   : > { %v901_v28 = vld [vmem:[#allocation2 + $0x128] sm:$0xff]  ;;  %v1288_v38 = vld [vmem:[#allocation2 + $0x138] sm:$0xff]  ;;  %v1432_v3 = vpack.c.bf16 %v1406_v62, %v1405_v61  ;;  %1943 = vst.msk [vmem:[#allocation4 + $0x38] sm:$0xff] %vm1934_vm12, %v10486_v1  ;;  %1935 = vst.msk [vmem:[#allocation4] sm:$0xff] %vm1934_vm12, %v10486_v1 }
 0x10a   : > { %v8011_v29 = vpack.c.bf16 %v901_v28, %v900_v27  ;;  %v1534_v4 = vld [vmem:[#allocation2 + $0xaa] sm:$0xff]  ;;  %v1535_v6 = vld [vmem:[#allocation2 + $0xb2] sm:$0xff]  ;;  %v1150_v12 = vld [vmem:[#allocation2 + $0xc2] sm:$0xff]  ;;  %1936 = vst.msk [vmem:[#allocation4 + $0x8] sm:$0xff] %vm1934_vm12, %v10486_v1 }
 0x10b   : > { %1459 = vrot.lane.b32.xlu0 %v7951_v50, %s7437_s24  ;;  %v1561_v7 = vpack.c.bf16 %v1535_v6, %v1534_v4  ;;  %v1022_v10 = vld [vmem:[#allocation2 + $0xc9] sm:$0xff]  ;;  %v1025_v33 = vld [vmem:[#allocation2 + $0xf1] sm:$0xff]  ;;  %v1026_v34 = vld [vmem:[#allocation2 + $0xf9] sm:$0xff]  ;;  %1939 = vst.msk [vmem:[#allocation4 + $0x18] sm:$0xff] %vm1934_vm12, %v10486_v1 }
 0x10c   : > { %1461 = vrot.lane.b32.xlu1 %v1428_v14, %s7437_s24  ;;  %616 = vst.msk [vmem:[#allocation3 + $0x60] sm:$0xff] %vm435_vm0, %v8011_v29  ;;  %v1046_v11 = vpack.c.bf16 %v1022_v10, %v1021_v9  ;;  %v1151_v13 = vld [vmem:[#allocation2 + $0xca] sm:$0xff]  ;;  %v1539_v23 = vld [vmem:[#allocation2 + $0xe2] sm:$0xff]  ;;  %v1048_v36 = vpack.c.bf16 %v1026_v34, %v1025_v33 }
 0x10d   : > { %v1563_v25 = vpack.c.bf16 %v1539_v23, %v1538_v21  ;;  %v1414_v46 = vld [vmem:[#allocation2 + $0x111] sm:$0xff]  ;;  %v1029_v4 = vld [vmem:[#allocation2 + $0x121] sm:$0xff]  ;;  %v1030_v6 = vld [vmem:[#allocation2 + $0x129] sm:$0xff]  ;;  %1940 = vst.msk [vmem:[#allocation4 + $0x20] sm:$0xff] %vm1934_vm12, %v10486_v1 }
 0x10e   : > { %v1158_v9 = vld [vmem:[#allocation2 + $0x122] sm:$0xff]  ;;  %v1159_v10 = vld [vmem:[#allocation2 + $0x12a] sm:$0xff]  ;;  %v1546_v21 = vld [vmem:[#allocation2 + $0x13a] sm:$0xff]  ;;  %1945 = vst.msk [vmem:[#allocation4 + $0x48] sm:$0xff] %vm1934_vm12, %v10486_v1 }
 0x10f   : > { %1588 = vrot.lane.b32.xlu0 %v1169_v59, %s7438_s25  ;;  %v1292_v63 = vld [vmem:[#allocation2 + $0x168] sm:$0xff]  ;;  %v1034_v34 = vld [vmem:[#allocation2 + $0x159] sm:$0xff]  ;;  %1946 = vst.msk [vmem:[#allocation4 + $0x50] sm:$0xff] %vm1934_vm12, %v10486_v1  ;;  %1948 = vst.msk [vmem:[#allocation4 + $0x60] sm:$0xff] %vm1934_vm12, %v10486_v1 }
 0x110   : > { %1590 = vrot.lane.b32.xlu1 %v1557_v16, %s7438_s25  ;;  %v1547_v23 = vld [vmem:[#allocation2 + $0x142] sm:$0xff]  ;;  %1949 = vst.msk [vmem:[#allocation4 + $0x68] sm:$0xff] %vm1934_vm12, %v10486_v1  ;;  %1951 = vst.msk [vmem:[#allocation4 + $0x78] sm:$0xff] %vm1934_vm12, %v10486_v1 }
 0x111   : > { %1952 = vst.msk [vmem:[#allocation4 + $0x80] sm:$0xff] %vm1934_vm12, %v10486_v1  ;;  %1954 = vst.msk [vmem:[#allocation4 + $0x90] sm:$0xff] %vm1934_vm12, %v10486_v1 }
 0x112   : > { %1955 = vst.msk [vmem:[#allocation4 + $0x98] sm:$0xff] %vm1934_vm12, %v10486_v1  ;;  %1957 = vst.msk [vmem:[#allocation4 + $0xa8] sm:$0xff] %vm1934_vm12, %v10486_v1 }
 0x113   : > { %688 = vrot.lane.b32.xlu0 %v7951_v50, %s7431_s18  ;;  %1958 = vst.msk [vmem:[#allocation4 + $0xb0] sm:$0xff] %vm1934_vm12, %v10486_v1  ;;  %1960 = vst.msk [vmem:[#allocation4 + $0xc0] sm:$0xff] %vm1934_vm12, %v10486_v1 }
 0x114   : > { %690 = vrot.lane.b32.xlu1 %v1428_v14, %s7431_s18  ;;  %1961 = vst.msk [vmem:[#allocation4 + $0xc8] sm:$0xff] %vm1934_vm12, %v10486_v1  ;;  %1963 = vst.msk [vmem:[#allocation4 + $0xd8] sm:$0xff] %vm1934_vm12, %v10486_v1 }
 0x115   : > { %1964 = vst.msk [vmem:[#allocation4 + $0xe0] sm:$0xff] %vm1934_vm12, %v10486_v1  ;;  %1966 = vst.msk [vmem:[#allocation4 + $0xf0] sm:$0xff] %vm1934_vm12, %v10486_v1 }
 0x116   : > { %1967 = vst.msk [vmem:[#allocation4 + $0xf8] sm:$0xff] %vm1934_vm12, %v10486_v1  ;;  %1969 = vst.msk [vmem:[#allocation4 + $0x108] sm:$0xff] %vm1934_vm12, %v10486_v1 }
 0x117   : > { %817 = vrot.lane.b32.xlu0 %v1169_v59, %s7432_s6  ;;  %v520_v59 = vld [vmem:[%s7763_s22 + $0xe8] sm:$0xff]  ;;  %1970 = vst.msk [vmem:[#allocation4 + $0x110] sm:$0xff] %vm1934_vm12, %v10486_v1  ;;  %1972 = vst.msk [vmem:[#allocation4 + $0x120] sm:$0xff] %vm1934_vm12, %v10486_v1 }
 0x118   : > { %819 = vrot.lane.b32.xlu1 %v1557_v16, %s7432_s6  ;;  %553 = vst.msk [vmem:[#allocation2 + $0x171] sm:$0xff] %vm435_vm0, %v520_v59 }
 0x119   : > { %1973 = vst.msk [vmem:[#allocation4 + $0x128] sm:$0xff] %vm1934_vm12, %v10486_v1  ;;  %1975 = vst.msk [vmem:[#allocation4 + $0x138] sm:$0xff] %vm1934_vm12, %v10486_v1 }
 0x11a   : > { %1976 = vst.msk [vmem:[#allocation4 + $0x140] sm:$0xff] %vm1934_vm12, %v10486_v1  ;;  %1978 = vst.msk [vmem:[#allocation4 + $0x150] sm:$0xff] %vm1934_vm12, %v10486_v1 }
 0x11b   : > { %946 = vrot.lane.b32.xlu0 %v7933_v39, %s7433_s28  ;;  %v1289_v39 = vld [vmem:[#allocation2 + $0x140] sm:$0xff]  ;;  %1979 = vst.msk [vmem:[#allocation4 + $0x158] sm:$0xff] %vm1934_vm12, %v10486_v1  ;;  %1981 = vst.msk [vmem:[#allocation4 + $0x168] sm:$0xff] %vm1934_vm12, %v10486_v1 }
 0x11c   : > { %948 = vrot.lane.b32.xlu1 %v7940_v43, %s7433_s28  ;;  %v8029_v40 = vpack.c.bf16 %v1289_v39, %v1288_v38  ;;  %v1154_v38 = vld [vmem:[#allocation2 + $0xf2] sm:$0xff]  ;;  %v1155_v39 = vld [vmem:[#allocation2 + $0xfa] sm:$0xff]  ;;  %1982 = vst.msk [vmem:[#allocation4 + $0x170] sm:$0xff] %vm1934_vm12, %v10486_v1  ;;  %1984 = vst.msk [vmem:[#allocation4 + $0x180] sm:$0xff] %vm1934_vm12, %v10486_v1 }
 0x11d   : > { %v1177_v42 = vpack.c.bf16 %v1155_v39, %v1154_v38  ;;  %v1163_v39 = vld [vmem:[#allocation2 + $0x15a] sm:$0xff]  ;;  %1985 = vst.msk [vmem:[#allocation4 + $0x188] sm:$0xff] %vm1934_vm12, %v10486_v1  ;;  %1987 = vst.msk [vmem:[#allocation4 + $0x198] sm:$0xff] %vm1934_vm12, %v10486_v1 }
 0x11e   : > { %617 = vst.msk [vmem:[#allocation3 + $0x68] sm:$0xff] %vm435_vm0, %v8029_v40 }
 0x11f   : > { %1075 = vrot.lane.b32.xlu0 %v1428_v14, %s7434_s30  ;;  %v1293_v0 = vld [vmem:[#allocation2 + $0x170] sm:$0xff]  ;;  %v1175_v14 = vpack.c.bf16 %v1151_v13, %v1150_v12  ;;  %v1179_v12 = vpack.c.bf16 %v1159_v10, %v1158_v9  ;;  %1988 = vst.msk [vmem:[#allocation4 + $0x1a0] sm:$0xff] %vm1934_vm12, %v10486_v1 }
 0x120   : > { %1077 = vrot.lane.b32.xlu1 %v1042_v30, %s7434_s30  ;;  %v8065_v2 = vpack.c.bf16 %v1293_v0, %v1292_v63  ;;  %1944 = vst.msk [vmem:[#allocation4 + $0x40] sm:$0x3] %vm1937_vm13, %v10486_v1  ;;  %1938 = vst.msk [vmem:[#allocation4 + $0x10] sm:$0x3] %vm1937_vm13, %v10486_v1 }
 0x121   : > { %1941 = vst.msk [vmem:[#allocation4 + $0x28] sm:$0x3] %vm1937_vm13, %v10486_v1  ;;  %1947 = vst.msk [vmem:[#allocation4 + $0x58] sm:$0x3] %vm1937_vm13, %v10486_v1 }
 0x122   : > { %619 = vst.msk [vmem:[#allocation3 + $0x78] sm:$0xff] %vm435_vm0, %v8065_v2 }
 0x123   : > { %1204 = vrot.lane.b32.xlu0 %v1557_v16, %s7435_s29  ;;  %v1409_v16 = vld [vmem:[#allocation2 + $0xd9] sm:$0xff]  ;;  %1950 = vst.msk [vmem:[#allocation4 + $0x70] sm:$0x3] %vm1937_vm13, %v10486_v1  ;;  %1953 = vst.msk [vmem:[#allocation4 + $0x88] sm:$0x3] %vm1937_vm13, %v10486_v1 }
 0x124   : > { %1206 = vrot.lane.b32.xlu1 %v1171_v35, %s7435_s29  ;;  %1956 = vst.msk [vmem:[#allocation4 + $0xa0] sm:$0x3] %vm1937_vm13, %v10486_v1  ;;  %1959 = vst.msk [vmem:[#allocation4 + $0xb8] sm:$0x3] %vm1937_vm13, %v10486_v1 }
 0x125   : > { %1962 = vst.msk [vmem:[#allocation4 + $0xd0] sm:$0x3] %vm1937_vm13, %v10486_v1  ;;  %1965 = vst.msk [vmem:[#allocation4 + $0xe8] sm:$0x3] %vm1937_vm13, %v10486_v1 }
 0x126   : > { %1968 = vst.msk [vmem:[#allocation4 + $0x100] sm:$0x3] %vm1937_vm13, %v10486_v1  ;;  %1971 = vst.msk [vmem:[#allocation4 + $0x118] sm:$0x3] %vm1937_vm13, %v10486_v1 }
 0x127   : > { %1334 = vrot.lane.b32.xlu0 %v7940_v43, %s7436_s11  ;;  %v517_v43 = vld [vmem:[%s7763_s22 + $0xd0] sm:$0xff]  ;;  %1974 = vst.msk [vmem:[#allocation4 + $0x130] sm:$0x3] %vm1937_vm13, %v10486_v1  ;;  %1977 = vst.msk [vmem:[#allocation4 + $0x148] sm:$0x3] %vm1937_vm13, %v10486_v1 }
 0x128   : > { %1336 = vrot.lane.b32.xlu1 %v7944_v47, %s7436_s11  ;;  %550 = vst.msk [vmem:[#allocation2 + $0x151] sm:$0xff] %vm435_vm0, %v517_v43  ;;  %v1413_v43 = vld [vmem:[#allocation2 + $0x109] sm:$0xff] }
 0x129   : > { %v1436_v49 = vpack.c.bf16 %v1414_v46, %v1413_v43  ;;  %v1422_v43 = vld [vmem:[#allocation2 + $0x171] sm:$0xff]  ;;  %1980 = vst.msk [vmem:[#allocation4 + $0x160] sm:$0x3] %vm1937_vm13, %v10486_v1  ;;  %1983 = vst.msk [vmem:[#allocation4 + $0x178] sm:$0x3] %vm1937_vm13, %v10486_v1 }
 0x12a   : > { %1986 = vst.msk [vmem:[#allocation4 + $0x190] sm:$0x3] %vm1937_vm13, %v10486_v1  ;;  %1989 = vst.msk [vmem:[#allocation4 + $0x1a8] sm:$0x3] %vm1937_vm13, %v10486_v1  ;;  %vm5988_vm13 = vcmask 1047559  }
 0x12b   : > { %1463 = vrot.lane.b32.xlu0 %v1042_v30, %s7437_s24 }
 0x12c   : > { %1465 = vrot.lane.b32.xlu1 %v1430_v41, %s7437_s24 }
 0x12f   : > { %1592 = vrot.lane.b32.xlu0 %v1171_v35, %s7438_s25  ;;  %v904_v50 = vld [vmem:[#allocation2 + $0x150] sm:$0xff]  ;;  %v905_v51 = vld [vmem:[#allocation2 + $0x158] sm:$0xff] }
 0x130   : > { %1594 = vrot.lane.b32.xlu1 %v1559_v45, %s7438_s25  ;;  %v8047_v53 = vpack.c.bf16 %v905_v51, %v904_v50  ;;  %v1033_v33 = vld [vmem:[#allocation2 + $0x151] sm:$0xff] }
 0x131   : > { %v1162_v38 = vld [vmem:[#allocation2 + $0x152] sm:$0xff] }
 0x132   : > { %618 = vst.msk [vmem:[#allocation3 + $0x70] sm:$0xff] %vm435_vm0, %v8047_v53 }
 0x133   : > { %692 = vrot.lane.b32.xlu0 %v1042_v30, %s7431_s18 }
 0x134   : > { %694 = vrot.lane.b32.xlu1 %v1430_v41, %s7431_s18 }
 0x137   : > { %821 = vrot.lane.b32.xlu0 %v1171_v35, %s7432_s6 }
 0x138   : > { %823 = vrot.lane.b32.xlu1 %v1559_v45, %s7432_s6 }
 0x13b   : > { %950 = vrot.lane.b32.xlu0 %v7944_v47, %s7433_s28  ;;  %v1173_v47 = vpack.c.bf16 %v1147_v57, %v1146_v55  ;;  %v1543_v55 = vld [vmem:[#allocation2 + $0x112] sm:$0xff] }
 0x13c   : > { %952 = vrot.lane.b32.xlu1 %v7953_v52, %s7433_s28 }
 0x13f   : > { %1079 = vrot.lane.b32.xlu0 %v1430_v41, %s7434_s30 }
 0x140   : > { %1081 = vrot.lane.b32.xlu1 %v1044_v54, %s7434_s30 }
 0x143   : > { %1208 = vrot.lane.b32.xlu0 %v1559_v45, %s7435_s29 }
 0x144   : > { %1210 = vrot.lane.b32.xlu1 %v1173_v47, %s7435_s29 }
 0x147   : > { %1338 = vrot.lane.b32.xlu0 %v7953_v52, %s7436_s11  ;;  %v521_v52 = vld [vmem:[%s7763_s22 + $0xf0] sm:$0xff]  ;;  %s6500_s22 = sld [smem:[#allocation21 + $0x102]] }
 0x148   : > { %1340 = vrot.lane.b32.xlu1 %v7957_v56, %s7436_s11  ;;  %554 = vst.msk [vmem:[#allocation2 + $0x181] sm:$0xff] %vm435_vm0, %v521_v52  ;;  %v1050_v52 = vpack.c.bf16 %v1030_v6, %v1029_v4  ;;  %vm4228_vm0 = vcmask 523266  }
 0x14b   : > { %1467 = vrot.lane.b32.xlu0 %v1044_v54, %s7437_s24 }
 0x14c   : > { %1469 = vrot.lane.b32.xlu1 %v1432_v3, %s7437_s24 }
 0x14f   : > { %1596 = vrot.lane.b32.xlu0 %v1173_v47, %s7438_s25  ;;  %v685_v15 = vpop.permute.xlu0 %684  ;;  %v1037_v6 = vld [vmem:[#allocation2 + $0x181] sm:$0xff] }
 0x150   : > { %1598 = vrot.lane.b32.xlu1 %v1561_v7, %s7438_s25  ;;  %733 = vst.msk [vmem:[#allocation3] sm:$0xff] %vm732_vm3, %v685_v15  ;;  %v814_v17 = vpop.permute.xlu1 %813  ;;  %v1417_v15 = vld [vmem:[#allocation2 + $0x139] sm:$0xff]  ;;  %v1166_v10 = vld [vmem:[#allocation2 + $0x182] sm:$0xff] }
 0x151   : > { %862 = vst.msk [vmem:[#allocation3] sm:$0xff] %vm861_vm4, %v814_v17 }
 0x153   : > { %696 = vrot.lane.b32.xlu0 %v1044_v54, %s7431_s18  ;;  %v1542_v54 = vld [vmem:[#allocation2 + $0x10a] sm:$0xff] }
 0x154   : > { %698 = vrot.lane.b32.xlu1 %v1432_v3, %s7431_s18 }
 0x157   : > { %825 = vrot.lane.b32.xlu0 %v1173_v47, %s7432_s6 }
 0x158   : > { %827 = vrot.lane.b32.xlu1 %v1561_v7, %s7432_s6 }
 0x15b   : > { %954 = vrot.lane.b32.xlu0 %v7957_v56, %s7433_s28  ;;  %v1410_v56 = vld [vmem:[#allocation2 + $0xe1] sm:$0xff] }
 0x15c   : > { %956 = vrot.lane.b32.xlu1 %v7964_v60, %s7433_s28  ;;  %v1434_v18 = vpack.c.bf16 %v1410_v56, %v1409_v16  ;;  %v1418_v16 = vld [vmem:[#allocation2 + $0x141] sm:$0xff] }
 0x15d   : > { %v1438_v17 = vpack.c.bf16 %v1418_v16, %v1417_v15 }
 0x15f   : > { %1083 = vrot.lane.b32.xlu0 %v1432_v3, %s7434_s30 }
 0x160   : > { %1085 = vrot.lane.b32.xlu1 %v1046_v11, %s7434_s30 }
 0x163   : > { %1212 = vrot.lane.b32.xlu0 %v1561_v7, %s7435_s29 }
 0x164   : > { %1214 = vrot.lane.b32.xlu1 %v1175_v14, %s7435_s29 }
 0x167   : > { %1342 = vrot.lane.b32.xlu0 %v7964_v60, %s7436_s11 }
 0x168   : > { %1344 = vrot.lane.b32.xlu1 %v7971_v5, %s7436_s11 }
 0x169   : > { %v687_v20 = vpop.permute.xlu0 %686 }
 0x16a   : > { %734 = vst.msk [vmem:[#allocation3 + $0x8] sm:$0xff] %vm732_vm3, %v687_v20  ;;  %v816_v24 = vpop.permute.xlu1 %815 }
 0x16b   : > { %863 = vst.msk [vmem:[#allocation3 + $0x8] sm:$0xff] %vm861_vm4, %v816_v24  ;;  %1471 = vrot.lane.b32.xlu0 %v1046_v11, %s7437_s24 }
 0x16c   : > { %1473 = vrot.lane.b32.xlu1 %v1434_v18, %s7437_s24 }
 0x16d   : > { %v943_v26 = vpop.permute.xlu0 %942 }
 0x16e   : > { %991 = vst.msk [vmem:[#allocation3] sm:$0xff] %vm990_vm5, %v943_v26  ;;  %v945_v60 = vpop.permute.xlu1 %944 }
 0x16f   : > { %992 = vst.msk [vmem:[#allocation3 + $0x8] sm:$0xff] %vm990_vm5, %v945_v60  ;;  %1600 = vrot.lane.b32.xlu0 %v1175_v14, %s7438_s25 }
 0x170   : > { %1602 = vrot.lane.b32.xlu1 %v1563_v25, %s7438_s25 }
 0x171   : > { %v1072_v27 = vpop.permute.xlu0 %1071 }
 0x172   : > { %1120 = vst.msk [vmem:[#allocation3] sm:$0xff] %vm1119_vm6, %v1072_v27  ;;  %v1074_v28 = vpop.permute.xlu1 %1073 }
 0x173   : > { %1121 = vst.msk [vmem:[#allocation3 + $0x8] sm:$0xff] %vm1119_vm6, %v1074_v28  ;;  %700 = vrot.lane.b32.xlu0 %v1046_v11, %s7431_s18 }
 0x174   : > { %702 = vrot.lane.b32.xlu1 %v1434_v18, %s7431_s18 }
 0x175   : > { %v1201_v30 = vpop.permute.xlu0 %1200 }
 0x176   : > { %1249 = vst.msk [vmem:[#allocation3] sm:$0xff] %vm1248_vm7, %v1201_v30  ;;  %v1203_v31 = vpop.permute.xlu1 %1202 }
 0x177   : > { %1250 = vst.msk [vmem:[#allocation3 + $0x8] sm:$0xff] %vm1248_vm7, %v1203_v31  ;;  %829 = vrot.lane.b32.xlu0 %v1175_v14, %s7432_s6 }
 0x178   : > { %831 = vrot.lane.b32.xlu1 %v1563_v25, %s7432_s6 }
 0x179   : > { %v1331_v32 = vpop.permute.xlu0 %1330 }
 0x17a   : > { %1379 = vst.msk [vmem:[#allocation3] sm:$0xff] %vm1378_vm8, %v1331_v32  ;;  %v1333_v35 = vpop.permute.xlu1 %1332 }
 0x17b   : > { %1380 = vst.msk [vmem:[#allocation3 + $0x8] sm:$0xff] %vm1378_vm8, %v1333_v35  ;;  %958 = vrot.lane.b32.xlu0 %v7971_v5, %s7433_s28 }
 0x17c   : > { %960 = vrot.lane.b32.xlu1 %v7992_v19, %s7433_s28 }
 0x17d   : > { %v1460_v37 = vpop.permute.xlu0 %1459 }
 0x17e   : > { %1508 = vst.msk [vmem:[#allocation3] sm:$0xff] %vm1507_vm9, %v1460_v37  ;;  %v1462_v41 = vpop.permute.xlu1 %1461 }
 0x17f   : > { %1509 = vst.msk [vmem:[#allocation3 + $0x8] sm:$0xff] %vm1507_vm9, %v1462_v41  ;;  %1087 = vrot.lane.b32.xlu0 %v1434_v18, %s7434_s30 }
 0x180   : > { %1089 = vrot.lane.b32.xlu1 %v1048_v36, %s7434_s30 }
 0x181   : > { %v1589_v5 = vpop.permute.xlu0 %1588 }
 0x182   : > { %1637 = vst.msk [vmem:[#allocation3] sm:$0xff] %vm1636_vm10, %v1589_v5  ;;  %v1591_v44 = vpop.permute.xlu1 %1590 }
 0x183   : > { %1638 = vst.msk [vmem:[#allocation3 + $0x8] sm:$0xff] %vm1636_vm10, %v1591_v44  ;;  %1216 = vrot.lane.b32.xlu0 %v1563_v25, %s7435_s29 }
 0x184   : > { %1218 = vrot.lane.b32.xlu1 %v1177_v42, %s7435_s29 }
 0x185   : > { %v689_v45 = vpop.permute.xlu0 %688 }
 0x186   : > { %735 = vst.msk [vmem:[#allocation3 + $0x10] sm:$0xff] %vm732_vm3, %v689_v45  ;;  %v691_v48 = vpop.permute.xlu1 %690  ;;  %v1421_v45 = vld [vmem:[#allocation2 + $0x169] sm:$0xff] }
 0x187   : > { %736 = vst.msk [vmem:[#allocation3 + $0x18] sm:$0xff] %vm732_vm3, %v691_v48  ;;  %1346 = vrot.lane.b32.xlu0 %v7992_v19, %s7436_s11  ;;  %v1565_v19 = vpack.c.bf16 %v1543_v55, %v1542_v54  ;;  %v1440_v48 = vpack.c.bf16 %v1422_v43, %v1421_v45  ;;  %v1551_v54 = vld [vmem:[#allocation2 + $0x172] sm:$0xff] }
 0x188   : > { %1348 = vrot.lane.b32.xlu1 %v7995_v22, %s7436_s11 }
 0x189   : > { %v818_v50 = vpop.permute.xlu0 %817  ;;  %v1653_v51 = vld [vmem:[#allocation3] sm:$0xff] }
 0x18a   : > { %864 = vst.msk [vmem:[#allocation3 + $0x10] sm:$0xff] %vm861_vm4, %v818_v50  ;;  %v820_v57 = vpop.permute.xlu1 %819  ;;  %6788 = vmatprep.mubr.msk.bf16.mxu0 %vm1688_vm11, %v1653_v51  ;;  %v1654_v58 = vld [vmem:[#allocation3 + $0x8] sm:$0xff]  ;;  %v1550_v51 = vld [vmem:[#allocation2 + $0x16a] sm:$0xff] }
 0x18b   : > { %865 = vst.msk [vmem:[#allocation3 + $0x18] sm:$0xff] %vm861_vm4, %v820_v57  ;;  %1475 = vrot.lane.b32.xlu0 %v1048_v36, %s7437_s24  ;;  %6789 = vmatmul.mubr.msk.bf16.vlgmr.msra.gmra.mrb[0].mxu0 %vm1688_vm11, %v1654_v58 }
 0x18c   : > { %1477 = vrot.lane.b32.xlu1 %v1436_v49, %s7437_s24 }
 0x18d   : > { %v947_v59 = vpop.permute.xlu0 %946 }
 0x18e   : > { %993 = vst.msk [vmem:[#allocation3 + $0x10] sm:$0xff] %vm990_vm5, %v947_v59  ;;  %v949_v47 = vpop.permute.xlu1 %948 }
 0x18f   : > { %994 = vst.msk [vmem:[#allocation3 + $0x18] sm:$0xff] %vm990_vm5, %v949_v47  ;;  %1604 = vrot.lane.b32.xlu0 %v1177_v42, %s7438_s25 }
 0x190   : > { %1606 = vrot.lane.b32.xlu1 %v1565_v19, %s7438_s25 }
 0x191   : > { %v1076_v61 = vpop.permute.xlu0 %1075 }
 0x192   : > { %1122 = vst.msk [vmem:[#allocation3 + $0x10] sm:$0xff] %vm1119_vm6, %v1076_v61  ;;  %v1078_v62 = vpop.permute.xlu1 %1077 }
 0x193   : > { %1123 = vst.msk [vmem:[#allocation3 + $0x18] sm:$0xff] %vm1119_vm6, %v1078_v62  ;;  %704 = vrot.lane.b32.xlu0 %v1048_v36, %s7431_s18  ;;  %v1052_v36 = vpack.c.bf16 %v1034_v34, %v1033_v33  ;;  %v908_v62 = vld [vmem:[#allocation2 + $0x180] sm:$0xff] }
 0x194   : > { %706 = vrot.lane.b32.xlu1 %v1436_v49, %s7431_s18  ;;  %v2088_v33 = vld [vmem:[#allocation4 + $0x9] sm:$0xff] }
 0x195   : > { %v1205_v63 = vpop.permute.xlu0 %1204 }
 0x196   : > { %1251 = vst.msk [vmem:[#allocation3 + $0x10] sm:$0xff] %vm1248_vm7, %v1205_v63  ;;  %v1207_v0 = vpop.permute.xlu1 %1206  ;;  %v909_v63 = vld [vmem:[#allocation2 + $0x188] sm:$0xff] }
 0x197   : > { %1252 = vst.msk [vmem:[#allocation3 + $0x18] sm:$0xff] %vm1248_vm7, %v1207_v0  ;;  %833 = vrot.lane.b32.xlu0 %v1177_v42, %s7432_s6  ;;  %v1181_v42 = vpack.c.bf16 %v1163_v39, %v1162_v38 }
 0x198   : > { %835 = vrot.lane.b32.xlu1 %v1565_v19, %s7432_s6 }
 0x199   : > { %v1335_v3 = vpop.permute.xlu0 %1334 }
 0x19a   : > { %1381 = vst.msk [vmem:[#allocation3 + $0x10] sm:$0xff] %vm1378_vm8, %v1335_v3  ;;  %v1337_v7 = vpop.permute.xlu1 %1336  ;;  %v8231_v3 = vpack.c.bf16 %v909_v63, %v908_v62 }
 0x19b   : > { %1382 = vst.msk [vmem:[#allocation3 + $0x18] sm:$0xff] %vm1378_vm8, %v1337_v7  ;;  %962 = vrot.lane.b32.xlu0 %v7995_v22, %s7433_s28  ;;  %v1038_v7 = vld [vmem:[#allocation2 + $0x189] sm:$0xff] }
 0x19c   : > { %964 = vrot.lane.b32.xlu1 %v8011_v29, %s7433_s28 }
 0x19d   : > { %v1464_v8 = vpop.permute.xlu0 %1463 }
 0x19e   : > { %1510 = vst.msk [vmem:[#allocation3 + $0x10] sm:$0xff] %vm1507_vm9, %v1464_v8  ;;  %v1466_v11 = vpop.permute.xlu1 %1465  ;;  %v8239_v8 = vpack.c.bf16 %v1038_v7, %v1037_v6 }
 0x19f   : > { %1511 = vst.msk [vmem:[#allocation3 + $0x18] sm:$0xff] %vm1507_vm9, %v1466_v11  ;;  %1091 = vrot.lane.b32.xlu0 %v1436_v49, %s7434_s30  ;;  %v1167_v11 = vld [vmem:[#allocation2 + $0x18a] sm:$0xff] }
 0x1a0   : > { %1093 = vrot.lane.b32.xlu1 %v1050_v52, %s7434_s30 }
 0x1a1   : > { %v1593_v13 = vpop.permute.xlu0 %1592 }
 0x1a2   : > { %1639 = vst.msk [vmem:[#allocation3 + $0x10] sm:$0xff] %vm1636_vm10, %v1593_v13  ;;  %v1595_v22 = vpop.permute.xlu1 %1594  ;;  %v8246_v13 = vpack.c.bf16 %v1167_v11, %v1166_v10 }
 0x1a3   : > { %1640 = vst.msk [vmem:[#allocation3 + $0x18] sm:$0xff] %vm1636_vm10, %v1595_v22  ;;  %1220 = vrot.lane.b32.xlu0 %v1565_v19, %s7435_s29  ;;  %v8248_v22 = vld [vmem:[#allocation2 + $0x198] sm:$0xff] }
 0x1a4   : > { %1222 = vrot.lane.b32.xlu1 %v1179_v12, %s7435_s29 }
 0x1a5   : > { %v693_v14 = vpop.permute.xlu0 %692 }
 0x1a6   : > { %737 = vst.msk [vmem:[#allocation3 + $0x20] sm:$0xff] %vm732_vm3, %v693_v14  ;;  %v695_v56 = vpop.permute.xlu1 %694  ;;  %v8250_v14 = vld [vmem:[#allocation2 + $0x1a0] sm:$0xff] }
 0x1a7   : > { %738 = vst.msk [vmem:[#allocation3 + $0x28] sm:$0xff] %vm732_vm3, %v695_v56  ;;  %1350 = vrot.lane.b32.xlu0 %v8011_v29, %s7436_s11  ;;  %v1567_v29 = vpack.c.bf16 %v1547_v23, %v1546_v21  ;;  %v1313_v16 = vpack.c.bf16 %v8250_v14, %v8248_v22 }
 0x1a8   : > { %1352 = vrot.lane.b32.xlu1 %v8029_v40, %s7436_s11 }
 0x1a9   : > { %v822_v18 = vpop.permute.xlu0 %821  ;;  %v1655_v20 = vld [vmem:[#allocation3 + $0x10] sm:$0xff] }
 0x1aa   : > { %866 = vst.msk [vmem:[#allocation3 + $0x20] sm:$0xff] %vm861_vm4, %v822_v18  ;;  %v824_v24 = vpop.permute.xlu1 %823  ;;  %6792 = vmatprep.mubr.msk.bf16.mxu0 %vm1688_vm11, %v1655_v20  ;;  %v1656_v25 = vld [vmem:[#allocation3 + $0x18] sm:$0xff] }
 0x1ab   : > { %867 = vst.msk [vmem:[#allocation3 + $0x28] sm:$0xff] %vm861_vm4, %v824_v24  ;;  %1479 = vrot.lane.b32.xlu0 %v1050_v52, %s7437_s24  ;;  %6793 = vmatmul.mubr.msk.bf16.gmra.mrb[4].mxu0 %vm1688_vm11, %v1656_v25  ;;  %v1426_v18 = vld [vmem:[#allocation2 + $0x1a1] sm:$0xff] }
 0x1ac   : > { %1481 = vrot.lane.b32.xlu1 %v1438_v17, %s7437_s24  ;;  %v1554_v25 = vld [vmem:[#allocation2 + $0x19a] sm:$0xff] }
 0x1ad   : > { %v951_v26 = vpop.permute.xlu0 %950 }
 0x1ae   : > { %995 = vst.msk [vmem:[#allocation3 + $0x20] sm:$0xff] %vm990_vm5, %v951_v26  ;;  %v953_v60 = vpop.permute.xlu1 %952 }
 0x1af   : > { %996 = vst.msk [vmem:[#allocation3 + $0x28] sm:$0xff] %vm990_vm5, %v953_v60  ;;  %1608 = vrot.lane.b32.xlu0 %v1179_v12, %s7438_s25 }
 0x1b0   : > { %1610 = vrot.lane.b32.xlu1 %v1567_v29, %s7438_s25 }
 0x1b1   : > { %v1080_v27 = vpop.permute.xlu0 %1079 }
 0x1b2   : > { %1124 = vst.msk [vmem:[#allocation3 + $0x20] sm:$0xff] %vm1119_vm6, %v1080_v27  ;;  %v1082_v28 = vpop.permute.xlu1 %1081 }
 0x1b3   : > { %1125 = vst.msk [vmem:[#allocation3 + $0x28] sm:$0xff] %vm1119_vm6, %v1082_v28  ;;  %708 = vrot.lane.b32.xlu0 %v1050_v52, %s7431_s18  ;;  %v2695_v28 = vld [vmem:[#allocation4 + $0x199] sm:$0xff] }
 0x1b4   : > { %710 = vrot.lane.b32.xlu1 %v1438_v17, %s7431_s18 }
 0x1b5   : > { %v1209_v30 = vpop.permute.xlu0 %1208 }
 0x1b6   : > { %1253 = vst.msk [vmem:[#allocation3 + $0x20] sm:$0xff] %vm1248_vm7, %v1209_v30  ;;  %v1211_v31 = vpop.permute.xlu1 %1210  ;;  %v2696_v30 = vld [vmem:[#allocation4 + $0x1a1] sm:$0xff] }
 0x1b7   : > { %1254 = vst.msk [vmem:[#allocation3 + $0x28] sm:$0xff] %vm1248_vm7, %v1211_v31  ;;  %837 = vrot.lane.b32.xlu0 %v1179_v12, %s7432_s6 }
 0x1b8   : > { %839 = vrot.lane.b32.xlu1 %v1567_v29, %s7432_s6 }
 0x1b9   : > { %v1339_v32 = vpop.permute.xlu0 %1338 }
 0x1ba   : > { %1383 = vst.msk [vmem:[#allocation3 + $0x20] sm:$0xff] %vm1378_vm8, %v1339_v32  ;;  %v1341_v35 = vpop.permute.xlu1 %1340  ;;  %v2087_v32 = vld [vmem:[#allocation4 + $0x1] sm:$0xff] }
 0x1bb   : > { %1384 = vst.msk [vmem:[#allocation3 + $0x28] sm:$0xff] %vm1378_vm8, %v1341_v35  ;;  %966 = vrot.lane.b32.xlu0 %v8029_v40, %s7433_s28  ;;  %v2712_v35 = vpack.c.bf16 %v2696_v30, %v2695_v28 }
 0x1bc   : > { %968 = vrot.lane.b32.xlu1 %v8047_v53, %s7433_s28 }
 0x1bd   : > { %v1468_v37 = vpop.permute.xlu0 %1467 }
 0x1be   : > { %1512 = vst.msk [vmem:[#allocation3 + $0x20] sm:$0xff] %vm1507_vm9, %v1468_v37  ;;  %v1470_v41 = vpop.permute.xlu1 %1469 }
 0x1bf   : > { %1513 = vst.msk [vmem:[#allocation3 + $0x28] sm:$0xff] %vm1507_vm9, %v1470_v41  ;;  %1095 = vrot.lane.b32.xlu0 %v1438_v17, %s7434_s30  ;;  %v1425_v17 = vld [vmem:[#allocation2 + $0x199] sm:$0xff] }
 0x1c0   : > { %1097 = vrot.lane.b32.xlu1 %v1052_v36, %s7434_s30  ;;  %v1442_v21 = vpack.c.bf16 %v1426_v18, %v1425_v17 }
 0x1c1   : > { %v1597_v5 = vpop.permute.xlu0 %1596 }
 0x1c2   : > { %1641 = vst.msk [vmem:[#allocation3 + $0x20] sm:$0xff] %vm1636_vm10, %v1597_v5  ;;  %v1599_v40 = vpop.permute.xlu1 %1598 }
 0x1c3   : > { %1642 = vst.msk [vmem:[#allocation3 + $0x28] sm:$0xff] %vm1636_vm10, %v1599_v40  ;;  %1224 = vrot.lane.b32.xlu0 %v1567_v29, %s7435_s29  ;;  %v1555_v29 = vld [vmem:[#allocation2 + $0x1a2] sm:$0xff] }
 0x1c4   : > { %1226 = vrot.lane.b32.xlu1 %v1181_v42, %s7435_s29  ;;  %v1571_v27 = vpack.c.bf16 %v1555_v29, %v1554_v25 }
 0x1c5   : > { %v697_v44 = vpop.permute.xlu0 %696 }
 0x1c6   : > { %739 = vst.msk [vmem:[#allocation3 + $0x30] sm:$0xff] %vm732_vm3, %v697_v44  ;;  %v699_v46 = vpop.permute.xlu1 %698 }
 0x1c7   : > { %740 = vst.msk [vmem:[#allocation3 + $0x38] sm:$0xff] %vm732_vm3, %v699_v46  ;;  %1354 = vrot.lane.b32.xlu0 %v8047_v53, %s7436_s11  ;;  %v8215_v53 = vpack.c.bf16 %v1551_v54, %v1550_v51 }
 0x1c8   : > { %1356 = vrot.lane.b32.xlu1 %v8065_v2, %s7436_s11 }
 0x1c9   : > { %v826_v49 = vpop.permute.xlu0 %825  ;;  %v1657_v50 = vld [vmem:[#allocation3 + $0x20] sm:$0xff] }
 0x1ca   : > { %868 = vst.msk [vmem:[#allocation3 + $0x30] sm:$0xff] %vm861_vm4, %v826_v49  ;;  %v828_v55 = vpop.permute.xlu1 %827  ;;  %6796 = vmatprep.mubr.msk.bf16.mxu0 %vm1688_vm11, %v1657_v50  ;;  %v1658_v57 = vld [vmem:[#allocation3 + $0x28] sm:$0xff] }
 0x1cb   : > { %869 = vst.msk [vmem:[#allocation3 + $0x38] sm:$0xff] %vm861_vm4, %v828_v55  ;;  %1483 = vrot.lane.b32.xlu0 %v1052_v36, %s7437_s24  ;;  %6797 = vmatmul.mubr.msk.bf16.gmra.mrb[8].mxu0 %vm1688_vm11, %v1658_v57 }
 0x1cc   : > { %1485 = vrot.lane.b32.xlu1 %v1440_v48, %s7437_s24 }
 0x1cd   : > { %v955_v58 = vpop.permute.xlu0 %954 }
 0x1ce   : > { %997 = vst.msk [vmem:[#allocation3 + $0x30] sm:$0xff] %vm990_vm5, %v955_v58  ;;  %v957_v19 = vpop.permute.xlu1 %956 }
 0x1cf   : > { %998 = vst.msk [vmem:[#allocation3 + $0x38] sm:$0xff] %vm990_vm5, %v957_v19  ;;  %1612 = vrot.lane.b32.xlu0 %v1181_v42, %s7438_s25 }
 0x1d0   : > { %1614 = vrot.lane.b32.xlu1 %v8215_v53, %s7438_s25 }
 0x1d1   : > { %v1084_v59 = vpop.permute.xlu0 %1083 }
 0x1d2   : > { %1126 = vst.msk [vmem:[#allocation3 + $0x30] sm:$0xff] %vm1119_vm6, %v1084_v59  ;;  %v1086_v47 = vpop.permute.xlu1 %1085 }
 0x1d3   : > { %1127 = vst.msk [vmem:[#allocation3 + $0x38] sm:$0xff] %vm1119_vm6, %v1086_v47  ;;  %712 = vrot.lane.b32.xlu0 %v1052_v36, %s7431_s18  ;;  %v2119_v36 = vpack.c.bf16 %v2088_v33, %v2087_v32  ;;  %v7098_v32 = vld [vmem:[#allocation16 + $0xc0] sm:$0xff]   ;;  %v7099_v33 = vld [vmem:[#allocation16 + $0x48] sm:$0xff]  }
 0x1d4   : > { %714 = vrot.lane.b32.xlu1 %v1440_v48, %s7431_s18  ;;  %6646 = vmatprep.subr.bf16.mxu0 %v7098_v32  ;;  %s6501_s18 = sld [smem:[#allocation21 + $0x1]] }
 0x1d5   : > { %v1213_v61 = vpop.permute.xlu0 %1212 }
 0x1d6   : > { %1255 = vst.msk [vmem:[#allocation3 + $0x30] sm:$0xff] %vm1248_vm7, %v1213_v61  ;;  %v1215_v0 = vpop.permute.xlu1 %1214 }
 0x1d7   : > { %1256 = vst.msk [vmem:[#allocation3 + $0x38] sm:$0xff] %vm1248_vm7, %v1215_v0  ;;  %841 = vrot.lane.b32.xlu0 %v1181_v42, %s7432_s6 }
 0x1d8   : > { %843 = vrot.lane.b32.xlu1 %v8215_v53, %s7432_s6  ;;  %s6502_s6 = sld [smem:[#allocation21 + $0x101]] }
 0x1d9   : > { %v1343_v4 = vpop.permute.xlu0 %1342 }
 0x1da   : > { %1385 = vst.msk [vmem:[#allocation3 + $0x30] sm:$0xff] %vm1378_vm8, %v1343_v4  ;;  %v1345_v52 = vpop.permute.xlu1 %1344 }
 0x1db   : > { %1386 = vst.msk [vmem:[#allocation3 + $0x38] sm:$0xff] %vm1378_vm8, %v1345_v52  ;;  %970 = vrot.lane.b32.xlu0 %v8065_v2, %s7433_s28 }
 0x1dc   : > { %972 = vrot.lane.b32.xlu1 %v8231_v3, %s7433_s28  ;;  %s6164_s28 = sld [smem:[#allocation21]] }
 0x1dd   : > { %v1472_v9 = vpop.permute.xlu0 %1471 }
 0x1de   : > { %1514 = vst.msk [vmem:[#allocation3 + $0x30] sm:$0xff] %vm1507_vm9, %v1472_v9  ;;  %v1474_v12 = vpop.permute.xlu1 %1473 }
 0x1df   : > { %1515 = vst.msk [vmem:[#allocation3 + $0x38] sm:$0xff] %vm1507_vm9, %v1474_v12  ;;  %1099 = vrot.lane.b32.xlu0 %v1440_v48, %s7434_s30 }
 0x1e0   : > { %1101 = vrot.lane.b32.xlu1 %v8239_v8, %s7434_s30 }
 0x1e1   : > { %v1601_v2 = vpop.permute.xlu0 %1600 }
 0x1e2   : > { %1643 = vst.msk [vmem:[#allocation3 + $0x30] sm:$0xff] %vm1636_vm10, %v1601_v2  ;;  %v1603_v15 = vpop.permute.xlu1 %1602 }
 0x1e3   : > { %1644 = vst.msk [vmem:[#allocation3 + $0x38] sm:$0xff] %vm1636_vm10, %v1603_v15  ;;  %1228 = vrot.lane.b32.xlu0 %v8215_v53, %s7435_s29 }
 0x1e4   : > { %1230 = vrot.lane.b32.xlu1 %v8246_v13, %s7435_s29  ;;  %s6498_s29 = sld [smem:[#allocation21 + $0x100]] }
 0x1e5   : > { %v701_v56 = vpop.permute.xlu0 %700 }
 0x1e6   : > { %741 = vst.msk [vmem:[#allocation3 + $0x40] sm:$0xff] %vm732_vm3, %v701_v56  ;;  %v703_v20 = vpop.permute.xlu1 %702 }
 0x1e7   : > { %742 = vst.msk [vmem:[#allocation3 + $0x48] sm:$0xff] %vm732_vm3, %v703_v20  ;;  %1358 = vrot.lane.b32.xlu0 %v8231_v3, %s7436_s11 }
 0x1e8   : > { %1360 = vrot.lane.b32.xlu1 %v1313_v16, %s7436_s11  ;;  %s6505_s11 = sld [smem:[#allocation21 + $0x82]] }
 0x1e9   : > { %v830_v23 = vpop.permute.xlu0 %829  ;;  %v1659_v24 = vld [vmem:[#allocation3 + $0x30] sm:$0xff] }
 0x1ea   : > { %870 = vst.msk [vmem:[#allocation3 + $0x40] sm:$0xff] %vm861_vm4, %v830_v23  ;;  %v832_v26 = vpop.permute.xlu1 %831  ;;  %6800 = vmatprep.mubr.msk.bf16.mxu0 %vm1688_vm11, %v1659_v24  ;;  %v1660_v60 = vld [vmem:[#allocation3 + $0x38] sm:$0xff] }
 0x1eb   : > { %871 = vst.msk [vmem:[#allocation3 + $0x48] sm:$0xff] %vm861_vm4, %v832_v26  ;;  %1487 = vrot.lane.b32.xlu0 %v8239_v8, %s7437_s24  ;;  %6801 = vmatmul.mubr.msk.bf16.gmra.mrb[12].mxu0 %vm1688_vm11, %v1660_v60 }
 0x1ec   : > { %1489 = vrot.lane.b32.xlu1 %v1442_v21, %s7437_s24  ;;  %s6507_s24 = sld [smem:[#allocation21 + $0x81]] }
 0x1ed   : > { %v959_v31 = vpop.permute.xlu0 %958 }
 0x1ee   : > { %999 = vst.msk [vmem:[#allocation3 + $0x40] sm:$0xff] %vm990_vm5, %v959_v31  ;;  %v961_v34 = vpop.permute.xlu1 %960  ;;  %v7097_v31 = vld [vmem:[#allocation16] sm:$0xff]  }
 0x1ef   : > { %1000 = vst.msk [vmem:[#allocation3 + $0x48] sm:$0xff] %vm990_vm5, %v961_v34  ;;  %1616 = vrot.lane.b32.xlu0 %v8246_v13, %s7438_s25  ;;  %v7100_v34 = vld [vmem:[#allocation16 + $0x80] sm:$0xff]  }
 0x1f0   : > { %1618 = vrot.lane.b32.xlu1 %v1571_v27, %s7438_s25  ;;  %v7096_v27 = vld [vmem:[#allocation16 + $0x40] sm:$0xff]   ;;  %6647 = vmatpush3.bf16.msra.mxu0 %v7100_v34  ;;  %s6163_s25 = sld [smem:[#allocation8]] }
 0x1f1   : > { %v1088_v37 = vpop.permute.xlu0 %1087  ;;  %6534 = vmatprep.subr.bf16.mxu1 %v7096_v27  ;;  %v7119_v27 = vld [vmem:[#allocation16 + $0x70] sm:$0xff]  }
 0x1f2   : > { %1128 = vst.msk [vmem:[#allocation3 + $0x40] sm:$0xff] %vm1119_vm6, %v1088_v37  ;;  %v1090_v38 = vpop.permute.xlu1 %1089  ;;  %6535 = vmatpush3.bf16.msra.mxu1 %v7097_v31  ;;  %v7101_v37 = vld [vmem:[#allocation16 + $0x8] sm:$0xff]  }
 0x1f3   : > { %1129 = vst.msk [vmem:[#allocation3 + $0x48] sm:$0xff] %vm1119_vm6, %v1090_v38  ;;  %2759 = vrot.lane.b32.xlu0 %v2712_v35, %s7439_s20  ;;  %6536 = vmatprep.subr.bf16.mxu1 %v7099_v33  ;;  %v7102_v38 = vld [vmem:[#allocation16 + $0xc8] sm:$0xff]  }
 0x1f4   : > { %2151 = vrot.lane.b32.xlu1 %v2119_v36, %s7439_s20  ;;  %6648 = vmatprep.subr.bf16.mxu0 %v7102_v38 }
 0x1f5   : > { %v1217_v39 = vpop.permute.xlu0 %1216 }
 0x1f6   : > { %1257 = vst.msk [vmem:[#allocation3 + $0x40] sm:$0xff] %vm1248_vm7, %v1217_v39  ;;  %v1219_v41 = vpop.permute.xlu1 %1218  ;;  %v7103_v39 = vld [vmem:[#allocation16 + $0x50] sm:$0xff]   ;;  %6537 = vmatpush3.bf16.msra.mxu1 %v7101_v37 }
 0x1f7   : > { %1258 = vst.msk [vmem:[#allocation3 + $0x48] sm:$0xff] %vm1248_vm7, %v1219_v41  ;;  %v7104_v41 = vld [vmem:[#allocation16 + $0x88] sm:$0xff]   ;;  %6538 = vmatprep.subr.bf16.mxu1 %v7103_v39 }
 0x1f8   : > { %6649 = vmatpush3.bf16.msra.mxu0 %v7104_v41 }
 0x1f9   : > { %v1347_v42 = vpop.permute.xlu0 %1346 }
 0x1fa   : > { %1387 = vst.msk [vmem:[#allocation3 + $0x40] sm:$0xff] %vm1378_vm8, %v1347_v42  ;;  %v1349_v5 = vpop.permute.xlu1 %1348 }
 0x1fb   : > { %1388 = vst.msk [vmem:[#allocation3 + $0x48] sm:$0xff] %vm1378_vm8, %v1349_v5 }
 0x1fd   : > { %v1476_v40 = vpop.permute.xlu0 %1475 }
 0x1fe   : > { %1516 = vst.msk [vmem:[#allocation3 + $0x40] sm:$0xff] %vm1507_vm9, %v1476_v40  ;;  %v1478_v44 = vpop.permute.xlu1 %1477  ;;  %v7105_v40 = vld [vmem:[#allocation16 + $0x10] sm:$0xff]  }
 0x1ff   : > { %1517 = vst.msk [vmem:[#allocation3 + $0x48] sm:$0xff] %vm1507_vm9, %v1478_v44  ;;  %v2023_v44 = vld [vmem:[#allocation4] sm:$0xff]  ;;  %6539 = vmatpush3.bf16.msra.mxu1 %v7105_v40 }
 0x201   : > { %v1605_v45 = vpop.permute.xlu0 %1604 }
 0x202   : > { %1645 = vst.msk [vmem:[#allocation3 + $0x40] sm:$0xff] %vm1636_vm10, %v1605_v45  ;;  %v1607_v43 = vpop.permute.xlu1 %1606  ;;  %v2024_v45 = vld [vmem:[#allocation4 + $0x8] sm:$0xff] }
 0x203   : > { %1646 = vst.msk [vmem:[#allocation3 + $0x48] sm:$0xff] %vm1636_vm10, %v1607_v43  ;;  %v8447_v43 = vld [vmem:[#allocation15] ss:$0 sm:$0xff] }
 0x205   : > { %v705_v46 = vpop.permute.xlu0 %704 }
 0x206   : > { %743 = vst.msk [vmem:[#allocation3 + $0x50] sm:$0xff] %vm732_vm3, %v705_v46  ;;  %v707_v48 = vpop.permute.xlu1 %706  ;;  %v2055_v46 = vpack.c.bf16 %v2024_v45, %v2023_v44  ;;  %v7121_v44 = vld [vmem:[#allocation16 + $0x30] sm:$0xff]  }
 0x207   : > { %744 = vst.msk [vmem:[#allocation3 + $0x58] sm:$0xff] %vm732_vm3, %v707_v48  ;;  %v2631_v48 = vld [vmem:[#allocation4 + $0x198] sm:$0xff] }
 0x208   : > { %2071 = vst.msk [vmem:[#allocation5] sm:$0xff] %vm1934_vm12, %v2055_v46  ;;  %v7122_v45 = vld [vmem:[#allocation16 + $0xf0] sm:$0xff]   ;;  %v7123_v46 = vld [vmem:[#allocation16 + $0x78] sm:$0xff]  }
 0x209   : > { %v834_v49 = vpop.permute.xlu0 %833  ;;  %v1661_v50 = vld [vmem:[#allocation3 + $0x40] sm:$0xff] }
 0x20a   : > { %872 = vst.msk [vmem:[#allocation3 + $0x50] sm:$0xff] %vm861_vm4, %v834_v49  ;;  %v836_v51 = vpop.permute.xlu1 %835  ;;  %6804 = vmatprep.mubr.msk.bf16.mxu0 %vm1688_vm11, %v1661_v50  ;;  %v1662_v54 = vld [vmem:[#allocation3 + $0x48] sm:$0xff]  ;;  %v2632_v49 = vld [vmem:[#allocation4 + $0x1a0] sm:$0xff] }
 0x20b   : > { %873 = vst.msk [vmem:[#allocation3 + $0x58] sm:$0xff] %vm861_vm4, %v836_v51  ;;  %6805 = vmatmul.mubr.msk.bf16.gmra.mrb[16].mxu0 %vm1688_vm11, %v1662_v54  ;;  %v2648_v51 = vpack.c.bf16 %v2632_v49, %v2631_v48  ;;  %v7106_v54 = vld [vmem:[#allocation16 + $0xd0] sm:$0xff]  }
 0x20c   : > { %6650 = vmatprep.subr.bf16.mxu0 %v7106_v54  ;;  %v7124_v48 = vld [vmem:[#allocation16 + $0xb0] sm:$0xff]  }
 0x20d   : > { %v963_v55 = vpop.permute.xlu0 %962  ;;  %2664 = vst.msk [vmem:[#allocation5 + $0x270] sm:$0xff] %vm1934_vm12, %v2648_v51  ;;  %v7126_v51 = vld [vmem:[#allocation16 + $0xf8] sm:$0xff]  }
 0x20e   : > { %1001 = vst.msk [vmem:[#allocation3 + $0x50] sm:$0xff] %vm990_vm5, %v963_v55  ;;  %v965_v57 = vpop.permute.xlu1 %964 }
 0x20f   : > { %1002 = vst.msk [vmem:[#allocation3 + $0x58] sm:$0xff] %vm990_vm5, %v965_v57 }
 0x211   : > { %v1092_v53 = vpop.permute.xlu0 %1091 }
 0x212   : > { %1130 = vst.msk [vmem:[#allocation3 + $0x50] sm:$0xff] %vm1119_vm6, %v1092_v53  ;;  %v1094_v58 = vpop.permute.xlu1 %1093  ;;  %v7107_v53 = vld [vmem:[#allocation16 + $0x58] sm:$0xff]  }
 0x213   : > { %1131 = vst.msk [vmem:[#allocation3 + $0x58] sm:$0xff] %vm1119_vm6, %v1094_v58  ;;  %v7108_v58 = vld [vmem:[#allocation16 + $0x90] sm:$0xff]   ;;  %6540 = vmatprep.subr.bf16.mxu1 %v7107_v53 }
 0x214   : > { %6651 = vmatpush3.bf16.msra.mxu0 %v7108_v58 }
 0x215   : > { %v1221_v19 = vpop.permute.xlu0 %1220 }
 0x216   : > { %1259 = vst.msk [vmem:[#allocation3 + $0x50] sm:$0xff] %vm1248_vm7, %v1221_v19  ;;  %v1223_v59 = vpop.permute.xlu1 %1222 }
 0x217   : > { %1260 = vst.msk [vmem:[#allocation3 + $0x58] sm:$0xff] %vm1248_vm7, %v1223_v59 }
 0x219   : > { %v1351_v47 = vpop.permute.xlu0 %1350 }
 0x21a   : > { %1389 = vst.msk [vmem:[#allocation3 + $0x50] sm:$0xff] %vm1378_vm8, %v1351_v47  ;;  %v1353_v61 = vpop.permute.xlu1 %1352  ;;  %v7109_v47 = vld [vmem:[#allocation16 + $0x18] sm:$0xff]  }
 0x21b   : > { %1390 = vst.msk [vmem:[#allocation3 + $0x58] sm:$0xff] %vm1378_vm8, %v1353_v61  ;;  %6541 = vmatpush3.bf16.msra.mxu1 %v7109_v47 }
 0x21d   : > { %v1480_v62 = vpop.permute.xlu0 %1479 }
 0x21e   : > { %1518 = vst.msk [vmem:[#allocation3 + $0x50] sm:$0xff] %vm1507_vm9, %v1480_v62  ;;  %v1482_v63 = vpop.permute.xlu1 %1481 }
 0x21f   : > { %1519 = vst.msk [vmem:[#allocation3 + $0x58] sm:$0xff] %vm1507_vm9, %v1482_v63 }
 0x221   : > { %v1609_v0 = vpop.permute.xlu0 %1608 }
 0x222   : > { %1647 = vst.msk [vmem:[#allocation3 + $0x50] sm:$0xff] %vm1636_vm10, %v1609_v0  ;;  %v1611_v3 = vpop.permute.xlu1 %1610 }
 0x223   : > { %1648 = vst.msk [vmem:[#allocation3 + $0x58] sm:$0xff] %vm1636_vm10, %v1611_v3 }
 0x225   : > { %v709_v4 = vpop.permute.xlu0 %708 }
 0x226   : > { %745 = vst.msk [vmem:[#allocation3 + $0x60] sm:$0xff] %vm732_vm3, %v709_v4  ;;  %v711_v6 = vpop.permute.xlu1 %710 }
 0x227   : > { %746 = vst.msk [vmem:[#allocation3 + $0x68] sm:$0xff] %vm732_vm3, %v711_v6  ;;  %v7110_v6 = vld [vmem:[#allocation16 + $0xd8] sm:$0xff]  }
 0x228   : > { %6652 = vmatprep.subr.bf16.mxu0 %v7110_v6 }
 0x229   : > { %v838_v7 = vpop.permute.xlu0 %837  ;;  %v1663_v52 = vld [vmem:[#allocation3 + $0x50] sm:$0xff] }
 0x22a   : > { %874 = vst.msk [vmem:[#allocation3 + $0x60] sm:$0xff] %vm861_vm4, %v838_v7  ;;  %v840_v8 = vpop.permute.xlu1 %839  ;;  %6808 = vmatprep.mubr.msk.bf16.mxu0 %vm1688_vm11, %v1663_v52  ;;  %v1664_v9 = vld [vmem:[#allocation3 + $0x58] sm:$0xff] }
 0x22b   : > { %875 = vst.msk [vmem:[#allocation3 + $0x68] sm:$0xff] %vm861_vm4, %v840_v8  ;;  %6809 = vmatmul.mubr.msk.bf16.gmra.mrb[20].mxu0 %vm1688_vm11, %v1664_v9  ;;  %v7111_v9 = vld [vmem:[#allocation16 + $0x60] sm:$0xff]  }
 0x22c   : > { %6542 = vmatprep.subr.bf16.mxu1 %v7111_v9 }
 0x22d   : > { %v967_v10 = vpop.permute.xlu0 %966 }
 0x22e   : > { %1003 = vst.msk [vmem:[#allocation3 + $0x60] sm:$0xff] %vm990_vm5, %v967_v10  ;;  %v969_v11 = vpop.permute.xlu1 %968  ;;  %v7112_v10 = vld [vmem:[#allocation16 + $0x98] sm:$0xff]  }
 0x22f   : > { %1004 = vst.msk [vmem:[#allocation3 + $0x68] sm:$0xff] %vm990_vm5, %v969_v11  ;;  %6653 = vmatpush3.bf16.msra.mxu0 %v7112_v10 }
 0x231   : > { %v1096_v12 = vpop.permute.xlu0 %1095 }
 0x232   : > { %1132 = vst.msk [vmem:[#allocation3 + $0x60] sm:$0xff] %vm1119_vm6, %v1096_v12  ;;  %v1098_v13 = vpop.permute.xlu1 %1097  ;;  %v7113_v12 = vld [vmem:[#allocation16 + $0x20] sm:$0xff]  }
 0x233   : > { %1133 = vst.msk [vmem:[#allocation3 + $0x68] sm:$0xff] %vm1119_vm6, %v1098_v13  ;;  %6543 = vmatpush3.bf16.msra.mxu1 %v7113_v12 }
 0x235   : > { %v1225_v2 = vpop.permute.xlu0 %1224 }
 0x236   : > { %1261 = vst.msk [vmem:[#allocation3 + $0x60] sm:$0xff] %vm1248_vm7, %v1225_v2  ;;  %v1227_v22 = vpop.permute.xlu1 %1226 }
 0x237   : > { %1262 = vst.msk [vmem:[#allocation3 + $0x68] sm:$0xff] %vm1248_vm7, %v1227_v22  ;;  %v7114_v22 = vld [vmem:[#allocation16 + $0xe0] sm:$0xff]  }
 0x238   : > { %6654 = vmatprep.subr.bf16.mxu0 %v7114_v22 }
 0x239   : > { %v1355_v14 = vpop.permute.xlu0 %1354 }
 0x23a   : > { %1391 = vst.msk [vmem:[#allocation3 + $0x60] sm:$0xff] %vm1378_vm8, %v1355_v14  ;;  %v1357_v15 = vpop.permute.xlu1 %1356 }
 0x23b   : > { %1392 = vst.msk [vmem:[#allocation3 + $0x68] sm:$0xff] %vm1378_vm8, %v1357_v15  ;;  %v7115_v15 = vld [vmem:[#allocation16 + $0x68] sm:$0xff]  }
 0x23c   : > { %6544 = vmatprep.subr.bf16.mxu1 %v7115_v15 }
 0x23d   : > { %v1484_v16 = vpop.permute.xlu0 %1483 }
 0x23e   : > { %1520 = vst.msk [vmem:[#allocation3 + $0x60] sm:$0xff] %vm1507_vm9, %v1484_v16  ;;  %v1486_v56 = vpop.permute.xlu1 %1485  ;;  %v7116_v16 = vld [vmem:[#allocation16 + $0xa0] sm:$0xff]  }
 0x23f   : > { %1521 = vst.msk [vmem:[#allocation3 + $0x68] sm:$0xff] %vm1507_vm9, %v1486_v56  ;;  %v7117_v56 = vld [vmem:[#allocation16 + $0x28] sm:$0xff]   ;;  %6655 = vmatpush3.bf16.msra.mxu0 %v7116_v16 }
 0x240   : > { %6545 = vmatpush3.bf16.msra.mxu1 %v7117_v56 }
 0x241   : > { %v1613_v17 = vpop.permute.xlu0 %1612  ;;  %6546 = vmatprep.subr.bf16.mxu1 %v7119_v27 }
 0x242   : > { %1649 = vst.msk [vmem:[#allocation3 + $0x60] sm:$0xff] %vm1636_vm10, %v1613_v17  ;;  %v1615_v18 = vpop.permute.xlu1 %1614  ;;  %v2216_v17 = vld [vmem:[#allocation4 + $0x2] sm:$0xff] }
 0x243   : > { %1650 = vst.msk [vmem:[#allocation3 + $0x68] sm:$0xff] %vm1636_vm10, %v1615_v18  ;;  %v2217_v18 = vld [vmem:[#allocation4 + $0xa] sm:$0xff] }
 0x244   : > { %6547 = vmatpush3.bf16.msra.mxu1 %v7121_v44 }
 0x245   : > { %v713_v20 = vpop.permute.xlu0 %712  ;;  %6548 = vmatprep.subr.bf16.mxu1 %v7123_v46 }
 0x246   : > { %747 = vst.msk [vmem:[#allocation3 + $0x70] sm:$0xff] %vm732_vm3, %v713_v20  ;;  %v715_v21 = vpop.permute.xlu1 %714  ;;  %v2248_v20 = vpack.c.bf16 %v2217_v18, %v2216_v17 }
 0x247   : > { %748 = vst.msk [vmem:[#allocation3 + $0x78] sm:$0xff] %vm732_vm3, %v715_v21  ;;  %vm4093_vm3 = vcmask 1046528  }
 0x248   : > { %2264 = vst.msk [vmem:[#allocation5 + $0x8] sm:$0xff] %vm1934_vm12, %v2248_v20 }
 0x249   : > { %v842_v23 = vpop.permute.xlu0 %841  ;;  %v1665_v24 = vld [vmem:[#allocation3 + $0x60] sm:$0xff] }
 0x24a   : > { %876 = vst.msk [vmem:[#allocation3 + $0x70] sm:$0xff] %vm861_vm4, %v842_v23  ;;  %v844_v25 = vpop.permute.xlu1 %843  ;;  %6812 = vmatprep.mubr.msk.bf16.mxu0 %vm1688_vm11, %v1665_v24  ;;  %v1666_v29 = vld [vmem:[#allocation3 + $0x68] sm:$0xff]  ;;  %v7118_v23 = vld [vmem:[#allocation16 + $0xe8] sm:$0xff]  }
 0x24b   : > { %877 = vst.msk [vmem:[#allocation3 + $0x78] sm:$0xff] %vm861_vm4, %v844_v25  ;;  %6813 = vmatmul.mubr.msk.bf16.gmra.mrb[24].mxu0 %vm1688_vm11, %v1666_v29  ;;  %6656 = vmatprep.subr.bf16.mxu0 %v7118_v23  ;;  %vm4341_vm4 = vcmask 1045504  }
 0x24d   : > { %v971_v26 = vpop.permute.xlu0 %970 }
 0x24e   : > { %1005 = vst.msk [vmem:[#allocation3 + $0x70] sm:$0xff] %vm990_vm5, %v971_v26  ;;  %v973_v60 = vpop.permute.xlu1 %972 }
 0x24f   : > { %1006 = vst.msk [vmem:[#allocation3 + $0x78] sm:$0xff] %vm990_vm5, %v973_v60  ;;  %vm7442_vm5 = vmmov 0  }
 0x251   : > { %v1100_v28 = vpop.permute.xlu0 %1099 }
 0x252   : > { %1134 = vst.msk [vmem:[#allocation3 + $0x70] sm:$0xff] %vm1119_vm6, %v1100_v28  ;;  %v1102_v30 = vpop.permute.xlu1 %1101 }
 0x253   : > { %1135 = vst.msk [vmem:[#allocation3 + $0x78] sm:$0xff] %vm1119_vm6, %v1102_v30  ;;  %vm5857_vm6 = vcmask 130112  }
 0x255   : > { %v1229_v35 = vpop.permute.xlu0 %1228 }
 0x256   : > { %1263 = vst.msk [vmem:[#allocation3 + $0x70] sm:$0xff] %vm1248_vm7, %v1229_v35  ;;  %v1231_v36 = vpop.permute.xlu1 %1230 }
 0x257   : > { %1264 = vst.msk [vmem:[#allocation3 + $0x78] sm:$0xff] %vm1248_vm7, %v1231_v36  ;;  %vm5976_vm7 = vcmask 1041409  }
 0x259   : > { %v1359_v42 = vpop.permute.xlu0 %1358 }
 0x25a   : > { %1393 = vst.msk [vmem:[#allocation3 + $0x70] sm:$0xff] %vm1378_vm8, %v1359_v42  ;;  %v1361_v5 = vpop.permute.xlu1 %1360 }
 0x25b   : > { %1394 = vst.msk [vmem:[#allocation3 + $0x78] sm:$0xff] %vm1378_vm8, %v1361_v5  ;;  %v7120_v5 = vld [vmem:[#allocation16 + $0xa8] sm:$0xff]   ;;  %vm5978_vm8 = vcmask 1042434  }
 0x25c   : > { %6657 = vmatpush3.bf16.msra.mxu0 %v7120_v5 }
 0x25d   : > { %v1488_v50 = vpop.permute.xlu0 %1487  ;;  %6658 = vmatprep.subr.bf16.mxu0 %v7122_v45 }
 0x25e   : > { %1522 = vst.msk [vmem:[#allocation3 + $0x70] sm:$0xff] %vm1507_vm9, %v1488_v50  ;;  %v1490_v55 = vpop.permute.xlu1 %1489  ;;  %v6790_v57 = vpop.f32.mrb[0].mxu0  ;;  %v7125_v50 = vld [vmem:[#allocation16 + $0x38] sm:$0xff]  }
 0x25f   : > { %1523 = vst.msk [vmem:[#allocation3 + $0x78] sm:$0xff] %vm1507_vm9, %v1490_v55  ;;  %v1784_v19 = vadd.f32 %v6790_v57, %v8447_v43  ;;  %v1775_v59 = vpop.f32.mrb[1].mxu0  ;;  %v7127_v57 = vld [vmem:[#allocation16 + $0xb8] sm:$0xff]   ;;  %6549 = vmatpush3.bf16.msra.mxu1 %v7125_v50  ;;  %vm5980_vm9 = vcmask 1043459  }
 0x260   : > { %v1776_v61 = vadd.f32 %v8447_v43, %v1775_v59  ;;  %v6791_v62 = vpop.f32.mrb[2].mxu0  ;;  %6659 = vmatpush3.bf16.msra.mxu0 %v7124_v48 }
 0x261   : > { %v1904_v63 = vmax.f32 %v1784_v19, 0.0  ;;  %v1787_v0 = vadd.f32 %v6791_v62, %v8447_v43  ;;  %v1617_v3 = vpop.permute.xlu0 %1616  ;;  %v1778_v4 = vpop.f32.mrb[3].mxu0  ;;  %6660 = vmatprep.subr.bf16.mxu0 %v7126_v51 }
 0x262   : > { %v1902_v7 = vmax.f32 %v1776_v61, 0.0  ;;  %1651 = vst.msk [vmem:[#allocation3 + $0x70] sm:$0xff] %vm1636_vm10, %v1617_v3  ;;  %v1779_v52 = vadd.f32 %v8447_v43, %v1778_v4  ;;  %v1619_v8 = vpop.permute.xlu1 %1618 }
 0x263   : > { %1993 = vst.msk [vmem:[#allocation4 + $0x31] sm:$0xff] %vm1934_vm12, %v1904_v63  ;;  %v1905_v11 = vmax.f32 %v1787_v0, 0.0 }
 0x264   : > { %1652 = vst.msk [vmem:[#allocation3 + $0x78] sm:$0xff] %vm1636_vm10, %v1619_v8  ;;  %v1903_v13 = vmax.f32 %v1779_v52, 0.0  ;;  %6661 = vmatpush3.bf16.msra.mxu0 %v7127_v57  ;;  %vm5982_vm10 = vcmask 1044484  }
 0x265   : > { %1991 = vst.msk [vmem:[#allocation4 + $0x19] sm:$0xff] %vm1934_vm12, %v1902_v7  ;;  %1994 = vst.msk [vmem:[#allocation4 + $0x39] sm:$0xff] %vm1934_vm12, %v1905_v11  ;;  %v2760_v2 = vpop.permute.xlu0 %2759 }
 0x266   : > { %1992 = vst.msk [vmem:[#allocation4 + $0x21] sm:$0xff] %vm1934_vm12, %v1903_v13  ;;  %v2152_v14 = vpop.permute.xlu1 %2151 }
 0x267   : > { %2792 = vst.msk [vmem:[#allocation5 + $0x270] sm:$0xff] %vm2199_vm14, %v2760_v2  ;;  %2200 = vst.msk [vmem:[#allocation5] sm:$0xff] %vm2199_vm14, %v2152_v14 }
 0x269   : > { %v1667_v21 = vld [vmem:[#allocation3 + $0x70] sm:$0xff] }
 0x26a   : > { %6816 = vmatprep.mubr.msk.bf16.mxu0 %vm1688_vm11, %v1667_v21  ;;  %v2282_v25 = vld [vmem:[#allocation4 + $0x30] sm:$0xff] }
 0x26b   : > { %v1668_v24 = vld [vmem:[#allocation3 + $0x78] sm:$0xff] }
 0x26c   : > { %v2091_v29 = vld [vmem:[#allocation4 + $0x31] sm:$0xff]  ;;  %6817 = vmatmul.mubr.msk.bf16.gmra.mrb[28].mxu0 %vm1688_vm11, %v1668_v24  ;;  %v2089_v60 = vld [vmem:[#allocation4 + $0x19] sm:$0xff]  ;;  %vm5984_vm11 = vcmask 1045509  }
 0x26d   : > { %v2280_v26 = vld [vmem:[#allocation4 + $0x18] sm:$0xff]  ;;  %v2281_v35 = vld [vmem:[#allocation4 + $0x20] sm:$0xff] }
 0x26e   : > { %v2283_v28 = vld [vmem:[#allocation4 + $0x38] sm:$0xff]  ;;  %v2090_v36 = vld [vmem:[#allocation4 + $0x21] sm:$0xff]  ;;  %v2312_v38 = vpack.c.bf16 %v2281_v35, %v2280_v26 }
 0x26f   : > { %v2092_v30 = vld [vmem:[#allocation4 + $0x39] sm:$0xff]  ;;  %v2313_v32 = vpack.c.bf16 %v2283_v28, %v2282_v25  ;;  %v2120_v39 = vpack.c.bf16 %v2090_v36, %v2089_v60  ;;  %v2473_v42 = vld [vmem:[#allocation4 + $0x22] sm:$0xff] }
 0x270   : > { %v2474_v31 = vld [vmem:[#allocation4 + $0x32] sm:$0xff]  ;;  %v2121_v33 = vpack.c.bf16 %v2092_v30, %v2091_v29  ;;  %v2475_v34 = vld [vmem:[#allocation4 + $0x3a] sm:$0xff]  ;;  %2072 = vst.msk [vmem:[#allocation5 + $0x28] sm:$0xff] %vm1934_vm12, %v2312_v38 }
 0x271   : > { %v2505_v37 = vpack.c.bf16 %v2475_v34, %v2474_v31  ;;  %v2472_v41 = vld [vmem:[#allocation4 + $0x1a] sm:$0xff]  ;;  %2346 = vrot.lane.b32.xlu0 %v2313_v32, %s7439_s20  ;;  %2073 = vst.msk [vmem:[#allocation5 + $0x50] sm:$0xff] %vm1934_vm12, %v2313_v32  ;;  %2649 = vst.msk [vmem:[#allocation5 + $0x18] sm:$0xff] %vm1934_vm12, %v2313_v32  ;;  %v2793_v49 = vld [vmem:[#allocation4 + $0x32] sm:$0xff] }
 0x272   : > { %2155 = vrot.lane.b32.xlu1 %v2121_v33, %s7439_s20  ;;  %v2504_v40 = vpack.c.bf16 %v2473_v42, %v2472_v41  ;;  %2457 = vst.msk [vmem:[#allocation5 + $0x38] sm:$0xff] %vm1934_vm12, %v2121_v33  ;;  %2456 = vst.msk [vmem:[#allocation5 + $0x10] sm:$0xff] %vm1934_vm12, %v2120_v39  ;;  %v2794_v54 = vld [vmem:[#allocation4 + $0x3a] sm:$0xff] }
 0x273   : > { %2266 = vst.msk [vmem:[#allocation5 + $0x58] sm:$0xff] %vm1934_vm12, %v2505_v37  ;;  %v2825_v55 = vpack.c.bf16 %v2794_v54, %v2793_v49 }
 0x274   : > { %2265 = vst.msk [vmem:[#allocation5 + $0x30] sm:$0xff] %vm1934_vm12, %v2504_v40 }
 0x275   : > { %2729 = vrot.lane.b32.xlu0 %v2121_v33, %s7439_s20  ;;  %2841 = vst.msk [vmem:[#allocation5 + $0x20] sm:$0xff] %vm1934_vm12, %v2825_v55 }
 0x276   : > { %2538 = vrot.lane.b32.xlu1 %v2505_v37, %s7439_s20 }
 0x279   : > { %2344 = vrot.lane.b32.xlu0 %v2312_v38, %s7439_s20 }
 0x27a   : > { %2153 = vrot.lane.b32.xlu1 %v2120_v39, %s7439_s20 }
 0x27e   : > { %2536 = vrot.lane.b32.xlu1 %v2504_v40, %s7439_s20  ;;  %v6794_v53 = vpop.f32.mrb[4].mxu0 }
 0x27f   : > { %v1800_v58 = vadd.f32 %v6794_v53, %v8447_v43  ;;  %v1791_v19 = vpop.f32.mrb[5].mxu0 }
 0x280   : > { %v1792_v59 = vadd.f32 %v8447_v43, %v1791_v19  ;;  %v6795_v47 = vpop.f32.mrb[6].mxu0 }
 0x281   : > { %v1908_v61 = vmax.f32 %v1800_v58, 0.0  ;;  %v1803_v62 = vadd.f32 %v6795_v47, %v8447_v43  ;;  %v1794_v63 = vpop.f32.mrb[7].mxu0 }
 0x282   : > { %v1906_v0 = vmax.f32 %v1792_v59, 0.0  ;;  %v1795_v3 = vadd.f32 %v8447_v43, %v1794_v63 }
 0x283   : > { %1997 = vst.msk [vmem:[#allocation4 + $0x61] sm:$0xff] %vm1934_vm12, %v1908_v61  ;;  %v1909_v4 = vmax.f32 %v1803_v62, 0.0 }
 0x284   : > { %1995 = vst.msk [vmem:[#allocation4 + $0x49] sm:$0xff] %vm1934_vm12, %v1906_v0  ;;  %v1907_v6 = vmax.f32 %v1795_v3, 0.0 }
 0x285   : > { %1998 = vst.msk [vmem:[#allocation4 + $0x69] sm:$0xff] %vm1934_vm12, %v1909_v4 }
 0x286   : > { %1996 = vst.msk [vmem:[#allocation4 + $0x51] sm:$0xff] %vm1934_vm12, %v1907_v6 }
 0x28a   : > { %v2286_v7 = vld [vmem:[#allocation4 + $0x60] sm:$0xff] }
 0x28b   : > { %v2095_v52 = vld [vmem:[#allocation4 + $0x61] sm:$0xff]  ;;  %v2093_v12 = vld [vmem:[#allocation4 + $0x49] sm:$0xff] }
 0x28c   : > { %v2287_v8 = vld [vmem:[#allocation4 + $0x68] sm:$0xff] }
 0x28d   : > { %v2096_v9 = vld [vmem:[#allocation4 + $0x69] sm:$0xff]  ;;  %v2796_v2 = vld [vmem:[#allocation4 + $0x52] sm:$0xff]  ;;  %v2315_v22 = vpack.c.bf16 %v2287_v8, %v2286_v7 }
 0x28e   : > { %v2478_v10 = vld [vmem:[#allocation4 + $0x62] sm:$0xff]  ;;  %v2795_v13 = vld [vmem:[#allocation4 + $0x4a] sm:$0xff]  ;;  %v2123_v14 = vpack.c.bf16 %v2096_v9, %v2095_v52 }
 0x28f   : > { %v2284_v11 = vld [vmem:[#allocation4 + $0x48] sm:$0xff]  ;;  %v2826_v16 = vpack.c.bf16 %v2796_v2, %v2795_v13  ;;  %v2285_v56 = vld [vmem:[#allocation4 + $0x50] sm:$0xff]  ;;  %2350 = vrot.lane.b32.xlu0 %v2315_v22, %s7439_s20  ;;  %2075 = vst.msk [vmem:[#allocation5 + $0xa0] sm:$0xff] %vm1934_vm12, %v2315_v22  ;;  %2651 = vst.msk [vmem:[#allocation5 + $0x68] sm:$0xff] %vm1934_vm12, %v2315_v22 }
 0x290   : > { %v2479_v15 = vld [vmem:[#allocation4 + $0x6a] sm:$0xff]  ;;  %v2224_v18 = vld [vmem:[#allocation4 + $0x62] sm:$0xff]  ;;  %2159 = vrot.lane.b32.xlu1 %v2123_v14, %s7439_s20  ;;  %v2314_v20 = vpack.c.bf16 %v2285_v56, %v2284_v11  ;;  %2459 = vst.msk [vmem:[#allocation5 + $0x88] sm:$0xff] %vm1934_vm12, %v2123_v14 }
 0x291   : > { %v2094_v17 = vld [vmem:[#allocation4 + $0x51] sm:$0xff]  ;;  %2842 = vst.msk [vmem:[#allocation5 + $0x48] sm:$0xff] %vm1934_vm12, %v2826_v16  ;;  %2267 = vst.msk [vmem:[#allocation5 + $0x80] sm:$0xff] %vm1934_vm12, %v2826_v16  ;;  %v2507_v25 = vpack.c.bf16 %v2479_v15, %v2478_v10 }
 0x292   : > { %v2122_v21 = vpack.c.bf16 %v2094_v17, %v2093_v12  ;;  %v2225_v23 = vld [vmem:[#allocation4 + $0x6a] sm:$0xff]  ;;  %2074 = vst.msk [vmem:[#allocation5 + $0x78] sm:$0xff] %vm1934_vm12, %v2314_v20  ;;  %2650 = vst.msk [vmem:[#allocation5 + $0x40] sm:$0xff] %vm1934_vm12, %v2314_v20 }
 0x293   : > { %v2252_v24 = vpack.c.bf16 %v2225_v23, %v2224_v18  ;;  %2733 = vrot.lane.b32.xlu0 %v2123_v14, %s7439_s20 }
 0x294   : > { %2458 = vst.msk [vmem:[#allocation5 + $0x60] sm:$0xff] %vm1934_vm12, %v2122_v21  ;;  %2542 = vrot.lane.b32.xlu1 %v2507_v25, %s7439_s20 }
 0x295   : > { %2268 = vst.msk [vmem:[#allocation5 + $0xa8] sm:$0xff] %vm1934_vm12, %v2252_v24  ;;  %2843 = vst.msk [vmem:[#allocation5 + $0x70] sm:$0xff] %vm1934_vm12, %v2252_v24 }
 0x297   : > { %2348 = vrot.lane.b32.xlu0 %v2314_v20, %s7439_s20 }
 0x298   : > { %2157 = vrot.lane.b32.xlu1 %v2122_v21, %s7439_s20 }
 0x29b   : > { %2731 = vrot.lane.b32.xlu0 %v2122_v21, %s7439_s20 }
 0x29c   : > { %2540 = vrot.lane.b32.xlu1 %v2826_v16, %s7439_s20 }
 0x29e   : > { %v6798_v29 = vpop.f32.mrb[8].mxu0 }
 0x29f   : > { %v1816_v26 = vadd.f32 %v6798_v29, %v8447_v43  ;;  %v1807_v60 = vpop.f32.mrb[9].mxu0 }
 0x2a0   : > { %v1808_v27 = vadd.f32 %v8447_v43, %v1807_v60  ;;  %v6799_v28 = vpop.f32.mrb[10].mxu0 }
 0x2a1   : > { %v1912_v30 = vmax.f32 %v1816_v26, 0.0  ;;  %v1819_v31 = vadd.f32 %v6799_v28, %v8447_v43  ;;  %v1810_v32 = vpop.f32.mrb[11].mxu0 }
 0x2a2   : > { %v1910_v33 = vmax.f32 %v1808_v27, 0.0  ;;  %v1811_v34 = vadd.f32 %v8447_v43, %v1810_v32 }
 0x2a3   : > { %2001 = vst.msk [vmem:[#allocation4 + $0x91] sm:$0xff] %vm1934_vm12, %v1912_v30  ;;  %v1913_v35 = vmax.f32 %v1819_v31, 0.0 }
 0x2a4   : > { %1999 = vst.msk [vmem:[#allocation4 + $0x79] sm:$0xff] %vm1934_vm12, %v1910_v33  ;;  %v1911_v36 = vmax.f32 %v1811_v34, 0.0 }
 0x2a5   : > { %2002 = vst.msk [vmem:[#allocation4 + $0x99] sm:$0xff] %vm1934_vm12, %v1913_v35 }
 0x2a6   : > { %2000 = vst.msk [vmem:[#allocation4 + $0x81] sm:$0xff] %vm1934_vm12, %v1911_v36 }
 0x2aa   : > { %v2290_v37 = vld [vmem:[#allocation4 + $0x90] sm:$0xff] }
 0x2ab   : > { %v2099_v38 = vld [vmem:[#allocation4 + $0x91] sm:$0xff]  ;;  %v2097_v40 = vld [vmem:[#allocation4 + $0x79] sm:$0xff] }
 0x2ac   : > { %v2291_v39 = vld [vmem:[#allocation4 + $0x98] sm:$0xff] }
 0x2ad   : > { %v2100_v41 = vld [vmem:[#allocation4 + $0x99] sm:$0xff]  ;;  %v2800_v45 = vld [vmem:[#allocation4 + $0x82] sm:$0xff]  ;;  %v2317_v46 = vpack.c.bf16 %v2291_v39, %v2290_v37 }
 0x2ae   : > { %v2482_v42 = vld [vmem:[#allocation4 + $0x92] sm:$0xff]  ;;  %v2799_v44 = vld [vmem:[#allocation4 + $0x7a] sm:$0xff]  ;;  %v2125_v48 = vpack.c.bf16 %v2100_v41, %v2099_v38 }
 0x2af   : > { %v2288_v5 = vld [vmem:[#allocation4 + $0x78] sm:$0xff]  ;;  %v2828_v50 = vpack.c.bf16 %v2800_v45, %v2799_v44  ;;  %v2289_v51 = vld [vmem:[#allocation4 + $0x80] sm:$0xff]  ;;  %2354 = vrot.lane.b32.xlu0 %v2317_v46, %s7439_s20  ;;  %2077 = vst.msk [vmem:[#allocation5 + $0xf0] sm:$0xff] %vm1934_vm12, %v2317_v46  ;;  %2653 = vst.msk [vmem:[#allocation5 + $0xb8] sm:$0xff] %vm1934_vm12, %v2317_v46 }
 0x2b0   : > { %v2483_v49 = vld [vmem:[#allocation4 + $0x9a] sm:$0xff]  ;;  %v2228_v55 = vld [vmem:[#allocation4 + $0x92] sm:$0xff]  ;;  %2163 = vrot.lane.b32.xlu1 %v2125_v48, %s7439_s20  ;;  %v2316_v57 = vpack.c.bf16 %v2289_v51, %v2288_v5  ;;  %2461 = vst.msk [vmem:[#allocation5 + $0xd8] sm:$0xff] %vm1934_vm12, %v2125_v48 }
 0x2b1   : > { %v2098_v54 = vld [vmem:[#allocation4 + $0x81] sm:$0xff]  ;;  %2844 = vst.msk [vmem:[#allocation5 + $0x98] sm:$0xff] %vm1934_vm12, %v2828_v50  ;;  %2269 = vst.msk [vmem:[#allocation5 + $0xd0] sm:$0xff] %vm1934_vm12, %v2828_v50  ;;  %v2509_v59 = vpack.c.bf16 %v2483_v49, %v2482_v42 }
 0x2b2   : > { %v2124_v53 = vpack.c.bf16 %v2098_v54, %v2097_v40  ;;  %v2229_v58 = vld [vmem:[#allocation4 + $0x9a] sm:$0xff]  ;;  %2076 = vst.msk [vmem:[#allocation5 + $0xc8] sm:$0xff] %vm1934_vm12, %v2316_v57  ;;  %2652 = vst.msk [vmem:[#allocation5 + $0x90] sm:$0xff] %vm1934_vm12, %v2316_v57 }
 0x2b3   : > { %v2254_v19 = vpack.c.bf16 %v2229_v58, %v2228_v55  ;;  %2737 = vrot.lane.b32.xlu0 %v2125_v48, %s7439_s20 }
 0x2b4   : > { %2460 = vst.msk [vmem:[#allocation5 + $0xb0] sm:$0xff] %vm1934_vm12, %v2124_v53  ;;  %2546 = vrot.lane.b32.xlu1 %v2509_v59, %s7439_s20 }
 0x2b5   : > { %2270 = vst.msk [vmem:[#allocation5 + $0xf8] sm:$0xff] %vm1934_vm12, %v2254_v19  ;;  %2845 = vst.msk [vmem:[#allocation5 + $0xc0] sm:$0xff] %vm1934_vm12, %v2254_v19 }
 0x2b7   : > { %2352 = vrot.lane.b32.xlu0 %v2316_v57, %s7439_s20 }
 0x2b8   : > { %2161 = vrot.lane.b32.xlu1 %v2124_v53, %s7439_s20 }
 0x2bb   : > { %2735 = vrot.lane.b32.xlu0 %v2124_v53, %s7439_s20 }
 0x2bc   : > { %2544 = vrot.lane.b32.xlu1 %v2828_v50, %s7439_s20 }
 0x2be   : > { %v6802_v47 = vpop.f32.mrb[12].mxu0 }
 0x2bf   : > { %v1832_v61 = vadd.f32 %v6802_v47, %v8447_v43  ;;  %v1823_v62 = vpop.f32.mrb[13].mxu0 }
 0x2c0   : > { %v1824_v63 = vadd.f32 %v8447_v43, %v1823_v62  ;;  %v6803_v0 = vpop.f32.mrb[14].mxu0 }
 0x2c1   : > { %v1916_v3 = vmax.f32 %v1832_v61, 0.0  ;;  %v1835_v4 = vadd.f32 %v6803_v0, %v8447_v43  ;;  %v1826_v6 = vpop.f32.mrb[15].mxu0 }
 0x2c2   : > { %v1914_v7 = vmax.f32 %v1824_v63, 0.0  ;;  %v1827_v52 = vadd.f32 %v8447_v43, %v1826_v6 }
 0x2c3   : > { %2005 = vst.msk [vmem:[#allocation4 + $0xc1] sm:$0xff] %vm1934_vm12, %v1916_v3  ;;  %v1917_v8 = vmax.f32 %v1835_v4, 0.0 }
 0x2c4   : > { %2003 = vst.msk [vmem:[#allocation4 + $0xa9] sm:$0xff] %vm1934_vm12, %v1914_v7  ;;  %v1915_v9 = vmax.f32 %v1827_v52, 0.0 }
 0x2c5   : > { %2006 = vst.msk [vmem:[#allocation4 + $0xc9] sm:$0xff] %vm1934_vm12, %v1917_v8 }
 0x2c6   : > { %2004 = vst.msk [vmem:[#allocation4 + $0xb1] sm:$0xff] %vm1934_vm12, %v1915_v9 }
 0x2ca   : > { %v2294_v10 = vld [vmem:[#allocation4 + $0xc0] sm:$0xff] }
 0x2cb   : > { %v2103_v11 = vld [vmem:[#allocation4 + $0xc1] sm:$0xff]  ;;  %v2420_v31 = vld [vmem:[#allocation4 + $0xa9] sm:$0xff] }
 0x2cc   : > { %v2295_v12 = vld [vmem:[#allocation4 + $0xc8] sm:$0xff]  ;;  %v2039_v22 = vld [vmem:[#allocation4 + $0xc0] sm:$0xff] }
 0x2cd   : > { %v2104_v13 = vld [vmem:[#allocation4 + $0xc9] sm:$0xff]  ;;  %v2319_v14 = vpack.c.bf16 %v2295_v12, %v2294_v10  ;;  %v2422_v18 = vld [vmem:[#allocation4 + $0xc1] sm:$0xff]  ;;  %v2485_v23 = vld [vmem:[#allocation4 + $0xb2] sm:$0xff] }
 0x2ce   : > { %v2292_v2 = vld [vmem:[#allocation4 + $0xa8] sm:$0xff]  ;;  %v2127_v15 = vpack.c.bf16 %v2104_v13, %v2103_v11  ;;  %v2293_v17 = vld [vmem:[#allocation4 + $0xb0] sm:$0xff] }
 0x2cf   : > { %v2486_v16 = vld [vmem:[#allocation4 + $0xc2] sm:$0xff]  ;;  %v2487_v56 = vld [vmem:[#allocation4 + $0xca] sm:$0xff]  ;;  %v2318_v20 = vpack.c.bf16 %v2293_v17, %v2292_v2  ;;  %2358 = vrot.lane.b32.xlu0 %v2319_v14, %s7439_s20  ;;  %v2804_v38 = vld [vmem:[#allocation4 + $0xb2] sm:$0xff] }
 0x2d0   : > { %v2484_v21 = vld [vmem:[#allocation4 + $0xaa] sm:$0xff]  ;;  %2167 = vrot.lane.b32.xlu1 %v2127_v15, %s7439_s20  ;;  %v2232_v33 = vld [vmem:[#allocation4 + $0xc2] sm:$0xff]  ;;  %v2511_v34 = vpack.c.bf16 %v2487_v56, %v2486_v16 }
 0x2d1   : > { %v2040_v24 = vld [vmem:[#allocation4 + $0xc8] sm:$0xff]  ;;  %v2510_v25 = vpack.c.bf16 %v2485_v23, %v2484_v21  ;;  %v2612_v27 = vld [vmem:[#allocation4 + $0xb0] sm:$0xff]  ;;  %2078 = vst.msk [vmem:[#allocation5 + $0x118] sm:$0xff] %vm1934_vm12, %v2318_v20 }
 0x2d2   : > { %v2063_v29 = vpack.c.bf16 %v2040_v24, %v2039_v22  ;;  %v2423_v26 = vld [vmem:[#allocation4 + $0xc9] sm:$0xff]  ;;  %v2421_v32 = vld [vmem:[#allocation4 + $0xb1] sm:$0xff] }
 0x2d3   : > { %v2611_v60 = vld [vmem:[#allocation4 + $0xa8] sm:$0xff]  ;;  %v2447_v28 = vpack.c.bf16 %v2423_v26, %v2422_v18  ;;  %2271 = vst.msk [vmem:[#allocation5 + $0x120] sm:$0xff] %vm1934_vm12, %v2510_v25  ;;  %v2446_v35 = vpack.c.bf16 %v2421_v32, %v2420_v31  ;;  %v2102_v39 = vld [vmem:[#allocation4 + $0xb1] sm:$0xff]  ;;  %2741 = vrot.lane.b32.xlu0 %v2127_v15, %s7439_s20 }
 0x2d4   : > { %v2638_v30 = vpack.c.bf16 %v2612_v27, %v2611_v60  ;;  %2079 = vst.msk [vmem:[#allocation5 + $0x140] sm:$0xff] %vm1934_vm12, %v2063_v29  ;;  %2655 = vst.msk [vmem:[#allocation5 + $0x108] sm:$0xff] %vm1934_vm12, %v2063_v29  ;;  %v2233_v36 = vld [vmem:[#allocation4 + $0xca] sm:$0xff]  ;;  %2550 = vrot.lane.b32.xlu1 %v2511_v34, %s7439_s20 }
 0x2d5   : > { %v2803_v37 = vld [vmem:[#allocation4 + $0xaa] sm:$0xff]  ;;  %2463 = vst.msk [vmem:[#allocation5 + $0x128] sm:$0xff] %vm1934_vm12, %v2447_v28  ;;  %v2256_v41 = vpack.c.bf16 %v2233_v36, %v2232_v33  ;;  %2462 = vst.msk [vmem:[#allocation5 + $0x100] sm:$0xff] %vm1934_vm12, %v2446_v35 }
 0x2d6   : > { %2654 = vst.msk [vmem:[#allocation5 + $0xe0] sm:$0xff] %vm1934_vm12, %v2638_v30  ;;  %v2830_v42 = vpack.c.bf16 %v2804_v38, %v2803_v37  ;;  %v2101_v5 = vld [vmem:[#allocation4 + $0xa9] sm:$0xff] }
 0x2d7   : > { %2272 = vst.msk [vmem:[#allocation5 + $0x148] sm:$0xff] %vm1934_vm12, %v2256_v41  ;;  %2847 = vst.msk [vmem:[#allocation5 + $0x110] sm:$0xff] %vm1934_vm12, %v2256_v41  ;;  %v2126_v40 = vpack.c.bf16 %v2102_v39, %v2101_v5  ;;  %2356 = vrot.lane.b32.xlu0 %v2318_v20, %s7439_s20  ;;  %v2857_v21 = vld [vmem:[#allocation5] sm:$0xff] }
 0x2d8   : > { %2846 = vst.msk [vmem:[#allocation5 + $0xe8] sm:$0xff] %vm1934_vm12, %v2830_v42  ;;  %v7128_v28 = vld [vmem:[#allocation16 + $0x100] sm:$0xff]  }
 0x2d9   : > { %2165 = vrot.lane.b32.xlu1 %v2126_v40, %s7439_s20  ;;  %6820 = vmatprep.subr.bf16.mxu0 %v7128_v28 }
 0x2da   : > { %6882 = vmatprep.subr.bf16.mxu1 %v7128_v28 }
 0x2db   : > { %2739 = vrot.lane.b32.xlu0 %v2126_v40, %s7439_s20 }
 0x2dd   : > { %2548 = vrot.lane.b32.xlu1 %v2510_v25, %s7439_s20 }
 0x2de   : > { %v6806_v44 = vpop.f32.mrb[16].mxu0 }
 0x2df   : > { %v1848_v45 = vadd.f32 %v6806_v44, %v8447_v43  ;;  %v1839_v46 = vpop.f32.mrb[17].mxu0 }
 0x2e0   : > { %v1840_v48 = vadd.f32 %v8447_v43, %v1839_v46  ;;  %v6807_v49 = vpop.f32.mrb[18].mxu0 }
 0x2e1   : > { %v1920_v50 = vmax.f32 %v1848_v45, 0.0  ;;  %v1851_v51 = vadd.f32 %v6807_v49, %v8447_v43  ;;  %v1842_v53 = vpop.f32.mrb[19].mxu0 }
 0x2e2   : > { %v1918_v57 = vmax.f32 %v1840_v48, 0.0  ;;  %v1843_v19 = vadd.f32 %v8447_v43, %v1842_v53 }
 0x2e3   : > { %v2347_v54 = vpop.permute.xlu0 %2346  ;;  %2009 = vst.msk [vmem:[#allocation4 + $0xf1] sm:$0xff] %vm1934_vm12, %v1920_v50  ;;  %v1921_v58 = vmax.f32 %v1851_v51, 0.0 }
 0x2e4   : > { %v2156_v55 = vpop.permute.xlu1 %2155  ;;  %2393 = vst.msk [vmem:[#allocation5 + $0x30] sm:$0xff] %vm2199_vm14, %v2347_v54  ;;  %v1919_v59 = vmax.f32 %v1843_v19, 0.0 }
 0x2e5   : > { %2202 = vst.msk [vmem:[#allocation5 + $0x50] sm:$0xff] %vm2199_vm14, %v2156_v55 }
 0x2e6   : > { %2007 = vst.msk [vmem:[#allocation4 + $0xd9] sm:$0xff] %vm1934_vm12, %v1918_v57  ;;  %2010 = vst.msk [vmem:[#allocation4 + $0xf9] sm:$0xff] %vm1934_vm12, %v1921_v58 }
 0x2e7   : > { %v2730_v47 = vpop.permute.xlu0 %2729  ;;  %2008 = vst.msk [vmem:[#allocation4 + $0xe1] sm:$0xff] %vm1934_vm12, %v1919_v59 }
 0x2e8   : > { %v2539_v61 = vpop.permute.xlu1 %2538  ;;  %2777 = vst.msk [vmem:[#allocation5 + $0x18] sm:$0xff] %vm2199_vm14, %v2730_v47 }
 0x2e9   : > { %2585 = vst.msk [vmem:[#allocation5 + $0x38] sm:$0xff] %vm2199_vm14, %v2539_v61 }
 0x2ea   : > { %v2298_v0 = vld [vmem:[#allocation4 + $0xf0] sm:$0xff] }
 0x2eb   : > { %v2345_v62 = vpop.permute.xlu0 %2344  ;;  %v2107_v3 = vld [vmem:[#allocation4 + $0xf1] sm:$0xff]  ;;  %v2863_v27 = vld [vmem:[#allocation5 + $0x30] sm:$0xff] }
 0x2ec   : > { %v2154_v63 = vpop.permute.xlu1 %2153  ;;  %2392 = vst.msk [vmem:[#allocation5 + $0x8] sm:$0xff] %vm2199_vm14, %v2345_v62 }
 0x2ed   : > { %2201 = vst.msk [vmem:[#allocation5 + $0x28] sm:$0xff] %vm2199_vm14, %v2154_v63  ;;  %v2299_v4 = vld [vmem:[#allocation4 + $0xf8] sm:$0xff] }
 0x2ee   : > { %v2108_v6 = vld [vmem:[#allocation4 + $0xf9] sm:$0xff]  ;;  %v2321_v10 = vpack.c.bf16 %v2299_v4, %v2298_v0  ;;  %v2106_v14 = vld [vmem:[#allocation4 + $0xe1] sm:$0xff] }
 0x2ef   : > { %v2490_v7 = vld [vmem:[#allocation4 + $0xf2] sm:$0xff]  ;;  %v2860_v9 = vld [vmem:[#allocation5 + $0x18] sm:$0xff]  ;;  %v2129_v11 = vpack.c.bf16 %v2108_v6, %v2107_v3  ;;  %v2491_v12 = vld [vmem:[#allocation4 + $0xfa] sm:$0xff] }
 0x2f0   : > { %v2296_v52 = vld [vmem:[#allocation4 + $0xd8] sm:$0xff]  ;;  %v2537_v8 = vpop.permute.xlu1 %2536  ;;  %3473 = vmatprep.mubr.bf16.mxu0 %v2860_v9  ;;  %v2513_v2 = vpack.c.bf16 %v2491_v12, %v2490_v7  ;;  %v2297_v22 = vld [vmem:[#allocation4 + $0xe0] sm:$0xff]  ;;  %2362 = vrot.lane.b32.xlu0 %v2321_v10, %s7439_s20  ;;  %2081 = vst.msk [vmem:[#allocation5 + $0x190] sm:$0xff] %vm1934_vm12, %v2321_v10  ;;  %2657 = vst.msk [vmem:[#allocation5 + $0x158] sm:$0xff] %vm1934_vm12, %v2321_v10 }
 0x2f1   : > { %v2105_v13 = vld [vmem:[#allocation4 + $0xd9] sm:$0xff]  ;;  %2584 = vst.msk [vmem:[#allocation5 + $0x10] sm:$0xff] %vm2199_vm14, %v2537_v8  ;;  %2171 = vrot.lane.b32.xlu1 %v2129_v11, %s7439_s20  ;;  %v2320_v16 = vpack.c.bf16 %v2297_v22, %v2296_v52  ;;  %v2489_v17 = vld [vmem:[#allocation4 + $0xe2] sm:$0xff] }
 0x2f2   : > { %v2488_v15 = vld [vmem:[#allocation4 + $0xda] sm:$0xff]  ;;  %v2128_v56 = vpack.c.bf16 %v2106_v14, %v2105_v13  ;;  %2465 = vst.msk [vmem:[#allocation5 + $0x178] sm:$0xff] %vm1934_vm12, %v2129_v11  ;;  %v2808_v20 = vld [vmem:[#allocation4 + $0xe2] sm:$0xff]  ;;  %2274 = vst.msk [vmem:[#allocation5 + $0x198] sm:$0xff] %vm1934_vm12, %v2513_v2 }
 0x2f3   : > { %v2807_v18 = vld [vmem:[#allocation4 + $0xda] sm:$0xff]  ;;  %v2512_v23 = vpack.c.bf16 %v2489_v17, %v2488_v15  ;;  %v2809_v25 = vld [vmem:[#allocation4 + $0xf2] sm:$0xff]  ;;  %2080 = vst.msk [vmem:[#allocation5 + $0x168] sm:$0xff] %vm1934_vm12, %v2320_v16  ;;  %2656 = vst.msk [vmem:[#allocation5 + $0x130] sm:$0xff] %vm1934_vm12, %v2320_v16 }
 0x2f4   : > { %v2832_v24 = vpack.c.bf16 %v2808_v20, %v2807_v18  ;;  %v2810_v29 = vld [vmem:[#allocation4 + $0xfa] sm:$0xff]  ;;  %2464 = vst.msk [vmem:[#allocation5 + $0x150] sm:$0xff] %vm1934_vm12, %v2128_v56  ;;  %2745 = vrot.lane.b32.xlu0 %v2129_v11, %s7439_s20  ;;  %v2864_v18 = vld [vmem:[#allocation5 + $0x38] sm:$0xff] }
 0x2f5   : > { %v2858_v26 = vld [vmem:[#allocation5 + $0x8] sm:$0xff]  ;;  %v2833_v60 = vpack.c.bf16 %v2810_v29, %v2809_v25  ;;  %2273 = vst.msk [vmem:[#allocation5 + $0x170] sm:$0xff] %vm1934_vm12, %v2512_v23  ;;  %2554 = vrot.lane.b32.xlu1 %v2513_v2, %s7439_s20  ;;  %v2867_v15 = vld [vmem:[#allocation5 + $0x50] sm:$0xff] }
 0x2f6   : > { %3312 = vmatprep.mubr.bf16.mxu1 %v2858_v26  ;;  %2848 = vst.msk [vmem:[#allocation5 + $0x138] sm:$0xff] %vm1934_vm12, %v2832_v24  ;;  %v2862_v31 = vld [vmem:[#allocation5 + $0x28] sm:$0xff] }
 0x2f7   : > { %3313 = vmatmul.mubr.bf16.vlgmr.msra.gmra.mrb[0].mxu1 %v2857_v21  ;;  %2849 = vst.msk [vmem:[#allocation5 + $0x160] sm:$0xff] %vm1934_vm12, %v2833_v60 }
 0x2f8   : > { %3320 = vmatprep.mubr.bf16.mxu1 %v2863_v27  ;;  %v2859_v30 = vld [vmem:[#allocation5 + $0x10] sm:$0xff]  ;;  %6886 = vmatpush3.bf16.msra.mxu1 %v7128_v28 }
 0x2f9   : > { %3474 = vmatmul.mubr.bf16.vlgmr.msra.gmra.mrb[32].mxu0 %v2859_v30  ;;  %2360 = vrot.lane.b32.xlu0 %v2320_v16, %s7439_s20  ;;  %v7129_v16 = vld [vmem:[#allocation16 + $0x108] sm:$0xff]  }
 0x2fa   : > { %6821 = vmatpush3.bf16.msra.mxu0 %v7128_v28  ;;  %2169 = vrot.lane.b32.xlu1 %v2128_v56, %s7439_s20 }
 0x2fb   : > { %6822 = vmatprep.subr.bf16.mxu0 %v7129_v16  ;;  %6883 = vmatprep.subr.bf16.mxu1 %v7129_v16 }
 0x2fc   : > { %6887 = vmatpush3.bf16.msra.mxu1 %v7129_v16 }
 0x2fd   : > { %2743 = vrot.lane.b32.xlu0 %v2128_v56, %s7439_s20 }
 0x2fe   : > { %2552 = vrot.lane.b32.xlu1 %v2512_v23, %s7439_s20  ;;  %v6810_v32 = vpop.f32.mrb[20].mxu0  ;;  %6823 = vmatpush3.bf16.msra.mxu0 %v7129_v16 }
 0x2ff   : > { %3321 = vmatmul.mubr.bf16.gmra.mrb[4].mxu1 %v2862_v31  ;;  %v1864_v33 = vadd.f32 %v6810_v32, %v8447_v43  ;;  %v1855_v34 = vpop.f32.mrb[21].mxu0 }
 0x300   : > { %v1856_v35 = vadd.f32 %v8447_v43, %v1855_v34  ;;  %v6811_v36 = vpop.f32.mrb[22].mxu0 }
 0x301   : > { %v1924_v37 = vmax.f32 %v1864_v33, 0.0  ;;  %v1867_v38 = vadd.f32 %v6811_v36, %v8447_v43  ;;  %v1858_v39 = vpop.f32.mrb[23].mxu0  ;;  %v2351_v41 = vpop.permute.xlu0 %2350 }
 0x302   : > { %v1922_v42 = vmax.f32 %v1856_v35, 0.0  ;;  %v1859_v5 = vadd.f32 %v8447_v43, %v1858_v39  ;;  %2395 = vst.msk [vmem:[#allocation5 + $0x80] sm:$0xff] %vm2199_vm14, %v2351_v41  ;;  %v2160_v40 = vpop.permute.xlu1 %2159 }
 0x303   : > { %2013 = vst.msk [vmem:[#allocation4 + $0x121] sm:$0xff] %vm1934_vm12, %v1924_v37  ;;  %v1925_v44 = vmax.f32 %v1867_v38, 0.0 }
 0x304   : > { %2204 = vst.msk [vmem:[#allocation5 + $0xa0] sm:$0xff] %vm2199_vm14, %v2160_v40  ;;  %v1923_v45 = vmax.f32 %v1859_v5, 0.0 }
 0x305   : > { %2011 = vst.msk [vmem:[#allocation4 + $0x109] sm:$0xff] %vm1934_vm12, %v1922_v42  ;;  %2014 = vst.msk [vmem:[#allocation4 + $0x129] sm:$0xff] %vm1934_vm12, %v1925_v44  ;;  %v2734_v46 = vpop.permute.xlu0 %2733 }
 0x306   : > { %2012 = vst.msk [vmem:[#allocation4 + $0x111] sm:$0xff] %vm1934_vm12, %v1923_v45  ;;  %v2543_v48 = vpop.permute.xlu1 %2542 }
 0x307   : > { %2779 = vst.msk [vmem:[#allocation5 + $0x68] sm:$0xff] %vm2199_vm14, %v2734_v46  ;;  %2587 = vst.msk [vmem:[#allocation5 + $0x88] sm:$0xff] %vm2199_vm14, %v2543_v48 }
 0x309   : > { %v2349_v49 = vpop.permute.xlu0 %2348  ;;  %v2873_v56 = vld [vmem:[#allocation5 + $0x80] sm:$0xff] }
 0x30a   : > { %2394 = vst.msk [vmem:[#allocation5 + $0x58] sm:$0xff] %vm2199_vm14, %v2349_v49  ;;  %v2158_v50 = vpop.permute.xlu1 %2157  ;;  %v2302_v51 = vld [vmem:[#allocation4 + $0x120] sm:$0xff] }
 0x30b   : > { %2203 = vst.msk [vmem:[#allocation5 + $0x78] sm:$0xff] %vm2199_vm14, %v2158_v50  ;;  %v2111_v54 = vld [vmem:[#allocation4 + $0x121] sm:$0xff] }
 0x30c   : > { %v2300_v55 = vld [vmem:[#allocation4 + $0x108] sm:$0xff] }
 0x30d   : > { %v2109_v57 = vld [vmem:[#allocation4 + $0x109] sm:$0xff]  ;;  %v2732_v59 = vpop.permute.xlu0 %2731  ;;  %v2110_v0 = vld [vmem:[#allocation4 + $0x111] sm:$0xff] }
 0x30e   : > { %v2303_v53 = vld [vmem:[#allocation4 + $0x128] sm:$0xff]  ;;  %v2301_v63 = vld [vmem:[#allocation4 + $0x110] sm:$0xff]  ;;  %2778 = vst.msk [vmem:[#allocation5 + $0x40] sm:$0xff] %vm2199_vm14, %v2732_v59  ;;  %v2541_v3 = vpop.permute.xlu1 %2540  ;;  %v2130_v7 = vpack.c.bf16 %v2110_v0, %v2109_v57  ;;  %v2870_v20 = vld [vmem:[#allocation5 + $0x68] sm:$0xff] }
 0x30f   : > { %v2112_v58 = vld [vmem:[#allocation4 + $0x129] sm:$0xff]  ;;  %v2323_v47 = vpack.c.bf16 %v2303_v53, %v2302_v51  ;;  %v2322_v6 = vpack.c.bf16 %v2301_v63, %v2300_v55  ;;  %v2493_v8 = vld [vmem:[#allocation4 + $0x112] sm:$0xff]  ;;  %2586 = vst.msk [vmem:[#allocation5 + $0x60] sm:$0xff] %vm2199_vm14, %v2541_v3 }
 0x310   : > { %v2494_v19 = vld [vmem:[#allocation4 + $0x122] sm:$0xff]  ;;  %v2131_v61 = vpack.c.bf16 %v2112_v58, %v2111_v54  ;;  %v2495_v62 = vld [vmem:[#allocation4 + $0x12a] sm:$0xff]  ;;  %v2812_v11 = vld [vmem:[#allocation4 + $0x112] sm:$0xff]  ;;  %2466 = vst.msk [vmem:[#allocation5 + $0x1a0] sm:$0xff] %vm1934_vm12, %v2130_v7 }
 0x311   : > { %v2515_v4 = vpack.c.bf16 %v2495_v62, %v2494_v19  ;;  %v2492_v52 = vld [vmem:[#allocation4 + $0x10a] sm:$0xff]  ;;  %2366 = vrot.lane.b32.xlu0 %v2323_v47, %s7439_s20  ;;  %2083 = vst.msk [vmem:[#allocation5 + $0x1e0] sm:$0xff] %vm1934_vm12, %v2323_v47  ;;  %2659 = vst.msk [vmem:[#allocation5 + $0x1a8] sm:$0xff] %vm1934_vm12, %v2323_v47  ;;  %v2813_v13 = vld [vmem:[#allocation4 + $0x122] sm:$0xff] }
 0x312   : > { %2175 = vrot.lane.b32.xlu1 %v2131_v61, %s7439_s20  ;;  %v2514_v9 = vpack.c.bf16 %v2493_v8, %v2492_v52  ;;  %2467 = vst.msk [vmem:[#allocation5 + $0x1c8] sm:$0xff] %vm1934_vm12, %v2131_v61  ;;  %v2811_v10 = vld [vmem:[#allocation4 + $0x10a] sm:$0xff]  ;;  %2082 = vst.msk [vmem:[#allocation5 + $0x1b8] sm:$0xff] %vm1934_vm12, %v2322_v6  ;;  %v2874_v8 = vld [vmem:[#allocation5 + $0x88] sm:$0xff] }
 0x313   : > { %2658 = vst.msk [vmem:[#allocation5 + $0x180] sm:$0xff] %vm1934_vm12, %v2322_v6  ;;  %2276 = vst.msk [vmem:[#allocation5 + $0x1e8] sm:$0xff] %vm1934_vm12, %v2515_v4  ;;  %v2834_v12 = vpack.c.bf16 %v2812_v11, %v2811_v10  ;;  %v2814_v2 = vld [vmem:[#allocation4 + $0x12a] sm:$0xff] }
 0x314   : > { %v2868_v22 = vld [vmem:[#allocation5 + $0x58] sm:$0xff]  ;;  %2275 = vst.msk [vmem:[#allocation5 + $0x1c0] sm:$0xff] %vm1934_vm12, %v2514_v9  ;;  %v2835_v14 = vpack.c.bf16 %v2814_v2, %v2813_v13 }
 0x315   : > { %3328 = vmatprep.mubr.bf16.mxu1 %v2868_v22  ;;  %2850 = vst.msk [vmem:[#allocation5 + $0x188] sm:$0xff] %vm1934_vm12, %v2834_v12  ;;  %2749 = vrot.lane.b32.xlu0 %v2131_v61, %s7439_s20  ;;  %v2865_v17 = vld [vmem:[#allocation5 + $0x40] sm:$0xff]  ;;  %v2872_v21 = vld [vmem:[#allocation5 + $0x78] sm:$0xff] }
 0x316   : > { %2558 = vrot.lane.b32.xlu1 %v2515_v4, %s7439_s20  ;;  %2851 = vst.msk [vmem:[#allocation5 + $0x1b0] sm:$0xff] %vm1934_vm12, %v2835_v14  ;;  %3329 = vmatmul.mubr.bf16.gmra.mrb[8].mxu1 %v2867_v15  ;;  %v2869_v29 = vld [vmem:[#allocation5 + $0x60] sm:$0xff]  ;;  %v7132_v12 = vld [vmem:[#allocation15] ss:$0 sm:$0xff] }
 0x317   : > { %3336 = vmatprep.mubr.bf16.mxu1 %v2873_v56  ;;  %3481 = vmatprep.mubr.bf16.mxu0 %v2865_v17  ;;  %v2877_v4 = vld [vmem:[#allocation5 + $0xa0] sm:$0xff] }
 0x318   : > { %3482 = vmatmul.mubr.bf16.gmra.mrb[36].mxu0 %v2864_v18 }
 0x319   : > { %2364 = vrot.lane.b32.xlu0 %v2322_v6, %s7439_s20  ;;  %3489 = vmatprep.mubr.bf16.mxu0 %v2870_v20  ;;  %v7130_v6 = vld [vmem:[#allocation16 + $0x110] sm:$0xff]  }
 0x31a   : > { %2173 = vrot.lane.b32.xlu1 %v2130_v7, %s7439_s20  ;;  %6824 = vmatprep.subr.bf16.mxu0 %v7130_v6 }
 0x31b   : > { %6825 = vmatpush3.bf16.msra.mxu0 %v7130_v6  ;;  %6884 = vmatprep.subr.bf16.mxu1 %v7130_v6 }
 0x31c   : > { %6888 = vmatpush3.bf16.msra.mxu1 %v7130_v6 }
 0x31d   : > { %2747 = vrot.lane.b32.xlu0 %v2130_v7, %s7439_s20 }
 0x31e   : > { %2556 = vrot.lane.b32.xlu1 %v2514_v9, %s7439_s20  ;;  %3337 = vmatmul.mubr.bf16.gmra.mrb[12].mxu1 %v2872_v21  ;;  %v6814_v23 = vpop.f32.mrb[24].mxu0 }
 0x31f   : > { %v1880_v24 = vadd.f32 %v6814_v23, %v8447_v43  ;;  %v1871_v25 = vpop.f32.mrb[25].mxu0 }
 0x320   : > { %v1872_v26 = vadd.f32 %v8447_v43, %v1871_v25  ;;  %3490 = vmatmul.mubr.bf16.gmra.mrb[40].mxu0 %v2869_v29  ;;  %v6815_v60 = vpop.f32.mrb[26].mxu0 }
 0x321   : > { %v1928_v27 = vmax.f32 %v1880_v24, 0.0  ;;  %v1883_v28 = vadd.f32 %v6815_v60, %v8447_v43  ;;  %v1874_v30 = vpop.f32.mrb[27].mxu0  ;;  %v2355_v31 = vpop.permute.xlu0 %2354 }
 0x322   : > { %v1926_v32 = vmax.f32 %v1872_v26, 0.0  ;;  %v1875_v33 = vadd.f32 %v8447_v43, %v1874_v30  ;;  %2397 = vst.msk [vmem:[#allocation5 + $0xd0] sm:$0xff] %vm2199_vm14, %v2355_v31  ;;  %v2164_v34 = vpop.permute.xlu1 %2163 }
 0x323   : > { %2017 = vst.msk [vmem:[#allocation4 + $0x151] sm:$0xff] %vm1934_vm12, %v1928_v27  ;;  %v1929_v35 = vmax.f32 %v1883_v28, 0.0 }
 0x324   : > { %2206 = vst.msk [vmem:[#allocation5 + $0xf0] sm:$0xff] %vm2199_vm14, %v2164_v34  ;;  %v1927_v36 = vmax.f32 %v1875_v33, 0.0 }
 0x325   : > { %2015 = vst.msk [vmem:[#allocation4 + $0x139] sm:$0xff] %vm1934_vm12, %v1926_v32  ;;  %2018 = vst.msk [vmem:[#allocation4 + $0x159] sm:$0xff] %vm1934_vm12, %v1929_v35  ;;  %v2738_v37 = vpop.permute.xlu0 %2737 }
 0x326   : > { %2016 = vst.msk [vmem:[#allocation4 + $0x141] sm:$0xff] %vm1934_vm12, %v1927_v36  ;;  %v2547_v38 = vpop.permute.xlu1 %2546 }
 0x327   : > { %2781 = vst.msk [vmem:[#allocation5 + $0xb8] sm:$0xff] %vm2199_vm14, %v2738_v37  ;;  %2589 = vst.msk [vmem:[#allocation5 + $0xd8] sm:$0xff] %vm2199_vm14, %v2547_v38 }
 0x329   : > { %v2353_v43 = vpop.permute.xlu0 %2352  ;;  %v2883_v7 = vld [vmem:[#allocation5 + $0xd0] sm:$0xff] }
 0x32a   : > { %2396 = vst.msk [vmem:[#allocation5 + $0xa8] sm:$0xff] %vm2199_vm14, %v2353_v43  ;;  %v2162_v39 = vpop.permute.xlu1 %2161  ;;  %v2306_v41 = vld [vmem:[#allocation4 + $0x150] sm:$0xff] }
 0x32b   : > { %2205 = vst.msk [vmem:[#allocation5 + $0xc8] sm:$0xff] %vm2199_vm14, %v2162_v39  ;;  %v2115_v42 = vld [vmem:[#allocation4 + $0x151] sm:$0xff] }
 0x32c   : > { %v2304_v5 = vld [vmem:[#allocation4 + $0x138] sm:$0xff] }
 0x32d   : > { %v2113_v40 = vld [vmem:[#allocation4 + $0x139] sm:$0xff]  ;;  %v2736_v48 = vpop.permute.xlu0 %2735  ;;  %v2114_v55 = vld [vmem:[#allocation4 + $0x141] sm:$0xff] }
 0x32e   : > { %v2307_v44 = vld [vmem:[#allocation4 + $0x158] sm:$0xff]  ;;  %v2305_v54 = vld [vmem:[#allocation4 + $0x140] sm:$0xff]  ;;  %2780 = vst.msk [vmem:[#allocation5 + $0x90] sm:$0xff] %vm2199_vm14, %v2736_v48  ;;  %v2545_v57 = vpop.permute.xlu1 %2544  ;;  %v2132_v19 = vpack.c.bf16 %v2114_v55, %v2113_v40  ;;  %v2880_v9 = vld [vmem:[#allocation5 + $0xb8] sm:$0xff] }
 0x32f   : > { %v2116_v45 = vld [vmem:[#allocation4 + $0x159] sm:$0xff]  ;;  %v2325_v49 = vpack.c.bf16 %v2307_v44, %v2306_v41  ;;  %v2324_v58 = vpack.c.bf16 %v2305_v54, %v2304_v5  ;;  %v2497_v47 = vld [vmem:[#allocation4 + $0x142] sm:$0xff]  ;;  %2588 = vst.msk [vmem:[#allocation5 + $0xb0] sm:$0xff] %vm2199_vm14, %v2545_v57 }
 0x330   : > { %v2498_v46 = vld [vmem:[#allocation4 + $0x152] sm:$0xff]  ;;  %v2133_v50 = vpack.c.bf16 %v2116_v45, %v2115_v42  ;;  %v2499_v51 = vld [vmem:[#allocation4 + $0x15a] sm:$0xff]  ;;  %2468 = vst.msk [vmem:[#allocation5 + $0x1f0] sm:$0xff] %vm1934_vm12, %v2132_v19  ;;  %v7131_v54 = vld [vmem:[#allocation16 + $0x118] sm:$0xff]  }
 0x331   : > { %v2517_v53 = vpack.c.bf16 %v2499_v51, %v2498_v46  ;;  %v2496_v59 = vld [vmem:[#allocation4 + $0x13a] sm:$0xff]  ;;  %2370 = vrot.lane.b32.xlu0 %v2325_v49, %s7439_s20  ;;  %2085 = vst.msk [vmem:[#allocation5 + $0x230] sm:$0xff] %vm1934_vm12, %v2325_v49  ;;  %2661 = vst.msk [vmem:[#allocation5 + $0x1f8] sm:$0xff] %vm1934_vm12, %v2325_v49  ;;  %v2817_v62 = vld [vmem:[#allocation4 + $0x152] sm:$0xff]  ;;  %6826 = vmatprep.subr.bf16.mxu0 %v7131_v54 }
 0x332   : > { %2179 = vrot.lane.b32.xlu1 %v2133_v50, %s7439_s20  ;;  %v2516_v61 = vpack.c.bf16 %v2497_v47, %v2496_v59  ;;  %2469 = vst.msk [vmem:[#allocation5 + $0x218] sm:$0xff] %vm1934_vm12, %v2133_v50  ;;  %v2818_v63 = vld [vmem:[#allocation4 + $0x15a] sm:$0xff]  ;;  %2084 = vst.msk [vmem:[#allocation5 + $0x208] sm:$0xff] %vm1934_vm12, %v2324_v58  ;;  %v2884_v57 = vld [vmem:[#allocation5 + $0xd8] sm:$0xff]  ;;  %6885 = vmatprep.subr.bf16.mxu1 %v7131_v54 }
 0x333   : > { %2660 = vst.msk [vmem:[#allocation5 + $0x1d0] sm:$0xff] %vm1934_vm12, %v2324_v58  ;;  %2278 = vst.msk [vmem:[#allocation5 + $0x238] sm:$0xff] %vm1934_vm12, %v2517_v53  ;;  %v2837_v0 = vpack.c.bf16 %v2818_v63, %v2817_v62  ;;  %v2878_v3 = vld [vmem:[#allocation5 + $0xa8] sm:$0xff]  ;;  %6827 = vmatpush3.bf16.msra.mxu0 %v7131_v54  ;;  %6889 = vmatpush3.bf16.msra.mxu1 %v7131_v54 }
 0x334   : > { %2277 = vst.msk [vmem:[#allocation5 + $0x210] sm:$0xff] %vm1934_vm12, %v2516_v61  ;;  %2852 = vst.msk [vmem:[#allocation5 + $0x1d8] sm:$0xff] %vm1934_vm12, %v2516_v61  ;;  %3344 = vmatprep.mubr.bf16.mxu1 %v2878_v3  ;;  %v2882_v10 = vld [vmem:[#allocation5 + $0xc8] sm:$0xff] }
 0x335   : > { %2853 = vst.msk [vmem:[#allocation5 + $0x200] sm:$0xff] %vm1934_vm12, %v2837_v0  ;;  %2753 = vrot.lane.b32.xlu0 %v2133_v50, %s7439_s20  ;;  %3345 = vmatmul.mubr.bf16.gmra.mrb[16].mxu1 %v2877_v4  ;;  %v2875_v52 = vld [vmem:[#allocation5 + $0x90] sm:$0xff] }
 0x336   : > { %2562 = vrot.lane.b32.xlu1 %v2517_v53, %s7439_s20  ;;  %3352 = vmatprep.mubr.bf16.mxu1 %v2883_v7  ;;  %v2879_v22 = vld [vmem:[#allocation5 + $0xb0] sm:$0xff] }
 0x337   : > { %3497 = vmatprep.mubr.bf16.mxu0 %v2875_v52  ;;  %v2887_v50 = vld [vmem:[#allocation5 + $0xf0] sm:$0xff] }
 0x338   : > { %3498 = vmatmul.mubr.bf16.gmra.mrb[44].mxu0 %v2874_v8 }
 0x339   : > { %2368 = vrot.lane.b32.xlu0 %v2324_v58, %s7439_s20  ;;  %3505 = vmatprep.mubr.bf16.mxu0 %v2880_v9 }
 0x33a   : > { %2177 = vrot.lane.b32.xlu1 %v2132_v19, %s7439_s20 }
 0x33d   : > { %2751 = vrot.lane.b32.xlu0 %v2132_v19, %s7439_s20  ;;  %3353 = vmatmul.mubr.bf16.gmra.mrb[20].mxu1 %v2882_v10 }
 0x33e   : > { %2560 = vrot.lane.b32.xlu1 %v2516_v61, %s7439_s20 }
 0x33f   : > { %v6818_v11 = vpop.f32.mrb[28].mxu0 }
 0x340   : > { %v1896_v13 = vadd.f32 %v7132_v12, %v6818_v11  ;;  %v1887_v2 = vpop.f32.mrb[29].mxu0  ;;  %3506 = vmatmul.mubr.bf16.gmra.mrb[48].mxu0 %v2879_v22 }
 0x341   : > { %v1888_v14 = vadd.f32 %v7132_v12, %v1887_v2  ;;  %v6819_v15 = vpop.f32.mrb[30].mxu0  ;;  %v2359_v18 = vpop.permute.xlu0 %2358 }
 0x342   : > { %v1932_v16 = vmax.f32 %v1896_v13, 0.0  ;;  %v1899_v56 = vadd.f32 %v7132_v12, %v6819_v15  ;;  %v1890_v17 = vpop.f32.mrb[31].mxu0  ;;  %2399 = vst.msk [vmem:[#allocation5 + $0x120] sm:$0xff] %vm2199_vm14, %v2359_v18  ;;  %v2168_v23 = vpop.permute.xlu1 %2167  ;;  %v2823_v18 = vld [vmem:[#allocation4 + $0x19a] sm:$0xff] }
 0x343   : > { %v1930_v20 = vmax.f32 %v1888_v14, 0.0  ;;  %v1891_v21 = vadd.f32 %v7132_v12, %v1890_v17  ;;  %2208 = vst.msk [vmem:[#allocation5 + $0x140] sm:$0xff] %vm2199_vm14, %v2168_v23 }
 0x344   : > { %2021 = vst.msk [vmem:[#allocation4 + $0x181] sm:$0xff] %vm1934_vm12, %v1932_v16  ;;  %v1933_v24 = vmax.f32 %v1899_v56, 0.0 }
 0x345   : > { %2019 = vst.msk [vmem:[#allocation4 + $0x169] sm:$0xff] %vm1934_vm12, %v1930_v20  ;;  %v1931_v25 = vmax.f32 %v1891_v21, 0.0  ;;  %v2742_v29 = vpop.permute.xlu0 %2741  ;;  %v2824_v20 = vld [vmem:[#allocation4 + $0x1a2] sm:$0xff] }
 0x346   : > { %2022 = vst.msk [vmem:[#allocation4 + $0x189] sm:$0xff] %vm1934_vm12, %v1933_v24  ;;  %v2551_v26 = vpop.permute.xlu1 %2550  ;;  %v2840_v21 = vpack.c.bf16 %v2824_v20, %v2823_v18  ;;  %v2871_v20 = vld [vmem:[#allocation5 + $0x70] sm:$0xff] }
 0x347   : > { %2020 = vst.msk [vmem:[#allocation4 + $0x171] sm:$0xff] %vm1934_vm12, %v1931_v25 }
 0x348   : > { %2783 = vst.msk [vmem:[#allocation5 + $0x108] sm:$0xff] %vm2199_vm14, %v2742_v29  ;;  %2591 = vst.msk [vmem:[#allocation5 + $0x128] sm:$0xff] %vm2199_vm14, %v2551_v26 }
 0x349   : > { %v2357_v60 = vpop.permute.xlu0 %2356  ;;  %v2893_v51 = vld [vmem:[#allocation5 + $0x120] sm:$0xff]  ;;  %2856 = vst.msk [vmem:[#allocation5 + $0x278] sm:$0xff] %vm1934_vm12, %v2840_v21 }
 0x34a   : > { %2398 = vst.msk [vmem:[#allocation5 + $0xf8] sm:$0xff] %vm2199_vm14, %v2357_v60  ;;  %v2897_v7 = vld [vmem:[#allocation5 + $0x140] sm:$0xff] }
 0x34b   : > { %v2166_v27 = vpop.permute.xlu1 %2165  ;;  %v2310_v28 = vld [vmem:[#allocation4 + $0x180] sm:$0xff] }
 0x34c   : > { %2207 = vst.msk [vmem:[#allocation5 + $0x118] sm:$0xff] %vm2199_vm14, %v2166_v27  ;;  %v2693_v30 = vld [vmem:[#allocation4 + $0x181] sm:$0xff]  ;;  %v2117_v31 = vld [vmem:[#allocation4 + $0x169] sm:$0xff] }
 0x34d   : > { %v2308_v32 = vld [vmem:[#allocation4 + $0x168] sm:$0xff]  ;;  %v2740_v36 = vpop.permute.xlu0 %2739 }
 0x34e   : > { %v2311_v33 = vld [vmem:[#allocation4 + $0x188] sm:$0xff]  ;;  %v2118_v39 = vld [vmem:[#allocation4 + $0x171] sm:$0xff]  ;;  %2782 = vst.msk [vmem:[#allocation5 + $0xe0] sm:$0xff] %vm2199_vm14, %v2740_v36 }
 0x34f   : > { %v2502_v34 = vld [vmem:[#allocation4 + $0x182] sm:$0xff]  ;;  %v2503_v35 = vld [vmem:[#allocation4 + $0x18a] sm:$0xff]  ;;  %v2327_v37 = vpack.c.bf16 %v2311_v33, %v2310_v28  ;;  %v2549_v42 = vpop.permute.xlu1 %2548  ;;  %v2134_v40 = vpack.c.bf16 %v2118_v39, %v2117_v31  ;;  %v2501_v46 = vld [vmem:[#allocation4 + $0x172] sm:$0xff] }
 0x350   : > { %v2519_v38 = vpack.c.bf16 %v2503_v35, %v2502_v34  ;;  %v2694_v43 = vld [vmem:[#allocation4 + $0x189] sm:$0xff]  ;;  %2590 = vst.msk [vmem:[#allocation5 + $0x100] sm:$0xff] %vm2199_vm14, %v2549_v42  ;;  %v2890_v53 = vld [vmem:[#allocation5 + $0x108] sm:$0xff] }
 0x351   : > { %v2309_v41 = vld [vmem:[#allocation4 + $0x170] sm:$0xff]  ;;  %v2711_v5 = vpack.c.bf16 %v2694_v43, %v2693_v30  ;;  %2374 = vrot.lane.b32.xlu0 %v2327_v37, %s7439_s20  ;;  %2663 = vst.msk [vmem:[#allocation5 + $0x248] sm:$0xff] %vm1934_vm12, %v2327_v37  ;;  %2470 = vst.msk [vmem:[#allocation5 + $0x240] sm:$0xff] %vm1934_vm12, %v2134_v40  ;;  %v2888_v49 = vld [vmem:[#allocation5 + $0xf8] sm:$0xff] }
 0x352   : > { %v2326_v44 = vpack.c.bf16 %v2309_v41, %v2308_v32  ;;  %v2500_v45 = vld [vmem:[#allocation4 + $0x16a] sm:$0xff]  ;;  %2566 = vrot.lane.b32.xlu1 %v2519_v38, %s7439_s20  ;;  %2855 = vst.msk [vmem:[#allocation5 + $0x250] sm:$0xff] %vm1934_vm12, %v2519_v38  ;;  %3360 = vmatprep.mubr.bf16.mxu1 %v2888_v49  ;;  %v2894_v9 = vld [vmem:[#allocation5 + $0x128] sm:$0xff] }
 0x353   : > { %v2518_v48 = vpack.c.bf16 %v2501_v46, %v2500_v45  ;;  %2471 = vst.msk [vmem:[#allocation5 + $0x268] sm:$0xff] %vm1934_vm12, %v2711_v5  ;;  %3361 = vmatmul.mubr.bf16.gmra.mrb[24].mxu1 %v2887_v50  ;;  %v2892_v58 = vld [vmem:[#allocation5 + $0x118] sm:$0xff] }
 0x354   : > { %2086 = vst.msk [vmem:[#allocation5 + $0x258] sm:$0xff] %vm1934_vm12, %v2326_v44  ;;  %2662 = vst.msk [vmem:[#allocation5 + $0x220] sm:$0xff] %vm1934_vm12, %v2326_v44  ;;  %3368 = vmatprep.mubr.bf16.mxu1 %v2893_v51  ;;  %v8718_v51 = vld [vmem:[#allocation18] ss:$0 sm:$0xff] }
 0x355   : > { %2279 = vst.msk [vmem:[#allocation5 + $0x260] sm:$0xff] %vm1934_vm12, %v2518_v48  ;;  %2854 = vst.msk [vmem:[#allocation5 + $0x228] sm:$0xff] %vm1934_vm12, %v2518_v48  ;;  %2757 = vrot.lane.b32.xlu0 %v2711_v5, %s7439_s20  ;;  %v2885_v55 = vld [vmem:[#allocation5 + $0xe0] sm:$0xff] }
 0x356   : > { %2181 = vrot.lane.b32.xlu1 %v2134_v40, %s7439_s20  ;;  %3513 = vmatprep.mubr.bf16.mxu0 %v2885_v55 }
 0x357   : > { %3514 = vmatmul.mubr.bf16.gmra.mrb[52].mxu0 %v2884_v57  ;;  %v2889_v19 = vld [vmem:[#allocation5 + $0x100] sm:$0xff] }
 0x358   : > { %3521 = vmatprep.mubr.bf16.mxu0 %v2890_v53 }
 0x359   : > { %2372 = vrot.lane.b32.xlu0 %v2326_v44, %s7439_s20 }
 0x35a   : > { %2564 = vrot.lane.b32.xlu1 %v2518_v48, %s7439_s20 }
 0x35b   : > { %3369 = vmatmul.mubr.bf16.gmra.mrb[28].mxu1 %v2892_v58 }
 0x35d   : > { %2755 = vrot.lane.b32.xlu0 %v2134_v40, %s7439_s20  ;;  %s7446_s20 = smov 127  }
 0x35f   : > { %3522 = vmatmul.mubr.bf16.gmra.mrb[56].mxu0 %v2889_v19 }
 0x362   : > { %v2363_v59 = vpop.permute.xlu0 %2362 }
 0x363   : > { %v2172_v47 = vpop.permute.xlu1 %2171  ;;  %2401 = vst.msk [vmem:[#allocation5 + $0x170] sm:$0xff] %vm2199_vm14, %v2363_v59 }
 0x364   : > { %2210 = vst.msk [vmem:[#allocation5 + $0x190] sm:$0xff] %vm2199_vm14, %v2172_v47 }
 0x366   : > { %v2746_v61 = vpop.permute.xlu0 %2745 }
 0x367   : > { %2785 = vst.msk [vmem:[#allocation5 + $0x158] sm:$0xff] %vm2199_vm14, %v2746_v61  ;;  %v2555_v62 = vpop.permute.xlu1 %2554 }
 0x368   : > { %2593 = vst.msk [vmem:[#allocation5 + $0x178] sm:$0xff] %vm2199_vm14, %v2555_v62 }
 0x36a   : > { %v2903_v52 = vld [vmem:[#allocation5 + $0x170] sm:$0xff] }
 0x36b   : > { %v2361_v63 = vpop.permute.xlu0 %2360  ;;  %v2907_v24 = vld [vmem:[#allocation5 + $0x190] sm:$0xff] }
 0x36c   : > { %2400 = vst.msk [vmem:[#allocation5 + $0x148] sm:$0xff] %vm2199_vm14, %v2361_v63  ;;  %v2170_v0 = vpop.permute.xlu1 %2169 }
 0x36d   : > { %2209 = vst.msk [vmem:[#allocation5 + $0x168] sm:$0xff] %vm2199_vm14, %v2170_v0 }
 0x36e   : > { %v2900_v10 = vld [vmem:[#allocation5 + $0x158] sm:$0xff] }
 0x36f   : > { %v2744_v3 = vpop.permute.xlu0 %2743  ;;  %v2904_v26 = vld [vmem:[#allocation5 + $0x178] sm:$0xff] }
 0x370   : > { %2784 = vst.msk [vmem:[#allocation5 + $0x130] sm:$0xff] %vm2199_vm14, %v2744_v3  ;;  %v2553_v4 = vpop.permute.xlu1 %2552 }
 0x371   : > { %2592 = vst.msk [vmem:[#allocation5 + $0x150] sm:$0xff] %vm2199_vm14, %v2553_v4 }
 0x373   : > { %v2898_v6 = vld [vmem:[#allocation5 + $0x148] sm:$0xff] }
 0x374   : > { %3376 = vmatprep.mubr.bf16.mxu1 %v2898_v6  ;;  %v2902_v11 = vld [vmem:[#allocation5 + $0x168] sm:$0xff] }
 0x375   : > { %3377 = vmatmul.mubr.bf16.gmra.mrb[32].mxu1 %v2897_v7 }
 0x376   : > { %3384 = vmatprep.mubr.bf16.mxu1 %v2903_v52 }
 0x377   : > { %v2895_v8 = vld [vmem:[#allocation5 + $0x130] sm:$0xff] }
 0x378   : > { %3529 = vmatprep.mubr.bf16.mxu0 %v2895_v8  ;;  %v2899_v12 = vld [vmem:[#allocation5 + $0x150] sm:$0xff] }
 0x379   : > { %3530 = vmatmul.mubr.bf16.gmra.mrb[60].mxu0 %v2894_v9 }
 0x37a   : > { %3537 = vmatprep.mubr.bf16.mxu0 %v2900_v10 }
 0x37d   : > { %3385 = vmatmul.mubr.bf16.gmra.mrb[36].mxu1 %v2902_v11 }
 0x381   : > { %3538 = vmatmul.mubr.bf16.gmra.mrb[64].mxu0 %v2899_v12 }
 0x383   : > { %v2367_v13 = vpop.permute.xlu0 %2366 }
 0x384   : > { %v2176_v2 = vpop.permute.xlu1 %2175  ;;  %2403 = vst.msk [vmem:[#allocation5 + $0x1c0] sm:$0xff] %vm2199_vm14, %v2367_v13 }
 0x385   : > { %2212 = vst.msk [vmem:[#allocation5 + $0x1e0] sm:$0xff] %vm2199_vm14, %v2176_v2 }
 0x387   : > { %v2750_v22 = vpop.permute.xlu0 %2749 }
 0x388   : > { %v2559_v14 = vpop.permute.xlu1 %2558  ;;  %2787 = vst.msk [vmem:[#allocation5 + $0x1a8] sm:$0xff] %vm2199_vm14, %v2750_v22 }
 0x389   : > { %2595 = vst.msk [vmem:[#allocation5 + $0x1c8] sm:$0xff] %vm2199_vm14, %v2559_v14 }
 0x38b   : > { %v2365_v15 = vpop.permute.xlu0 %2364  ;;  %v2913_v25 = vld [vmem:[#allocation5 + $0x1c0] sm:$0xff] }
 0x38c   : > { %v2174_v16 = vpop.permute.xlu1 %2173  ;;  %2402 = vst.msk [vmem:[#allocation5 + $0x198] sm:$0xff] %vm2199_vm14, %v2365_v15  ;;  %v2917_v43 = vld [vmem:[#allocation5 + $0x1e0] sm:$0xff] }
 0x38d   : > { %2211 = vst.msk [vmem:[#allocation5 + $0x1b8] sm:$0xff] %vm2199_vm14, %v2174_v16 }
 0x38f   : > { %v2748_v56 = vpop.permute.xlu0 %2747  ;;  %v2910_v60 = vld [vmem:[#allocation5 + $0x1a8] sm:$0xff] }
 0x390   : > { %v2557_v17 = vpop.permute.xlu1 %2556  ;;  %2786 = vst.msk [vmem:[#allocation5 + $0x180] sm:$0xff] %vm2199_vm14, %v2748_v56  ;;  %v2914_v42 = vld [vmem:[#allocation5 + $0x1c8] sm:$0xff] }
 0x391   : > { %2594 = vst.msk [vmem:[#allocation5 + $0x1a0] sm:$0xff] %vm2199_vm14, %v2557_v17 }
 0x393   : > { %v2908_v23 = vld [vmem:[#allocation5 + $0x198] sm:$0xff] }
 0x394   : > { %3392 = vmatprep.mubr.bf16.mxu1 %v2908_v23  ;;  %v2912_v27 = vld [vmem:[#allocation5 + $0x1b8] sm:$0xff]  ;;  %v2935_v23 = vld [vmem:[#allocation5 + $0x270] sm:$0xff] }
 0x395   : > { %3393 = vmatmul.mubr.bf16.gmra.mrb[40].mxu1 %v2907_v24  ;;  %v2876_v24 = vld [vmem:[#allocation5 + $0x98] sm:$0xff] }
 0x396   : > { %3400 = vmatprep.mubr.bf16.mxu1 %v2913_v25  ;;  %v2881_v25 = vld [vmem:[#allocation5 + $0xc0] sm:$0xff] }
 0x397   : > { %v2905_v29 = vld [vmem:[#allocation5 + $0x180] sm:$0xff] }
 0x398   : > { %3545 = vmatprep.mubr.bf16.mxu0 %v2905_v29  ;;  %v2909_v28 = vld [vmem:[#allocation5 + $0x1a0] sm:$0xff] }
 0x399   : > { %3546 = vmatmul.mubr.bf16.gmra.mrb[68].mxu0 %v2904_v26 }
 0x39a   : > { %3553 = vmatprep.mubr.bf16.mxu0 %v2910_v60  ;;  %v2861_v60 = vld [vmem:[#allocation5 + $0x20] sm:$0xff] }
 0x39d   : > { %3401 = vmatmul.mubr.bf16.gmra.mrb[44].mxu1 %v2912_v27 }
 0x3a1   : > { %3554 = vmatmul.mubr.bf16.gmra.mrb[72].mxu0 %v2909_v28 }
 0x3a3   : > { %v2371_v30 = vpop.permute.xlu0 %2370 }
 0x3a4   : > { %v2180_v31 = vpop.permute.xlu1 %2179  ;;  %2405 = vst.msk [vmem:[#allocation5 + $0x210] sm:$0xff] %vm2199_vm14, %v2371_v30 }
 0x3a5   : > { %2214 = vst.msk [vmem:[#allocation5 + $0x230] sm:$0xff] %vm2199_vm14, %v2180_v31 }
 0x3a7   : > { %v2754_v32 = vpop.permute.xlu0 %2753 }
 0x3a8   : > { %v2563_v33 = vpop.permute.xlu1 %2562  ;;  %2789 = vst.msk [vmem:[#allocation5 + $0x1f8] sm:$0xff] %vm2199_vm14, %v2754_v32  ;;  %v2886_v32 = vld [vmem:[#allocation5 + $0xe8] sm:$0xff] }
 0x3a9   : > { %2597 = vst.msk [vmem:[#allocation5 + $0x218] sm:$0xff] %vm2199_vm14, %v2563_v33 }
 0x3ab   : > { %v2369_v34 = vpop.permute.xlu0 %2368  ;;  %v2923_v39 = vld [vmem:[#allocation5 + $0x210] sm:$0xff] }
 0x3ac   : > { %v2178_v35 = vpop.permute.xlu1 %2177  ;;  %2404 = vst.msk [vmem:[#allocation5 + $0x1e8] sm:$0xff] %vm2199_vm14, %v2369_v34  ;;  %v2927_v14 = vld [vmem:[#allocation5 + $0x230] sm:$0xff] }
 0x3ad   : > { %2213 = vst.msk [vmem:[#allocation5 + $0x208] sm:$0xff] %vm2199_vm14, %v2178_v35  ;;  %v2891_v35 = vld [vmem:[#allocation5 + $0x110] sm:$0xff] }
 0x3af   : > { %v2752_v36 = vpop.permute.xlu0 %2751  ;;  %v2920_v5 = vld [vmem:[#allocation5 + $0x1f8] sm:$0xff] }
 0x3b0   : > { %v2561_v37 = vpop.permute.xlu1 %2560  ;;  %2788 = vst.msk [vmem:[#allocation5 + $0x1d0] sm:$0xff] %vm2199_vm14, %v2752_v36  ;;  %v2924_v56 = vld [vmem:[#allocation5 + $0x218] sm:$0xff] }
 0x3b1   : > { %2596 = vst.msk [vmem:[#allocation5 + $0x1f0] sm:$0xff] %vm2199_vm14, %v2561_v37 }
 0x3b3   : > { %v2918_v38 = vld [vmem:[#allocation5 + $0x1e8] sm:$0xff] }
 0x3b4   : > { %3408 = vmatprep.mubr.bf16.mxu1 %v2918_v38  ;;  %v2922_v40 = vld [vmem:[#allocation5 + $0x208] sm:$0xff] }
 0x3b5   : > { %3409 = vmatmul.mubr.bf16.gmra.mrb[48].mxu1 %v2917_v43 }
 0x3b6   : > { %3416 = vmatprep.mubr.bf16.mxu1 %v2923_v39 }
 0x3b7   : > { %v2915_v41 = vld [vmem:[#allocation5 + $0x1d0] sm:$0xff] }
 0x3b8   : > { %3561 = vmatprep.mubr.bf16.mxu0 %v2915_v41  ;;  %v2919_v44 = vld [vmem:[#allocation5 + $0x1f0] sm:$0xff]  ;;  %v2866_v41 = vld [vmem:[#allocation5 + $0x48] sm:$0xff] }
 0x3b9   : > { %3562 = vmatmul.mubr.bf16.gmra.mrb[76].mxu0 %v2914_v42 }
 0x3ba   : > { %3569 = vmatprep.mubr.bf16.mxu0 %v2920_v5 }
 0x3bd   : > { %3417 = vmatmul.mubr.bf16.gmra.mrb[52].mxu1 %v2922_v40 }
 0x3c1   : > { %3570 = vmatmul.mubr.bf16.gmra.mrb[80].mxu0 %v2919_v44 }
 0x3c3   : > { %v2375_v45 = vpop.permute.xlu0 %2374 }
 0x3c4   : > { %v2567_v46 = vpop.permute.xlu1 %2566  ;;  %2407 = vst.msk [vmem:[#allocation5 + $0x260] sm:$0xff] %vm2199_vm14, %v2375_v45 }
 0x3c5   : > { %2599 = vst.msk [vmem:[#allocation5 + $0x268] sm:$0xff] %vm2199_vm14, %v2567_v46 }
 0x3c7   : > { %v2758_v48 = vpop.permute.xlu0 %2757 }
 0x3c8   : > { %v2182_v49 = vpop.permute.xlu1 %2181  ;;  %2791 = vst.msk [vmem:[#allocation5 + $0x248] sm:$0xff] %vm2199_vm14, %v2758_v48 }
 0x3c9   : > { %2215 = vst.msk [vmem:[#allocation5 + $0x258] sm:$0xff] %vm2199_vm14, %v2182_v49 }
 0x3ca   : > { %v6550_v50 = vpop.f32.mrb[0].mxu1 }
 0x3cb   : > { %v6551_v54 = vpop.f32.mrb[1].mxu1  ;;  %v2373_v53 = vpop.permute.xlu0 %2372  ;;  %v2933_v15 = vld [vmem:[#allocation5 + $0x260] sm:$0xff] }
 0x3cc   : > { %v6552_v55 = vadd.f32 %v6551_v54, %v6550_v50  ;;  %v6553_v57 = vpop.f32.mrb[2].mxu1  ;;  %v6662_v58 = vpop.f32.mrb[32].mxu0  ;;  %2406 = vst.msk [vmem:[#allocation5 + $0x238] sm:$0xff] %vm2199_vm14, %v2373_v53  ;;  %v2934_v29 = vld [vmem:[#allocation5 + $0x268] sm:$0xff]  ;;  %v2896_v54 = vld [vmem:[#allocation5 + $0x138] sm:$0xff]  ;;  %v2901_v53 = vld [vmem:[#allocation5 + $0x160] sm:$0xff] }
 0x3cd   : > { %v2565_v59 = vpop.permute.xlu1 %2564  ;;  %v6554_v47 = vpop.f32.mrb[3].mxu1 }
 0x3ce   : > { %v3315_v19 = vadd.f32 %v6552_v55, %v8718_v51  ;;  %2598 = vst.msk [vmem:[#allocation5 + $0x240] sm:$0xff] %vm2199_vm14, %v2565_v59  ;;  %v6555_v61 = vadd.f32 %v6554_v47, %v6553_v57  ;;  %v6663_v62 = vpop.f32.mrb[33].mxu0 }
 0x3cf   : > { %v6664_v63 = vadd.f32 %v6663_v62, %v6662_v58  ;;  %v6665_v0 = vpop.f32.mrb[34].mxu0  ;;  %v2756_v6 = vpop.permute.xlu0 %2755  ;;  %v2930_v17 = vld [vmem:[#allocation5 + $0x248] sm:$0xff] }
 0x3d0   : > { %v3318_v3 = vadd.f32 %v6555_v61, %v8718_v51  ;;  %v6666_v4 = vpop.f32.mrb[35].mxu0  ;;  %2790 = vst.msk [vmem:[#allocation5 + $0x220] sm:$0xff] %vm2199_vm14, %v2756_v6  ;;  %v2932_v18 = vld [vmem:[#allocation5 + $0x258] sm:$0xff]  ;;  %v2911_v6 = vld [vmem:[#allocation5 + $0x1b0] sm:$0xff] }
 0x3d1   : > { %v6667_v7 = vadd.f32 %v6666_v4, %v6665_v0  ;;  %v8725_v8 = vadd.f32 %v6664_v63, %v3315_v19  ;;  %v2906_v4 = vld [vmem:[#allocation5 + $0x188] sm:$0xff] }
 0x3d2   : > { %v6556_v52 = vpop.f32.mrb[4].mxu1 }
 0x3d3   : > { %v6557_v9 = vpop.f32.mrb[5].mxu1  ;;  %v8727_v12 = vadd.f32 %v6667_v7, %v3318_v3  ;;  %v2928_v2 = vld [vmem:[#allocation5 + $0x238] sm:$0xff] }
 0x3d4   : > { %v6558_v10 = vadd.f32 %v6557_v9, %v6556_v52  ;;  %v6559_v11 = vpop.f32.mrb[6].mxu1  ;;  %3424 = vmatprep.mubr.bf16.mxu1 %v2928_v2  ;;  %v2916_v7 = vld [vmem:[#allocation5 + $0x1d8] sm:$0xff]  ;;  %v2921_v52 = vld [vmem:[#allocation5 + $0x200] sm:$0xff] }
 0x3d5   : > { %v6560_v13 = vpop.f32.mrb[7].mxu1  ;;  %3425 = vmatmul.mubr.bf16.gmra.mrb[56].mxu1 %v2927_v14  ;;  %v2929_v21 = vld [vmem:[#allocation5 + $0x240] sm:$0xff] }
 0x3d6   : > { %v6561_v22 = vadd.f32 %v6560_v13, %v6559_v11  ;;  %3432 = vmatprep.mubr.bf16.mxu1 %v2933_v15  ;;  %v3323_v37 = vadd.f32 %v6558_v10, %v8718_v51 }
 0x3d7   : > { %v2925_v16 = vld [vmem:[#allocation5 + $0x220] sm:$0xff] }
 0x3d8   : > { %3577 = vmatprep.mubr.bf16.mxu0 %v2925_v16  ;;  %v3326_v42 = vadd.f32 %v6561_v22, %v8718_v51  ;;  %v2926_v22 = vld [vmem:[#allocation5 + $0x228] sm:$0xff]  ;;  %v2931_v16 = vld [vmem:[#allocation5 + $0x250] sm:$0xff] }
 0x3d9   : > { %3578 = vmatmul.mubr.bf16.gmra.mrb[84].mxu0 %v2924_v56 }
 0x3da   : > { %3585 = vmatprep.mubr.bf16.mxu0 %v2930_v17 }
 0x3dd   : > { %3433 = vmatmul.mubr.bf16.gmra.mrb[60].mxu1 %v2932_v18 }
 0x3de   : > { %6832 = vmatprep.mubr.msk.bf16.mxu1 %vm1934_vm12, %v2871_v20 }
 0x3e1   : > { %3586 = vmatmul.mubr.bf16.gmra.mrb[88].mxu0 %v2929_v21 }
 0x3e2   : > { %3593 = vmatprep.mubr.bf16.mxu0 %v2935_v23 }
 0x3e5   : > { %6833 = vmatmul.mubr.msk.bf16.vlgmr.msra.gmra.mrb[64].mxu1 %vm1934_vm12, %v2876_v24 }
 0x3e6   : > { %6836 = vmatprep.mubr.msk.bf16.mxu1 %vm1934_vm12, %v2881_v25 }
 0x3e9   : > { %v6562_v26 = vpop.f32.mrb[8].mxu1  ;;  %3594 = vmatmul.mubr.bf16.gmra.mrb[92].mxu0 %v2934_v29 }
 0x3ea   : > { %v6563_v27 = vpop.f32.mrb[9].mxu1  ;;  %6828 = vmatprep.mubr.msk.bf16.mxu0 %vm1934_vm12, %v2861_v60  ;;  %v2936_v60 = vld [vmem:[#allocation5 + $0x278] sm:$0xff] }
 0x3eb   : > { %v6564_v28 = vadd.f32 %v6563_v27, %v6562_v26  ;;  %v6565_v30 = vpop.f32.mrb[10].mxu1  ;;  %v6668_v34 = vpop.f32.mrb[36].mxu0 }
 0x3ec   : > { %v6566_v31 = vpop.f32.mrb[11].mxu1  ;;  %v6669_v36 = vpop.f32.mrb[37].mxu0 }
 0x3ed   : > { %v6567_v33 = vadd.f32 %v6566_v31, %v6565_v30  ;;  %6837 = vmatmul.mubr.msk.bf16.gmra.mrb[68].mxu1 %vm1934_vm12, %v2886_v32  ;;  %v6670_v38 = vadd.f32 %v6669_v36, %v6668_v34  ;;  %v6671_v43 = vpop.f32.mrb[38].mxu0  ;;  %v3331_v19 = vadd.f32 %v6564_v28, %v8718_v51 }
 0x3ee   : > { %6840 = vmatprep.mubr.msk.bf16.mxu1 %vm1934_vm12, %v2891_v35  ;;  %v6672_v39 = vpop.f32.mrb[39].mxu0 }
 0x3ef   : > { %v6673_v5 = vadd.f32 %v6672_v39, %v6671_v43  ;;  %v8738_v44 = vadd.f32 %v6670_v38, %v3323_v37  ;;  %v3334_v62 = vadd.f32 %v6567_v33, %v8718_v51 }
 0x3f1   : > { %v6568_v40 = vpop.f32.mrb[12].mxu1  ;;  %6829 = vmatmul.mubr.msk.bf16.vlgmr.msra.gmra.mrb[96].mxu0 %vm1934_vm12, %v2866_v41  ;;  %v8740_v49 = vadd.f32 %v6673_v5, %v3326_v42 }
 0x3f2   : > { %v6569_v45 = vpop.f32.mrb[13].mxu1 }
 0x3f3   : > { %v6570_v46 = vadd.f32 %v6569_v45, %v6568_v40  ;;  %v6571_v48 = vpop.f32.mrb[14].mxu1  ;;  %v6674_v57 = vpop.f32.mrb[40].mxu0 }
 0x3f4   : > { %v6572_v50 = vpop.f32.mrb[15].mxu1  ;;  %v6675_v58 = vpop.f32.mrb[41].mxu0 }
 0x3f5   : > { %v6573_v55 = vadd.f32 %v6572_v50, %v6571_v48  ;;  %6841 = vmatmul.mubr.msk.bf16.gmra.mrb[72].mxu1 %vm1934_vm12, %v2896_v54  ;;  %v6676_v59 = vadd.f32 %v6675_v58, %v6674_v57  ;;  %v6677_v47 = vpop.f32.mrb[42].mxu0  ;;  %v3339_v17 = vadd.f32 %v6570_v46, %v8718_v51 }
 0x3f6   : > { %6844 = vmatprep.mubr.msk.bf16.mxu1 %vm1934_vm12, %v2901_v53  ;;  %v6678_v61 = vpop.f32.mrb[43].mxu0 }
 0x3f7   : > { %v6679_v63 = vadd.f32 %v6678_v61, %v6677_v47  ;;  %v8746_v0 = vadd.f32 %v6676_v59, %v3331_v19  ;;  %v3342_v23 = vadd.f32 %v6573_v55, %v8718_v51 }
 0x3f9   : > { %v8748_v3 = vadd.f32 %v6679_v63, %v3334_v62 }
 0x3fd   : > { %6845 = vmatmul.mubr.msk.bf16.gmra.mrb[76].mxu1 %vm1934_vm12, %v2906_v4 }
 0x3fe   : > { %6848 = vmatprep.mubr.msk.bf16.mxu1 %vm1934_vm12, %v2911_v6 }
 0x405   : > { %6849 = vmatmul.mubr.msk.bf16.gmra.mrb[80].mxu1 %vm1934_vm12, %v2916_v7 }
 0x406   : > { %6852 = vmatprep.mubr.msk.bf16.mxu1 %vm1934_vm12, %v2921_v52 }
 0x408   : > { %v6574_v9 = vpop.f32.mrb[16].mxu1 }
 0x409   : > { %v6575_v10 = vpop.f32.mrb[17].mxu1 }
 0x40a   : > { %v6576_v11 = vadd.f32 %v6575_v10, %v6574_v9  ;;  %v6577_v13 = vpop.f32.mrb[18].mxu1 }
 0x40b   : > { %v6578_v2 = vpop.f32.mrb[19].mxu1  ;;  %v6680_v15 = vpop.f32.mrb[44].mxu0 }
 0x40c   : > { %v6579_v14 = vadd.f32 %v6578_v2, %v6577_v13  ;;  %v6681_v56 = vpop.f32.mrb[45].mxu0  ;;  %v3347_v35 = vadd.f32 %v6576_v11, %v8718_v51 }
 0x40d   : > { %6853 = vmatmul.mubr.msk.bf16.gmra.mrb[84].mxu1 %vm1934_vm12, %v2926_v22  ;;  %v6682_v18 = vadd.f32 %v6681_v56, %v6680_v15  ;;  %v6683_v20 = vpop.f32.mrb[46].mxu0 }
 0x40e   : > { %6856 = vmatprep.mubr.msk.bf16.mxu1 %vm1934_vm12, %v2931_v16  ;;  %v6684_v21 = vpop.f32.mrb[47].mxu0  ;;  %v3350_v43 = vadd.f32 %v6579_v14, %v8718_v51 }
 0x40f   : > { %v6685_v24 = vadd.f32 %v6684_v21, %v6683_v20  ;;  %v8758_v29 = vadd.f32 %v6682_v18, %v3339_v17 }
 0x410   : > { %v6580_v25 = vpop.f32.mrb[20].mxu1 }
 0x411   : > { %v6581_v26 = vpop.f32.mrb[21].mxu1  ;;  %v8760_v30 = vadd.f32 %v6685_v24, %v3342_v23 }
 0x412   : > { %v6582_v27 = vadd.f32 %v6581_v26, %v6580_v25  ;;  %v6583_v28 = vpop.f32.mrb[22].mxu1 }
 0x413   : > { %v6584_v31 = vpop.f32.mrb[23].mxu1  ;;  %v6686_v33 = vpop.f32.mrb[48].mxu0 }
 0x414   : > { %v6585_v32 = vadd.f32 %v6584_v31, %v6583_v28  ;;  %v6687_v34 = vpop.f32.mrb[49].mxu0  ;;  %v3355_v57 = vadd.f32 %v6582_v27, %v8718_v51 }
 0x415   : > { %6857 = vmatmul.mubr.msk.bf16.gmra.mrb[88].mxu1 %vm1934_vm12, %v2936_v60  ;;  %v6688_v36 = vadd.f32 %v6687_v34, %v6686_v33  ;;  %v6689_v37 = vpop.f32.mrb[50].mxu0 }
 0x416   : > { %v6690_v38 = vpop.f32.mrb[51].mxu0  ;;  %v3358_v59 = vadd.f32 %v6585_v32, %v8718_v51 }
 0x417   : > { %v6691_v39 = vadd.f32 %v6690_v38, %v6689_v37  ;;  %v8765_v41 = vadd.f32 %v6688_v36, %v3347_v35 }
 0x419   : > { %v8767_v42 = vadd.f32 %v6691_v39, %v3350_v43 }
 0x426   : > { %v6586_v5 = vpop.f32.mrb[24].mxu1 }
 0x427   : > { %v6587_v40 = vpop.f32.mrb[25].mxu1 }
 0x428   : > { %v6588_v45 = vadd.f32 %v6587_v40, %v6586_v5  ;;  %v6589_v46 = vpop.f32.mrb[26].mxu1 }
 0x429   : > { %v6590_v48 = vpop.f32.mrb[27].mxu1 }
 0x42a   : > { %v6591_v50 = vadd.f32 %v6590_v48, %v6589_v46  ;;  %v6692_v54 = vpop.f32.mrb[52].mxu0  ;;  %v3363_v13 = vadd.f32 %v6588_v45, %v8718_v51 }
 0x42b   : > { %v6693_v55 = vpop.f32.mrb[53].mxu0 }
 0x42c   : > { %v6694_v53 = vadd.f32 %v6693_v55, %v6692_v54  ;;  %v6695_v58 = vpop.f32.mrb[54].mxu0  ;;  %v3366_v15 = vadd.f32 %v6591_v50, %v8718_v51 }
 0x42d   : > { %v6696_v19 = vpop.f32.mrb[55].mxu0 }
 0x42e   : > { %v6697_v47 = vadd.f32 %v6696_v19, %v6695_v58  ;;  %v6592_v61 = vpop.f32.mrb[28].mxu1  ;;  %v8771_v62 = vadd.f32 %v6694_v53, %v3355_v57 }
 0x42f   : > { %v6593_v63 = vpop.f32.mrb[29].mxu1 }
 0x430   : > { %v6594_v4 = vadd.f32 %v6593_v63, %v6592_v61  ;;  %v6595_v6 = vpop.f32.mrb[30].mxu1  ;;  %v8773_v7 = vadd.f32 %v6697_v47, %v3358_v59 }
 0x431   : > { %v6596_v52 = vpop.f32.mrb[31].mxu1 }
 0x432   : > { %v6597_v9 = vadd.f32 %v6596_v52, %v6595_v6  ;;  %v6698_v10 = vpop.f32.mrb[56].mxu0  ;;  %v3371_v27 = vadd.f32 %v6594_v4, %v8718_v51 }
 0x433   : > { %v6699_v11 = vpop.f32.mrb[57].mxu0 }
 0x434   : > { %v6700_v2 = vadd.f32 %v6699_v11, %v6698_v10  ;;  %v6701_v22 = vpop.f32.mrb[58].mxu0  ;;  %v3374_v33 = vadd.f32 %v6597_v9, %v8718_v51 }
 0x435   : > { %v6702_v14 = vpop.f32.mrb[59].mxu0 }
 0x436   : > { %v6703_v16 = vadd.f32 %v6702_v14, %v6701_v22  ;;  %v8777_v56 = vadd.f32 %v6700_v2, %v3363_v13 }
 0x438   : > { %v8779_v17 = vadd.f32 %v6703_v16, %v3366_v15 }
 0x448   : > { %v6598_v18 = vpop.f32.mrb[32].mxu1 }
 0x449   : > { %v6599_v20 = vpop.f32.mrb[33].mxu1 }
 0x44a   : > { %v6600_v21 = vadd.f32 %v6599_v20, %v6598_v18  ;;  %v6601_v23 = vpop.f32.mrb[34].mxu1 }
 0x44b   : > { %v6602_v24 = vpop.f32.mrb[35].mxu1 }
 0x44c   : > { %v6603_v25 = vadd.f32 %v6602_v24, %v6601_v23  ;;  %v6704_v26 = vpop.f32.mrb[60].mxu0  ;;  %v3379_v48 = vadd.f32 %v6600_v21, %v8718_v51 }
 0x44d   : > { %v6705_v60 = vpop.f32.mrb[61].mxu0 }
 0x44e   : > { %v6706_v28 = vadd.f32 %v6705_v60, %v6704_v26  ;;  %v6707_v31 = vpop.f32.mrb[62].mxu0  ;;  %v3382_v57 = vadd.f32 %v6603_v25, %v8718_v51 }
 0x44f   : > { %v6708_v32 = vpop.f32.mrb[63].mxu0 }
 0x450   : > { %v6709_v34 = vadd.f32 %v6708_v32, %v6707_v31  ;;  %v6604_v35 = vpop.f32.mrb[36].mxu1  ;;  %v8783_v36 = vadd.f32 %v6706_v28, %v3371_v27 }
 0x451   : > { %v6605_v37 = vpop.f32.mrb[37].mxu1 }
 0x452   : > { %v6606_v38 = vadd.f32 %v6605_v37, %v6604_v35  ;;  %v6607_v43 = vpop.f32.mrb[38].mxu1  ;;  %v8785_v39 = vadd.f32 %v6709_v34, %v3374_v33 }
 0x453   : > { %v6608_v5 = vpop.f32.mrb[39].mxu1 }
 0x454   : > { %v6609_v40 = vadd.f32 %v6608_v5, %v6607_v43  ;;  %v6710_v45 = vpop.f32.mrb[64].mxu0  ;;  %v3387_v10 = vadd.f32 %v6606_v38, %v8718_v51 }
 0x455   : > { %v6711_v46 = vpop.f32.mrb[65].mxu0 }
 0x456   : > { %v6712_v50 = vadd.f32 %v6711_v46, %v6710_v45  ;;  %v6713_v54 = vpop.f32.mrb[66].mxu0  ;;  %v3390_v22 = vadd.f32 %v6609_v40, %v8718_v51 }
 0x457   : > { %v6714_v55 = vpop.f32.mrb[67].mxu0 }
 0x458   : > { %v6715_v53 = vadd.f32 %v6714_v55, %v6713_v54  ;;  %v8789_v58 = vadd.f32 %v6712_v50, %v3379_v48 }
 0x45a   : > { %v8791_v19 = vadd.f32 %v6715_v53, %v3382_v57 }
 0x468   : > { %v6610_v59 = vpop.f32.mrb[40].mxu1 }
 0x469   : > { %v6611_v47 = vpop.f32.mrb[41].mxu1 }
 0x46a   : > { %v6612_v61 = vadd.f32 %v6611_v47, %v6610_v59  ;;  %v6613_v63 = vpop.f32.mrb[42].mxu1 }
 0x46b   : > { %v6614_v4 = vpop.f32.mrb[43].mxu1 }
 0x46c   : > { %v6615_v6 = vadd.f32 %v6614_v4, %v6613_v63  ;;  %v6716_v52 = vpop.f32.mrb[68].mxu0  ;;  %v3395_v27 = vadd.f32 %v6612_v61, %v8718_v51 }
 0x46d   : > { %v6717_v9 = vpop.f32.mrb[69].mxu0 }
 0x46e   : > { %v6718_v11 = vadd.f32 %v6717_v9, %v6716_v52  ;;  %v6719_v13 = vpop.f32.mrb[70].mxu0  ;;  %v3398_v33 = vadd.f32 %v6615_v6, %v8718_v51 }
 0x46f   : > { %v6720_v2 = vpop.f32.mrb[71].mxu0 }
 0x470   : > { %v6721_v14 = vadd.f32 %v6720_v2, %v6719_v13  ;;  %v6616_v15 = vpop.f32.mrb[44].mxu1  ;;  %v8795_v16 = vadd.f32 %v6718_v11, %v3387_v10 }
 0x471   : > { %v6617_v18 = vpop.f32.mrb[45].mxu1 }
 0x472   : > { %v6618_v20 = vadd.f32 %v6617_v18, %v6616_v15  ;;  %v6619_v21 = vpop.f32.mrb[46].mxu1  ;;  %v8797_v23 = vadd.f32 %v6721_v14, %v3390_v22 }
 0x473   : > { %v6620_v24 = vpop.f32.mrb[47].mxu1 }
 0x474   : > { %v6621_v25 = vadd.f32 %v6620_v24, %v6619_v21  ;;  %v6722_v26 = vpop.f32.mrb[72].mxu0  ;;  %v3403_v54 = vadd.f32 %v6618_v20, %v8718_v51 }
 0x475   : > { %v6723_v60 = vpop.f32.mrb[73].mxu0 }
 0x476   : > { %v6724_v28 = vadd.f32 %v6723_v60, %v6722_v26  ;;  %v6725_v31 = vpop.f32.mrb[74].mxu0  ;;  %v3406_v59 = vadd.f32 %v6621_v25, %v8718_v51 }
 0x477   : > { %v6726_v32 = vpop.f32.mrb[75].mxu0 }
 0x478   : > { %v6727_v34 = vadd.f32 %v6726_v32, %v6725_v31  ;;  %v8801_v35 = vadd.f32 %v6724_v28, %v3395_v27 }
 0x47a   : > { %v8803_v37 = vadd.f32 %v6727_v34, %v3398_v33 }
 0x488   : > { %v6622_v38 = vpop.f32.mrb[48].mxu1 }
 0x489   : > { %v6623_v43 = vpop.f32.mrb[49].mxu1 }
 0x48a   : > { %v6624_v5 = vadd.f32 %v6623_v43, %v6622_v38  ;;  %v6625_v40 = vpop.f32.mrb[50].mxu1 }
 0x48b   : > { %v6626_v45 = vpop.f32.mrb[51].mxu1 }
 0x48c   : > { %v6627_v46 = vadd.f32 %v6626_v45, %v6625_v40  ;;  %v6728_v48 = vpop.f32.mrb[76].mxu0  ;;  %v3411_v22 = vadd.f32 %v6624_v5, %v8718_v51 }
 0x48d   : > { %v6729_v50 = vpop.f32.mrb[77].mxu0 }
 0x48e   : > { %v6730_v55 = vadd.f32 %v6729_v50, %v6728_v48  ;;  %v6731_v57 = vpop.f32.mrb[78].mxu0  ;;  %v3414_v20 = vadd.f32 %v6627_v46, %v8718_v51 }
 0x48f   : > { %v6732_v53 = vpop.f32.mrb[79].mxu0 }
 0x490   : > { %v6733_v47 = vadd.f32 %v6732_v53, %v6731_v57  ;;  %v6628_v61 = vpop.f32.mrb[52].mxu1  ;;  %v8807_v63 = vadd.f32 %v6730_v55, %v3403_v54 }
 0x491   : > { %v6629_v4 = vpop.f32.mrb[53].mxu1 }
 0x492   : > { %v6630_v6 = vadd.f32 %v6629_v4, %v6628_v61  ;;  %v6631_v52 = vpop.f32.mrb[54].mxu1  ;;  %v8809_v9 = vadd.f32 %v6733_v47, %v3406_v59 }
 0x493   : > { %v6632_v10 = vpop.f32.mrb[55].mxu1 }
 0x494   : > { %v6633_v11 = vadd.f32 %v6632_v10, %v6631_v52  ;;  %v6734_v13 = vpop.f32.mrb[80].mxu0  ;;  %v3419_v38 = vadd.f32 %v6630_v6, %v8718_v51 }
 0x495   : > { %v6735_v2 = vpop.f32.mrb[81].mxu0 }
 0x496   : > { %v6736_v14 = vadd.f32 %v6735_v2, %v6734_v13  ;;  %v6737_v15 = vpop.f32.mrb[82].mxu0  ;;  %v3422_v45 = vadd.f32 %v6633_v11, %v8718_v51 }
 0x497   : > { %v6738_v18 = vpop.f32.mrb[83].mxu0 }
 0x498   : > { %v6739_v21 = vadd.f32 %v6738_v18, %v6737_v15  ;;  %v8813_v24 = vadd.f32 %v6736_v14, %v3411_v22 }
 0x49a   : > { %v8815_v25 = vadd.f32 %v6739_v21, %v3414_v20 }
 0x4a8   : > { %v6634_v26 = vpop.f32.mrb[56].mxu1 }
 0x4a9   : > { %v6635_v60 = vpop.f32.mrb[57].mxu1 }
 0x4aa   : > { %v6636_v27 = vadd.f32 %v6635_v60, %v6634_v26  ;;  %v6637_v28 = vpop.f32.mrb[58].mxu1  ;;  %v8831_v26 = vld [vmem:[#allocation19 + $0x1] ss:$0 sm:$0xff] }
 0x4ab   : > { %v6638_v31 = vpop.f32.mrb[59].mxu1 }
 0x4ac   : > { %v6639_v32 = vadd.f32 %v6638_v31, %v6637_v28  ;;  %v6740_v33 = vpop.f32.mrb[84].mxu0  ;;  %v3427_v6 = vadd.f32 %v6636_v27, %v8718_v51 }
 0x4ad   : > { %v6741_v34 = vpop.f32.mrb[85].mxu0 }
 0x4ae   : > { %v6742_v43 = vadd.f32 %v6741_v34, %v6740_v33  ;;  %v6743_v5 = vpop.f32.mrb[86].mxu0  ;;  %v3430_v11 = vadd.f32 %v6639_v32, %v8718_v51 }
 0x4af   : > { %v6744_v40 = vpop.f32.mrb[87].mxu0 }
 0x4b0   : > { %v6745_v46 = vadd.f32 %v6744_v40, %v6743_v5  ;;  %v6640_v48 = vpop.f32.mrb[60].mxu1  ;;  %v8819_v50 = vadd.f32 %v6742_v43, %v3419_v38 }
 0x4b1   : > { %v6641_v54 = vpop.f32.mrb[61].mxu1 }
 0x4b2   : > { %v6642_v55 = vadd.f32 %v6641_v54, %v6640_v48  ;;  %v6643_v57 = vpop.f32.mrb[62].mxu1  ;;  %v8821_v53 = vadd.f32 %v6745_v46, %v3422_v45 }
 0x4b3   : > { %v6644_v59 = vpop.f32.mrb[63].mxu1 }
 0x4b4   : > { %v6645_v47 = vadd.f32 %v6644_v59, %v6643_v57  ;;  %v6746_v61 = vpop.f32.mrb[88].mxu0  ;;  %v3435_v34 = vadd.f32 %v6642_v55, %v8718_v51 }
 0x4b5   : > { %v6747_v4 = vpop.f32.mrb[89].mxu0 }
 0x4b6   : > { %v6748_v52 = vadd.f32 %v6747_v4, %v6746_v61  ;;  %v6749_v10 = vpop.f32.mrb[90].mxu0  ;;  %v3438_v45 = vadd.f32 %v6645_v47, %v8718_v51 }
 0x4b7   : > { %v6750_v13 = vpop.f32.mrb[91].mxu0 }
 0x4b8   : > { %v6751_v2 = vadd.f32 %v6750_v13, %v6749_v10  ;;  %v6834_v22 = vpop.f32.mrb[64].mxu1  ;;  %v8825_v14 = vadd.f32 %v6748_v52, %v3427_v6 }
 0x4b9   : > { %v3661_v15 = vadd.f32 %v6834_v22, %v8758_v29  ;;  %v3652_v18 = vpop.f32.mrb[65].mxu1 }
 0x4ba   : > { %v8829_v20 = vadd.f32 %v3652_v18, %v8746_v0  ;;  %v6835_v21 = vpop.f32.mrb[66].mxu1  ;;  %v8833_v60 = vadd.f32 %v6751_v2, %v3430_v11 }
 0x4bb   : > { %v8835_v27 = vmax.f32 %v3661_v15, 0.0  ;;  %v3664_v28 = vadd.f32 %v6835_v21, %v8760_v30  ;;  %v3655_v31 = vpop.f32.mrb[67].mxu1 }
 0x4bc   : > { %v8839_v32 = vadd.f32 %v3655_v31, %v8748_v3  ;;  %v6752_v33 = vpop.f32.mrb[92].mxu0 }
 0x4bd   : > { %v6753_v29 = vpop.f32.mrb[93].mxu0  ;;  %v3957_v0 = vmul.f32 %v8831_v26, %v8835_v27 }
 0x4be   : > { %v6754_v38 = vadd.f32 %v6753_v29, %v6752_v33  ;;  %v6755_v43 = vpop.f32.mrb[94].mxu0  ;;  %v8888_v33 = vld [vmem:[#allocation19] ss:$0 sm:$0xff] }
 0x4bf   : > { %v6756_v5 = vpop.f32.mrb[95].mxu0  ;;  %v3999_v40 = vsel %vm3979_vm15, %v3957_v0, 0.0 }
 0x4c0   : > { %v6757_v30 = vadd.f32 %v6756_v5, %v6755_v43  ;;  %v6838_v46 = vpop.f32.mrb[68].mxu1  ;;  %4000 = vadd.xlane.f32.xlu1 %v3999_v40  ;;  %v8846_v3 = vadd.f32 %v6754_v38, %v3435_v34  ;;  %v8900_v43 = vmax.f32 %v3664_v28, 0.0 }
 0x4c1   : > { %v8849_v48 = vadd.f32 %v6838_v46, %v8771_v62  ;;  %v3668_v54 = vpop.f32.mrb[69].mxu1 }
 0x4c2   : > { %v8852_v57 = vadd.f32 %v3668_v54, %v8765_v41  ;;  %v6839_v55 = vpop.f32.mrb[70].mxu1  ;;  %v8854_v59 = vadd.f32 %v6757_v30, %v3438_v45 }
 0x4c3   : > { %v8857_v61 = vadd.f32 %v6839_v55, %v8773_v7  ;;  %v3671_v4 = vpop.f32.mrb[71].mxu1  ;;  %v3808_v55 = vmul.f32 %v8888_v33, %v8835_v27 }
 0x4c4   : > { %v8860_v51 = vadd.f32 %v3671_v4, %v8767_v42  ;;  %v6830_v47 = vpop.f32.mrb[96].mxu0  ;;  %v8872_v42 = vld [vmem:[#allocation19 + $0x2] ss:$0 sm:$0xff] }
 0x4c5   : > { %v3645_v6 = vadd.f32 %v6830_v47, %v8738_v44  ;;  %v3636_v52 = vpop.f32.mrb[97].mxu0  ;;  %v4206_v45 = vmul.f32 %v8872_v42, %v8835_v27 }
 0x4c6   : > { %v3637_v62 = vadd.f32 %v3636_v52, %v8725_v8  ;;  %v6831_v10 = vpop.f32.mrb[98].mxu0 }
 0x4c7   : > { %v8864_v13 = vmax.f32 %v3645_v6, 0.0  ;;  %v3648_v41 = vadd.f32 %v6831_v10, %v8740_v49  ;;  %v3639_v11 = vpop.f32.mrb[99].mxu0  ;;  %v4247_v52 = vsel %vm4228_vm0, %v4206_v45, 0.0 }
 0x4c8   : > { %v8867_v2 = vmax.f32 %v3637_v62, 0.0  ;;  %v8870_v7 = vadd.f32 %v3639_v11, %v8727_v12  ;;  %v6842_v22 = vpop.f32.mrb[72].mxu1 }
 0x4c9   : > { %v8875_v15 = vadd.f32 %v6842_v22, %v8783_v36  ;;  %v3684_v44 = vpop.f32.mrb[73].mxu1  ;;  %v4202_v8 = vmul.f32 %v8872_v42, %v8864_v13  ;;  %v3953_v18 = vmul.f32 %v8831_v26, %v8864_v13  ;;  %v8881_v49 = vmax.f32 %v3648_v41, 0.0 }
 0x4ca   : > { %v8884_v21 = vadd.f32 %v3684_v44, %v8777_v56  ;;  %v6843_v12 = vpop.f32.mrb[74].mxu1  ;;  %v3951_v31 = vmul.f32 %v8831_v26, %v8867_v2  ;;  %v3804_v38 = vmul.f32 %v8888_v33, %v8864_v13 }
 0x4cb   : > { %v8891_v36 = vadd.f32 %v6843_v12, %v8785_v39  ;;  %v3687_v29 = vpop.f32.mrb[75].mxu1  ;;  %v4235_v0 = vsel %vm4228_vm0, %v4202_v8, 0.0  ;;  %v3987_v34 = vsel %vm3979_vm15, %v3953_v18, 0.0  ;;  %v3954_v40 = vmul.f32 %v8831_v26, %v8881_v49 }
 0x4cc   : > { %v8898_v56 = vadd.f32 %v3687_v29, %v8779_v17  ;;  %4236 = vadd.xlane.f32.xlu1 %v4235_v0  ;;  %3988 = vadd.xlane.f32.xlu0 %v3987_v34  ;;  %v3980_v5 = vsel %vm3979_vm15, %v3951_v31, 0.0  ;;  %v3837_v39 = vsel %vm1934_vm12, %v3804_v38, 0.0  ;;  %v4203_v41 = vmul.f32 %v8872_v42, %v8881_v49  ;;  %v8942_v31 = vld [vmem:[#allocation19 + $0x3] ss:$0 sm:$0xff] }
 0x4cd   : > { %v3990_v6 = vsel %vm3983_vm1, %v3954_v40, 0.0  ;;  %v3805_v12 = vmul.f32 %v8888_v33, %v8881_v49 }
 0x4ce   : > { %v4238_v34 = vsel %vm1934_vm12, %v4203_v41, 0.0 }
 0x4d0   : > { %v6846_v30 = vpop.f32.mrb[76].mxu1  ;;  %3981 = vadd.xlane.f32.xlu0 %v3980_v5  ;;  %3838 = vadd.xlane.f32.xlu1 %v3837_v39  ;;  %v3840_v5 = vsel %vm3833_vm2, %v3805_v12, 0.0 }
 0x4d1   : > { %v8909_v17 = vadd.f32 %v6846_v30, %v8795_v16  ;;  %v3700_v46 = vpop.f32.mrb[77].mxu1  ;;  %v3958_v16 = vmul.f32 %v8831_v26, %v8900_v43 }
 0x4d2   : > { %v8912_v28 = vadd.f32 %v3700_v46, %v8789_v58  ;;  %v6847_v54 = vpop.f32.mrb[78].mxu1  ;;  %v8926_v58 = vld [vmem:[#allocation19 + $0x4] ss:$0 sm:$0xff] }
 0x4d3   : > { %v8917_v4 = vadd.f32 %v6847_v54, %v8797_v23  ;;  %v3703_v47 = vpop.f32.mrb[79].mxu1  ;;  %v4002_v10 = vsel %vm3983_vm1, %v3958_v16, 0.0  ;;  %v3849_v23 = vsel %vm1934_vm12, %v3808_v55, 0.0  ;;  %v4596_v11 = vmul.f32 %v8926_v58, %v8864_v13 }
 0x4d4   : > { %v8924_v62 = vadd.f32 %v3703_v47, %v8791_v19  ;;  %3991 = vadd.xlane.f32.xlu0 %v3990_v6  ;;  %4248 = vadd.xlane.f32.xlu1 %v4247_v52  ;;  %v4600_v40 = vmul.f32 %v8926_v58, %v8835_v27  ;;  %v4452_v55 = vmul.f32 %v8942_v31, %v8835_v27 }
 0x4d5   : > { %v4624_v38 = vsel %vm3979_vm15, %v4596_v11, 0.0  ;;  %v4597_v41 = vmul.f32 %v8926_v58, %v8881_v49 }
 0x4d6   : > { %v4636_v16 = vsel %vm3979_vm15, %v4600_v40, 0.0 }
 0x4d8   : > { %v6850_v22 = vpop.f32.mrb[80].mxu1  ;;  %4003 = vadd.xlane.f32.xlu0 %v4002_v10  ;;  %3850 = vadd.xlane.f32.xlu1 %v3849_v23 }
 0x4d9   : > { %v8935_v19 = vadd.f32 %v6850_v22, %v8807_v63  ;;  %v3716_v44 = vpop.f32.mrb[81].mxu1  ;;  %v4448_v63 = vmul.f32 %v8942_v31, %v8864_v13 }
 0x4da   : > { %v8938_v8 = vadd.f32 %v3716_v44, %v8801_v35  ;;  %v6851_v18 = vpop.f32.mrb[82].mxu1 }
 0x4db   : > { %v8945_v29 = vadd.f32 %v6851_v18, %v8809_v9  ;;  %v3719_v0 = vpop.f32.mrb[83].mxu1  ;;  %v4476_v39 = vsel %vm1934_vm12, %v4448_v63, 0.0  ;;  %v4207_v9 = vmul.f32 %v8872_v42, %v8900_v43 }
 0x4dc   : > { %v8952_v35 = vadd.f32 %v3719_v0, %v8803_v37  ;;  %4239 = vadd.xlane.f32.xlu0 %v4238_v34  ;;  %4625 = vadd.xlane.f32.xlu1 %v4624_v38 }
 0x4dd   : > { %v4250_v52 = vsel %vm1934_vm12, %v4207_v9, 0.0  ;;  %v4601_v9 = vmul.f32 %v8926_v58, %v8900_v43 }
 0x4e0   : > { %v6854_v45 = vpop.f32.mrb[84].mxu1  ;;  %3841 = vadd.xlane.f32.xlu0 %v3840_v5  ;;  %4477 = vadd.xlane.f32.xlu1 %v4476_v39 }
 0x4e1   : > { %v8961_v30 = vadd.f32 %v6854_v45, %v8819_v50  ;;  %v3732_v37 = vpop.f32.mrb[85].mxu1  ;;  %v3809_v50 = vmul.f32 %v8888_v33, %v8900_v43  ;;  %v9012_v45 = vld [vmem:[#allocation19 + $0x6] ss:$0 sm:$0xff] }
 0x4e2   : > { %v8964_v46 = vadd.f32 %v3732_v37, %v8813_v24  ;;  %v6855_v54 = vpop.f32.mrb[86].mxu1  ;;  %v8978_v24 = vld [vmem:[#allocation19 + $0x5] ss:$0 sm:$0xff] }
 0x4e3   : > { %10515 = vst [vmem:[#allocation29_spill] sm:$0xff] %v8961_v30  ;;  %v8969_v47 = vadd.f32 %v6855_v54, %v8821_v53  ;;  %v3735_v6 = vpop.f32.mrb[87].mxu1  ;;  %v3852_v23 = vsel %vm3833_vm2, %v3809_v50, 0.0  ;;  %v4488_v53 = vsel %vm1934_vm12, %v4452_v55, 0.0  ;;  %v4842_v11 = vmul.f32 %v8978_v24, %v8864_v13 }
 0x4e4   : > { %10516 = vst [vmem:[#allocation30_spill] sm:$0xff] %v8964_v46  ;;  %v8976_v10 = vadd.f32 %v3735_v6, %v8815_v25  ;;  %4251 = vadd.xlane.f32.xlu0 %v4250_v52  ;;  %4637 = vadd.xlane.f32.xlu1 %v4636_v16  ;;  %v4846_v0 = vmul.f32 %v8978_v24, %v8835_v27  ;;  %v4627_v13 = vsel %vm3983_vm1, %v4597_v41, 0.0  ;;  %v9020_v6 = vld [vmem:[#allocation19 + $0x8] ss:$0 sm:$0xff]  ;;  %v9023_v52 = vmax.f32 %v8829_v20, 0.0 }
 0x4e5   : > { %10517 = vst [vmem:[#allocation31_spill] sm:$0xff] %v8969_v47  ;;  %v4870_v63 = vsel %vm4228_vm0, %v4842_v11, 0.0  ;;  %v4453_v54 = vmul.f32 %v8942_v31, %v8900_v43  ;;  %v5090_v55 = vmul.f32 %v9012_v45, %v8835_v27  ;;  %v4847_v20 = vmul.f32 %v8978_v24, %v8900_v43 }
 0x4e6   : > { %10518 = vst [vmem:[#allocation32_spill] sm:$0xff] %v8976_v10  ;;  %v9368_v10 = vld [vmem:[#allocation19 + $0x1] ss:$0 sm:$0xff] }
 0x4e7   : > { %v4491_v16 = vsel %vm3833_vm2, %v4453_v54, 0.0  ;;  %v5122_v50 = vsel %vm1934_vm12, %v5090_v55, 0.0  ;;  %v3806_v54 = vmul.f32 %v8888_v33, %v9023_v52 }
 0x4e8   : > { %v6858_v22 = vpop.f32.mrb[88].mxu1  ;;  %3853 = vadd.xlane.f32.xlu0 %v3852_v23  ;;  %4489 = vadd.xlane.f32.xlu1 %v4488_v53  ;;  %v4843_v23 = vmul.f32 %v8978_v24, %v8881_v49  ;;  %v5484_v53 = vmul.f32 %v9020_v6, %v8835_v27 }
 0x4e9   : > { %v8987_v25 = vadd.f32 %v6858_v22, %v8846_v3  ;;  %v3748_v44 = vpop.f32.mrb[89].mxu1  ;;  %v4449_v3 = vmul.f32 %v8942_v31, %v8881_v49  ;;  %v3955_v22 = vmul.f32 %v8831_v26, %v9023_v52  ;;  %v3843_v55 = vsel %vm1934_vm12, %v3806_v54, 0.0 }
 0x4ea   : > { %v8990_v18 = vadd.f32 %v3748_v44, %v8825_v14  ;;  %v6859_v12 = vpop.f32.mrb[90].mxu1  ;;  %v9004_v14 = vld [vmem:[#allocation19 + $0x7] ss:$0 sm:$0xff]  ;;  %v4873_v41 = vsel %vm1934_vm12, %v4843_v23, 0.0  ;;  %v5516_v11 = vsel %vm4228_vm0, %v5484_v53, 0.0  ;;  %v4885_v44 = vsel %vm1934_vm12, %v4847_v20, 0.0 }
 0x4eb   : > { %10519 = vst [vmem:[#allocation33_spill] sm:$0xff] %v8987_v25  ;;  %v8995_v34 = vadd.f32 %v6859_v12, %v8854_v59  ;;  %v3751_v38 = vpop.f32.mrb[91].mxu1  ;;  %v4479_v39 = vsel %vm3833_vm2, %v4449_v3, 0.0  ;;  %v4882_v59 = vsel %vm4228_vm0, %v4846_v0, 0.0  ;;  %v5238_v40 = vmul.f32 %v9004_v14, %v8835_v27 }
 0x4ec   : > { %10520 = vst [vmem:[#allocation34_spill] sm:$0xff] %v8990_v18  ;;  %v9002_v5 = vadd.f32 %v3751_v38, %v8833_v60  ;;  %4628 = vadd.xlane.f32.xlu0 %v4627_v13  ;;  %4871 = vadd.xlane.f32.xlu1 %v4870_v63  ;;  %v4639_v60 = vsel %vm3983_vm1, %v4601_v9, 0.0  ;;  %v3993_v49 = vsel %vm3979_vm15, %v3955_v22, 0.0  ;;  %v5239_v27 = vmul.f32 %v9004_v14, %v8900_v43 }
 0x4ed   : > { %10521 = vst [vmem:[#allocation35_spill] sm:$0xff] %v8995_v34  ;;  %v5270_v37 = vsel %vm3979_vm15, %v5238_v40, 0.0  ;;  %v4200_v12 = vmul.f32 %v8872_v42, %v8867_v2  ;;  %v5091_v13 = vmul.f32 %v9012_v45, %v8900_v43  ;;  %v3802_v63 = vmul.f32 %v8888_v33, %v8867_v2 }
 0x4ee   : > { %10522 = vst [vmem:[#allocation36_spill] sm:$0xff] %v9002_v5  ;;  %v5273_v0 = vsel %vm3983_vm1, %v5239_v27, 0.0  ;;  %v9050_v3 = vmax.f32 %v8839_v32, 0.0  ;;  %v5485_v9 = vmul.f32 %v9020_v6, %v8900_v43  ;;  %v4204_v40 = vmul.f32 %v8872_v42, %v9023_v52 }
 0x4ef   : > { %v4229_v38 = vsel %vm4228_vm0, %v4200_v12, 0.0 }
 0x4f0   : > { %4480 = vadd.xlane.f32.xlu0 %v4479_v39  ;;  %4883 = vadd.xlane.f32.xlu1 %v4882_v59  ;;  %v5125_v39 = vsel %vm3833_vm2, %v5091_v13, 0.0  ;;  %v3830_v59 = vsel %vm1934_vm12, %v3802_v63, 0.0  ;;  %v5519_v2 = vsel %vm1934_vm12, %v5485_v9, 0.0  ;;  %v3956_v32 = vmul.f32 %v8831_v26, %v9050_v3 }
 0x4f1   : > { %v4205_v22 = vmul.f32 %v8872_v42, %v9050_v3  ;;  %v3807_v12 = vmul.f32 %v8888_v33, %v9050_v3  ;;  %v4599_v63 = vmul.f32 %v8926_v58, %v9050_v3 }
 0x4f2   : > { %v3996_v43 = vsel %vm3983_vm1, %v3956_v32, 0.0 }
 0x4f4   : > { %4640 = vadd.xlane.f32.xlu0 %v4639_v60  ;;  %5271 = vadd.xlane.f32.xlu1 %v5270_v37  ;;  %v3764_v60 = vmax.f32 %v8870_v7, 0.0  ;;  %v4241_v37 = vsel %vm4228_vm0, %v4204_v40, 0.0  ;;  %v4598_v7 = vmul.f32 %v8926_v58, %v9023_v52  ;;  %v4451_v40 = vmul.f32 %v8942_v31, %v9050_v3 }
 0x4f6   : > { %v4630_v23 = vsel %vm3979_vm15, %v4598_v7, 0.0  ;;  %v3803_v53 = vmul.f32 %v8888_v33, %v3764_v60  ;;  %v4485_v32 = vsel %vm3833_vm2, %v4451_v40, 0.0 }
 0x4f8   : > { %4492 = vadd.xlane.f32.xlu0 %v4491_v16  ;;  %5123 = vadd.xlane.f32.xlu1 %v5122_v50  ;;  %v4201_v16 = vmul.f32 %v8872_v42, %v3764_v60 }
 0x4fa   : > { %v4232_v50 = vsel %vm1934_vm12, %v4201_v16, 0.0 }
 0x4fc   : > { %4874 = vadd.xlane.f32.xlu0 %v4873_v41  ;;  %5517 = vadd.xlane.f32.xlu1 %v5516_v11  ;;  %v4450_v41 = vmul.f32 %v8942_v31, %v9023_v52  ;;  %v3834_v11 = vsel %vm3833_vm2, %v3803_v53, 0.0 }
 0x4fe   : > { %v4482_v20 = vsel %vm1934_vm12, %v4450_v41, 0.0  ;;  %v3774_v41 = vmax.f32 %v8857_v61, 0.0 }
 0x500   : > { %4886 = vadd.xlane.f32.xlu0 %v4885_v44  ;;  %3994 = vadd.xlane.f32.xlu1 %v3993_v49  ;;  %v4844_v44 = vmul.f32 %v8978_v24, %v9023_v52  ;;  %v4244_v49 = vsel %vm1934_vm12, %v4205_v22, 0.0  ;;  %v5483_v22 = vmul.f32 %v9020_v6, %v9050_v3 }
 0x502   : > { %v4876_v27 = vsel %vm4228_vm0, %v4844_v44, 0.0 }
 0x504   : > { %5274 = vadd.xlane.f32.xlu0 %v5273_v0  ;;  %4230 = vadd.xlane.f32.xlu1 %v4229_v38  ;;  %v5236_v0 = vmul.f32 %v9004_v14, %v9023_v52  ;;  %v3846_v38 = vsel %vm3833_vm2, %v3807_v12, 0.0  ;;  %v3962_v12 = vmul.f32 %v8831_v26, %v3774_v41 }
 0x506   : > { %v5264_v13 = vsel %vm3979_vm15, %v5236_v0, 0.0  ;;  %v4014_v61 = vsel %vm3983_vm1, %v3962_v12, 0.0  ;;  %v9159_v12 = vmax.f32 %v8860_v51, 0.0 }
 0x508   : > { %5126 = vadd.xlane.f32.xlu0 %v5125_v39  ;;  %3831 = vadd.xlane.f32.xlu1 %v3830_v59  ;;  %v5088_v39 = vmul.f32 %v9012_v45, %v9023_v52  ;;  %v4633_v59 = vsel %vm3983_vm1, %v4599_v63, 0.0  ;;  %v3960_v51 = vmul.f32 %v8831_v26, %v9159_v12 }
 0x50a   : > { %v5116_v9 = vsel %vm1934_vm12, %v5088_v39, 0.0 }
 0x50c   : > { %5520 = vadd.xlane.f32.xlu0 %v5519_v2  ;;  %4242 = vadd.xlane.f32.xlu1 %v4241_v37  ;;  %v5482_v2 = vmul.f32 %v9020_v6, %v9023_v52  ;;  %v3773_v37 = vmax.f32 %v8849_v48, 0.0  ;;  %v5237_v52 = vmul.f32 %v9004_v14, %v9050_v3 }
 0x50e   : > { %v5510_v54 = vsel %vm4228_vm0, %v5482_v2, 0.0  ;;  %v3961_v48 = vmul.f32 %v8831_v26, %v3773_v37  ;;  %v4210_v53 = vmul.f32 %v8872_v42, %v3773_v37  ;;  %v3812_v44 = vmul.f32 %v8888_v33, %v3773_v37 }
 0x50f   : > { %v4604_v0 = vmul.f32 %v8926_v58, %v3773_v37 }
 0x510   : > { %3997 = vadd.xlane.f32.xlu0 %v3996_v43  ;;  %3844 = vadd.xlane.f32.xlu1 %v3843_v55  ;;  %v4845_v43 = vmul.f32 %v8978_v24, %v9050_v3  ;;  %v3952_v55 = vmul.f32 %v8831_v26, %v3764_v60  ;;  %v5089_v60 = vmul.f32 %v9012_v45, %v9050_v3 }
 0x511   : > { %v4211_v3 = vmul.f32 %v8872_v42, %v3774_v41 }
 0x512   : > { %v4879_v16 = vsel %vm1934_vm12, %v4845_v43, 0.0  ;;  %v3984_v7 = vsel %vm3983_vm1, %v3952_v55, 0.0 }
 0x513   : > { %v4262_v63 = vsel %vm1934_vm12, %v4211_v3, 0.0 }
 0x514   : > { %4233 = vadd.xlane.f32.xlu0 %v4232_v50  ;;  %4631 = vadd.xlane.f32.xlu1 %v4630_v23  ;;  %v5267_v50 = vsel %vm3983_vm1, %v5237_v52, 0.0  ;;  %v4011_v23 = vsel %vm3979_vm15, %v3961_v48, 0.0  ;;  %v9142_v52 = vmax.f32 %v8852_v57, 0.0 }
 0x516   : > { %v3959_v57 = vmul.f32 %v8831_v26, %v9142_v52  ;;  %v3810_v3 = vmul.f32 %v8888_v33, %v9142_v52 }
 0x518   : > { %3835 = vadd.xlane.f32.xlu0 %v3834_v11  ;;  %4483 = vadd.xlane.f32.xlu1 %v4482_v20  ;;  %v5119_v11 = vsel %vm3833_vm2, %v5089_v60, 0.0  ;;  %v4259_v20 = vsel %vm4228_vm0, %v4210_v53, 0.0  ;;  %v5488_v60 = vmul.f32 %v9020_v6, %v3773_v37 }
 0x51c   : > { %4245 = vadd.xlane.f32.xlu0 %v4244_v49  ;;  %4877 = vadd.xlane.f32.xlu1 %v4876_v27  ;;  %v5513_v49 = vsel %vm1934_vm12, %v5483_v22, 0.0  ;;  %v3861_v27 = vsel %vm1934_vm12, %v3812_v44, 0.0  ;;  %v4005_v44 = vsel %vm3979_vm15, %v3959_v57, 0.0 }
 0x520   : > { %3847 = vadd.xlane.f32.xlu0 %v3846_v38  ;;  %5265 = vadd.xlane.f32.xlu1 %v5264_v13  ;;  %v4648_v38 = vsel %vm3979_vm15, %v4604_v0, 0.0  ;;  %v4456_v13 = vmul.f32 %v8942_v31, %v3773_v37 }
 0x522   : > { %v4500_v39 = vsel %vm1934_vm12, %v4456_v13, 0.0 }
 0x524   : > { %4634 = vadd.xlane.f32.xlu0 %v4633_v59  ;;  %5117 = vadd.xlane.f32.xlu1 %v5116_v9  ;;  %v3813_v59 = vmul.f32 %v8888_v33, %v3774_v41  ;;  %v4850_v9 = vmul.f32 %v8978_v24, %v3773_v37 }
 0x526   : > { %v3864_v40 = vsel %vm3833_vm2, %v3813_v59, 0.0  ;;  %v4894_v2 = vsel %vm4228_vm0, %v4850_v9, 0.0  ;;  %v3855_v59 = vsel %vm1934_vm12, %v3810_v3, 0.0  ;;  %v4602_v9 = vmul.f32 %v8926_v58, %v9142_v52 }
 0x528   : > { %4486 = vadd.xlane.f32.xlu0 %v4485_v32  ;;  %5511 = vadd.xlane.f32.xlu1 %v5510_v54  ;;  %v4605_v32 = vmul.f32 %v8926_v58, %v3774_v41  ;;  %v5242_v54 = vmul.f32 %v9004_v14, %v3773_v37 }
 0x52a   : > { %v4651_v43 = vsel %vm3983_vm1, %v4605_v32, 0.0  ;;  %v5282_v55 = vsel %vm3979_vm15, %v5242_v54, 0.0  ;;  %v4642_v32 = vsel %vm3979_vm15, %v4602_v9, 0.0  ;;  %v4209_v54 = vmul.f32 %v8872_v42, %v9159_v12 }
 0x52c   : > { %4880 = vadd.xlane.f32.xlu0 %v4879_v16  ;;  %3985 = vadd.xlane.f32.xlu1 %v3984_v7  ;;  %v4457_v16 = vmul.f32 %v8942_v31, %v3774_v41  ;;  %v5094_v7 = vmul.f32 %v9012_v45, %v3773_v37  ;;  %v4208_v37 = vmul.f32 %v8872_v42, %v9142_v52 }
 0x52e   : > { %v4503_v48 = vsel %vm3833_vm2, %v4457_v16, 0.0 }
 0x530   : > { %5268 = vadd.xlane.f32.xlu0 %v5267_v50  ;;  %4012 = vadd.xlane.f32.xlu1 %v4011_v23  ;;  %v5134_v50 = vsel %vm1934_vm12, %v5094_v7, 0.0  ;;  %v4851_v23 = vmul.f32 %v8978_v24, %v3774_v41 }
 0x532   : > { %v4897_v53 = vsel %vm1934_vm12, %v4851_v23, 0.0 }
 0x534   : > { %5120 = vadd.xlane.f32.xlu0 %v5119_v11  ;;  %4260 = vadd.xlane.f32.xlu1 %v4259_v20  ;;  %v5528_v11 = vsel %vm4228_vm0, %v5488_v60, 0.0  ;;  %v5243_v20 = vmul.f32 %v9004_v14, %v3774_v41  ;;  %v3811_v60 = vmul.f32 %v8888_v33, %v9159_v12 }
 0x536   : > { %v5285_v22 = vsel %vm3983_vm1, %v5243_v20, 0.0 }
 0x538   : > { %5514 = vadd.xlane.f32.xlu0 %v5513_v49  ;;  %3862 = vadd.xlane.f32.xlu1 %v3861_v27  ;;  %v5095_v49 = vmul.f32 %v9012_v45, %v3774_v41 }
 0x53a   : > { %v5137_v0 = vsel %vm3833_vm2, %v5095_v49, 0.0 }
 0x53c   : > { %4015 = vadd.xlane.f32.xlu0 %v4014_v61  ;;  %4649 = vadd.xlane.f32.xlu1 %v4648_v38  ;;  %v4253_v61 = vsel %vm4228_vm0, %v4208_v37, 0.0  ;;  %v5489_v38 = vmul.f32 %v9020_v6, %v3774_v41  ;;  %v3858_v37 = vsel %vm3833_vm2, %v3811_v60, 0.0 }
 0x540   : > { %4263 = vadd.xlane.f32.xlu0 %v4262_v63  ;;  %4501 = vadd.xlane.f32.xlu1 %v4500_v39  ;;  %v5531_v39 = vsel %vm1934_vm12, %v5489_v38, 0.0  ;;  %v5240_v38 = vmul.f32 %v9004_v14, %v9142_v52 }
 0x544   : > { %3865 = vadd.xlane.f32.xlu0 %v3864_v40  ;;  %4895 = vadd.xlane.f32.xlu1 %v4894_v2  ;;  %v4008_v2 = vsel %vm3983_vm1, %v3960_v51, 0.0 }
 0x548   : > { %4652 = vadd.xlane.f32.xlu0 %v4651_v43  ;;  %5283 = vadd.xlane.f32.xlu1 %v5282_v55  ;;  %v4454_v43 = vmul.f32 %v8942_v31, %v9142_v52 }
 0x54a   : > { %v4494_v23 = vsel %vm1934_vm12, %v4454_v43, 0.0 }
 0x54c   : > { %4504 = vadd.xlane.f32.xlu0 %v4503_v48  ;;  %5135 = vadd.xlane.f32.xlu1 %v5134_v50  ;;  %v4256_v50 = vsel %vm1934_vm12, %v4209_v54, 0.0 }
 0x54d   : > { %v4001_v27 = vpop.xlane.xlu1 %4000 }
 0x550   : > { %4898 = vadd.xlane.f32.xlu0 %v4897_v53  ;;  %5529 = vadd.xlane.f32.xlu1 %v5528_v11  ;;  %v4848_v53 = vmul.f32 %v8978_v24, %v9142_v52 }
 0x554   : > { %5286 = vadd.xlane.f32.xlu0 %v5285_v22  ;;  %4006 = vadd.xlane.f32.xlu1 %v4005_v44  ;;  %v4103_v44 = vrot.slane %v4001_v27, 1 }
 0x558   : > { %5138 = vadd.xlane.f32.xlu0 %v5137_v0  ;;  %4254 = vadd.xlane.f32.xlu1 %v4253_v61  ;;  %v4888_v0 = vsel %vm4228_vm0, %v4848_v53, 0.0  ;;  %v4603_v61 = vmul.f32 %v8926_v58, %v9159_v12  ;;  %v4849_v53 = vmul.f32 %v8978_v24, %v9159_v12 }
 0x559   : > { %v4237_v13 = vpop.xlane.xlu1 %4236  ;;  %v3989_v63 = vpop.xlane.xlu0 %3988 }
 0x55a   : > { %v4097_v7 = vrot.slane %v3989_v63, 1  ;;  %v4345_v27 = vrot.slane %v4237_v13, 2  ;;  %v4645_v9 = vsel %vm3983_vm1, %v4603_v61, 0.0  ;;  %v9206_v13 = vmax.f32 %v8875_v15, 0.0 }
 0x55c   : > { %5532 = vadd.xlane.f32.xlu0 %v5531_v39  ;;  %3856 = vadd.xlane.f32.xlu1 %v3855_v59  ;;  %v3965_v61 = vmul.f32 %v8831_v26, %v9206_v13  ;;  %v5098_v1 = vmul.f32 %v9012_v45, %v9206_v13 }
 0x55d   : > { %v9172_v41 = vpop.xlane.xlu0 %3981  ;;  %v3839_v40 = vpop.xlane.xlu1 %3838 }
 0x560   : > { %4009 = vadd.xlane.f32.xlu0 %v4008_v2  ;;  %4643 = vadd.xlane.f32.xlu1 %v4642_v32  ;;  %v4455_v2 = vmul.f32 %v8942_v31, %v9159_v12  ;;  %v5092_v32 = vmul.f32 %v9012_v45, %v9142_v52 }
 0x561   : > { %v3992_v55 = vpop.xlane.xlu0 %3991  ;;  %v4249_v16 = vpop.xlane.xlu1 %4248 }
 0x562   : > { %v4098_v48 = vrot.slane %v3992_v55, 1  ;;  %v5128_v60 = vsel %vm1934_vm12, %v5092_v32, 0.0 }
 0x564   : > { %v4099_v11 = vsel %vm4093_vm3, %v4097_v7, %v4098_v48  ;;  %4257 = vadd.xlane.f32.xlu0 %v4256_v50  ;;  %4495 = vadd.xlane.f32.xlu1 %v4494_v23  ;;  %v4497_v23 = vsel %vm3833_vm2, %v4455_v2, 0.0 }
 0x565   : > { %v4004_v20 = vpop.xlane.xlu0 %4003  ;;  %v3851_v57 = vpop.xlane.xlu1 %3850  ;;  %v4166_v22 = vadd.f32 %v4099_v11, %v3839_v40  ;;  %v5276_v40 = vsel %vm3979_vm15, %v5240_v38, 0.0  ;;  %v5486_v11 = vmul.f32 %v9020_v6, %v9142_v52 }
 0x566   : > { %v4104_v49 = vrot.slane %v4004_v20, 1 }
 0x568   : > { %v4105_v3 = vsel %vm4093_vm3, %v4103_v44, %v4104_v49  ;;  %3859 = vadd.xlane.f32.xlu0 %v3858_v37  ;;  %4889 = vadd.xlane.f32.xlu1 %v4888_v0  ;;  %v4351_v44 = vrot.slane %v4249_v16, 2  ;;  %v5522_v37 = vsel %vm4228_vm0, %v5486_v11, 0.0  ;;  %v5241_v0 = vmul.f32 %v9004_v14, %v9159_v12 }
 0x569   : > { %v4170_v63 = vadd.f32 %v4105_v3, %v3851_v57  ;;  %v4240_v39 = vpop.xlane.xlu0 %4239  ;;  %v4626_v59 = vpop.xlane.xlu1 %4625 }
 0x56a   : > { %v4346_v51 = vrot.slane %v4240_v39, 2 }
 0x56c   : > { %4646 = vadd.xlane.f32.xlu0 %v4645_v9  ;;  %5277 = vadd.xlane.f32.xlu1 %v5276_v40  ;;  %v4347_v54 = vsel %vm4341_vm4, %v4345_v27, %v4346_v51  ;;  %v5279_v27 = vsel %vm3983_vm1, %v5241_v0, 0.0  ;;  %v5093_v9 = vmul.f32 %v9012_v45, %v9159_v12  ;;  %v4214_v40 = vmul.f32 %v8872_v42, %v9206_v13 }
 0x56d   : > { %v3842_v43 = vpop.xlane.xlu0 %3841  ;;  %v9201_v55 = vpop.xlane.xlu1 %4477  ;;  %v9203_v7 = vadd.f32 %v4347_v54, %v4166_v22 }
 0x56e   : > { %v4167_v50 = vadd.f32 %v4098_v48, %v3842_v43  ;;  %v4891_v48 = vsel %vm1934_vm12, %v4849_v53, 0.0  ;;  %v3816_v53 = vmul.f32 %v8888_v33, %v9206_v13 }
 0x570   : > { %4498 = vadd.xlane.f32.xlu0 %v4497_v23  ;;  %5129 = vadd.xlane.f32.xlu1 %v5128_v60  ;;  %v9214_v20 = vadd.f32 %v4346_v51, %v4167_v50  ;;  %v4023_v51 = vsel %vm3979_vm15, %v3965_v61, 0.0  ;;  %v5131_v50 = vsel %vm3833_vm2, %v5093_v9, 0.0  ;;  %v4271_v23 = vsel %vm4228_vm0, %v4214_v40, 0.0 }
 0x571   : > { %v4252_v57 = vpop.xlane.xlu0 %4251  ;;  %v4638_v22 = vpop.xlane.xlu1 %4637  ;;  %v5487_v60 = vmul.f32 %v9020_v6, %v9159_v12 }
 0x572   : > { %v4352_v15 = vrot.slane %v4252_v57, 2  ;;  %v4742_v0 = vrot.slane %v4638_v22, 1 }
 0x573   : > { %v5525_v57 = vsel %vm1934_vm12, %v5487_v60, 0.0 }
 0x574   : > { %4892 = vadd.xlane.f32.xlu0 %v4891_v48  ;;  %5523 = vadd.xlane.f32.xlu1 %v5522_v37  ;;  %v4353_v52 = vsel %vm4341_vm4, %v4351_v44, %v4352_v15  ;;  %v3873_v44 = vsel %vm1934_vm12, %v3816_v53, 0.0 }
 0x575   : > { %v3854_v38 = vpop.xlane.xlu0 %3853  ;;  %v9223_v3 = vpop.xlane.xlu1 %4489  ;;  %v9225_v39 = vadd.f32 %v4353_v52, %v4170_v63  ;;  %v9238_v63 = vmax.f32 %v8891_v36, 0.0 }
 0x576   : > { %v4171_v16 = vadd.f32 %v4104_v49, %v3854_v38  ;;  %v4736_v49 = vrot.slane %v4626_v59, 1 }
 0x577   : > { %v3966_v12 = vmul.f32 %v8831_v26, %v9238_v63  ;;  %v5493_v25 = vmul.f32 %v9020_v6, %v9238_v63 }
 0x578   : > { %5280 = vadd.xlane.f32.xlu0 %v5279_v27  ;;  %4024 = vadd.xlane.f32.xlu1 %v4023_v51  ;;  %v9233_v2 = vadd.f32 %v4352_v15, %v4171_v16  ;;  %v4608_v15 = vmul.f32 %v8926_v58, %v9206_v13  ;;  %v4215_v16 = vmul.f32 %v8872_v42, %v9238_v63 }
 0x579   : > { %v9235_v32 = vpop.xlane.xlu0 %4628  ;;  %v4872_v54 = vpop.xlane.xlu1 %4871  ;;  %v4026_v52 = vsel %vm3983_vm1, %v3966_v12, 0.0  ;;  %v4460_v27 = vmul.f32 %v8942_v31, %v9206_v13 }
 0x57a   : > { %v10489_v43 = vrot.slane %v9235_v32, 1  ;;  %v4660_v38 = vsel %vm3979_vm15, %v4608_v15, 0.0  ;;  %v4274_v40 = vsel %vm1934_vm12, %v4215_v16, 0.0 }
 0x57c   : > { %v9250_v11 = vsel %vm4093_vm3, %v4736_v49, %v10489_v43  ;;  %5132 = vadd.xlane.f32.xlu0 %v5131_v50  ;;  %4272 = vadd.xlane.f32.xlu1 %v4271_v23  ;;  %v4512_v49 = vsel %vm1934_vm12, %v4460_v27, 0.0  ;;  %v3817_v50 = vmul.f32 %v8888_v33, %v9238_v63  ;;  %v4854_v23 = vmul.f32 %v8978_v24, %v9206_v13 }
 0x57d   : > { %v9252_v36 = vpop.xlane.xlu0 %4480  ;;  %v4884_v59 = vpop.xlane.xlu1 %4883  ;;  %v5146_v43 = vsel %vm1934_vm12, %v5098_v1, 0.0 }
 0x57e   : > { %v3876_v12 = vsel %vm3833_vm2, %v3817_v50, 0.0  ;;  %v4906_v15 = vsel %vm4228_vm0, %v4854_v23, 0.0  ;;  %v4988_v27 = vrot.slane %v4884_v59, 2  ;;  %v4461_v23 = vmul.f32 %v8942_v31, %v9238_v63 }
 0x580   : > { %5526 = vadd.xlane.f32.xlu0 %v5525_v57  ;;  %3874 = vadd.xlane.f32.xlu1 %v3873_v44  ;;  %v4982_v57 = vrot.slane %v4872_v54, 2 }
 0x581   : > { %v9260_v48 = vpop.xlane.xlu0 %4640  ;;  %v5272_v37 = vpop.xlane.xlu1 %5271 }
 0x582   : > { %v10492_v61 = vrot.slane %v9260_v48, 1 }
 0x584   : > { %v9272_v51 = vsel %vm4093_vm3, %v4742_v0, %v10492_v61  ;;  %4027 = vadd.xlane.f32.xlu0 %v4026_v52  ;;  %4661 = vadd.xlane.f32.xlu1 %v4660_v38  ;;  %v4609_v0 = vmul.f32 %v8926_v58, %v9238_v63  ;;  %v5246_v52 = vmul.f32 %v9004_v14, %v9206_v13 }
 0x585   : > { %v9274_v22 = vpop.xlane.xlu0 %4492  ;;  %v9276_v9 = vpop.xlane.xlu1 %5123 }
 0x586   : > { %v5294_v50 = vsel %vm3979_vm15, %v5246_v52, 0.0 }
 0x588   : > { %4275 = vadd.xlane.f32.xlu0 %v4274_v40  ;;  %4513 = vadd.xlane.f32.xlu1 %v4512_v49  ;;  %v4663_v49 = vsel %vm3983_vm1, %v4609_v0, 0.0  ;;  %v5379_v0 = vrot.slane %v5272_v37, 1 }
 0x589   : > { %v9284_v60 = vpop.xlane.xlu0 %4874  ;;  %v5518_v53 = vpop.xlane.xlu1 %5517 }
 0x58a   : > { %v10488_v44 = vrot.slane %v9284_v60, 2 }
 0x58c   : > { %v9296_v38 = vsel %vm4341_vm4, %v4982_v57, %v10488_v44  ;;  %3877 = vadd.xlane.f32.xlu0 %v3876_v12  ;;  %4907 = vadd.xlane.f32.xlu1 %v4906_v15  ;;  %v9315_v15 = vmax.f32 %v8884_v21, 0.0  ;;  %v4515_v44 = vsel %vm3833_vm2, %v4461_v23, 0.0 }
 0x58d   : > { %v9298_v54 = vpop.xlane.xlu0 %4886  ;;  %v3995_v16 = vpop.xlane.xlu1 %3994 }
 0x58e   : > { %v10490_v40 = vrot.slane %v9298_v54, 2  ;;  %v4212_v5 = vmul.f32 %v8872_v42, %v9315_v15  ;;  %v4458_v46 = vmul.f32 %v8942_v31, %v9315_v15 }
 0x590   : > { %4664 = vadd.xlane.f32.xlu0 %v4663_v49  ;;  %5295 = vadd.xlane.f32.xlu1 %v5294_v50  ;;  %v9310_v57 = vsel %vm4341_vm4, %v4988_v27, %v10490_v40  ;;  %v4855_v49 = vmul.f32 %v8978_v24, %v9238_v63  ;;  %v5492_v27 = vmul.f32 %v9020_v6, %v9206_v13  ;;  %v4265_v18 = vsel %vm4228_vm0, %v4212_v5, 0.0 }
 0x591   : > { %v9312_v59 = vpop.xlane.xlu0 %5274  ;;  %v4231_v12 = vpop.xlane.xlu1 %4230  ;;  %v5247_v40 = vmul.f32 %v9004_v14, %v9238_v63  ;;  %v3963_v13 = vmul.f32 %v8831_v26, %v9315_v15 }
 0x592   : > { %v10491_v52 = vrot.slane %v9312_v59, 1  ;;  %v4909_v23 = vsel %vm1934_vm12, %v4855_v49, 0.0  ;;  %v5540_v1 = vsel %vm4228_vm0, %v5492_v27, 0.0  ;;  %v5099_v27 = vmul.f32 %v9012_v45, %v9238_v63 }
 0x593   : > { %v5297_v61 = vsel %vm3983_vm1, %v5247_v40, 0.0  ;;  %v4017_v49 = vsel %vm3979_vm15, %v3963_v13, 0.0  ;;  %v4100_v40 = vrot.slane %v3995_v16, 1  ;;  %v4342_v16 = vrot.slane %v4231_v12, 2 }
 0x594   : > { %v9327_v50 = vsel %vm4093_vm3, %v5379_v0, %v10491_v52  ;;  %4516 = vadd.xlane.f32.xlu0 %v4515_v44  ;;  %5147 = vadd.xlane.f32.xlu1 %v5146_v43  ;;  %v5625_v43 = vrot.slane %v5518_v53, 2  ;;  %v5149_v34 = vsel %vm3833_vm2, %v5099_v27, 0.0  ;;  %v5543_v27 = vsel %vm1934_vm12, %v5493_v25, 0.0 }
 0x595   : > { %v9329_v21 = vpop.xlane.xlu0 %5126  ;;  %v9331_v37 = vpop.xlane.xlu1 %3831 }
 0x598   : > { %4910 = vadd.xlane.f32.xlu0 %v4909_v23  ;;  %5541 = vadd.xlane.f32.xlu1 %v5540_v1  ;;  %v9354_v1 = vmax.f32 %v8898_v56, 0.0 }
 0x599   : > { %v9339_v0 = vpop.xlane.xlu0 %5520  ;;  %v4243_v44 = vpop.xlane.xlu1 %4242 }
 0x59a   : > { %v10493_v52 = vrot.slane %v9339_v0, 2  ;;  %v3964_v63 = vmul.f32 %v9368_v10, %v9354_v1 }
 0x59c   : > { %v9351_v26 = vsel %vm4341_vm4, %v5625_v43, %v10493_v52  ;;  %5298 = vadd.xlane.f32.xlu0 %v5297_v61  ;;  %4018 = vadd.xlane.f32.xlu1 %v4017_v49  ;;  %v3814_v43 = vmul.f32 %v8888_v33, %v9315_v15 }
 0x59d   : > { %v3998_v53 = vpop.xlane.xlu0 %3997  ;;  %v3845_v23 = vpop.xlane.xlu1 %3844 }
 0x59e   : > { %v4101_v13 = vrot.slane %v3998_v53, 1  ;;  %v3867_v5 = vsel %vm1934_vm12, %v3814_v43, 0.0 }
 0x5a0   : > { %v4102_v61 = vsel %vm4093_vm3, %v4100_v40, %v4101_v13  ;;  %5150 = vadd.xlane.f32.xlu0 %v5149_v34  ;;  %4266 = vadd.xlane.f32.xlu1 %v4265_v18  ;;  %v4606_v34 = vmul.f32 %v8926_v58, %v9315_v15  ;;  %v4020_v40 = vsel %vm3983_vm1, %v3964_v63, 0.0  ;;  %v3815_v63 = vmul.f32 %v8888_v33, %v9354_v1 }
 0x5a1   : > { %v4168_v49 = vadd.f32 %v4102_v61, %v3845_v23  ;;  %v9363_v52 = vpop.xlane.xlu0 %4233  ;;  %v4632_v56 = vpop.xlane.xlu1 %4631  ;;  %v4213_v61 = vmul.f32 %v8872_v42, %v9354_v1  ;;  %v5244_v33 = vmul.f32 %v9004_v14, %v9315_v15 }
 0x5a2   : > { %v10494_v53 = vrot.slane %v9363_v52, 2  ;;  %v4654_v43 = vsel %vm3979_vm15, %v4606_v34, 0.0  ;;  %v4852_v34 = vmul.f32 %v8978_v24, %v9315_v15 }
 0x5a3   : > { %v4268_v47 = vsel %vm1934_vm12, %v4213_v61, 0.0  ;;  %v4607_v61 = vmul.f32 %v8926_v58, %v9354_v1 }
 0x5a4   : > { %v9377_v18 = vsel %vm4341_vm4, %v4342_v16, %v10494_v53  ;;  %5544 = vadd.xlane.f32.xlu0 %v5543_v27  ;;  %3868 = vadd.xlane.f32.xlu1 %v3867_v5  ;;  %v4348_v5 = vrot.slane %v4243_v44, 2 }
 0x5a5   : > { %v9379_v12 = vpop.xlane.xlu0 %3835  ;;  %v4484_v25 = vpop.xlane.xlu1 %4483 }
 0x5a6   : > { %v4562_v23 = vadd.f32 %v4484_v25, %v9203_v7  ;;  %v4506_v7 = vsel %vm1934_vm12, %v4458_v46, 0.0  ;;  %v3870_v46 = vsel %vm3833_vm2, %v3815_v63, 0.0  ;;  %v4459_v63 = vmul.f32 %v8942_v31, %v9354_v1 }
 0x5a8   : > { %4021 = vadd.xlane.f32.xlu0 %v4020_v40  ;;  %4655 = vadd.xlane.f32.xlu1 %v4654_v43 }
 0x5a9   : > { %v4246_v16 = vpop.xlane.xlu0 %4245  ;;  %v4878_v27 = vpop.xlane.xlu1 %4877 }
 0x5aa   : > { %v4349_v53 = vrot.slane %v4246_v16, 2  ;;  %v4900_v16 = vsel %vm4228_vm0, %v4852_v34, 0.0  ;;  %v4657_v34 = vsel %vm3983_vm1, %v4607_v61, 0.0 }
 0x5ac   : > { %v4350_v42 = vsel %vm4341_vm4, %v4348_v5, %v4349_v53  ;;  %4269 = vadd.xlane.f32.xlu0 %v4268_v47  ;;  %4507 = vadd.xlane.f32.xlu1 %v4506_v7  ;;  %v4739_v7 = vrot.slane %v4632_v56, 1 }
 0x5ad   : > { %v4416_v25 = vadd.f32 %v4350_v42, %v4168_v49  ;;  %v3848_v40 = vpop.xlane.xlu0 %3847  ;;  %v9395_v43 = vpop.xlane.xlu1 %5265 }
 0x5ae   : > { %v4169_v44 = vadd.f32 %v4101_v13, %v3848_v40  ;;  %v5288_v40 = vsel %vm3979_vm15, %v5244_v33, 0.0 }
 0x5af   : > { %v4564_v30 = vadd.f32 %v9223_v3, %v4416_v25  ;;  %v5096_v3 = vmul.f32 %v9012_v45, %v9315_v15 }
 0x5b0   : > { %v4417_v5 = vadd.f32 %v4349_v53, %v4169_v44  ;;  %3871 = vadd.xlane.f32.xlu0 %v3870_v46  ;;  %4901 = vadd.xlane.f32.xlu1 %v4900_v16  ;;  %v9423_v44 = vmax.f32 %v8909_v17, 0.0  ;;  %v10524_v46 = vrot.slane %v9298_v54, 2  ;;  %v4509_v16 = vsel %vm3833_vm2, %v4459_v63, 0.0 }
 0x5b1   : > { %v4635_v47 = vpop.xlane.xlu0 %4634  ;;  %v9404_v49 = vpop.xlane.xlu1 %5117  ;;  %v4810_v13 = vadd.f32 %v9272_v51, %v4564_v30  ;;  %v10523_v30 = vrot.slane %v9260_v48, 1  ;;  %v5140_v33 = vsel %vm1934_vm12, %v5096_v3, 0.0  ;;  %v4853_v48 = vmul.f32 %v8978_v24, %v9354_v1 }
 0x5b2   : > { %v4565_v58 = vadd.f32 %v9274_v22, %v4417_v5  ;;  %v4740_v42 = vrot.slane %v4635_v47, 1  ;;  %v4985_v54 = vrot.slane %v4878_v27, 2  ;;  %v5245_v24 = vmul.f32 %v9004_v14, %v9354_v1 }
 0x5b3   : > { %v9415_v53 = vadd.f32 %v9310_v57, %v4810_v13  ;;  %v5097_v14 = vmul.f32 %v9012_v45, %v9354_v1  ;;  %v10526_v45 = vrot.slane %v9312_v59, 1  ;;  %v10527_v59 = vrot.slane %v9235_v32, 1 }
 0x5b4   : > { %v4741_v25 = vsel %vm4093_vm3, %v4739_v7, %v4740_v42  ;;  %4658 = vadd.xlane.f32.xlu0 %v4657_v34  ;;  %5289 = vadd.xlane.f32.xlu1 %v5288_v40  ;;  %v4811_v51 = vadd.f32 %v10523_v30, %v4565_v58  ;;  %v4903_v58 = vsel %vm1934_vm12, %v4853_v48, 0.0 }
 0x5b5   : > { %v4808_v22 = vadd.f32 %v4741_v25, %v4562_v23  ;;  %v4487_v56 = vpop.xlane.xlu0 %4486  ;;  %v9420_v31 = vpop.xlane.xlu1 %5511  ;;  %v5490_v23 = vmul.f32 %v9020_v6, %v9315_v15  ;;  %v3969_v15 = vmul.f32 %v9368_v10, %v9423_v44 }
 0x5b6   : > { %v4563_v61 = vadd.f32 %v4487_v56, %v9214_v20  ;;  %v9428_v57 = vadd.f32 %v10524_v46, %v4811_v51  ;;  %v4094_v20 = vrot.slane %v9172_v41, 1  ;;  %v5376_v51 = vrot.slane %v9395_v43, 1 }
 0x5b7   : > { %v5534_v63 = vsel %vm4228_vm0, %v5490_v23, 0.0 }
 0x5b8   : > { %v4809_v5 = vadd.f32 %v4740_v42, %v4563_v61  ;;  %4510 = vadd.xlane.f32.xlu0 %v4509_v16  ;;  %5141 = vadd.xlane.f32.xlu1 %v5140_v33  ;;  %v10525_v61 = vrot.slane %v9363_v52, 2  ;;  %v9456_v33 = vld [vmem:[#allocation19 + $0x2] ss:$0 sm:$0xff]  ;;  %v4035_v52 = vsel %vm3979_vm15, %v3969_v15, 0.0 }
 0x5b9   : > { %v4881_v17 = vpop.xlane.xlu0 %4880  ;;  %v3986_v47 = vpop.xlane.xlu1 %3985  ;;  %v4218_v48 = vmul.f32 %v9456_v33, %v9423_v44 }
 0x5ba   : > { %v4986_v13 = vrot.slane %v4881_v17, 2  ;;  %v4095_v7 = vrot.slane %v3986_v47, 1  ;;  %v9468_v47 = vmax.f32 %v8917_v4, 0.0  ;;  %v10529_v4 = vrot.slane %v9284_v60, 2 }
 0x5bb   : > { %v4283_v32 = vsel %vm4228_vm0, %v4218_v48, 0.0  ;;  %v9513_v48 = vld [vmem:[#allocation19 + $0x3] ss:$0 sm:$0xff] }
 0x5bc   : > { %v4987_v42 = vsel %vm4341_vm4, %v4985_v54, %v4986_v13  ;;  %v5055_v34 = vadd.f32 %v4986_v13, %v4809_v5  ;;  %v4096_v40 = vsel %vm4093_vm3, %v4094_v20, %v4095_v7  ;;  %v4165_v41 = vadd.f32 %v4095_v7, %v9379_v12  ;;  %4904 = vadd.xlane.f32.xlu0 %v4903_v58 }
 0x5bd   : > { %v5054_v27 = vadd.f32 %v4987_v42, %v4808_v22  ;;  %v4164_v3 = vadd.f32 %v4096_v40, %v9331_v37  ;;  %5535 = vadd.xlane.f32.xlu1 %v5534_v63  ;;  %v5269_v25 = vpop.xlane.xlu0 %5268  ;;  %v4013_v30 = vpop.xlane.xlu1 %4012  ;;  %v5291_v37 = vsel %vm3983_vm1, %v5245_v24, 0.0  ;;  %v10528_v54 = vrot.slane %v9339_v0, 2  ;;  %v9486_v63 = vld [vmem:[#allocation19] ss:$0 sm:$0xff] }
 0x5be   : > { %v5203_v56 = vadd.f32 %v9329_v21, %v5055_v34  ;;  %v4413_v46 = vadd.f32 %v10525_v61, %v4165_v41  ;;  %v5377_v16 = vrot.slane %v5269_v25, 1  ;;  %v3820_v0 = vmul.f32 %v9486_v63, %v9423_v44 }
 0x5bf   : > { %v5202_v12 = vadd.f32 %v9276_v9, %v5054_v27  ;;  %v4412_v22 = vadd.f32 %v9377_v18, %v4164_v3  ;;  %v3970_v40 = vmul.f32 %v9368_v10, %v9468_v47  ;;  %v9500_v3 = vld [vmem:[#allocation19 + $0x4] ss:$0 sm:$0xff] }
 0x5c0   : > { %v5449_v43 = vadd.f32 %v10526_v45, %v5203_v56  ;;  %v5378_v21 = vsel %vm4093_vm3, %v5376_v51, %v5377_v16  ;;  %5292 = vadd.xlane.f32.xlu0 %v5291_v37  ;;  %v4561_v23 = vadd.f32 %v9252_v36, %v4413_v46  ;;  %v5143_v36 = vsel %vm3833_vm2, %v5097_v14, 0.0 }
 0x5c1   : > { %v5448_v9 = vadd.f32 %v9327_v50, %v5202_v12  ;;  %v4560_v18 = vadd.f32 %v9201_v55, %v4412_v22  ;;  %4036 = vadd.xlane.f32.xlu1 %v4035_v52  ;;  %v5121_v5 = vpop.xlane.xlu0 %5120  ;;  %v4261_v17 = vpop.xlane.xlu1 %4260  ;;  %v5491_v55 = vmul.f32 %v9020_v6, %v9354_v1  ;;  %v3885_v27 = vsel %vm1934_vm12, %v3820_v0, 0.0 }
 0x5c2   : > { %v4807_v20 = vadd.f32 %v10527_v59, %v4561_v23  ;;  %v9474_v13 = vadd.f32 %v10528_v54, %v5449_v43  ;;  %v4109_v51 = vrot.slane %v4013_v30, 1  ;;  %v4219_v12 = vmul.f32 %v9456_v33, %v9468_v47 }
 0x5c3   : > { %v4806_v7 = vadd.f32 %v9250_v11, %v4560_v18  ;;  %v9481_v50 = vadd.f32 %v9351_v26, %v5448_v9  ;;  %v5622_v26 = vrot.slane %v9420_v31, 2  ;;  %v5537_v34 = vsel %vm1934_vm12, %v5491_v55, 0.0 }
 0x5c4   : > { %v5053_v58 = vadd.f32 %v10529_v4, %v4807_v20  ;;  %5144 = vadd.xlane.f32.xlu0 %v5143_v36  ;;  %v4612_v31 = vmul.f32 %v9500_v3, %v9423_v44  ;;  %v4464_v30 = vmul.f32 %v9513_v48, %v9423_v44  ;;  %v4357_v23 = vrot.slane %v4261_v17, 2  ;;  %v9525_v20 = vld [vmem:[#allocation19 + $0x5] ss:$0 sm:$0xff] }
 0x5c5   : > { %v5052_v11 = vadd.f32 %v9296_v38, %v4806_v7  ;;  %4284 = vadd.xlane.f32.xlu1 %v4283_v32  ;;  %v5515_v24 = vpop.xlane.xlu0 %5514  ;;  %v3863_v15 = vpop.xlane.xlu1 %3862  ;;  %v4286_v18 = vsel %vm1934_vm12, %v4219_v12, 0.0  ;;  %v4858_v54 = vmul.f32 %v9525_v20, %v9423_v44  ;;  %v4613_v32 = vmul.f32 %v9500_v3, %v9468_v47 }
 0x5c6   : > { %v5201_v60 = vadd.f32 %v5121_v5, %v5053_v58  ;;  %v5623_v1 = vrot.slane %v5515_v24, 2  ;;  %v4672_v37 = vsel %vm3979_vm15, %v4612_v31, 0.0  ;;  %v3821_v5 = vmul.f32 %v9486_v63, %v9468_v47  ;;  %v9539_v24 = vld [vmem:[#allocation19 + $0x7] ss:$0 sm:$0xff] }
 0x5c7   : > { %v5200_v42 = vadd.f32 %v9404_v49, %v5052_v11  ;;  %v4524_v59 = vsel %vm1934_vm12, %v4464_v30, 0.0  ;;  %v9536_v0 = vmax.f32 %v8912_v28, 0.0  ;;  %v4918_v11 = vsel %vm4228_vm0, %v4858_v54, 0.0 }
 0x5c8   : > { %v5447_v41 = vadd.f32 %v5377_v16, %v5201_v60  ;;  %v5624_v38 = vsel %vm4341_vm4, %v5622_v26, %v5623_v1  ;;  %5538 = vadd.xlane.f32.xlu0 %v5537_v34  ;;  %v4038_v16 = vsel %vm3983_vm1, %v3970_v40, 0.0  ;;  %v3888_v58 = vsel %vm3833_vm2, %v3821_v5, 0.0 }
 0x5c9   : > { %v5446_v25 = vadd.f32 %v5378_v21, %v5200_v42  ;;  %3886 = vadd.xlane.f32.xlu1 %v3885_v27  ;;  %v4016_v14 = vpop.xlane.xlu0 %4015  ;;  %v4650_v49 = vpop.xlane.xlu1 %4649  ;;  %v4675_v28 = vsel %vm3983_vm1, %v4613_v32, 0.0  ;;  %v4465_v40 = vmul.f32 %v9513_v48, %v9468_v47  ;;  %v3967_v27 = vmul.f32 %v9368_v10, %v9536_v0 }
 0x5ca   : > { %v9504_v56 = vadd.f32 %v5623_v1, %v5447_v41  ;;  %v4110_v61 = vrot.slane %v4016_v14, 1  ;;  %v4748_v42 = vrot.slane %v4650_v49, 1  ;;  %v4859_v49 = vmul.f32 %v9525_v20, %v9468_v47 }
 0x5cb   : > { %v9506_v46 = vadd.f32 %v5624_v38, %v5446_v25  ;;  %v4527_v14 = vsel %vm3833_vm2, %v4465_v40, 0.0  ;;  %v9573_v30 = vmax.f32 %v8924_v62, 0.0 }
 0x5cc   : > { %v4111_v22 = vsel %vm4093_vm3, %v4109_v51, %v4110_v61  ;;  %4039 = vadd.xlane.f32.xlu0 %v4038_v16  ;;  %v4029_v51 = vsel %vm3979_vm15, %v3967_v27, 0.0 }
 0x5cd   : > { %4673 = vadd.xlane.f32.xlu1 %v4672_v37  ;;  %v4264_v43 = vpop.xlane.xlu0 %4263  ;;  %v9519_v21 = vpop.xlane.xlu1 %4501  ;;  %v4174_v52 = vadd.f32 %v4111_v22, %v3863_v15  ;;  %v5250_v15 = vmul.f32 %v9539_v24, %v9423_v44 }
 0x5ce   : > { %v4358_v9 = vrot.slane %v4264_v43, 2  ;;  %v4921_v43 = vsel %vm1934_vm12, %v4859_v49, 0.0 }
 0x5cf   : > { %v5306_v38 = vsel %vm3979_vm15, %v5250_v15, 0.0 }
 0x5d0   : > { %4287 = vadd.xlane.f32.xlu0 %v4286_v18  ;;  %v4359_v7 = vsel %vm4341_vm4, %v4357_v23, %v4358_v9 }
 0x5d1   : > { %4525 = vadd.xlane.f32.xlu1 %v4524_v59  ;;  %v3866_v36 = vpop.xlane.xlu0 %3865  ;;  %v4896_v55 = vpop.xlane.xlu1 %4895  ;;  %v9530_v17 = vadd.f32 %v4359_v7, %v4174_v52  ;;  %v5251_v52 = vmul.f32 %v9539_v24, %v9468_v47 }
 0x5d2   : > { %v4175_v4 = vadd.f32 %v4110_v61, %v3866_v36  ;;  %v4216_v61 = vmul.f32 %v9456_v33, %v9536_v0  ;;  %v4994_v22 = vrot.slane %v4896_v55, 2  ;;  %v3968_v36 = vmul.f32 %v9368_v10, %v9573_v30 }
 0x5d3   : > { %v5309_v7 = vsel %vm3983_vm1, %v5251_v52, 0.0 }
 0x5d4   : > { %3889 = vadd.xlane.f32.xlu0 %v3888_v58  ;;  %v9543_v26 = vadd.f32 %v4358_v9, %v4175_v4  ;;  %v4277_v23 = vsel %vm4228_vm0, %v4216_v61, 0.0  ;;  %v3818_v9 = vmul.f32 %v9486_v63, %v9536_v0  ;;  %v4610_v58 = vmul.f32 %v9500_v3, %v9536_v0 }
 0x5d5   : > { %4919 = vadd.xlane.f32.xlu1 %v4918_v11  ;;  %v9545_v60 = vpop.xlane.xlu0 %4652  ;;  %v5284_v1 = vpop.xlane.xlu1 %5283  ;;  %v4032_v15 = vsel %vm3983_vm1, %v3968_v36, 0.0 }
 0x5d6   : > { %v4749_v34 = vrot.slane %v9545_v60, 1  ;;  %v5385_v59 = vrot.slane %v5284_v1, 1  ;;  %v3879_v4 = vsel %vm1934_vm12, %v3818_v9, 0.0  ;;  %v4217_v1 = vmul.f32 %v9456_v33, %v9573_v30 }
 0x5d8   : > { %v9554_v41 = vsel %vm4093_vm3, %v4748_v42, %v4749_v34  ;;  %4676 = vadd.xlane.f32.xlu0 %v4675_v28  ;;  %v4666_v42 = vsel %vm3979_vm15, %v4610_v58, 0.0  ;;  %v4462_v28 = vmul.f32 %v9513_v48, %v9536_v0  ;;  %v4280_v49 = vsel %vm1934_vm12, %v4217_v1, 0.0 }
 0x5d9   : > { %5307 = vadd.xlane.f32.xlu1 %v5306_v38  ;;  %v9559_v31 = vpop.xlane.xlu0 %4504  ;;  %v9561_v25 = vpop.xlane.xlu1 %5135  ;;  %v5248_v58 = vmul.f32 %v9539_v24, %v9536_v0 }
 0x5dc   : > { %4528 = vadd.xlane.f32.xlu0 %v4527_v14 }
 0x5dd   : > { %4030 = vadd.xlane.f32.xlu1 %v4029_v51  ;;  %v9569_v16 = vpop.xlane.xlu0 %4898  ;;  %v5530_v12 = vpop.xlane.xlu1 %5529  ;;  %v3819_v51 = vmul.f32 %v9486_v63, %v9573_v30 }
 0x5de   : > { %v4995_v37 = vrot.slane %v9569_v16, 2  ;;  %v5631_v27 = vrot.slane %v5530_v12, 2 }
 0x5e0   : > { %4922 = vadd.xlane.f32.xlu0 %v4921_v43  ;;  %v9584_v18 = vsel %vm4341_vm4, %v4994_v22, %v4995_v37  ;;  %v4518_v22 = vsel %vm1934_vm12, %v4462_v28, 0.0  ;;  %v4856_v43 = vmul.f32 %v9525_v20, %v9536_v0 }
 0x5e1   : > { %4278 = vadd.xlane.f32.xlu1 %v4277_v23  ;;  %v9586_v5 = vpop.xlane.xlu0 %5286  ;;  %v4007_v62 = vpop.xlane.xlu1 %4006 }
 0x5e2   : > { %v5386_v54 = vrot.slane %v9586_v5, 1  ;;  %v4106_v23 = vrot.slane %v4007_v62, 1 }
 0x5e4   : > { %v9595_v55 = vsel %vm4093_vm3, %v5385_v59, %v5386_v54  ;;  %5310 = vadd.xlane.f32.xlu0 %v5309_v7  ;;  %v3882_v59 = vsel %vm3833_vm2, %v3819_v51, 0.0  ;;  %v4611_v7 = vmul.f32 %v9500_v3, %v9573_v30  ;;  %v4463_v51 = vmul.f32 %v9513_v48, %v9573_v30 }
 0x5e5   : > { %3880 = vadd.xlane.f32.xlu1 %v3879_v4  ;;  %v9600_v32 = vpop.xlane.xlu0 %5138  ;;  %v4255_v11 = vpop.xlane.xlu1 %4254  ;;  %v4912_v4 = vsel %vm4228_vm0, %v4856_v43, 0.0 }
 0x5e6   : > { %v4354_v28 = vrot.slane %v4255_v11, 2 }
 0x5e8   : > { %4033 = vadd.xlane.f32.xlu0 %v4032_v15 }
 0x5e9   : > { %4667 = vadd.xlane.f32.xlu1 %v4666_v42  ;;  %v9608_v40 = vpop.xlane.xlu0 %5532  ;;  %v3857_v38 = vpop.xlane.xlu1 %3856 }
 0x5ea   : > { %v5632_v14 = vrot.slane %v9608_v40, 2 }
 0x5ec   : > { %v9617_v61 = vsel %vm4341_vm4, %v5631_v27, %v5632_v14  ;;  %4281 = vadd.xlane.f32.xlu0 %v4280_v49  ;;  %v4669_v49 = vsel %vm3983_vm1, %v4611_v7, 0.0 }
 0x5ed   : > { %4519 = vadd.xlane.f32.xlu1 %v4518_v22  ;;  %v4010_v12 = vpop.xlane.xlu0 %4009  ;;  %v4644_v52 = vpop.xlane.xlu1 %4643  ;;  %v9634_v22 = vmax.f32 %v8935_v19, 0.0  ;;  %v4857_v19 = vmul.f32 %v9525_v20, %v9573_v30 }
 0x5ee   : > { %v4107_v9 = vrot.slane %v4010_v12, 1  ;;  %v9638_v12 = vld [vmem:[#allocation19 + $0x6] ss:$0 sm:$0xff] }
 0x5ef   : > { %v5100_v11 = vmul.f32 %v9638_v12, %v9536_v0  ;;  %v5101_v60 = vmul.f32 %v9638_v12, %v9573_v30 }
 0x5f0   : > { %v4108_v36 = vsel %vm4093_vm3, %v4106_v23, %v4107_v9  ;;  %3883 = vadd.xlane.f32.xlu0 %v3882_v59 }
 0x5f1   : > { %v4172_v15 = vadd.f32 %v4108_v36, %v3857_v38  ;;  %4913 = vadd.xlane.f32.xlu1 %v4912_v4  ;;  %v4258_v1 = vpop.xlane.xlu0 %4257  ;;  %v4496_v42 = vpop.xlane.xlu1 %4495  ;;  %v5300_v38 = vsel %vm3979_vm15, %v5248_v58, 0.0  ;;  %v4521_v36 = vsel %vm3833_vm2, %v4463_v51, 0.0  ;;  %v5152_v58 = vsel %vm1934_vm12, %v5100_v11, 0.0 }
 0x5f2   : > { %v4355_v62 = vrot.slane %v4258_v1, 2  ;;  %v4566_v27 = vadd.f32 %v4496_v42, %v9225_v39  ;;  %v3973_v42 = vmul.f32 %v9368_v10, %v9634_v22 }
 0x5f4   : > { %v4356_v43 = vsel %vm4341_vm4, %v4354_v28, %v4355_v62  ;;  %4670 = vadd.xlane.f32.xlu0 %v4669_v49 }
 0x5f5   : > { %v4420_v23 = vadd.f32 %v4356_v43, %v4172_v15  ;;  %5301 = vadd.xlane.f32.xlu1 %v5300_v38  ;;  %v3860_v39 = vpop.xlane.xlu0 %3859  ;;  %v4890_v59 = vpop.xlane.xlu1 %4889  ;;  %v4915_v38 = vsel %vm1934_vm12, %v4857_v19, 0.0 }
 0x5f6   : > { %v4173_v7 = vadd.f32 %v4107_v9, %v3860_v39  ;;  %v4745_v9 = vrot.slane %v4644_v52, 1 }
 0x5f7   : > { %v4568_v4 = vadd.f32 %v9519_v21, %v4420_v23  ;;  %v5249_v21 = vmul.f32 %v9539_v24, %v9573_v30  ;;  %v4047_v23 = vsel %vm3979_vm15, %v3973_v42, 0.0 }
 0x5f8   : > { %v4421_v1 = vadd.f32 %v4355_v62, %v4173_v7  ;;  %4522 = vadd.xlane.f32.xlu0 %v4521_v36 }
 0x5f9   : > { %5153 = vadd.xlane.f32.xlu1 %v5152_v58  ;;  %v4647_v15 = vpop.xlane.xlu0 %4646  ;;  %v5278_v28 = vpop.xlane.xlu1 %5277  ;;  %v4814_v49 = vadd.f32 %v9554_v41, %v4568_v4  ;;  %v4222_v41 = vmul.f32 %v9456_v33, %v9634_v22  ;;  %v9670_v4 = vmax.f32 %v8945_v29, 0.0  ;;  %v5155_v29 = vsel %vm3833_vm2, %v5101_v60, 0.0 }
 0x5fa   : > { %v4569_v51 = vadd.f32 %v9559_v31, %v4421_v1  ;;  %v4746_v43 = vrot.slane %v4647_v15, 1  ;;  %v5303_v1 = vsel %vm3983_vm1, %v5249_v21, 0.0 }
 0x5fb   : > { %v9655_v62 = vadd.f32 %v9584_v18, %v4814_v49  ;;  %v3974_v42 = vmul.f32 %v9368_v10, %v9670_v4 }
 0x5fc   : > { %v4747_v11 = vsel %vm4093_vm3, %v4745_v9, %v4746_v43  ;;  %4916 = vadd.xlane.f32.xlu0 %v4915_v38  ;;  %v4815_v31 = vadd.f32 %v4749_v34, %v4569_v51  ;;  %v4616_v51 = vmul.f32 %v9500_v3, %v9634_v22 }
 0x5fd   : > { %v4812_v52 = vadd.f32 %v4747_v11, %v4566_v27  ;;  %4048 = vadd.xlane.f32.xlu1 %v4047_v23  ;;  %v4499_v39 = vpop.xlane.xlu0 %4498  ;;  %v5130_v7 = vpop.xlane.xlu1 %5129  ;;  %v4295_v27 = vsel %vm4228_vm0, %v4222_v41, 0.0 }
 0x5fe   : > { %v4567_v36 = vadd.f32 %v4499_v39, %v9233_v2  ;;  %v5204_v18 = vadd.f32 %v5130_v7, %v9415_v53  ;;  %v9667_v19 = vadd.f32 %v4995_v37, %v4815_v31  ;;  %v3824_v2 = vmul.f32 %v9486_v63, %v9634_v22 }
 0x5ff   : > { %v4991_v37 = vrot.slane %v4890_v59, 2  ;;  %v5382_v59 = vrot.slane %v5278_v28, 1  ;;  %v4050_v31 = vsel %vm3983_vm1, %v3974_v42, 0.0  ;;  %v4223_v39 = vmul.f32 %v9456_v33, %v9670_v4 }
 0x600   : > { %v4813_v34 = vadd.f32 %v4746_v43, %v4567_v36  ;;  %5304 = vadd.xlane.f32.xlu0 %v5303_v1  ;;  %v3897_v9 = vsel %vm1934_vm12, %v3824_v2, 0.0  ;;  %v4468_v28 = vmul.f32 %v9513_v48, %v9634_v22 }
 0x601   : > { %4296 = vadd.xlane.f32.xlu1 %v4295_v27  ;;  %v4893_v53 = vpop.xlane.xlu0 %4892  ;;  %v5524_v16 = vpop.xlane.xlu1 %5523  ;;  %v3825_v27 = vmul.f32 %v9486_v63, %v9670_v4 }
 0x602   : > { %v4992_v58 = vrot.slane %v4893_v53, 2 }
 0x604   : > { %v4993_v15 = vsel %vm4341_vm4, %v4991_v37, %v4992_v58  ;;  %v5059_v49 = vadd.f32 %v4992_v58, %v4813_v34  ;;  %5156 = vadd.xlane.f32.xlu0 %v5155_v29  ;;  %v5628_v37 = vrot.slane %v5524_v16, 2  ;;  %v3900_v29 = vsel %vm3833_vm2, %v3825_v27, 0.0  ;;  %v9742_v27 = vld [vmem:[#allocation19 + $0x8] ss:$0 sm:$0xff] }
 0x605   : > { %v5058_v43 = vadd.f32 %v4993_v15, %v4812_v52  ;;  %3898 = vadd.xlane.f32.xlu1 %v3897_v9  ;;  %v5281_v38 = vpop.xlane.xlu0 %5280  ;;  %v4025_v21 = vpop.xlane.xlu1 %4024  ;;  %v4684_v52 = vsel %vm3979_vm15, %v4616_v51, 0.0  ;;  %v5254_v9 = vmul.f32 %v9539_v24, %v9634_v22 }
 0x606   : > { %v5207_v11 = vadd.f32 %v9600_v32, %v5059_v49  ;;  %v5383_v23 = vrot.slane %v5281_v38, 1  ;;  %v4115_v38 = vrot.slane %v4025_v21, 1 }
 0x607   : > { %v5206_v41 = vadd.f32 %v9561_v25, %v5058_v43 }
 0x608   : > { %v5453_v7 = vadd.f32 %v5386_v54, %v5207_v11  ;;  %v5384_v36 = vsel %vm4093_vm3, %v5382_v59, %v5383_v23  ;;  %4051 = vadd.xlane.f32.xlu0 %v4050_v31  ;;  %v4298_v54 = vsel %vm1934_vm12, %v4223_v39, 0.0  ;;  %v5318_v39 = vsel %vm3979_vm15, %v5254_v9, 0.0 }
 0x609   : > { %v5452_v32 = vadd.f32 %v9595_v55, %v5206_v41  ;;  %v5450_v1 = vadd.f32 %v5384_v36, %v5204_v18  ;;  %4685 = vadd.xlane.f32.xlu1 %v4684_v52  ;;  %v5133_v25 = vpop.xlane.xlu0 %5132  ;;  %v4273_v60 = vpop.xlane.xlu1 %4272  ;;  %v4536_v55 = vsel %vm1934_vm12, %v4468_v28, 0.0  ;;  %v4862_v18 = vmul.f32 %v9525_v20, %v9634_v22 }
 0x60a   : > { %v5205_v34 = vadd.f32 %v5133_v25, %v9428_v57  ;;  %v9700_v5 = vadd.f32 %v5632_v14, %v5453_v7  ;;  %v4469_v41 = vmul.f32 %v9513_v48, %v9670_v4  ;;  %v5106_v7 = vmul.f32 %v9638_v12, %v9634_v22 }
 0x60b   : > { %v9706_v2 = vadd.f32 %v9617_v61, %v5452_v32  ;;  %v4617_v61 = vmul.f32 %v9500_v3, %v9670_v4  ;;  %v4930_v49 = vsel %vm4228_vm0, %v4862_v18, 0.0  ;;  %v4363_v28 = vrot.slane %v4273_v60, 2 }
 0x60c   : > { %v5451_v53 = vadd.f32 %v5383_v23, %v5205_v34  ;;  %4299 = vadd.xlane.f32.xlu0 %v4298_v54  ;;  %v4863_v25 = vmul.f32 %v9525_v20, %v9670_v4  ;;  %v9739_v34 = vmax.f32 %v8938_v8, 0.0  ;;  %v5170_v54 = vsel %vm1934_vm12, %v5106_v7, 0.0 }
 0x60d   : > { %4537 = vadd.xlane.f32.xlu1 %v4536_v55  ;;  %v5527_v57 = vpop.xlane.xlu0 %5526  ;;  %v3875_v40 = vpop.xlane.xlu1 %3874  ;;  %v4687_v23 = vsel %vm3983_vm1, %v4617_v61, 0.0  ;;  %v5255_v8 = vmul.f32 %v9539_v24, %v9670_v4 }
 0x60e   : > { %v5629_v58 = vrot.slane %v5527_v57, 2 }
 0x610   : > { %v5630_v42 = vsel %vm4341_vm4, %v5628_v37, %v5629_v58  ;;  %v9717_v15 = vadd.f32 %v5629_v58, %v5451_v53  ;;  %3901 = vadd.xlane.f32.xlu0 %v3900_v29  ;;  %v5500_v53 = vmul.f32 %v9742_v27, %v9634_v22  ;;  %v4933_v37 = vsel %vm1934_vm12, %v4863_v25, 0.0 }
 0x611   : > { %v9722_v51 = vadd.f32 %v5630_v42, %v5450_v1  ;;  %4931 = vadd.xlane.f32.xlu1 %v4930_v49  ;;  %v4028_v16 = vpop.xlane.xlu0 %4027  ;;  %v4662_v43 = vpop.xlane.xlu1 %4661  ;;  %v4539_v1 = vsel %vm3833_vm2, %v4469_v41, 0.0  ;;  %v3971_v29 = vmul.f32 %v9368_v10, %v9739_v34  ;;  %v4220_v41 = vmul.f32 %v9456_v33, %v9739_v34 }
 0x612   : > { %v4116_v59 = vrot.slane %v4028_v16, 1  ;;  %v5564_v58 = vsel %vm4228_vm0, %v5500_v53, 0.0  ;;  %v4754_v49 = vrot.slane %v4662_v43, 1  ;;  %v5321_v16 = vsel %vm3983_vm1, %v5255_v8, 0.0 }
 0x614   : > { %v4117_v31 = vsel %vm4093_vm3, %v4115_v38, %v4116_v59  ;;  %4688 = vadd.xlane.f32.xlu0 %v4687_v23  ;;  %v5107_v38 = vmul.f32 %v9638_v12, %v9670_v4  ;;  %v4041_v23 = vsel %vm3979_vm15, %v3971_v29, 0.0 }
 0x615   : > { %5319 = vadd.xlane.f32.xlu1 %v5318_v39  ;;  %v4276_v36 = vpop.xlane.xlu0 %4275  ;;  %v9733_v21 = vpop.xlane.xlu1 %4513  ;;  %v4178_v52 = vadd.f32 %v4117_v31, %v3875_v40  ;;  %v9776_v39 = vmax.f32 %v8952_v35, 0.0 }
 0x616   : > { %v4364_v32 = vrot.slane %v4276_v36, 2  ;;  %v5173_v7 = vsel %vm3833_vm2, %v5107_v38, 0.0  ;;  %v5501_v36 = vmul.f32 %v9742_v27, %v9670_v4  ;;  %v4466_v38 = vmul.f32 %v9513_v48, %v9739_v34 }
 0x617   : > { %v3972_v53 = vmul.f32 %v9368_v10, %v9776_v39  ;;  %v4221_v29 = vmul.f32 %v9456_v33, %v9776_v39  ;;  %v4861_v45 = vmul.f32 %v9525_v20, %v9776_v39 }
 0x618   : > { %4540 = vadd.xlane.f32.xlu0 %v4539_v1  ;;  %v4365_v55 = vsel %vm4341_vm4, %v4363_v28, %v4364_v32  ;;  %v3822_v28 = vmul.f32 %v9486_v63, %v9739_v34  ;;  %v5567_v35 = vsel %vm1934_vm12, %v5501_v36, 0.0  ;;  %v4530_v36 = vsel %vm1934_vm12, %v4466_v38, 0.0 }
 0x619   : > { %5171 = vadd.xlane.f32.xlu1 %v5170_v54  ;;  %v3878_v60 = vpop.xlane.xlu0 %3877  ;;  %v4908_v18 = vpop.xlane.xlu1 %4907  ;;  %v9747_v57 = vadd.f32 %v4365_v55, %v4178_v52  ;;  %v4289_v52 = vsel %vm4228_vm0, %v4220_v41, 0.0  ;;  %v4614_v55 = vmul.f32 %v9500_v3, %v9739_v34  ;;  %v4292_v41 = vsel %vm1934_vm12, %v4221_v29, 0.0 }
 0x61a   : > { %v4179_v40 = vadd.f32 %v4116_v59, %v3878_v60  ;;  %v5000_v25 = vrot.slane %v4908_v18, 2  ;;  %v3891_v4 = vsel %vm1934_vm12, %v3822_v28, 0.0  ;;  %v5252_v29 = vmul.f32 %v9539_v24, %v9739_v34 }
 0x61c   : > { %4934 = vadd.xlane.f32.xlu0 %v4933_v37  ;;  %v9755_v22 = vadd.f32 %v4364_v32, %v4179_v40 }
 0x61d   : > { %5565 = vadd.xlane.f32.xlu1 %v5564_v58  ;;  %v9757_v61 = vpop.xlane.xlu0 %4664  ;;  %v5296_v42 = vpop.xlane.xlu1 %5295  ;;  %v4044_v58 = vsel %vm3983_vm1, %v3972_v53, 0.0 }
 0x61e   : > { %v4755_v9 = vrot.slane %v9757_v61, 1  ;;  %v5391_v37 = vrot.slane %v5296_v42, 1  ;;  %v5499_v61 = vmul.f32 %v9742_v27, %v9776_v39 }
 0x620   : > { %v9766_v59 = vsel %vm4093_vm3, %v4754_v49, %v4755_v9  ;;  %5322 = vadd.xlane.f32.xlu0 %v5321_v16  ;;  %v4678_v16 = vsel %vm3979_vm15, %v4614_v55, 0.0  ;;  %v4615_v55 = vmul.f32 %v9500_v3, %v9776_v39 }
 0x621   : > { %4042 = vadd.xlane.f32.xlu1 %v4041_v23  ;;  %v9771_v43 = vpop.xlane.xlu0 %4516  ;;  %v9773_v31 = vpop.xlane.xlu1 %5147 }
 0x624   : > { %5174 = vadd.xlane.f32.xlu0 %v5173_v7  ;;  %v3823_v7 = vmul.f32 %v9486_v63, %v9776_v39 }
 0x625   : > { %4290 = vadd.xlane.f32.xlu1 %v4289_v52  ;;  %v9784_v32 = vpop.xlane.xlu0 %4910  ;;  %v5542_v1 = vpop.xlane.xlu1 %5541  ;;  %v4860_v52 = vmul.f32 %v9525_v20, %v9739_v34 }
 0x626   : > { %v5001_v54 = vrot.slane %v9784_v32, 2 }
 0x628   : > { %5568 = vadd.xlane.f32.xlu0 %v5567_v35  ;;  %v9796_v60 = vsel %vm4341_vm4, %v5000_v25, %v5001_v54  ;;  %v5637_v35 = vrot.slane %v5542_v1, 2 }
 0x629   : > { %3892 = vadd.xlane.f32.xlu1 %v3891_v4  ;;  %v9798_v18 = vpop.xlane.xlu0 %5298  ;;  %v4019_v40 = vpop.xlane.xlu1 %4018  ;;  %v3894_v4 = vsel %vm3833_vm2, %v3823_v7, 0.0  ;;  %v4681_v7 = vsel %vm3983_vm1, %v4615_v55, 0.0 }
 0x62a   : > { %v5392_v8 = vrot.slane %v9798_v18, 1  ;;  %v4112_v38 = vrot.slane %v4019_v40, 1 }
 0x62c   : > { %v9807_v49 = vsel %vm4093_vm3, %v5391_v37, %v5392_v8  ;;  %4045 = vadd.xlane.f32.xlu0 %v4044_v58  ;;  %v4924_v58 = vsel %vm4228_vm0, %v4860_v52, 0.0  ;;  %v5104_v52 = vmul.f32 %v9638_v12, %v9739_v34 }
 0x62d   : > { %4679 = vadd.xlane.f32.xlu1 %v4678_v16  ;;  %v9812_v42 = vpop.xlane.xlu0 %5150  ;;  %v4267_v23 = vpop.xlane.xlu1 %4266 }
 0x62e   : > { %v4360_v11 = vrot.slane %v4267_v23, 2 }
 0x630   : > { %4293 = vadd.xlane.f32.xlu0 %v4292_v41 }
 0x631   : > { %4531 = vadd.xlane.f32.xlu1 %v4530_v36  ;;  %v9820_v28 = vpop.xlane.xlu0 %5544  ;;  %v3869_v25 = vpop.xlane.xlu1 %3868  ;;  %v4467_v36 = vmul.f32 %v9513_v48, %v9776_v39 }
 0x632   : > { %v10495_v53 = vrot.slane %v9820_v28, 2 }
 0x633   : > { %v4533_v55 = vsel %vm3833_vm2, %v4467_v36, 0.0  ;;  %v4927_v36 = vsel %vm1934_vm12, %v4861_v45, 0.0 }
 0x634   : > { %v9829_v37 = vsel %vm4341_vm4, %v5637_v35, %v10495_v53  ;;  %3895 = vadd.xlane.f32.xlu0 %v3894_v4  ;;  %v5312_v35 = vsel %vm3979_vm15, %v5252_v29, 0.0 }
 0x635   : > { %4925 = vadd.xlane.f32.xlu1 %v4924_v58  ;;  %v4022_v1 = vpop.xlane.xlu0 %4021  ;;  %v4656_v16 = vpop.xlane.xlu1 %4655 }
 0x636   : > { %v4113_v41 = vrot.slane %v4022_v1, 1 }
 0x638   : > { %v4114_v6 = vsel %vm4093_vm3, %v4112_v38, %v4113_v41  ;;  %4682 = vadd.xlane.f32.xlu0 %v4681_v7  ;;  %v10530_v38 = vld [vmem:[#allocation29_spill] sm:$0xff] }
 0x639   : > { %v4176_v4 = vadd.f32 %v4114_v6, %v3869_v25  ;;  %5313 = vadd.xlane.f32.xlu1 %v5312_v35  ;;  %v4270_v58 = vpop.xlane.xlu0 %4269  ;;  %v4508_v14 = vpop.xlane.xlu1 %4507  ;;  %v9846_v7 = vmax.f32 %v10530_v38, 0.0  ;;  %v5164_v6 = vsel %vm1934_vm12, %v5104_v52, 0.0  ;;  %v5498_v25 = vmul.f32 %v9742_v27, %v9739_v34 }
 0x63a   : > { %v4361_v40 = vrot.slane %v4270_v58, 2  ;;  %v4570_v1 = vadd.f32 %v4508_v14, %v9530_v17  ;;  %v5253_v58 = vmul.f32 %v9539_v24, %v9776_v39 }
 0x63b   : > { %v3977_v52 = vmul.f32 %v9368_v10, %v9846_v7 }
 0x63c   : > { %v4362_v29 = vsel %vm4341_vm4, %v4360_v11, %v4361_v40  ;;  %4534 = vadd.xlane.f32.xlu0 %v4533_v55  ;;  %v5558_v11 = vsel %vm4228_vm0, %v5498_v25, 0.0 }
 0x63d   : > { %v4424_v23 = vadd.f32 %v4362_v29, %v4176_v4  ;;  %5165 = vadd.xlane.f32.xlu1 %v5164_v6  ;;  %v3872_v35 = vpop.xlane.xlu0 %3871  ;;  %v4902_v17 = vpop.xlane.xlu1 %4901  ;;  %v5315_v6 = vsel %vm3983_vm1, %v5253_v58, 0.0  ;;  %v4059_v10 = vsel %vm3979_vm15, %v3977_v52, 0.0  ;;  %v7440_v52 = vmov 0  }
 0x63e   : > { %v4177_v14 = vadd.f32 %v4113_v41, %v3872_v35  ;;  %v4751_v41 = vrot.slane %v4656_v16, 1  ;;  %v4997_v32 = vrot.slane %v4902_v17, 2  ;;  %7028 = vset.pattern.permute.xlu1 %v7440_v52  ;;  %7022 = vset.pattern.permute.xlu0 %v7440_v52  ;;  %v4620_v17 = vmul.f32 %v9500_v3, %v9846_v7 }
 0x63f   : > { %v4572_v38 = vadd.f32 %v9733_v21, %v4424_v23  ;;  %v5105_v21 = vmul.f32 %v9638_v12, %v9776_v39 }
 0x640   : > { %v4425_v53 = vadd.f32 %v4361_v40, %v4177_v14  ;;  %4928 = vadd.xlane.f32.xlu0 %v4927_v36  ;;  %v10531_v36 = vld [vmem:[#allocation31_spill] sm:$0xff] }
 0x641   : > { %5559 = vadd.xlane.f32.xlu1 %v5558_v11  ;;  %v4659_v34 = vpop.xlane.xlu0 %4658  ;;  %v5290_v4 = vpop.xlane.xlu1 %5289  ;;  %v4818_v55 = vadd.f32 %v9766_v59, %v4572_v38  ;;  %v4226_v59 = vmul.f32 %v9456_v33, %v9846_v7  ;;  %v9880_v58 = vmax.f32 %v10531_v36, 0.0  ;;  %v5167_v38 = vsel %vm3833_vm2, %v5105_v21, 0.0 }
 0x642   : > { %v4573_v45 = vadd.f32 %v9771_v43, %v4425_v53  ;;  %v4752_v29 = vrot.slane %v4659_v34, 1  ;;  %v5561_v34 = vsel %vm1934_vm12, %v5499_v61, 0.0 }
 0x643   : > { %v9865_v40 = vadd.f32 %v9796_v60, %v4818_v55  ;;  %v9889_v55 = vld [vmem:[#allocation19 + $0x1] ss:$0 sm:$0xff] }
 0x644   : > { %v4753_v25 = vsel %vm4093_vm3, %v4751_v41, %v4752_v29  ;;  %5316 = vadd.xlane.f32.xlu0 %v5315_v6  ;;  %v4819_v43 = vadd.f32 %v4755_v9, %v4573_v45  ;;  %v3978_v39 = vmul.f32 %v9889_v55, %v9880_v58 }
 0x645   : > { %v4816_v53 = vadd.f32 %v4753_v25, %v4570_v1  ;;  %4060 = vadd.xlane.f32.xlu1 %v4059_v10  ;;  %v4511_v16 = vpop.xlane.xlu0 %4510  ;;  %v5142_v23 = vpop.xlane.xlu1 %5141  ;;  %v4307_v1 = vsel %vm4228_vm0, %v4226_v59, 0.0  ;;  %v5388_v25 = vrot.slane %v5290_v4, 1 }
 0x646   : > { %v4571_v35 = vadd.f32 %v4511_v16, %v9543_v26  ;;  %v5208_v60 = vadd.f32 %v5142_v23, %v9655_v62  ;;  %v9877_v14 = vadd.f32 %v5001_v54, %v4819_v43  ;;  %v3828_v26 = vmul.f32 %v9486_v63, %v9846_v7 }
 0x647   : > { %v4062_v23 = vsel %vm3983_vm1, %v3978_v39, 0.0 }
 0x648   : > { %v4817_v9 = vadd.f32 %v4752_v29, %v4571_v35  ;;  %5168 = vadd.xlane.f32.xlu0 %v5167_v38  ;;  %v3909_v29 = vsel %vm1934_vm12, %v3828_v26, 0.0  ;;  %v4227_v35 = vmul.f32 %v9456_v33, %v9880_v58  ;;  %v10532_v33 = vrot.slane %v9820_v28, 2 }
 0x649   : > { %4308 = vadd.xlane.f32.xlu1 %v4307_v1  ;;  %v4905_v62 = vpop.xlane.xlu0 %4904  ;;  %v3829_v26 = vmul.f32 %v9486_v63, %v9880_v58 }
 0x64a   : > { %v4998_v54 = vrot.slane %v4905_v62, 2  ;;  %v5536_v11 = vpop.xlane.xlu1 %5535 }
 0x64b   : > { %v3912_v63 = vsel %vm3833_vm2, %v3829_v26, 0.0  ;;  %v5504_v26 = vmul.f32 %v9742_v27, %v9846_v7 }
 0x64c   : > { %v4999_v41 = vsel %vm4341_vm4, %v4997_v32, %v4998_v54  ;;  %v5063_v45 = vadd.f32 %v4998_v54, %v4817_v9  ;;  %5562 = vadd.xlane.f32.xlu0 %v5561_v34  ;;  %v5634_v54 = vrot.slane %v5536_v11, 2 }
 0x64d   : > { %v5062_v6 = vadd.f32 %v4999_v41, %v4816_v53  ;;  %3910 = vadd.xlane.f32.xlu1 %v3909_v29  ;;  %v5293_v21 = vpop.xlane.xlu0 %5292  ;;  %v4696_v53 = vsel %vm3979_vm15, %v4620_v17, 0.0  ;;  %v5258_v29 = vmul.f32 %v9539_v24, %v9846_v7 }
 0x64e   : > { %v5211_v10 = vadd.f32 %v9812_v42, %v5063_v45  ;;  %v5389_v59 = vrot.slane %v5293_v21, 1  ;;  %v4037_v43 = vpop.xlane.xlu1 %4036  ;;  %v4472_v42 = vmul.f32 %v9513_v48, %v9846_v7 }
 0x64f   : > { %v5210_v16 = vadd.f32 %v9773_v31, %v5062_v6  ;;  %v4121_v6 = vrot.slane %v4037_v43, 1 }
 0x650   : > { %v5457_v36 = vadd.f32 %v5392_v8, %v5211_v10  ;;  %v5390_v38 = vsel %vm4093_vm3, %v5388_v25, %v5389_v59  ;;  %4063 = vadd.xlane.f32.xlu0 %v4062_v23  ;;  %v4310_v8 = vsel %vm1934_vm12, %v4227_v35, 0.0  ;;  %v5330_v35 = vsel %vm3979_vm15, %v5258_v29, 0.0 }
 0x651   : > { %v5456_v4 = vadd.f32 %v9807_v49, %v5210_v16  ;;  %v5454_v61 = vadd.f32 %v5390_v38, %v5208_v60  ;;  %4697 = vadd.xlane.f32.xlu1 %v4696_v53  ;;  %v5145_v31 = vpop.xlane.xlu0 %5144  ;;  %v4548_v49 = vsel %vm1934_vm12, %v4472_v42, 0.0  ;;  %v4473_v16 = vmul.f32 %v9513_v48, %v9880_v58 }
 0x652   : > { %v5209_v9 = vadd.f32 %v5145_v31, %v9667_v19  ;;  %v4285_v1 = vpop.xlane.xlu1 %4284  ;;  %v9912_v18 = vadd.f32 %v10532_v33, %v5457_v36  ;;  %v4866_v19 = vmul.f32 %v9525_v20, %v9846_v7  ;;  %v5110_v36 = vmul.f32 %v9638_v12, %v9846_v7 }
 0x653   : > { %v9918_v62 = vadd.f32 %v9829_v37, %v5456_v4  ;;  %v4621_v37 = vmul.f32 %v9500_v3, %v9880_v58  ;;  %v4369_v53 = vrot.slane %v4285_v1, 2  ;;  %v4867_v31 = vmul.f32 %v9525_v20, %v9880_v58 }
 0x654   : > { %v5455_v32 = vadd.f32 %v5389_v59, %v5209_v9  ;;  %4311 = vadd.xlane.f32.xlu0 %v4310_v8  ;;  %v4942_v45 = vsel %vm4228_vm0, %v4866_v19, 0.0  ;;  %v10533_v9 = vld [vmem:[#allocation30_spill] sm:$0xff]  ;;  %v5182_v8 = vsel %vm1934_vm12, %v5110_v36, 0.0  ;;  %v10534_v36 = vld [vmem:[#allocation32_spill] sm:$0xff] }
 0x655   : > { %4549 = vadd.xlane.f32.xlu1 %v4548_v49  ;;  %v5539_v60 = vpop.xlane.xlu0 %5538  ;;  %v7049_v28 = vpack.i.bf16 %v9912_v18, %v9918_v62  ;;  %v4699_v59 = vsel %vm3983_vm1, %v4621_v37, 0.0  ;;  %v9951_v33 = vmax.f32 %v10533_v9, 0.0 }
 0x656   : > { %v5635_v52 = vrot.slane %v5539_v60, 2  ;;  %v3887_v34 = vpop.xlane.xlu1 %3886 }
 0x658   : > { %v5636_v39 = vsel %vm4341_vm4, %v5634_v54, %v5635_v52  ;;  %v9929_v41 = vadd.f32 %v5635_v52, %v5455_v32  ;;  %3913 = vadd.xlane.f32.xlu0 %v3912_v63  ;;  %v4945_v54 = vsel %vm1934_vm12, %v4867_v31, 0.0  ;;  %v5259_v52 = vmul.f32 %v9539_v24, %v9880_v58 }
 0x659   : > { %v9934_v17 = vadd.f32 %v5636_v39, %v5454_v61  ;;  %4943 = vadd.xlane.f32.xlu1 %v4942_v45  ;;  %v4040_v11 = vpop.xlane.xlu0 %4039  ;;  %v4551_v61 = vsel %vm3833_vm2, %v4473_v16, 0.0  ;;  %v3975_v63 = vmul.f32 %v9889_v55, %v9951_v33 }
 0x65a   : > { %v4122_v21 = vrot.slane %v4040_v11, 1  ;;  %v4674_v25 = vpop.xlane.xlu1 %4673  ;;  %v5333_v11 = vsel %vm3983_vm1, %v5259_v52, 0.0 }
 0x65b   : > { %v7044_v10 = vpack.i.bf16 %v9929_v41, %v9934_v17  ;;  %v4760_v39 = vrot.slane %v4674_v25, 1  ;;  %v10542_v41 = vpack.i.bf16 %v9474_v13, %v9481_v50 }
 0x65c   : > { %v4123_v23 = vsel %vm4093_vm3, %v4121_v6, %v4122_v21  ;;  %4700 = vadd.xlane.f32.xlu0 %v4699_v59  ;;  %v5111_v6 = vmul.f32 %v9638_v12, %v9880_v58  ;;  %v7143_v59 = vld [vmem:[#allocation19 + $0x2] ss:$0 sm:$0xff] }
 0x65d   : > { %5331 = vadd.xlane.f32.xlu1 %v5330_v35  ;;  %v4288_v43 = vpop.xlane.xlu0 %4287  ;;  %v4182_v38 = vadd.f32 %v4123_v23, %v3887_v34  ;;  %v5576_v34 = vsel %vm4228_vm0, %v5504_v26, 0.0  ;;  %v4224_v16 = vmul.f32 %v7143_v59, %v9951_v33 }
 0x65e   : > { %v4370_v42 = vrot.slane %v4288_v43, 2  ;;  %v9945_v4 = vpop.xlane.xlu1 %4525  ;;  %v9983_v43 = vmax.f32 %v10534_v36, 0.0 }
 0x660   : > { %4552 = vadd.xlane.f32.xlu0 %v4551_v61  ;;  %v4371_v32 = vsel %vm4341_vm4, %v4369_v53, %v4370_v42  ;;  %v5505_v53 = vmul.f32 %v9742_v27, %v9880_v58  ;;  %v7144_v61 = vld [vmem:[#allocation19] ss:$0 sm:$0xff] }
 0x661   : > { %5183 = vadd.xlane.f32.xlu1 %v5182_v8  ;;  %v3890_v1 = vpop.xlane.xlu0 %3889  ;;  %v9957_v49 = vadd.f32 %v4371_v32, %v4182_v38  ;;  %v5185_v38 = vsel %vm3833_vm2, %v5111_v6, 0.0  ;;  %v3826_v31 = vmul.f32 %v7144_v61, %v9951_v33 }
 0x662   : > { %v4183_v19 = vadd.f32 %v4122_v21, %v3890_v1  ;;  %v4920_v60 = vpop.xlane.xlu1 %4919  ;;  %v4053_v21 = vsel %vm3979_vm15, %v3975_v63, 0.0  ;;  %v5579_v1 = vsel %vm1934_vm12, %v5505_v53, 0.0 }
 0x663   : > { %v5006_v8 = vrot.slane %v4920_v60, 2  ;;  %v3903_v58 = vsel %vm1934_vm12, %v3826_v31, 0.0 }
 0x664   : > { %4946 = vadd.xlane.f32.xlu0 %v4945_v54  ;;  %v9965_v7 = vadd.f32 %v4370_v42, %v4183_v19  ;;  %v4301_v42 = vsel %vm4228_vm0, %v4224_v16, 0.0  ;;  %v3976_v19 = vmul.f32 %v9889_v55, %v9983_v43  ;;  %v4618_v54 = vmul.f32 %v9500_v3, %v9951_v33 }
 0x665   : > { %5577 = vadd.xlane.f32.xlu1 %v5576_v34  ;;  %v9967_v37 = vpop.xlane.xlu0 %4676  ;;  %v4225_v55 = vmul.f32 %v7143_v59, %v9983_v43  ;;  %v4470_v3 = vmul.f32 %v9513_v48, %v9951_v33  ;;  %v3827_v59 = vmul.f32 %v7144_v61, %v9983_v43  ;;  %v4864_v48 = vmul.f32 %v9525_v20, %v9951_v33 }
 0x666   : > { %v4761_v45 = vrot.slane %v9967_v37, 1  ;;  %v5308_v29 = vpop.xlane.xlu1 %5307  ;;  %v4690_v6 = vsel %vm3979_vm15, %v4618_v54, 0.0  ;;  %v10536_v37 = vld [vmem:[#allocation34_spill] sm:$0xff] }
 0x667   : > { %v5397_v34 = vrot.slane %v5308_v29, 1  ;;  %v4304_v53 = vsel %vm1934_vm12, %v4225_v55, 0.0  ;;  %v4542_v31 = vsel %vm1934_vm12, %v4470_v3, 0.0  ;;  %v4936_v20 = vsel %vm4228_vm0, %v4864_v48, 0.0 }
 0x668   : > { %5334 = vadd.xlane.f32.xlu0 %v5333_v11  ;;  %v9978_v23 = vsel %vm4093_vm3, %v4760_v39, %v4761_v45  ;;  %v4056_v11 = vsel %vm3983_vm1, %v3976_v19, 0.0 }
 0x669   : > { %4054 = vadd.xlane.f32.xlu1 %v4053_v21  ;;  %v9980_v25 = vpop.xlane.xlu0 %4528 }
 0x66a   : > { %v4031_v35 = vpop.xlane.xlu1 %4030 }
 0x66b   : > { %v4118_v16 = vrot.slane %v4031_v35, 1 }
 0x66c   : > { %5186 = vadd.xlane.f32.xlu0 %v5185_v38 }
 0x66d   : > { %4302 = vadd.xlane.f32.xlu1 %v4301_v42  ;;  %v9990_v9 = vpop.xlane.xlu0 %4922 }
 0x66e   : > { %v5007_v26 = vrot.slane %v9990_v9, 2  ;;  %v4279_v32 = vpop.xlane.xlu1 %4278 }
 0x66f   : > { %v4366_v19 = vrot.slane %v4279_v32, 2 }
 0x670   : > { %5580 = vadd.xlane.f32.xlu0 %v5579_v1  ;;  %v5008_v52 = vsel %vm4341_vm4, %v5006_v8, %v5007_v26 }
 0x671   : > { %3904 = vadd.xlane.f32.xlu1 %v3903_v58  ;;  %v10002_v60 = vpop.xlane.xlu0 %5310 }
 0x672   : > { %v10496_v63 = vrot.slane %v10002_v60, 1  ;;  %v3881_v39 = vpop.xlane.xlu1 %3880 }
 0x674   : > { %4057 = vadd.xlane.f32.xlu0 %v4056_v11  ;;  %v10013_v21 = vsel %vm4093_vm3, %v5397_v34, %v10496_v63  ;;  %v3906_v34 = vsel %vm3833_vm2, %v3827_v59, 0.0  ;;  %v10023_v11 = vld [vmem:[#allocation19 + $0x4] ss:$0 sm:$0xff] }
 0x675   : > { %4691 = vadd.xlane.f32.xlu1 %v4690_v6  ;;  %v4034_v29 = vpop.xlane.xlu0 %4033  ;;  %v4619_v61 = vmul.f32 %v10023_v11, %v9983_v43 }
 0x676   : > { %v4119_v36 = vrot.slane %v4034_v29, 1  ;;  %v4668_v38 = vpop.xlane.xlu1 %4667 }
 0x677   : > { %v4693_v29 = vsel %vm3983_vm1, %v4619_v61, 0.0 }
 0x678   : > { %v4120_v42 = vsel %vm4093_vm3, %v4118_v16, %v4119_v36  ;;  %4305 = vadd.xlane.f32.xlu0 %v4304_v53  ;;  %v10032_v16 = vld [vmem:[#allocation19 + $0x3] ss:$0 sm:$0xff] }
 0x679   : > { %v4180_v8 = vadd.f32 %v4120_v42, %v3881_v39  ;;  %4543 = vadd.xlane.f32.xlu1 %v4542_v31  ;;  %v4282_v1 = vpop.xlane.xlu0 %4281  ;;  %v5256_v39 = vmul.f32 %v9539_v24, %v9951_v33  ;;  %v4471_v53 = vmul.f32 %v10032_v16, %v9983_v43  ;;  %v5108_v24 = vmul.f32 %v9638_v12, %v9951_v33 }
 0x67a   : > { %v4367_v58 = vrot.slane %v4282_v1, 2  ;;  %v4520_v35 = vpop.xlane.xlu1 %4519 }
 0x67b   : > { %v4574_v54 = vadd.f32 %v4520_v35, %v9747_v57  ;;  %v5324_v31 = vsel %vm3979_vm15, %v5256_v39, 0.0 }
 0x67c   : > { %v4368_v55 = vsel %vm4341_vm4, %v4366_v19, %v4367_v58  ;;  %3907 = vadd.xlane.f32.xlu0 %v3906_v34  ;;  %v10535_v34 = vld [vmem:[#allocation33_spill] sm:$0xff] }
 0x67d   : > { %v4428_v32 = vadd.f32 %v4368_v55, %v4180_v8  ;;  %4937 = vadd.xlane.f32.xlu1 %v4936_v20  ;;  %v3884_v6 = vpop.xlane.xlu0 %3883  ;;  %v4757_v8 = vrot.slane %v4668_v38, 1  ;;  %v10043_v61 = vmax.f32 %v10535_v34, 0.0 }
 0x67e   : > { %v4181_v3 = vadd.f32 %v4119_v36, %v3884_v6  ;;  %v4914_v57 = vpop.xlane.xlu1 %4913 }
 0x67f   : > { %v4576_v59 = vadd.f32 %v9945_v4, %v4428_v32  ;;  %v4545_v4 = vsel %vm3833_vm2, %v4471_v53, 0.0 }
 0x680   : > { %v4429_v42 = vadd.f32 %v4367_v58, %v4181_v3  ;;  %4694 = vadd.xlane.f32.xlu0 %v4693_v29  ;;  %v10046_v58 = vld [vmem:[#allocation19 + $0x5] ss:$0 sm:$0xff] }
 0x681   : > { %5325 = vadd.xlane.f32.xlu1 %v5324_v31  ;;  %v4671_v48 = vpop.xlane.xlu0 %4670  ;;  %v4822_v36 = vadd.f32 %v9978_v23, %v4576_v59  ;;  %v4865_v55 = vmul.f32 %v10046_v58, %v9983_v43  ;;  %v5176_v23 = vsel %vm1934_vm12, %v5108_v24, 0.0  ;;  %v10064_v59 = vld [vmem:[#allocation19 + $0x7] ss:$0 sm:$0xff] }
 0x682   : > { %v4577_v1 = vadd.f32 %v9980_v25, %v4429_v42  ;;  %v4758_v19 = vrot.slane %v4671_v48, 1  ;;  %v5302_v35 = vpop.xlane.xlu1 %5301  ;;  %v5502_v25 = vmul.f32 %v9742_v27, %v9951_v33  ;;  %v5257_v33 = vmul.f32 %v10064_v59, %v9983_v43 }
 0x683   : > { %v10050_v20 = vadd.f32 %v5008_v52, %v4822_v36  ;;  %v4939_v53 = vsel %vm1934_vm12, %v4865_v55, 0.0  ;;  %v5109_v36 = vmul.f32 %v9638_v12, %v9983_v43  ;;  %v5394_v55 = vrot.slane %v5302_v35, 1 }
 0x684   : > { %4546 = vadd.xlane.f32.xlu0 %v4545_v4  ;;  %v4823_v38 = vadd.f32 %v4761_v45, %v4577_v1  ;;  %v4759_v39 = vsel %vm4093_vm3, %v4757_v8, %v4758_v19  ;;  %v10069_v45 = vmax.f32 %v10536_v37, 0.0  ;;  %v5327_v48 = vsel %vm3983_vm1, %v5257_v33, 0.0 }
 0x685   : > { %5177 = vadd.xlane.f32.xlu1 %v5176_v23  ;;  %v4523_v32 = vpop.xlane.xlu0 %4522  ;;  %v4820_v6 = vadd.f32 %v4759_v39, %v4574_v54  ;;  %v5570_v54 = vsel %vm4228_vm0, %v5502_v25, 0.0 }
 0x686   : > { %v4575_v3 = vadd.f32 %v4523_v32, %v9755_v22  ;;  %v5154_v29 = vpop.xlane.xlu1 %5153  ;;  %v10061_v52 = vadd.f32 %v5007_v26, %v4823_v38  ;;  %v5262_v22 = vmul.f32 %v10064_v59, %v10043_v61  ;;  %v5003_v26 = vrot.slane %v4914_v57, 2  ;;  %v10537_v38 = vld [vmem:[#allocation35_spill] sm:$0xff] }
 0x687   : > { %v4622_v1 = vmul.f32 %v10023_v11, %v10069_v45  ;;  %v10090_v12 = vmax.f32 %v10537_v38, 0.0  ;;  %v5212_v39 = vadd.f32 %v5154_v29, %v9865_v40  ;;  %v5179_v32 = vsel %vm3833_vm2, %v5109_v36, 0.0  ;;  %v10538_v29 = vld [vmem:[#allocation36_spill] sm:$0xff] }
 0x688   : > { %v4821_v42 = vadd.f32 %v4758_v19, %v4575_v3  ;;  %4940 = vadd.xlane.f32.xlu0 %v4939_v53  ;;  %v5342_v8 = vsel %vm3979_vm15, %v5262_v22, 0.0  ;;  %v5503_v3 = vmul.f32 %v9742_v27, %v9983_v43  ;;  %v4474_v35 = vmul.f32 %v10032_v16, %v10069_v45 }
 0x689   : > { %5571 = vadd.xlane.f32.xlu1 %v5570_v54  ;;  %v4917_v9 = vpop.xlane.xlu0 %4916  ;;  %v10106_v54 = vmax.f32 %v10538_v29, 0.0  ;;  %v5263_v22 = vmul.f32 %v10064_v59, %v10090_v12 }
 0x68a   : > { %v5004_v31 = vrot.slane %v4917_v9, 2  ;;  %v10074_v24 = vpop.xlane.xlu1 %4048  ;;  %v5573_v43 = vsel %vm1934_vm12, %v5503_v3, 0.0 }
 0x68b   : > { %v5345_v36 = vsel %vm3983_vm1, %v5263_v22, 0.0  ;;  %v4475_v38 = vmul.f32 %v10032_v16, %v10106_v54  ;;  %v5261_v22 = vmul.f32 %v10064_v59, %v10106_v54 }
 0x68c   : > { %5328 = vadd.xlane.f32.xlu0 %v5327_v48  ;;  %v5005_v19 = vsel %vm4341_vm4, %v5003_v26, %v5004_v31  ;;  %v10083_v34 = vadd.f32 %v5004_v31, %v4821_v42  ;;  %v4554_v26 = vsel %vm1934_vm12, %v4474_v35, 0.0  ;;  %v4868_v31 = vmul.f32 %v10046_v58, %v10069_v45 }
 0x68d   : > { %5343 = vadd.xlane.f32.xlu1 %v5342_v8  ;;  %v5305_v57 = vpop.xlane.xlu0 %5304  ;;  %v10085_v4 = vadd.f32 %v5005_v19, %v4820_v6  ;;  %v4702_v6 = vsel %vm3979_vm15, %v4622_v1, 0.0  ;;  %v4623_v8 = vmul.f32 %v10023_v11, %v10106_v54  ;;  %v5260_v19 = vmul.f32 %v10064_v59, %v10069_v45  ;;  %v7149_v11 = vld [vmem:[#allocation19 + $0x6] ss:$0 sm:$0xff] }
 0x68e   : > { %v5395_v23 = vrot.slane %v5305_v57, 1  ;;  %v10087_v25 = vpop.xlane.xlu1 %4296  ;;  %v4948_v1 = vsel %vm4228_vm0, %v4868_v31, 0.0  ;;  %v4869_v35 = vmul.f32 %v10046_v58, %v10106_v54  ;;  %v5102_v16 = vmul.f32 %v7149_v11, %v9423_v44 }
 0x68f   : > { %v5114_v58 = vmul.f32 %v7149_v11, %v10043_v61  ;;  %v5494_v59 = vmul.f32 %v9742_v27, %v9536_v0 }
 0x690   : > { %v5396_v53 = vsel %vm4093_vm3, %v5394_v55, %v5395_v23  ;;  %5180 = vadd.xlane.f32.xlu0 %v5179_v32  ;;  %v5112_v32 = vmul.f32 %v7149_v11, %v10069_v45 }
 0x691   : > { %v10100_v33 = vadd.f32 %v5396_v53, %v5212_v39  ;;  %4703 = vadd.xlane.f32.xlu1 %v4702_v6  ;;  %v5157_v37 = vpop.xlane.xlu0 %5156  ;;  %v5336_v39 = vsel %vm3979_vm15, %v5260_v19, 0.0  ;;  %v4557_v6 = vsel %vm3833_vm2, %v4475_v38, 0.0  ;;  %v5194_v19 = vsel %vm1934_vm12, %v5114_v58, 0.0 }
 0x692   : > { %v5213_v42 = vadd.f32 %v5157_v37, %v9877_v14  ;;  %v10103_v40 = vpop.xlane.xlu1 %3898  ;;  %v5188_v37 = vsel %vm1934_vm12, %v5112_v32, 0.0  ;;  %v5103_v32 = vmul.f32 %v7149_v11, %v9468_v47 }
 0x694   : > { %v10111_v9 = vadd.f32 %v5395_v23, %v5213_v42  ;;  %5574 = vadd.xlane.f32.xlu0 %v5573_v43  ;;  %v4705_v23 = vsel %vm3983_vm1, %v4623_v8, 0.0  ;;  %v4951_v43 = vsel %vm1934_vm12, %v4869_v35, 0.0  ;;  %v5339_v8 = vsel %vm3983_vm1, %v5261_v22, 0.0 }
 0x695   : > { %4555 = vadd.xlane.f32.xlu1 %v4554_v26  ;;  %v10116_v14 = vpop.xlane.xlu0 %4051  ;;  %v5158_v26 = vsel %vm1934_vm12, %v5102_v16, 0.0  ;;  %v5506_v35 = vmul.f32 %v9742_v27, %v10069_v45  ;;  %v5161_v0 = vsel %vm3833_vm2, %v5103_v32, 0.0  ;;  %v5507_v32 = vmul.f32 %v9742_v27, %v10106_v54 }
 0x696   : > { %v10118_v48 = vpop.xlane.xlu1 %4685 }
 0x697   : > { %v5582_v22 = vsel %vm4228_vm0, %v5506_v35, 0.0 }
 0x698   : > { %5346 = vadd.xlane.f32.xlu0 %v5345_v36 }
 0x699   : > { %4949 = vadd.xlane.f32.xlu1 %v4948_v1  ;;  %v10126_v57 = vpop.xlane.xlu0 %4299  ;;  %v5113_v1 = vmul.f32 %v7149_v11, %v10106_v54 }
 0x69a   : > { %v10128_v55 = vpop.xlane.xlu1 %4537 }
 0x69c   : > { %4706 = vadd.xlane.f32.xlu0 %v4705_v23 }
 0x69d   : > { %5337 = vadd.xlane.f32.xlu1 %v5336_v39  ;;  %v10135_v3 = vpop.xlane.xlu0 %3901  ;;  %v5191_v39 = vsel %vm3833_vm2, %v5113_v1, 0.0  ;;  %v5495_v1 = vmul.f32 %v9742_v27, %v9573_v30 }
 0x69e   : > { %v10137_v53 = vpop.xlane.xlu1 %4931 }
 0x6a0   : > { %4558 = vadd.xlane.f32.xlu0 %v4557_v6  ;;  %v5546_v6 = vsel %vm4228_vm0, %v5494_v59, 0.0 }
 0x6a1   : > { %5189 = vadd.xlane.f32.xlu1 %v5188_v37  ;;  %v10144_v42 = vpop.xlane.xlu0 %4688 }
 0x6a2   : > { %v10146_v29 = vpop.xlane.xlu1 %5319 }
 0x6a4   : > { %4952 = vadd.xlane.f32.xlu0 %v4951_v43  ;;  %v5115_v43 = vmul.f32 %v7149_v11, %v10090_v12  ;;  %v5508_v11 = vmul.f32 %v9742_v27, %v10043_v61  ;;  %v5497_v61 = vmul.f32 %v9742_v27, %v9468_v47 }
 0x6a5   : > { %5159 = vadd.xlane.f32.xlu1 %v5158_v26  ;;  %v10153_v31 = vpop.xlane.xlu0 %4540  ;;  %v5496_v26 = vmul.f32 %v9742_v27, %v9423_v44  ;;  %v5549_v44 = vsel %vm1934_vm12, %v5495_v1, 0.0 }
 0x6a6   : > { %v10155_v36 = vpop.xlane.xlu1 %5171  ;;  %v5197_v45 = vsel %vm3833_vm2, %v5115_v43, 0.0 }
 0x6a8   : > { %5340 = vadd.xlane.f32.xlu0 %v5339_v8 }
 0x6a9   : > { %5195 = vadd.xlane.f32.xlu1 %v5194_v19  ;;  %v10162_v23 = vpop.xlane.xlu0 %4934  ;;  %v5552_v19 = vsel %vm4228_vm0, %v5496_v26, 0.0 }
 0x6aa   : > { %v10164_v38 = vpop.xlane.xlu1 %5565 }
 0x6ac   : > { %5192 = vadd.xlane.f32.xlu0 %v5191_v39 }
 0x6ad   : > { %5547 = vadd.xlane.f32.xlu1 %v5546_v6  ;;  %v10171_v37 = vpop.xlane.xlu0 %5322  ;;  %v5588_v6 = vsel %vm4228_vm0, %v5508_v11, 0.0  ;;  %v5555_v11 = vsel %vm1934_vm12, %v5497_v61, 0.0  ;;  %vm7443_vm0 = vmmov 1  }
 0x6ae   : > { %v4043_v16 = vpop.xlane.xlu1 %4042  ;;  %vm6876_vm1 = vmpackc.low %vm4341_vm4, %vm7443_vm0 }
 0x6af   : > { %v4124_v35 = vrot.slane %v4043_v16, 1  ;;  %v5509_v16 = vmul.f32 %v9742_v27, %v10090_v12  ;;  %v10539_v12 = vpack.i.bf16 %v9504_v56, %v9506_v46 }
 0x6b0   : > { %5162 = vadd.xlane.f32.xlu0 %v5161_v0 }
 0x6b1   : > { %5583 = vadd.xlane.f32.xlu1 %v5582_v22  ;;  %v10178_v58 = vpop.xlane.xlu0 %5174  ;;  %v5585_v22 = vsel %vm1934_vm12, %v5507_v32, 0.0 }
 0x6b2   : > { %v4291_v8 = vpop.xlane.xlu1 %4290 }
 0x6b3   : > { %v4372_v1 = vrot.slane %v4291_v8, 2 }
 0x6b4   : > { %5198 = vadd.xlane.f32.xlu0 %v5197_v45 }
 0x6b5   : > { %5553 = vadd.xlane.f32.xlu1 %v5552_v19  ;;  %v10186_v59 = vpop.xlane.xlu0 %5568 }
 0x6b6   : > { %v3893_v39 = vpop.xlane.xlu1 %3892 }
 0x6b8   : > { %5550 = vadd.xlane.f32.xlu0 %v5549_v44 }
 0x6b9   : > { %5589 = vadd.xlane.f32.xlu1 %v5588_v6  ;;  %v4046_v30 = vpop.xlane.xlu0 %4045 }
 0x6ba   : > { %v4125_v0 = vrot.slane %v4046_v30, 1  ;;  %v4680_v43 = vpop.xlane.xlu1 %4679 }
 0x6bc   : > { %v4126_v26 = vsel %vm4093_vm3, %v4124_v35, %v4125_v0  ;;  %5586 = vadd.xlane.f32.xlu0 %v5585_v22  ;;  %v5591_v35 = vsel %vm1934_vm12, %v5509_v16, 0.0  ;;  %vm5986_vm12 = vcmask 1046534  }
 0x6bd   : > { %v4294_v45 = vpop.xlane.xlu0 %4293  ;;  %v4184_v44 = vadd.f32 %v4126_v26, %v3893_v39 }
 0x6be   : > { %v4373_v19 = vrot.slane %v4294_v45, 2  ;;  %v4532_v54 = vpop.xlane.xlu1 %4531  ;;  %v4763_v45 = vrot.slane %v4680_v43, 1 }
 0x6c0   : > { %v4374_v6 = vsel %vm4341_vm4, %v4372_v1, %v4373_v19  ;;  %5556 = vadd.xlane.f32.xlu0 %v5555_v11 }
 0x6c1   : > { %v10200_v32 = vadd.f32 %v4374_v6, %v4184_v44  ;;  %v3896_v30 = vpop.xlane.xlu0 %3895  ;;  %v4578_v44 = vadd.f32 %v4532_v54, %v9957_v49  ;;  %v5650_v49 = vrot.slane %v10186_v59, 2  ;;  %v10541_v54 = vpack.i.bf16 %v9700_v5, %v9706_v2 }
 0x6c2   : > { %v4185_v47 = vadd.f32 %v4125_v0, %v3896_v30  ;;  %v4926_v63 = vpop.xlane.xlu1 %4925  ;;  %v10540_v30 = vpack.i.bf16 %v9717_v15, %v9722_v51 }
 0x6c4   : > { %v10203_v22 = vadd.f32 %v4373_v19, %v4185_v47  ;;  %5592 = vadd.xlane.f32.xlu0 %v5591_v35  ;;  %v5009_v19 = vrot.slane %v4926_v63, 2 }
 0x6c5   : > { %v4683_v8 = vpop.xlane.xlu0 %4682 }
 0x6c6   : > { %v5314_v39 = vpop.xlane.xlu1 %5313  ;;  %v4764_v26 = vrot.slane %v4683_v8, 1 }
 0x6c7   : > { %v5400_v59 = vrot.slane %v5314_v39, 1 }
 0x6c8   : > { %v4765_v0 = vsel %vm4093_vm3, %v4763_v45, %v4764_v26 }
 0x6c9   : > { %v4535_v61 = vpop.xlane.xlu0 %4534  ;;  %v4824_v47 = vadd.f32 %v4765_v0, %v4578_v44 }
 0x6ca   : > { %v4579_v27 = vadd.f32 %v4535_v61, %v9965_v7  ;;  %7030 = vperm.xlu1 %7028, %v10539_v12   ;;  %v5166_v1 = vpop.xlane.xlu1 %5165  ;;  %v5404_v7 = vrot.slane %v10171_v37, 1  ;;  %v5403_v61 = vrot.slane %v10146_v29, 1  ;;  %v5649_v37 = vrot.slane %v10164_v38, 2 }
 0x6cb   : > { %v5216_v38 = vadd.f32 %v5166_v1, %v10050_v20 }
 0x6cc   : > { %v4825_v16 = vadd.f32 %v4764_v26, %v4579_v27  ;;  %v5405_v26 = vsel %vm4093_vm3, %v5403_v61, %v5404_v7  ;;  %v5651_v29 = vsel %vm4341_vm4, %v5649_v37, %v5650_v49 }
 0x6cd   : > { %v4929_v11 = vpop.xlane.xlu0 %4928 }
 0x6ce   : > { %v5010_v6 = vrot.slane %v4929_v11, 2  ;;  %7035 = vperm.xlu1 %7028, %v10540_v30   ;;  %v5560_v43 = vpop.xlane.xlu1 %5559 }
 0x6d0   : > { %v5011_v56 = vsel %vm4341_vm4, %v5009_v19, %v5010_v6  ;;  %v5071_v46 = vadd.f32 %v5010_v6, %v4825_v16  ;;  %v5646_v16 = vrot.slane %v5560_v43, 2 }
 0x6d1   : > { %v5070_v35 = vadd.f32 %v5011_v56, %v4824_v47  ;;  %v5317_v8 = vpop.xlane.xlu0 %5316 }
 0x6d2   : > { %v5219_v63 = vadd.f32 %v10178_v58, %v5071_v46  ;;  %7040 = vperm.xlu1 %7028, %v10541_v54   ;;  %v4061_v15 = vpop.xlane.xlu1 %4060  ;;  %v5401_v27 = vrot.slane %v5317_v8, 1 }
 0x6d3   : > { %v5218_v51 = vadd.f32 %v10155_v36, %v5070_v35  ;;  %v4133_v1 = vrot.slane %v4061_v15, 1 }
 0x6d4   : > { %v5465_v45 = vadd.f32 %v5404_v7, %v5219_v63  ;;  %v5402_v36 = vsel %vm4093_vm3, %v5400_v59, %v5401_v27 }
 0x6d5   : > { %v5464_v12 = vadd.f32 %v5405_v26, %v5218_v51  ;;  %v5169_v0 = vpop.xlane.xlu0 %5168  ;;  %v5462_v17 = vadd.f32 %v5402_v36, %v5216_v38 }
 0x6d6   : > { %v5711_v44 = vadd.f32 %v5650_v49, %v5465_v45  ;;  %v5217_v58 = vadd.f32 %v5169_v0, %v10061_v52  ;;  %7045 = vperm.xlu1 %7028, %v7044_v10   ;;  %v4309_v5 = vpop.xlane.xlu1 %4308 }
 0x6d7   : > { %v5710_v2 = vadd.f32 %v5651_v29, %v5464_v12  ;;  %v4381_v62 = vrot.slane %v4309_v5, 2 }
 0x6d8   : > { %v5463_v6 = vadd.f32 %v5401_v27, %v5217_v58 }
 0x6d9   : > { %v5563_v11 = vpop.xlane.xlu0 %5562  ;;  %v7069_v19 = vpack.i.bf16 %v5711_v44, %v5710_v2 }
 0x6da   : > { %v5647_v30 = vrot.slane %v5563_v11, 2  ;;  %7050 = vperm.xlu1 %7028, %v7049_v28   ;;  %v3911_v52 = vpop.xlane.xlu1 %3910  ;;  %7024 = vperm.xlu0 %7022, %v10542_v41  }
 0x6dc   : > { %v5648_v10 = vsel %vm4341_vm4, %v5646_v16, %v5647_v30  ;;  %v5709_v39 = vadd.f32 %v5647_v30, %v5463_v6 }
 0x6dd   : > { %v5708_v47 = vadd.f32 %v5648_v10, %v5462_v17  ;;  %v4064_v20 = vpop.xlane.xlu0 %4063 }
 0x6de   : > { %v4134_v7 = vrot.slane %v4064_v20, 1  ;;  %v4698_v43 = vpop.xlane.xlu1 %4697 }
 0x6df   : > { %v7064_v56 = vpack.i.bf16 %v5709_v39, %v5708_v47  ;;  %v4772_v51 = vrot.slane %v4698_v43, 1 }
 0x6e0   : > { %v4135_v46 = vsel %vm4093_vm3, %v4133_v1, %v4134_v7 }
 0x6e1   : > { %v4312_v35 = vpop.xlane.xlu0 %4311  ;;  %7065 = vperm.xlu1 %7028, %v7064_v56   ;;  %v4190_v18 = vadd.f32 %v4135_v46, %v3911_v52 }
 0x6e2   : > { %v4382_v28 = vrot.slane %v4312_v35, 2  ;;  %v4550_v8 = vpop.xlane.xlu1 %4549 }
 0x6e4   : > { %v4383_v13 = vsel %vm4341_vm4, %v4381_v62, %v4382_v28 }
 0x6e5   : > { %v3914_v50 = vpop.xlane.xlu0 %3913  ;;  %7070 = vperm.xlu1 %7028, %v7069_v19   ;;  %v10241_v61 = vadd.f32 %v4383_v13, %v4190_v18  ;;  %v4128_v18 = vrot.slane %v10116_v14, 1 }
 0x6e6   : > { %v4191_v49 = vadd.f32 %v4134_v7, %v3914_v50  ;;  %v4944_v63 = vpop.xlane.xlu1 %4943  ;;  %v4127_v50 = vrot.slane %v10074_v24, 1 }
 0x6e7   : > { %v5018_v29 = vrot.slane %v4944_v63, 2 }
 0x6e8   : > { %v10243_v54 = vadd.f32 %v4382_v28, %v4191_v49  ;;  %v4376_v49 = vrot.slane %v10126_v57, 2 }
 0x6e9   : > { %v4701_v15 = vpop.xlane.xlu0 %4700 }
 0x6ea   : > { %v4773_v37 = vrot.slane %v4701_v15, 1  ;;  %v10245_v26 = vpop.xlane.xlu1 %5331 }
 0x6ec   : > { %v4774_v45 = vsel %vm4093_vm3, %v4772_v51, %v4773_v37  ;;  %v4187_v51 = vadd.f32 %v4128_v18, %v10135_v3  ;;  %v4581_v3 = vadd.f32 %v10153_v31, %v10203_v22 }
 0x6ed   : > { %v4553_v27 = vpop.xlane.xlu0 %4552 }
 0x6ee   : > { %v10248_v12 = vpop.xlane.xlu1 %5183  ;;  %v4435_v57 = vadd.f32 %v4376_v49, %v4187_v51 }
 0x6f1   : > { %v4947_v0 = vpop.xlane.xlu0 %4946 }
 0x6f2   : > { %v5019_v59 = vrot.slane %v4947_v0, 2  ;;  %v10250_v44 = vpop.xlane.xlu1 %5577 }
 0x6f4   : > { %v5020_v58 = vsel %vm4341_vm4, %v5018_v29, %v5019_v59  ;;  %v4375_v29 = vrot.slane %v10087_v25, 2 }
 0x6f5   : > { %v10253_v5 = vpop.xlane.xlu0 %5334 }
 0x6f6   : > { %v4055_v2 = vpop.xlane.xlu1 %4054  ;;  %v4377_v14 = vsel %vm4341_vm4, %v4375_v29, %v4376_v49 }
 0x6f7   : > { %v4130_v6 = vrot.slane %v4055_v2, 1  ;;  %v4129_v2 = vsel %vm4093_vm3, %v4127_v50, %v4128_v18 }
 0x6f8   : > { %v4186_v24 = vadd.f32 %v4129_v2, %v10103_v40  ;;  %v4766_v40 = vrot.slane %v10118_v48, 1  ;;  %v5410_v48 = vrot.slane %v10253_v5, 1 }
 0x6f9   : > { %v10255_v36 = vpop.xlane.xlu0 %5186 }
 0x6fa   : > { %v4303_v38 = vpop.xlane.xlu1 %4302 }
 0x6fb   : > { %v4378_v10 = vrot.slane %v4303_v38, 2 }
 0x6fd   : > { %v10257_v11 = vpop.xlane.xlu0 %5580 }
 0x6fe   : > { %v3905_v19 = vpop.xlane.xlu1 %3904  ;;  %v5656_v5 = vrot.slane %v10257_v11, 2 }
 0x701   : > { %v4058_v16 = vpop.xlane.xlu0 %4057 }
 0x702   : > { %v4131_v30 = vrot.slane %v4058_v16, 1  ;;  %v4692_v52 = vpop.xlane.xlu1 %4691 }
 0x704   : > { %v4132_v41 = vsel %vm4093_vm3, %v4130_v6, %v4131_v30 }
 0x705   : > { %v4306_v17 = vpop.xlane.xlu0 %4305  ;;  %v4188_v20 = vadd.f32 %v4132_v41, %v3905_v19 }
 0x706   : > { %v4379_v39 = vrot.slane %v4306_v17, 2  ;;  %v4544_v47 = vpop.xlane.xlu1 %4543 }
 0x708   : > { %v4380_v1 = vsel %vm4341_vm4, %v4378_v10, %v4379_v39 }
 0x709   : > { %v4436_v7 = vadd.f32 %v4380_v1, %v4188_v20  ;;  %v3908_v43 = vpop.xlane.xlu0 %3907 }
 0x70a   : > { %v4189_v56 = vadd.f32 %v4131_v30, %v3908_v43  ;;  %v4938_v46 = vpop.xlane.xlu1 %4937  ;;  %v4767_v30 = vrot.slane %v10144_v42, 1 }
 0x70b   : > { %v4584_v35 = vadd.f32 %v4550_v8, %v4436_v7  ;;  %v5013_v7 = vrot.slane %v10162_v23, 2  ;;  %v5409_v23 = vrot.slane %v10245_v26, 1 }
 0x70c   : > { %v4437_v62 = vadd.f32 %v4379_v39, %v4189_v56  ;;  %v4827_v31 = vadd.f32 %v4767_v30, %v4581_v3  ;;  %v4768_v42 = vsel %vm4093_vm3, %v4766_v40, %v4767_v30  ;;  %v5655_v3 = vrot.slane %v10250_v44, 2 }
 0x70d   : > { %v4695_v28 = vpop.xlane.xlu0 %4694  ;;  %v4830_v13 = vadd.f32 %v4774_v45, %v4584_v35  ;;  %v5012_v35 = vrot.slane %v10137_v53, 2  ;;  %v5411_v53 = vsel %vm4093_vm3, %v5409_v23, %v5410_v48 }
 0x70e   : > { %v4585_v63 = vadd.f32 %v4553_v27, %v4437_v62  ;;  %v5326_v15 = vpop.xlane.xlu1 %5325  ;;  %v4770_v19 = vrot.slane %v4695_v28, 1  ;;  %v4769_v27 = vrot.slane %v4692_v52, 1 }
 0x70f   : > { %v10265_v0 = vadd.f32 %v5020_v58, %v4830_v13  ;;  %v4434_v58 = vadd.f32 %v4377_v14, %v4186_v24  ;;  %v5406_v62 = vrot.slane %v5326_v15, 1  ;;  %v5014_v28 = vsel %vm4341_vm4, %v5012_v35, %v5013_v7 }
 0x710   : > { %v4831_v8 = vadd.f32 %v4773_v37, %v4585_v63  ;;  %v5015_v37 = vrot.slane %v4938_v46, 2  ;;  %v4771_v41 = vsel %vm4093_vm3, %v4769_v27, %v4770_v19 }
 0x711   : > { %v4547_v38 = vpop.xlane.xlu0 %4546  ;;  %v4582_v39 = vadd.f32 %v4544_v47, %v4434_v58 }
 0x712   : > { %v5178_v45 = vpop.xlane.xlu1 %5177  ;;  %v10270_v16 = vadd.f32 %v5019_v59, %v4831_v8  ;;  %v4583_v6 = vadd.f32 %v4547_v38, %v4435_v57  ;;  %v4580_v59 = vadd.f32 %v10128_v55, %v10200_v32  ;;  %v5073_v32 = vadd.f32 %v5013_v7, %v4827_v31 }
 0x713   : > { %v4828_v22 = vadd.f32 %v4771_v41, %v4582_v39 }
 0x714   : > { %v4829_v52 = vadd.f32 %v4770_v19, %v4583_v6  ;;  %v4826_v56 = vadd.f32 %v4768_v42, %v4580_v59 }
 0x715   : > { %v4941_v25 = vpop.xlane.xlu0 %4940 }
 0x716   : > { %v5016_v17 = vrot.slane %v4941_v25, 2  ;;  %v5572_v10 = vpop.xlane.xlu1 %5571  ;;  %v5072_v49 = vadd.f32 %v5014_v28, %v4826_v56  ;;  %v10543_v56 = vrot.slane %v10002_v60, 1 }
 0x717   : > { %v5652_v15 = vrot.slane %v5572_v10, 2 }
 0x718   : > { %v5017_v20 = vsel %vm4341_vm4, %v5015_v37, %v5016_v17  ;;  %v5075_v47 = vadd.f32 %v5016_v17, %v4829_v52  ;;  %v5220_v2 = vadd.f32 %v5178_v45, %v5072_v49  ;;  %v5657_v45 = vsel %vm4341_vm4, %v5655_v3, %v5656_v5 }
 0x719   : > { %v5329_v1 = vpop.xlane.xlu0 %5328  ;;  %v5074_v46 = vadd.f32 %v5017_v20, %v4828_v22 }
 0x71a   : > { %v10283_v43 = vpop.xlane.xlu1 %5343  ;;  %v5407_v55 = vrot.slane %v5329_v1, 1  ;;  %v5223_v51 = vadd.f32 %v10255_v36, %v5075_v47 }
 0x71b   : > { %v5222_v63 = vadd.f32 %v10248_v12, %v5074_v46 }
 0x71c   : > { %v5408_v29 = vsel %vm4093_vm3, %v5406_v62, %v5407_v55  ;;  %v5469_v57 = vadd.f32 %v5410_v48, %v5223_v51 }
 0x71d   : > { %v5181_v18 = vpop.xlane.xlu0 %5180  ;;  %v5468_v24 = vadd.f32 %v5411_v53, %v5222_v63  ;;  %v5466_v26 = vadd.f32 %v5408_v29, %v5220_v2 }
 0x71e   : > { %v5221_v13 = vadd.f32 %v5181_v18, %v5073_v32  ;;  %v4704_v50 = vpop.xlane.xlu1 %4703  ;;  %v5715_v25 = vadd.f32 %v5656_v5, %v5469_v57 }
 0x71f   : > { %v5714_v30 = vadd.f32 %v5657_v45, %v5468_v24 }
 0x720   : > { %v5467_v38 = vadd.f32 %v5407_v55, %v5221_v13  ;;  %v4775_v55 = vrot.slane %v4704_v50, 1 }
 0x721   : > { %v5575_v8 = vpop.xlane.xlu0 %5574  ;;  %v7079_v17 = vpack.i.bf16 %v5715_v25, %v5714_v30 }
 0x722   : > { %v5653_v14 = vrot.slane %v5575_v8, 2  ;;  %v4556_v19 = vpop.xlane.xlu1 %4555 }
 0x723   : > { %v4586_v60 = vadd.f32 %v4556_v19, %v10241_v61 }
 0x724   : > { %v5654_v12 = vsel %vm4341_vm4, %v5652_v15, %v5653_v14  ;;  %v5713_v36 = vadd.f32 %v5653_v14, %v5467_v38 }
 0x725   : > { %v5712_v27 = vadd.f32 %v5654_v12, %v5466_v26  ;;  %v10296_v58 = vpop.xlane.xlu0 %5346 }
 0x726   : > { %v4950_v6 = vpop.xlane.xlu1 %4949 }
 0x727   : > { %v7074_v11 = vpack.i.bf16 %v5713_v36, %v5712_v27  ;;  %v5021_v62 = vrot.slane %v4950_v6, 2 }
 0x729   : > { %v4707_v37 = vpop.xlane.xlu0 %4706  ;;  %7075 = vperm.xlu1 %7028, %v7074_v11   ;;  %v5415_v11 = vrot.slane %v10283_v43, 1  ;;  %v7441_v43 = vmov 0.0|0.0  }
 0x72a   : > { %v5338_v41 = vpop.xlane.xlu1 %5337  ;;  %v4776_v47 = vrot.slane %v4707_v37, 1  ;;  %6874 = vmatprep.subr.bf16.mxu0 %v7441_v43 }
 0x72d   : > { %v4559_v10 = vpop.xlane.xlu0 %4558  ;;  %7080 = vperm.xlu1 %7028, %v7079_v17  }
 0x72e   : > { %v5190_v39 = vpop.xlane.xlu1 %5189  ;;  %v4587_v13 = vadd.f32 %v4559_v10, %v10243_v54 }
 0x72f   : > { %v5224_v53 = vadd.f32 %v5190_v39, %v10265_v0  ;;  %v5416_v0 = vrot.slane %v10296_v58, 1 }
 0x731   : > { %v4953_v44 = vpop.xlane.xlu0 %4952  ;;  %v5417_v10 = vsel %vm4093_vm3, %v5415_v11, %v5416_v0 }
 0x732   : > { %v5160_v59 = vpop.xlane.xlu1 %5159  ;;  %v5022_v48 = vrot.slane %v4953_v44, 2 }
 0x733   : > { %v5214_v40 = vadd.f32 %v5160_v59, %v10085_v4  ;;  %v4777_v4 = vsel %vm4093_vm3, %v4775_v55, %v4776_v47 }
 0x734   : > { %v5023_v50 = vsel %vm4341_vm4, %v5021_v62, %v5022_v48  ;;  %v4832_v2 = vadd.f32 %v4777_v4, %v4586_v60 }
 0x735   : > { %v5460_v20 = vadd.f32 %v10013_v21, %v5214_v40  ;;  %v5341_v31 = vpop.xlane.xlu0 %5340  ;;  %v5412_v21 = vrot.slane %v5338_v41, 1 }
 0x736   : > { %v5196_v22 = vpop.xlane.xlu1 %5195  ;;  %v5413_v18 = vrot.slane %v5341_v31, 1  ;;  %v5078_v19 = vadd.f32 %v5023_v50, %v4832_v2 }
 0x738   : > { %v5414_v63 = vsel %vm4093_vm3, %v5412_v21, %v5413_v18  ;;  %v5226_v45 = vadd.f32 %v5196_v22, %v5078_v19  ;;  %vm5996_vm3 = vcmask 113664  }
 0x739   : > { %v5193_v52 = vpop.xlane.xlu0 %5192  ;;  %v5470_v61 = vadd.f32 %v5414_v63, %v5224_v53 }
 0x73a   : > { %v5548_v1 = vpop.xlane.xlu1 %5547  ;;  %v5225_v23 = vadd.f32 %v5193_v52, %v10270_v16  ;;  %v4833_v16 = vadd.f32 %v4776_v47, %v4587_v13  ;;  %v5472_v58 = vadd.f32 %v5417_v10, %v5226_v45  ;;  %v5720_v47 = vlaneseq }
 0x73b   : > { %v5640_v49 = vrot.slane %v5548_v1, 2 }
 0x73c   : > { %v5471_v15 = vadd.f32 %v5413_v18, %v5225_v23  ;;  %v5079_v57 = vadd.f32 %v5022_v48, %v4833_v16  ;;  %v10323_v55 = vand.u32 127, %v5720_v47  ;;  %v10327_v18 = vshrl.u32 %v5720_v47, 7 }
 0x73d   : > { %v5163_v7 = vpop.xlane.xlu0 %5162 }
 0x73e   : > { %v5215_v42 = vadd.f32 %v5163_v7, %v10083_v34  ;;  %v5584_v32 = vpop.xlane.xlu1 %5583  ;;  %v5852_v62 = vadd.s32 4294967288, %v10323_v55 }
 0x73f   : > { %v5658_v38 = vrot.slane %v5584_v32, 2 }
 0x740   : > { %v5461_v46 = vadd.f32 %v10543_v56, %v5215_v42  ;;  %v10335_v13 = vsub.s32 %v5852_v62, %v10327_v18  ;;  %v5729_v62 = vmul.u32 2, %v10323_v55 }
 0x741   : > { %v5199_v35 = vpop.xlane.xlu0 %5198 }
 0x742   : > { %v5554_v8 = vpop.xlane.xlu1 %5553  ;;  %v5227_v36 = vadd.f32 %v5199_v35, %v5079_v57  ;;  %vm5730_vm2 = vcmp.eq.s32.totalorder %v10327_v18, %v5729_v62 }
 0x743   : > { %v5643_v27 = vrot.slane %v5554_v8, 2 }
 0x744   : > { %v5473_v39 = vadd.f32 %v5416_v0, %v5227_v36 }
 0x745   : > { %v5551_v28 = vpop.xlane.xlu0 %5550 }
 0x746   : > { %v5641_v34 = vrot.slane %v5551_v28, 2  ;;  %v5590_v6 = vpop.xlane.xlu1 %5589  ;;  %v10332_v28 = vsub.s32 %v10323_v55, %v10327_v18 }
 0x747   : > { %v5661_v44 = vrot.slane %v5590_v6, 2 }
 0x748   : > { %v5642_v51 = vsel %vm4341_vm4, %v5640_v49, %v5641_v34  ;;  %v5705_v29 = vadd.f32 %v5641_v34, %v10111_v9 }
 0x749   : > { %v5704_v54 = vadd.f32 %v5642_v51, %v10100_v33  ;;  %v5587_v5 = vpop.xlane.xlu0 %5586 }
 0x74a   : > { %v5659_v14 = vrot.slane %v5587_v5, 2  ;;  %v7031_v7 = vpop.permute.xlu1 %7030 }
 0x74b   : > { %v7054_v24 = vpack.i.bf16 %v5705_v29, %v5704_v54  ;;  %v7033_v23 = vunpack.i.h.bf16 %v7031_v7  ;;  %v7032_v49 = vunpack.i.l.bf16 %v7031_v7 }
 0x74c   : > { %v5660_v26 = vsel %vm4341_vm4, %v5658_v38, %v5659_v14  ;;  %v5717_v3 = vadd.f32 %v5659_v14, %v5471_v15 }
 0x74d   : > { %v5716_v12 = vadd.f32 %v5660_v26, %v5470_v61  ;;  %v5557_v9 = vpop.xlane.xlu0 %5556  ;;  %7055 = vperm.xlu0 %7022, %v7054_v24   ;;  %v5856_v29 = vrot.slane %v7033_v23, %v10335_v13  ;;  %v5851_v53 = vrot.slane %v7032_v49, %v10332_v28 }
 0x74e   : > { %v5644_v33 = vrot.slane %v5557_v9, 2  ;;  %v7036_v42 = vpop.permute.xlu1 %7035 }
 0x74f   : > { %v7084_v25 = vpack.i.bf16 %v5717_v3, %v5716_v12  ;;  %v7038_v50 = vunpack.i.h.bf16 %v7036_v42  ;;  %v7037_v51 = vunpack.i.l.bf16 %v7036_v42  ;;  %v5858_v61 = vsel %vm5857_vm6, %v5856_v29, %v5851_v53 }
 0x750   : > { %v5645_v30 = vsel %vm4341_vm4, %v5643_v27, %v5644_v33  ;;  %v5707_v37 = vadd.f32 %v5644_v33, %v5461_v46 }
 0x751   : > { %v5706_v41 = vadd.f32 %v5645_v30, %v5460_v20  ;;  %v5593_v17 = vpop.xlane.xlu0 %5592  ;;  %7085 = vperm.xlu1 %7028, %v7084_v25   ;;  %v10544_v20 = vmov 0.0   ;;  %v5875_v38 = vrot.slane %v7038_v50, %v10335_v13  ;;  %v5871_v14 = vrot.slane %v7037_v51, %v10332_v28 }
 0x752   : > { %v5662_v59 = vrot.slane %v5593_v17, 2  ;;  %6864 = vmatprep.mubr.msk.f32.mxu0 %vm7442_vm5, %v10544_v20  ;;  %v7041_v56 = vpop.permute.xlu1 %7040 }
 0x753   : > { %v7059_v40 = vpack.i.bf16 %v5707_v37, %v5706_v41  ;;  %v7043_v2 = vunpack.i.h.bf16 %v7041_v56  ;;  %v7042_v8 = vunpack.i.l.bf16 %v7041_v56  ;;  %v5876_v0 = vsel %vm5857_vm6, %v5875_v38, %v5871_v14 }
 0x754   : > { %v5663_v31 = vsel %vm4341_vm4, %v5661_v44, %v5662_v59  ;;  %v5719_v22 = vadd.f32 %v5662_v59, %v5473_v39 }
 0x755   : > { %v5718_v52 = vadd.f32 %v5663_v31, %v5472_v58  ;;  %7060 = vperm.xlu0 %7022, %v7059_v40   ;;  %v5884_v19 = vrot.slane %v7043_v2, %v10335_v13  ;;  %v5880_v24 = vrot.slane %v7042_v8, %v10332_v28 }
 0x756   : > { %v7046_v46 = vpop.permute.xlu1 %7045 }
 0x757   : > { %v7089_v1 = vpack.i.bf16 %v5719_v22, %v5718_v52  ;;  %v7048_v5 = vunpack.i.h.bf16 %v7046_v46  ;;  %v7047_v16 = vunpack.i.l.bf16 %v7046_v46  ;;  %v5885_v27 = vsel %vm5857_vm6, %v5884_v19, %v5880_v24 }
 0x759   : > { %7090 = vperm.xlu1 %7028, %v7089_v1   ;;  %v7025_v48 = vpop.permute.xlu0 %7024  ;;  %v5893_v26 = vrot.slane %v7048_v5, %v10335_v13  ;;  %v5889_v3 = vrot.slane %v7047_v16, %v10332_v28  ;;  %v5724_v16 = vmul.u32 2, %v10327_v18 }
 0x75a   : > { %v7051_v35 = vpop.permute.xlu1 %7050  ;;  %v7027_v4 = vunpack.i.h.bf16 %v7025_v48  ;;  %v7026_v21 = vunpack.i.l.bf16 %v7025_v48  ;;  %v5728_v48 = vadd.s32 8, %v10327_v18  ;;  %v6073_v18 = vstv %s6072_s12  ;;  %s6504_s12 = sld [smem:[#allocation21 + $0x80]] }
 0x75b   : > { %v7053_v12 = vunpack.i.h.bf16 %v7051_v35  ;;  %v7052_v36 = vunpack.i.l.bf16 %v7051_v35  ;;  %v5894_v37 = vsel %vm5857_vm6, %v5893_v26, %v5889_v3  ;;  %vm5725_vm15 = vcmp.eq.s32.totalorder %v10323_v55, %v5724_v16 }
 0x75c   : > { %v5866_v60 = vrot.slane %v7027_v4, %v10335_v13  ;;  %v5862_v63 = vrot.slane %v7026_v21, %v10332_v28  ;;  %vm10385_vm14 = vcmp.eq.s32.totalorder %v5728_v48, %v5729_v62 }
 0x75d   : > { %v5902_v41 = vrot.slane %v7053_v12, %v10335_v13  ;;  %v5898_v44 = vrot.slane %v7052_v36, %v10332_v28 }
 0x75e   : > { %v5867_v15 = vsel %vm5857_vm6, %v5866_v60, %v5862_v63 }
 0x75f   : > { %v5977_v57 = vsel %vm5976_vm7, %v5867_v15, %v5858_v61  ;;  %v5903_v51 = vsel %vm5857_vm6, %v5902_v41, %v5898_v44 }
 0x760   : > { %v10325_v32 = vpop.permute.xlu1 %7065  ;;  %v5979_v33 = vsel %vm5978_vm8, %v5876_v0, %v5977_v57 }
 0x761   : > { %v7068_v45 = vunpack.i.h.bf16 %v10325_v32  ;;  %v7067_v6 = vunpack.i.l.bf16 %v10325_v32  ;;  %v5981_v59 = vsel %vm5980_vm9, %v5885_v27, %v5979_v33 }
 0x762   : > { %v5983_v8 = vsel %vm5982_vm10, %v5894_v37, %v5981_v59  ;;  %v7444_v37 = vmov 1.0  }
 0x763   : > { %v5929_v7 = vrot.slane %v7068_v45, %v10335_v13  ;;  %v5925_v42 = vrot.slane %v7067_v6, %v10332_v28  ;;  %v5985_v36 = vsel %vm5984_vm11, %v5903_v51, %v5983_v8 }
 0x764   : > { %v7071_v34 = vpop.permute.xlu1 %7070 }
 0x765   : > { %v7073_v25 = vunpack.i.h.bf16 %v7071_v34  ;;  %v7072_v11 = vunpack.i.l.bf16 %v7071_v34  ;;  %v5930_v15 = vsel %vm5857_vm6, %v5929_v7, %v5925_v42 }
 0x767   : > { %v5938_v56 = vrot.slane %v7073_v25, %v10335_v13  ;;  %v5934_v46 = vrot.slane %v7072_v11, %v10332_v28 }
 0x769   : > { %v5939_v29 = vsel %vm5857_vm6, %v5938_v56, %v5934_v46  ;;  %v6215_v46 = vstv %s6505_s11  ;;  %s6242_s11 = scalar_lea.sflag [#allocation11], %s7759_s26 }
 0x76a   : > { %v5990_v19 = vsel %vm5976_vm7, %v5939_v29, %v5930_v15  ;;  %vm6151_vm7 = vcmask 72704  }
 0x76b   : > { %6152 = vst.msk [vmem:[#allocation6] sm:$0xff] %vm6151_vm7, %v10544_v20 }
 0x7a8   : > { %v7076_v54 = vpop.permute.xlu1 %7075 }
 0x7a9   : > { %v7078_v17 = vunpack.i.h.bf16 %v7076_v54  ;;  %v7077_v10 = vunpack.i.l.bf16 %v7076_v54 }
 0x7ab   : > { %v5947_v47 = vrot.slane %v7078_v17, %v10335_v13  ;;  %v5943_v35 = vrot.slane %v7077_v10, %v10332_v28 }
 0x7ac   : > { %v7081_v9 = vpop.permute.xlu1 %7080 }
 0x7ad   : > { %v7083_v58 = vunpack.i.h.bf16 %v7081_v9  ;;  %v7082_v40 = vunpack.i.l.bf16 %v7081_v9  ;;  %v5948_v54 = vsel %vm5857_vm6, %v5947_v47, %v5943_v35 }
 0x7ae   : > { %v5991_v3 = vsel %vm5978_vm8, %v5948_v54, %v5990_v19  ;;  %vm6153_vm8 = vcmask 65536  }
 0x7af   : > { %v5956_v4 = vrot.slane %v7083_v58, %v10335_v13  ;;  %v5952_v21 = vrot.slane %v7082_v40, %v10332_v28  ;;  %6154 = vst.msk [vmem:[#allocation6 + $0x8] sm:$0x1] %vm6153_vm8, %v10544_v20  ;;  %v6180_v58 = vstv %s6500_s22  ;;  %v6197_v40 = vstv %s6501_s18  ;;  %s6515_s18 = sshll.u32 %s7526_s17, 9  ;;  %s7447_s17 = smov [#allocation22]  }
 0x7b1   : > { %v5957_v38 = vsel %vm5857_vm6, %v5956_v4, %v5952_v21 }
 0x7b2   : > { %v5992_v27 = vsel %vm5980_vm9, %v5957_v38, %v5991_v3 }
 0x7cc   : > { %v7056_v30 = vpop.permute.xlu0 %7055 }
 0x7cd   : > { %v7058_v31 = vunpack.i.h.bf16 %v7056_v30  ;;  %v7057_v22 = vunpack.i.l.bf16 %v7056_v30  ;;  %v6490_v30 = vsel %vm5725_vm15, 1.0, %v10544_v20 }
 0x7cf   : > { %v5911_v34 = vrot.slane %v7058_v31, %v10335_v13  ;;  %v5907_v60 = vrot.slane %v7057_v22, %v10332_v28  ;;  %v6200_v31 = vstv %s6502_s6  ;;  %v6165_v22 = vstv %s6164_s28 }
 0x7d0   : > { %v7086_v39 = vpop.permute.xlu1 %7085 }
 0x7d1   : > { %v7088_v52 = vunpack.i.h.bf16 %v7086_v39  ;;  %v7087_v1 = vunpack.i.l.bf16 %v7086_v39  ;;  %v5912_v24 = vsel %vm5857_vm6, %v5911_v34, %v5907_v60 }
 0x7d2   : > { %v5987_v33 = vsel %vm5986_vm12, %v5912_v24, %v5985_v36 }
 0x7d3   : > { %v5965_v63 = vrot.slane %v7088_v52, %v10335_v13  ;;  %v5961_v50 = vrot.slane %v7087_v1, %v10332_v28  ;;  %v6168_v52 = vstv %s6498_s29  ;;  %s10427_s29 = scalar_lea.hbm %s10482_s9, %s6515_s18 }
 0x7d4   : > { %v7061_v32 = vpop.permute.xlu0 %7060 }
 0x7d5   : > { %v7063_v23 = vunpack.i.h.bf16 %v7061_v32  ;;  %v7062_v49 = vunpack.i.l.bf16 %v7061_v32  ;;  %v5966_v57 = vsel %vm5857_vm6, %v5965_v63, %v5961_v50  ;;  %v6231_v32 = vstv %s6507_s24 }
 0x7d6   : > { %v5993_v45 = vsel %vm5982_vm10, %v5966_v57, %v5992_v27 }
 0x7d7   : > { %v5920_v53 = vrot.slane %v7063_v23, %v10335_v13  ;;  %v5916_v2 = vrot.slane %v7062_v49, %v10332_v28  ;;  %v6187_v49 = vstv %s6163_s25  ;;  %s7337_s25 = sshll.u32 %s7447_s17, 4  ;;  %s7338_s25 = int_to_ptr.vmem [resolvable:$false] %s7337_s25 }
 0x7d8   : > { %v7091_v5 = vpop.permute.xlu1 %7090 }
 0x7d9   : > { %v7093_v14 = vunpack.i.h.bf16 %v7091_v5  ;;  %v7092_v61 = vunpack.i.l.bf16 %v7091_v5  ;;  %v5921_v12 = vsel %vm5857_vm6, %v5920_v53, %v5916_v2  ;;  %v6212_v53 = vstv %s6504_s12 }
 0x7da   : > { %v5989_v25 = vsel %vm5988_vm13, %v5921_v12, %v5987_v33 }
 0x7db   : > { %v5974_v9 = vrot.slane %v7093_v14, %v10335_v13  ;;  %v5970_v0 = vrot.slane %v7092_v61, %v10332_v28  ;;  %v6492_v28 = vsel %vm10385_vm14, 1.0, %v10544_v20 }
 0x7dc   : > { %v6879_v55 = vpack.c.bf16 %v6492_v28, %v7444_v37 }
 0x7dd   : > { %v5975_v6 = vsel %vm5857_vm6, %v5974_v9, %v5970_v0  ;;  %vm6880_vm6 = vmpackc.low %vm4341_vm4, %vm5730_vm2  ;;  %vm6159_vm4 = vcmask 63496  }
 0x7de   : > { %v5994_v11 = vsel %vm5984_vm11, %v5975_v6, %v5993_v45 }
 0x7df   : > { %v6875_v13 = vpack.c.bf16 %v5994_v11, %v5989_v25 }
 0x7e1   : > { %6877 = vmatpush3.bf16.msk.msra.mxu0 %vm6876_vm1, %v6875_v13 }
 0x7e2   : > { %6878 = vmatprep.subr.bf16.mxu0 %v7441_v43 }
 0x7e4   : > { %6865 = vmatmul.mubr.msk.f32.vlgmr.msra.gmra.mrb[100].mxu0 %vm5996_vm3, %v6490_v30 }
 0x7e5   : > { %6881 = vmatpush3.bf16.msk.msra.mxu0 %vm6880_vm6, %v6879_v55  ;;  %6871 = vmatprep.mubr.msk.f32.mxu0 %vm7442_vm5, %v10544_v20  ;;  %v6172_v20 = vstv %s6499_s10  ;;  %s6408_s10 = sshll.u32 %s7759_s26, 5  ;;  %vm6194_vm5 = vcmask 64512  }
 0x8b7   : > { %v6068_v41 = vpop.f32.mrb[100].mxu0 }
 0x8b8   : > { %6872 = vmatmul.mubr.msk.f32.vlgmr.msra.gmra.mrb[102].mxu0 %vm5996_vm3, %v6068_v41  ;;  %v6866_v17 = vpop.f32.mrb[101].mxu0 }
 0x98b   : > { %v6146_v10 = vpop.f32.mrb[102].mxu0 }
 0x98c   : > { %v6147_v43 = vadd.f32 %v6146_v10, %v6073_v18  ;;  %v6873_v39 = vpop.f32.mrb[103].mxu0 }
 0x98e   : > { %v6150_v44 = vmax.f32 %v6147_v43, 0.0 }
 0x990   : > { %6156 = vrot.lane.b32.xlu0 %v6150_v44, %s7445_s27 }
 0xa02   : > { %v6157_v59 = vpop.permute.xlu0 %6156 }
 0xa03   : > { %6160 = vst.msk [vmem:[#allocation6 + $0x1] sm:$0x7f] %vm6159_vm4, %v6157_v59 }
 0xa0a   : > { %v6161_v1 = vld [vmem:[#allocation6 + $0x1] sm:$0xff] }
 0xa0b   : > { %v6162_v7 = vld [vmem:[#allocation6] sm:$0xff]  ;;  %v6173_v42 = vmul.f32 %v6172_v20, %v6161_v1  ;;  %v6198_v47 = vmul.f32 %v6197_v40, %v6161_v1  ;;  %v6166_v62 = vmul.f32 %v6165_v22, %v6161_v1  ;;  %v6216_v23 = vmul.f32 %v6215_v46, %v6161_v1 }
 0xa0c   : > { %v6181_v56 = vmul.f32 %v6180_v58, %v6162_v7  ;;  %v6201_v35 = vmul.f32 %v6200_v31, %v6162_v7  ;;  %v6169_v48 = vmul.f32 %v6168_v52, %v6162_v7  ;;  %v6232_v34 = vmul.f32 %v6231_v32, %v6161_v1 }
 0xa0d   : > { %6175 = vrot.lane.b32.xlu1 %v6173_v42, %s7445_s27  ;;  %v6213_v5 = vmul.f32 %v6212_v53, %v6161_v1 }
 0xa0e   : > { %6183 = vrot.lane.b32.xlu0 %v6181_v56, %s7445_s27  ;;  %v6202_v4 = vadd.f32 %v6201_v35, %v6198_v47  ;;  %v6170_v21 = vadd.f32 %v6169_v48, %v6166_v62  ;;  %v6233_v50 = vadd.f32 %v6232_v34, %v6187_v49 }
 0xa10   : > { %v6203_v60 = vadd.f32 %v6202_v4, %v6187_v49  ;;  %v6234_v51 = vmax.f32 %v6233_v50, 0.0 }
 0xa11   : > { %6218 = vrot.lane.b32.xlu1 %v6216_v23, %s7445_s27  ;;  %s433_s27 = scalar_lea.vmem [#allocation22], %s6408_s10 }
 0xa12   : > { %v6204_v63 = vmax.f32 %v6203_v60, 0.0  ;;  %s6255_s22 = sshll.u32 %s433_s27, 4  ;;  %s10422_s22 = int_to_ptr.vmem [resolvable:$true] %s6255_s22 }
 0xa13   : > { %s7333_s24 = scalar_lea.vmem %s10422_s22, 512  ;;  %p7340_p10 = scmp.lt.s32.totalorder %s10422_s22, %s7338_s25 }
 0xa14   : > { %p7334_p2 = scmp.ne.s32.totalorder %s10422_s22, %s7333_s24 }
 0xa15   : > { %6206 = vrot.lane.b32.xlu1 %v6204_v63, %s7446_s20 }
 0xa16   : > { %p7335_p9 = pnand %p7334_p2, %p10547_p5 }
 0xa18   : > { %p7336_p4 = pneg %p7335_p9 }
 0xa19   : > { %6236 = vrot.lane.b32.xlu1 %v6234_v51, %s7446_s20 }
 0xa7f   : > { %v6176_v29 = vpop.permute.xlu1 %6175 }
 0xa80   : > { %v6178_v2 = vadd.f32 %v6176_v29, %v6170_v21  ;;  %v6184_v8 = vpop.permute.xlu0 %6183 }
 0xa82   : > { %v6186_v54 = vadd.f32 %v6184_v8, %v6178_v2 }
 0xa83   : > { %v6219_v16 = vpop.permute.xlu1 %6218 }
 0xa84   : > { %v6188_v15 = vadd.f32 %v6187_v49, %v6186_v54  ;;  %v6221_v38 = vadd.f32 %v6219_v16, %v6213_v5 }
 0xa86   : > { %v6189_v14 = vmax.f32 %v6188_v15, 0.0  ;;  %v6222_v61 = vadd.f32 %v6221_v38, %v6187_v49 }
 0xa87   : > { %v6207_v19 = vpop.permute.xlu1 %6206 }
 0xa88   : > { %6503 = vst.msk [vmem:[%s433_s27 + $0x8] sm:$0xff] %vm6194_vm5, %v6207_v19  ;;  %6191 = vrot.lane.b32.xlu0 %v6189_v14, %s7446_s20  ;;  %v6223_v24 = vmax.f32 %v6222_v61, 0.0 }
 0xa8b   : > { %v6237_v57 = vpop.permute.xlu1 %6236 }
 0xa8c   : > { %6508 = vst.msk [vmem:[%s433_s27 + $0x18] sm:$0xff] %vm6194_vm5, %v6237_v57  ;;  %6225 = vrot.lane.b32.xlu0 %v6223_v24, %s7446_s20  ;;  %s7339_s20 = scalar_lea.vmem %s7338_s25, 1024 }
 0xa8d   : > { %p7341_p8 = scmp.lt.s32.totalorder %s7339_s20, %s7333_s24 }
 0xa8f   : > { %p7342_p0 = por %p7341_p8, %p7340_p10 }
 0xa91   : > { %p7343_p1 = pnand %p7342_p0, %p7336_p4 }
 0xafa   : > { %v6192_v26 = vpop.permute.xlu0 %6191 }
 0xafb   : > { %6195 = vst.msk [vmem:[%s433_s27] sm:$0xff] %vm6194_vm5, %v6192_v26 }
 0xafe   : > { %v6226_v3 = vpop.permute.xlu0 %6225 }
 0xaff   : > { %6506 = vst.msk [vmem:[%s433_s27 + $0x10] sm:$0xff] %vm6194_vm5, %v6226_v3 }
 0xb00   : > { %7346 = shalt.err (!%p7343_p1)
}
 0xb01   : > { %s7347_s12 = scalar_lea.hbm %s10427_s29, 512  ;;  %s7351_s18 = scalar_lea.hbm %s10482_s9, 1024 }
 0xb02   : > { %p7348_p3 = scmp.ne.s32.totalorder %s10427_s29, %s7347_s12  ;;  %p7352_p12 = scmp.lt.u32.totalorder %s10427_s29, %s10482_s9 }
 0xb03   : > { %p7353_p6 = scmp.lt.u32.totalorder %s7351_s18, %s7347_s12  ;;  %p7355_p2 = scmp.lt.u32.totalorder %s7347_s12, %s10427_s29 }
 0xb04   : > { %p7349_p7 = pnand %p7348_p3, %p10547_p5 }
 0xb05   : > { %p7354_p13 = por %p7353_p6, %p7352_p12 }
 0xb06   : > { %p7350_p11 = pneg %p7349_p7 }
 0xb07   : > { %p7356_p9 = por %p7355_p2, %p7354_p13 }
 0xb09   : > { %p7357_p4 = pnand %p7356_p9, %p7350_p11 }
 0xb0b   : > { %7360 = shalt.err (!%p7357_p4)
}
 0xb0c   : > { %s7448_s24 = smov 128  }
 0xb0d   : > { %6917 = dma.vmem_to_hbm [thread:$0]  (%p10547_p5), %s10422_s22, 512, %s10427_s29, %s6242_s11, %s7448_s24, %s7448_s24, %s7434_s30  }
 0xb0e PF: > { %s6270_s17 = sand.u32 1, %s7403_s13   ;;  %p10548_p10 = scmp.ne.s32.totalorder %s10504_s19, 0 }
 0xb0f   : > { %p10549_p8 = scmp.ge.s32.totalorder %s7415_s16, 2  ;;  %s6271_s25 = scalar_lea.sflag [#allocation11], %s6270_s17 }
 0xb11   : > { %p6943_p0 = pnand %p10549_p8, %p10548_p10 }
 0xb13   : > { %7398 = dma.done.wait (!%p6943_p0), %s6271_s25, 512  }
 0xb14   : > { %7400 = vsyncadd (!%p6943_p0), %s6271_s25, 4294966784  ;;  %p28_p1 = scmp.ge.s32.totalorder %s7680_s21, 4   ;;  %s10550_s13 = smov %s7407_s14 }
 0xb15   : > { %s10551_s14 = smov %s7411_s15  ;;  %s10552_s15 = smov %s7691_s23 }
 0xb16   : > { %s10553_s16 = smov %s7680_s21  ;;  %30 = sbr.rel (!%p28_p1) target bundleno = 12 (0xc), region = 141 }
 0xb1d   :  { %6276 = vsyncpa [#allocation10], 1 }
 0xb1e   :  { %6278 = vsyncpa [#allocation10 + $0x1], 1 }
 0xb1f   :  { %6279 = vsyncpa [#allocation14], 1 }
 0xb20   :  { %6280 = vsyncpa [#allocation17], 1 }
 0xb21   :  { %6281 = vsyncpa [#allocation20], 1 }
 0xb22   :  { %6282 = vsyncpa [#allocation11], 1 }
 0xb23   :  { %6284 = vsyncpa [#allocation11 + $0x1], 1 }
 0xb24   :  { %6285 = vsyncpa [#allocation12], 1 }
 0xb25   :  { %6287 = vsyncpa [#allocation12 + $0x1], 1 }

</bundles_post_ra>
